<compile_context>
chip_gen: v7x
topology: tpu7x:2x2x1
jax: 0.10.0
libtpu: 0.0.40
codegen_flags: <defaults>
</compile_context>

<pallas_src>
import numpy as np
import jax
import jax.numpy as jnp
from jax import lax
from jax.experimental import pallas as pl
from jax.experimental.pallas import tpu as pltpu


_PALLAS_MIN_ROWS = 64        # spatial volumes below 4^3 go to XLA (per review)


# ----------------------------------------------------------------------------
# Pallas kernel: one K-dense matmul + fused scale/shift (+ per-channel ReLU).
# Operands bf16, accumulation f32, output bf16.
# ----------------------------------------------------------------------------
def _conv_mm_kernel(x_ref, w_ref, sc_ref, sh_ref, rm_ref, o_ref):
    # x_ref: (1, S, K) bf16     w_ref: (K, Cout) bf16
    # sc_ref/sh_ref/rm_ref: (1, Cout) f32 (BN scale, bias/BN shift, relu mask)
    # o_ref: (1, S, Cout) bf16
    acc = jnp.dot(x_ref[0], w_ref[...], preferred_element_type=jnp.float32)
    y = acc * sc_ref[...] + sh_ref[...]
    y = jnp.where(rm_ref[...] > 0.0, jnp.maximum(y, 0.0), y)
    o_ref[0] = y.astype(o_ref.dtype)


def _pallas_mm(xcol, w, scale, shift, rmask):
    """xcol: (N, S, K) bf16; w: (K, Cout) bf16; scale/shift/rmask: (1, Cout) f32."""
    N, S, K = xcol.shape
    Cout = w.shape[1]
    cost = pl.CostEstimate(
        flops=2 * N * S * K * Cout,
        transcendentals=0,
        bytes_accessed=(xcol.size * 2 + w.size * 2 + N * S * Cout * 2
                        + (scale.size + shift.size + rmask.size) * 4))
    return pl.pallas_call(
        _conv_mm_kernel,
        out_shape=jax.ShapeDtypeStruct((N, S, Cout), jnp.bfloat16),
        grid=(N,),
        in_specs=[
            pl.BlockSpec((1, S, K), lambda n: (n, 0, 0)),
            pl.BlockSpec((K, Cout), lambda n: (0, 0)),
            pl.BlockSpec((1, Cout), lambda n: (0, 0)),
            pl.BlockSpec((1, Cout), lambda n: (0, 0)),
            pl.BlockSpec((1, Cout), lambda n: (0, 0)),
        ],
        out_specs=pl.BlockSpec((1, S, Cout), lambda n: (n, 0, 0)),
        compiler_params=pltpu.CompilerParams(
            dimension_semantics=("parallel",)),
        cost_estimate=cost,
    )(xcol, w, scale, shift, rmask)


# ----------------------------------------------------------------------------
# 3x3x3 conv wrappers (stride 1, padding 1), NDHWC.
# ----------------------------------------------------------------------------
def _im2col(x):
    """(N, D, H, W, C) -> (N, D*H*W, 27*C) bf16, valid output rows only."""
    N, D, H, W, C = x.shape
    xp = jnp.pad(x.astype(jnp.bfloat16),
                 ((0, 0), (1, 1), (1, 1), (1, 1), (0, 0)))
    cols = [xp[:, kd:kd + D, kh:kh + H, kw:kw + W, :]
            for kd in range(3) for kh in range(3) for kw in range(3)]
    return jnp.concatenate(cols, axis=-1).reshape(N, D * H * W, 27 * C)


def _relu_mask(cout, relu):
    return jnp.full((1, cout), 1.0 if relu else 0.0, jnp.float32)


def _conv3x3_xla(x, p, relu):
    """Small-volume / Cout=1 path: plain XLA conv (per perf review)."""
    K, Cout = p['w'].shape
    cin = K // 27
    w = p['w'].astype(jnp.float32).reshape(3, 3, 3, cin, Cout)
    y = lax.conv_general_dilated(
        x.astype(jnp.float32), w, window_strides=(1, 1, 1), padding='SAME',
        dimension_numbers=('NDHWC', 'DHWIO', 'NDHWC'))
    y = y * p['scale'].reshape(-1) + p['shift'].reshape(-1)
    return jnp.maximum(y, 0.0) if relu else y


def conv3x3(x, p, *, relu):
    """3x3x3 conv + fused scale/shift (+ReLU). Pallas for large enough work."""
    N, D, H, W, _ = x.shape
    S = D * H * W
    Cout = p['w'].shape[1]
    if S < _PALLAS_MIN_ROWS or Cout < 16:
        return _conv3x3_xla(x, p, relu)
    xcol = _im2col(x)
    y = _pallas_mm(xcol, p['w'], p['scale'], p['shift'], _relu_mask(Cout, relu))
    return y.reshape(N, D, H, W, Cout)


def multi_conv3x3(xs, ps, relus):
    """Fuse several same-spatial-size 3x3x3 convs into ONE pallas_call via a
    block-diagonal weight (lane-dense Cout, one K-mega-dense dot)."""
    N, D, H, W, _ = xs[0].shape
    S = D * H * W
    couts = [p['w'].shape[1] for p in ps]
    if S < _PALLAS_MIN_ROWS:
        return [_conv3x3_xla(x, p, r) for x, p, r in zip(xs, ps, relus)]
    xcol = jnp.concatenate([_im2col(x) for x in xs], axis=-1)   # (N, S, sum K)
    ktot, ctot = sum(p['w'].shape[0] for p in ps), sum(couts)
    wblk = jnp.zeros((ktot, ctot), jnp.bfloat16)
    ko = co = 0
    for p in ps:
        k, c = p['w'].shape
        wblk = wblk.at[ko:ko + k, co:co + c].set(p['w'])        # constant-folds
        ko += k
        co += c
    scale = jnp.concatenate([p['scale'] for p in ps], axis=-1)
    shift = jnp.concatenate([p['shift'] for p in ps], axis=-1)
    rmask = jnp.concatenate([_relu_mask(c, r) for c, r in zip(couts, relus)],
                            axis=-1)
    y = _pallas_mm(xcol, wblk, scale, shift, rmask)             # (N, S, ctot)
    outs, co = [], 0
    for c in couts:
        outs.append(y[..., co:co + c].reshape(N, D, H, W, c))
        co += c
    return outs


# ----------------------------------------------------------------------------
# Pooling / upsampling glue (NDHWC)
# ----------------------------------------------------------------------------
def maxpool3d(x, k):
    N, D, H, W, C = x.shape
    return x.reshape(N, D // k, k, H // k, k, W // k, k, C).max(axis=(2, 4, 6))


def _interp_matrix(n_in, n_out):
    # trilinear, align_corners=False (PyTorch nn.Upsample default)
    scale = n_in / n_out
    o = np.arange(n_out)
    src = np.maximum((o + 0.5) * scale - 0.5, 0.0)
    i0 = np.minimum(np.floor(src).astype(np.int64), n_in - 1)
    i1 = np.minimum(i0 + 1, n_in - 1)
    w1 = src - np.floor(src)
    A = np.zeros((n_out, n_in), np.float32)
    np.add.at(A, (np.arange(n_out), i0), 1.0 - w1)
    np.add.at(A, (np.arange(n_out), i1), w1)
    return jnp.asarray(A)


def upsample_trilinear(x, s):
    N, D, H, W, C = x.shape
    Ad, Ah, Aw = _interp_matrix(D, D * s), _interp_matrix(H, H * s), _interp_matrix(W, W * s)
    y = jnp.einsum('od,ndhwc->nohwc', Ad, x)
    y = jnp.einsum('ph,ndhwc->ndpwc', Ah, y)
    y = jnp.einsum('qw,ndhwc->ndhqc', Aw, y)
    return y


# ----------------------------------------------------------------------------
# CBAM block (reconstruction, see TODO(synk) at top of file)
# ----------------------------------------------------------------------------
def cbam_post(y, p):
    """Apply channel + spatial attention to the downsample-conv output y."""
    yf = y.astype(jnp.float32)
    avg = jnp.mean(yf, axis=(1, 2, 3))
    mx = jnp.max(yf, axis=(1, 2, 3))

    def mlp(v):
        return jnp.maximum(v @ p['ca_w1'], 0.0) @ p['ca_w2']

    ca = jax.nn.sigmoid(mlp(avg) + mlp(mx))[:, None, None, None, :]
    yf = yf * ca
    sa_in = jnp.concatenate([jnp.mean(yf, axis=-1, keepdims=True),
                             jnp.max(yf, axis=-1, keepdims=True)], axis=-1)
    sa = jax.nn.sigmoid(conv3x3(sa_in, p['sa'], relu=False))   # Cout=1 -> XLA
    return yf * sa


# ----------------------------------------------------------------------------
# Parameter init (deterministic, synthetic).  Conv weights pre-reshaped to
# (27*Cin, Cout) bf16; BN scale kept as a separate f32 epilogue multiply.
# ----------------------------------------------------------------------------
class ParamGen:
    def __init__(self, seed=0):
        self.key = jax.random.PRNGKey(seed)

    def next(self):
        self.key, k = jax.random.split(self.key)
        return k


def make_conv(pg, cin, cout, *, bn, eps=1e-5):
    w = jax.random.normal(pg.next(), (cout, cin, 3, 3, 3), jnp.float32) * 0.05
    b = jnp.zeros((cout,), jnp.float32)
    if bn:   # eval-mode BatchNorm: gamma=1, beta=0, mean=0, var=1 (synthetic)
        gamma = jnp.ones((cout,), jnp.float32)
        beta = jnp.zeros((cout,), jnp.float32)
        mean = jnp.zeros((cout,), jnp.float32)
        var = jnp.ones((cout,), jnp.float32)
        scale = gamma / jnp.sqrt(var + eps)
        shift = (b - mean) * scale + beta
    else:
        scale = jnp.ones((cout,), jnp.float32)
        shift = b
    wt = jnp.transpose(w, (2, 3, 4, 1, 0)).reshape(27 * cin, cout)
    return {'w': wt.astype(jnp.bfloat16),
            'scale': scale.reshape(1, cout),
            'shift': shift.reshape(1, cout)}


def cbam_params(pg, cin, cat):
    ds = make_conv(pg, cin, cat, bn=False)           # downsample conv (bias only)
    hidden = max(cat // 8, 1)
    ca_w1 = jax.random.normal(pg.next(), (cat, hidden), jnp.float32) * 0.1
    ca_w2 = jax.random.normal(pg.next(), (hidden, cat), jnp.float32) * 0.1
    sa = make_conv(pg, 2, 1, bn=False)               # spatial-attention conv
    return {'ds': ds, 'ca_w1': ca_w1, 'ca_w2': ca_w2, 'sa': sa}


def init_params(seed=0):
    pg = ParamGen(seed)
    filters = [64 // 4, 128 // 4, 256 // 4, 512 // 4]   # feature_scale=4
    cat = filters[0]                                    # CatChannels = 16
    up = cat                                            # UpChannels = 16
    P = {}

    def unetconv(cin, cout):
        return [make_conv(pg, cin, cout, bn=True), make_conv(pg, cout, cout, bn=True)]

    P['conv1'] = unetconv(3, filters[0])
    P['conv2'] = unetconv(filters[0], filters[1])
    P['conv3'] = unetconv(filters[1], filters[2])
    P['conv4'] = unetconv(filters[2], filters[3])

    for name, cin in [('h1_PT_hd4', filters[0]), ('h2_PT_hd4', filters[1]),
                      ('h3_PT_hd4', filters[2]), ('h4_Cat_hd4', filters[3]),
                      ('h1_PT_hd3', filters[0]), ('h2_PT_hd3', filters[1]),
                      ('h3_Cat_hd3', filters[2]),
                      ('h1_PT_hd2', filters[0]), ('h2_Cat_hd2', filters[1]),
                      ('h1_Cat_hd1', filters[0])]:
        P[name] = cbam_params(pg, cin, cat)

    P['conv4d_1'] = make_conv(pg, up, up, bn=True)
    # conv3d_1 / bn3d_1 are registered twice in the PyTorch module; the second
    # registration wins, so stages hd3 and hd2 share the SAME parameters.
    P['conv3d_1'] = make_conv(pg, up, up, bn=True)
    P['conv1d_1'] = make_conv(pg, up, up, bn=True)
    for name in ['hd4_UT_hd3', 'hd3_UT_hd2', 'hd4_UT_hd2',
                 'hd2_UT_hd1', 'hd3_UT_hd1', 'hd4_UT_hd1']:
        P[name] = make_conv(pg, up, cat, bn=True)
    for name in ['outconv1', 'outconv2', 'outconv3', 'outconv4']:
        P[name] = make_conv(pg, up, 1, bn=False)
    return P


# ----------------------------------------------------------------------------
# UNet_3Plus_CBAM forward (internally NDHWC)
# ----------------------------------------------------------------------------
def unet_conv(x, plist):
    for p in plist:
        x = conv3x3(x, p, relu=True)
    return x


def forward(P, inputs):
    x = jnp.transpose(inputs, (0, 2, 3, 4, 1))          # NCDHW -> NDHWC

    # encoder
    h1 = unet_conv(x, P['conv1'])                       # (N,8,8,8,16)   Pallas
    h2 = unet_conv(maxpool3d(h1, 2), P['conv2'])        # (N,4,4,4,32)   Pallas
    h3 = unet_conv(maxpool3d(h2, 2), P['conv3'])        # (N,2,2,2,64)   XLA
    h4 = unet_conv(maxpool3d(h3, 2), P['conv4'])        # (N,1,1,1,128)  XLA

    # stage 4d  (1^3 -> XLA path inside multi_conv3x3)
    b = multi_conv3x3(
        [maxpool3d(h1, 8), maxpool3d(h2, 4), maxpool3d(h3, 2), h4],
        [P['h1_PT_hd4']['ds'], P['h2_PT_hd4']['ds'],
         P['h3_PT_hd4']['ds'], P['h4_Cat_hd4']['ds']],
        [False, False, False, False])
    h1_PT_hd4 = cbam_post(b[0], P['h1_PT_hd4'])
    h2_PT_hd4 = cbam_post(b[1], P['h2_PT_hd4'])
    h3_PT_hd4 = cbam_post(b[2], P['h3_PT_hd4'])
    h4_Cat_hd4 = cbam_post(b[3], P['h4_Cat_hd4'])
    hd4 = conv3x3(h1_PT_hd4 + h2_PT_hd4 + h3_PT_hd4 + h4_Cat_hd4,
                  P['conv4d_1'], relu=True)

    # stage 3d  (2^3 -> XLA path)
    b = multi_conv3x3(
        [maxpool3d(h1, 4), maxpool3d(h2, 2), h3, upsample_trilinear(hd4, 2)],
        [P['h1_PT_hd3']['ds'], P['h2_PT_hd3']['ds'],
         P['h3_Cat_hd3']['ds'], P['hd4_UT_hd3']],
        [False, False, False, True])
    h1_PT_hd3 = cbam_post(b[0], P['h1_PT_hd3'])
    h2_PT_hd3 = cbam_post(b[1], P['h2_PT_hd3'])
    h3_Cat_hd3 = cbam_post(b[2], P['h3_Cat_hd3'])
    hd3 = conv3x3(h1_PT_hd3 + h2_PT_hd3 + h3_Cat_hd3 + b[3],
                  P['conv3d_1'], relu=True)

    # stage 2d  (4^3 -> fused block-diag Pallas call, Cout=64 lane-dense)
    b = multi_conv3x3(
        [maxpool3d(h1, 2), h2, upsample_trilinear(hd3, 2), upsample_trilinear(hd4, 4)],
        [P['h1_PT_hd2']['ds'], P['h2_Cat_hd2']['ds'],
         P['hd3_UT_hd2'], P['hd4_UT_hd2']],
        [False, False, True, True])
    h1_PT_hd2 = cbam_post(b[0], P['h1_PT_hd2'])
    h2_Cat_hd2 = cbam_post(b[1], P['h2_Cat_hd2'])
    # PyTorch forward reuses conv3d_1/bn3d_1 here
    hd2 = conv3x3(h1_PT_hd2 + h2_Cat_hd2 + b[2] + b[3],
                  P['conv3d_1'], relu=True)

    # stage 1d  (8^3 -> fused block-diag Pallas call)
    b = multi_conv3x3(
        [h1, upsample_trilinear(hd2, 2), upsample_trilinear(hd3, 4),
         upsample_trilinear(hd4, 8)],
        [P['h1_Cat_hd1']['ds'], P['hd2_UT_hd1'],
         P['hd3_UT_hd1'], P['hd4_UT_hd1']],
        [False, True, True, True])
    h1_Cat_hd1 = cbam_post(b[0], P['h1_Cat_hd1'])
    hd1 = conv3x3(h1_Cat_hd1 + b[1] + b[2] + b[3], P['conv1d_1'], relu=True)

    # deep-supervision heads (Cout=1 -> XLA path, per perf review)
    d4 = upsample_trilinear(conv3x3(hd4, P['outconv4'], relu=False), 8)
    d3 = upsample_trilinear(conv3x3(hd3, P['outconv3'], relu=False), 4)
    d2 = upsample_trilinear(conv3x3(hd2, P['outconv2'], relu=False), 2)
    d1 = conv3x3(hd1, P['outconv1'], relu=False)

    to_ncdhw = lambda t: jnp.transpose(t, (0, 4, 1, 2, 3))
    return [to_ncdhw(d1), to_ncdhw(d2), to_ncdhw(d3), to_ncdhw(d4)]   # is_deconv=True


# ----------------------------------------------------------------------------
if __name__ == "__main__":
    key = jax.random.PRNGKey(0)
    x = jax.random.normal(key, (2, 3, 8, 8, 8), jnp.float32)  # NCDHW

    params = init_params(seed=0)
    fwd = jax.jit(lambda inp: forward(params, inp))
    d1, d2, d3, d4 = fwd(x)
    jax.block_until_ready((d1, d2, d3, d4))

    assert d1.shape == (2, 1, 8, 8, 8)
    assert d2.shape == (2, 1, 8, 8, 8)
    assert d3.shape == (2, 1, 8, 8, 8)
    assert d4.shape == (2, 1, 8, 8, 8)
    assert all(bool(jnp.all(jnp.isfinite(d.astype(jnp.float32))))
               for d in (d1, d2, d3, d4))
    print("KERNEL_OK")
</pallas_src>

<mosaic_0001>
module attributes {stable_mosaic.version = 11 : i64} {
  func.func @_conv_mm_kernel(%arg0: i32, %arg1: memref<1x512x81xbf16, #tpu.memory_space<vmem>>, %arg2: memref<81x16xbf16, #tpu.memory_space<vmem>>, %arg3: memref<1x16xf32, #tpu.memory_space<vmem>>, %arg4: memref<1x16xf32, #tpu.memory_space<vmem>>, %arg5: memref<1x16xf32, #tpu.memory_space<vmem>>, %arg6: memref<1x512x16xbf16, #tpu.memory_space<vmem>>) attributes {dimension_semantics = [#tpu.dimension_semantics<parallel>], iteration_bounds = array<i64: 2>, scalar_prefetch = 0 : i64, scratch_operands = 0 : i64, tpu.core_type = #tpu.core_type<tc>, window_params = [{transform_indices = @transform_0, window_bounds = array<i64: 1, 512, 81>}, {pipeline_mode = #tpu.pipeline_mode<synchronous>, transform_indices = @transform_1, window_bounds = array<i64: 81, 16>}, {pipeline_mode = #tpu.pipeline_mode<synchronous>, transform_indices = @transform_2, window_bounds = array<i64: 1, 16>}, {pipeline_mode = #tpu.pipeline_mode<synchronous>, transform_indices = @transform_3, window_bounds = array<i64: 1, 16>}, {pipeline_mode = #tpu.pipeline_mode<synchronous>, transform_indices = @transform_4, window_bounds = array<i64: 1, 16>}, {transform_indices = @transform_5, window_bounds = array<i64: 1, 512, 16>}]} {
    %c0 = arith.constant 0 : index
    %c0_0 = arith.constant 0 : index
    %c0_1 = arith.constant 0 : index
    %0 = vector.load %arg1[%c0, %c0_0, %c0_1] : memref<1x512x81xbf16, #tpu.memory_space<vmem>>, vector<1x512x81xbf16>
    %1 = vector.shape_cast %0 : vector<1x512x81xbf16> to vector<512x81xbf16>
    %c0_2 = arith.constant 0 : index
    %c0_3 = arith.constant 0 : index
    %2 = vector.load %arg2[%c0_2, %c0_3] : memref<81x16xbf16, #tpu.memory_space<vmem>>, vector<81x16xbf16>
    %cst = arith.constant dense<0.000000e+00> : vector<512x16xf32>
    %3 = tpu.matmul %1, %2, %cst {dimension_numbers = #tpu.dot_dimension_numbers<[1], [0], [0], [1], [0, 0, 1, 1], [], []>} : vector<512x81xbf16>, vector<81x16xbf16>, vector<512x16xf32> -> vector<512x16xf32>
    %c0_4 = arith.constant 0 : index
    %c0_5 = arith.constant 0 : index
    %4 = vector.load %arg3[%c0_4, %c0_5] : memref<1x16xf32, #tpu.memory_space<vmem>>, vector<1x16xf32>
    %5 = vector.broadcast %4 : vector<1x16xf32> to vector<512x16xf32>
    %6 = arith.mulf %3, %5 : vector<512x16xf32>
    %c0_6 = arith.constant 0 : index
    %c0_7 = arith.constant 0 : index
    %7 = vector.load %arg4[%c0_6, %c0_7] : memref<1x16xf32, #tpu.memory_space<vmem>>, vector<1x16xf32>
    %8 = vector.broadcast %7 : vector<1x16xf32> to vector<512x16xf32>
    %9 = arith.addf %6, %8 : vector<512x16xf32>
    %c0_8 = arith.constant 0 : index
    %c0_9 = arith.constant 0 : index
    %10 = vector.load %arg5[%c0_8, %c0_9] : memref<1x16xf32, #tpu.memory_space<vmem>>, vector<1x16xf32>
    %cst_10 = arith.constant 0.000000e+00 : f32
    %11 = vector.broadcast %cst_10 : f32 to vector<1x16xf32>
    %12 = arith.cmpf ogt, %10, %11 : vector<1x16xf32>
    %cst_11 = arith.constant 0.000000e+00 : f32
    %13 = vector.broadcast %cst_11 : f32 to vector<512x16xf32>
    %14 = arith.maximumf %9, %13 : vector<512x16xf32>
    %15 = vector.shape_cast %12 : vector<1x16xi1> to vector<1x16xi1>
    %16 = vector.broadcast %15 : vector<1x16xi1> to vector<512x16xi1>
    %17 = arith.select %16, %14, %9 : vector<512x16xi1>, vector<512x16xf32>
    %18 = arith.truncf %17 : vector<512x16xf32> to vector<512x16xbf16>
    %c0_12 = arith.constant 0 : index
    %c0_13 = arith.constant 0 : index
    %c0_14 = arith.constant 0 : index
    %19 = vector.load %arg6[%c0_12, %c0_13, %c0_14] : memref<1x512x16xbf16, #tpu.memory_space<vmem>>, vector<1x512x16xbf16>
    %20 = vector.shape_cast %19 : vector<1x512x16xbf16> to vector<512x16xbf16>
    %21 = vector.shape_cast %18 : vector<512x16xbf16> to vector<1x512x16xbf16>
    tpu.vector_store %arg6[%c0_12, %c0_13, %c0_14], %21 {strides = array<i32>} : memref<1x512x16xbf16, #tpu.memory_space<vmem>>, vector<1x512x16xbf16>,
    return
  }
  func.func @transform_0(%arg0: i32) -> (i32, i32, i32) {
    %c0_i32 = arith.constant 0 : i32
    %c0_i32_0 = arith.constant 0 : i32
    %c0_i32_1 = arith.constant 0 : i32
    return %arg0, %c0_i32, %c0_i32_0 : i32, i32, i32
  }
  func.func @transform_1(%arg0: i32) -> (i32, i32) {
    %c0_i32 = arith.constant 0 : i32
    %c0_i32_0 = arith.constant 0 : i32
    %c0_i32_1 = arith.constant 0 : i32
    return %c0_i32, %c0_i32_0 : i32, i32
  }
  func.func @transform_2(%arg0: i32) -> (i32, i32) {
    %c0_i32 = arith.constant 0 : i32
    %c0_i32_0 = arith.constant 0 : i32
    %c0_i32_1 = arith.constant 0 : i32
    return %c0_i32, %c0_i32_0 : i32, i32
  }
  func.func @transform_3(%arg0: i32) -> (i32, i32) {
    %c0_i32 = arith.constant 0 : i32
    %c0_i32_0 = arith.constant 0 : i32
    %c0_i32_1 = arith.constant 0 : i32
    return %c0_i32, %c0_i32_0 : i32, i32
  }
  func.func @transform_4(%arg0: i32) -> (i32, i32) {
    %c0_i32 = arith.constant 0 : i32
    %c0_i32_0 = arith.constant 0 : i32
    %c0_i32_1 = arith.constant 0 : i32
    return %c0_i32, %c0_i32_0 : i32, i32
  }
  func.func @transform_5(%arg0: i32) -> (i32, i32, i32) {
    %c0_i32 = arith.constant 0 : i32
    %c0_i32_0 = arith.constant 0 : i32
    %c0_i32_1 = arith.constant 0 : i32
    return %arg0, %c0_i32, %c0_i32_0 : i32, i32, i32
  }
}

module attributes {stable_mosaic.version = 11 : i64} {
  func.func @_conv_mm_kernel(%arg0: i32, %arg1: memref<1x512x432xbf16, #tpu.memory_space<vmem>>, %arg2: memref<432x16xbf16, #tpu.memory_space<vmem>>, %arg3: memref<1x16xf32, #tpu.memory_space<vmem>>, %arg4: memref<1x16xf32, #tpu.memory_space<vmem>>, %arg5: memref<1x16xf32, #tpu.memory_space<vmem>>, %arg6: memref<1x512x16xbf16, #tpu.memory_space<vmem>>) attributes {dimension_semantics = [#tpu.dimension_semantics<parallel>], iteration_bounds = array<i64: 2>, scalar_prefetch = 0 : i64, scratch_operands = 0 : i64, tpu.core_type = #tpu.core_type<tc>, window_params = [{transform_indices = @transform_0, window_bounds = array<i64: 1, 512, 432>}, {pipeline_mode = #tpu.pipeline_mode<synchronous>, transform_indices = @transform_1, window_bounds = array<i64: 432, 16>}, {pipeline_mode = #tpu.pipeline_mode<synchronous>, transform_indices = @transform_2, window_bounds = array<i64: 1, 16>}, {pipeline_mode = #tpu.pipeline_mode<synchronous>, transform_indices = @transform_3, window_bounds = array<i64: 1, 16>}, {pipeline_mode = #tpu.pipeline_mode<synchronous>, transform_indices = @transform_4, window_bounds = array<i64: 1, 16>}, {transform_indices = @transform_5, window_bounds = array<i64: 1, 512, 16>}]} {
    %c0 = arith.constant 0 : index
    %c0_0 = arith.constant 0 : index
    %c0_1 = arith.constant 0 : index
    %0 = vector.load %arg1[%c0, %c0_0, %c0_1] : memref<1x512x432xbf16, #tpu.memory_space<vmem>>, vector<1x512x432xbf16>
    %1 = vector.shape_cast %0 : vector<1x512x432xbf16> to vector<512x432xbf16>
    %c0_2 = arith.constant 0 : index
    %c0_3 = arith.constant 0 : index
    %2 = vector.load %arg2[%c0_2, %c0_3] : memref<432x16xbf16, #tpu.memory_space<vmem>>, vector<432x16xbf16>
    %cst = arith.constant dense<0.000000e+00> : vector<512x16xf32>
    %3 = tpu.matmul %1, %2, %cst {dimension_numbers = #tpu.dot_dimension_numbers<[1], [0], [0], [1], [0, 0, 1, 1], [], []>} : vector<512x432xbf16>, vector<432x16xbf16>, vector<512x16xf32> -> vector<512x16xf32>
    %c0_4 = arith.constant 0 : index
    %c0_5 = arith.constant 0 : index
    %4 = vector.load %arg3[%c0_4, %c0_5] : memref<1x16xf32, #tpu.memory_space<vmem>>, vector<1x16xf32>
    %5 = vector.broadcast %4 : vector<1x16xf32> to vector<512x16xf32>
    %6 = arith.mulf %3, %5 : vector<512x16xf32>
    %c0_6 = arith.constant 0 : index
    %c0_7 = arith.constant 0 : index
    %7 = vector.load %arg4[%c0_6, %c0_7] : memref<1x16xf32, #tpu.memory_space<vmem>>, vector<1x16xf32>
    %8 = vector.broadcast %7 : vector<1x16xf32> to vector<512x16xf32>
    %9 = arith.addf %6, %8 : vector<512x16xf32>
    %c0_8 = arith.constant 0 : index
    %c0_9 = arith.constant 0 : index
    %10 = vector.load %arg5[%c0_8, %c0_9] : memref<1x16xf32, #tpu.memory_space<vmem>>, vector<1x16xf32>
    %cst_10 = arith.constant 0.000000e+00 : f32
    %11 = vector.broadcast %cst_10 : f32 to vector<1x16xf32>
    %12 = arith.cmpf ogt, %10, %11 : vector<1x16xf32>
    %cst_11 = arith.constant 0.000000e+00 : f32
    %13 = vector.broadcast %cst_11 : f32 to vector<512x16xf32>
    %14 = arith.maximumf %9, %13 : vector<512x16xf32>
    %15 = vector.shape_cast %12 : vector<1x16xi1> to vector<1x16xi1>
    %16 = vector.broadcast %15 : vector<1x16xi1> to vector<512x16xi1>
    %17 = arith.select %16, %14, %9 : vector<512x16xi1>, vector<512x16xf32>
    %18 = arith.truncf %17 : vector<512x16xf32> to vector<512x16xbf16>
    %c0_12 = arith.constant 0 : index
    %c0_13 = arith.constant 0 : index
    %c0_14 = arith.constant 0 : index
    %19 = vector.load %arg6[%c0_12, %c0_13, %c0_14] : memref<1x512x16xbf16, #tpu.memory_space<vmem>>, vector<1x512x16xbf16>
    %20 = vector.shape_cast %19 : vector<1x512x16xbf16> to vector<512x16xbf16>
    %21 = vector.shape_cast %18 : vector<512x16xbf16> to vector<1x512x16xbf16>
    tpu.vector_store %arg6[%c0_12, %c0_13, %c0_14], %21 {strides = array<i32>} : memref<1x512x16xbf16, #tpu.memory_space<vmem>>, vector<1x512x16xbf16>,
    return
  }
  func.func @transform_0(%arg0: i32) -> (i32, i32, i32) {
    %c0_i32 = arith.constant 0 : i32
    %c0_i32_0 = arith.constant 0 : i32
    %c0_i32_1 = arith.constant 0 : i32
    return %arg0, %c0_i32, %c0_i32_0 : i32, i32, i32
  }
  func.func @transform_1(%arg0: i32) -> (i32, i32) {
    %c0_i32 = arith.constant 0 : i32
    %c0_i32_0 = arith.constant 0 : i32
    %c0_i32_1 = arith.constant 0 : i32
    return %c0_i32, %c0_i32_0 : i32, i32
  }
  func.func @transform_2(%arg0: i32) -> (i32, i32) {
    %c0_i32 = arith.constant 0 : i32
    %c0_i32_0 = arith.constant 0 : i32
    %c0_i32_1 = arith.constant 0 : i32
    return %c0_i32, %c0_i32_0 : i32, i32
  }
  func.func @transform_3(%arg0: i32) -> (i32, i32) {
    %c0_i32 = arith.constant 0 : i32
    %c0_i32_0 = arith.constant 0 : i32
    %c0_i32_1 = arith.constant 0 : i32
    return %c0_i32, %c0_i32_0 : i32, i32
  }
  func.func @transform_4(%arg0: i32) -> (i32, i32) {
    %c0_i32 = arith.constant 0 : i32
    %c0_i32_0 = arith.constant 0 : i32
    %c0_i32_1 = arith.constant 0 : i32
    return %c0_i32, %c0_i32_0 : i32, i32
  }
  func.func @transform_5(%arg0: i32) -> (i32, i32, i32) {
    %c0_i32 = arith.constant 0 : i32
    %c0_i32_0 = arith.constant 0 : i32
    %c0_i32_1 = arith.constant 0 : i32
    return %arg0, %c0_i32, %c0_i32_0 : i32, i32, i32
  }
}

module attributes {stable_mosaic.version = 11 : i64} {
  func.func @_conv_mm_kernel(%arg0: i32, %arg1: memref<1x64x432xbf16, #tpu.memory_space<vmem>>, %arg2: memref<432x32xbf16, #tpu.memory_space<vmem>>, %arg3: memref<1x32xf32, #tpu.memory_space<vmem>>, %arg4: memref<1x32xf32, #tpu.memory_space<vmem>>, %arg5: memref<1x32xf32, #tpu.memory_space<vmem>>, %arg6: memref<1x64x32xbf16, #tpu.memory_space<vmem>>) attributes {dimension_semantics = [#tpu.dimension_semantics<parallel>], iteration_bounds = array<i64: 2>, scalar_prefetch = 0 : i64, scratch_operands = 0 : i64, tpu.core_type = #tpu.core_type<tc>, window_params = [{transform_indices = @transform_0, window_bounds = array<i64: 1, 64, 432>}, {pipeline_mode = #tpu.pipeline_mode<synchronous>, transform_indices = @transform_1, window_bounds = array<i64: 432, 32>}, {pipeline_mode = #tpu.pipeline_mode<synchronous>, transform_indices = @transform_2, window_bounds = array<i64: 1, 32>}, {pipeline_mode = #tpu.pipeline_mode<synchronous>, transform_indices = @transform_3, window_bounds = array<i64: 1, 32>}, {pipeline_mode = #tpu.pipeline_mode<synchronous>, transform_indices = @transform_4, window_bounds = array<i64: 1, 32>}, {transform_indices = @transform_5, window_bounds = array<i64: 1, 64, 32>}]} {
    %c0 = arith.constant 0 : index
    %c0_0 = arith.constant 0 : index
    %c0_1 = arith.constant 0 : index
    %0 = vector.load %arg1[%c0, %c0_0, %c0_1] : memref<1x64x432xbf16, #tpu.memory_space<vmem>>, vector<1x64x432xbf16>
    %1 = vector.shape_cast %0 : vector<1x64x432xbf16> to vector<64x432xbf16>
    %c0_2 = arith.constant 0 : index
    %c0_3 = arith.constant 0 : index
    %2 = vector.load %arg2[%c0_2, %c0_3] : memref<432x32xbf16, #tpu.memory_space<vmem>>, vector<432x32xbf16>
    %cst = arith.constant dense<0.000000e+00> : vector<64x32xf32>
    %3 = tpu.matmul %1, %2, %cst {dimension_numbers = #tpu.dot_dimension_numbers<[1], [0], [0], [1], [0, 0, 1, 1], [], []>} : vector<64x432xbf16>, vector<432x32xbf16>, vector<64x32xf32> -> vector<64x32xf32>
    %c0_4 = arith.constant 0 : index
    %c0_5 = arith.constant 0 : index
    %4 = vector.load %arg3[%c0_4, %c0_5] : memref<1x32xf32, #tpu.memory_space<vmem>>, vector<1x32xf32>
    %5 = vector.broadcast %4 : vector<1x32xf32> to vector<64x32xf32>
    %6 = arith.mulf %3, %5 : vector<64x32xf32>
    %c0_6 = arith.constant 0 : index
    %c0_7 = arith.constant 0 : index
    %7 = vector.load %arg4[%c0_6, %c0_7] : memref<1x32xf32, #tpu.memory_space<vmem>>, vector<1x32xf32>
    %8 = vector.broadcast %7 : vector<1x32xf32> to vector<64x32xf32>
    %9 = arith.addf %6, %8 : vector<64x32xf32>
    %c0_8 = arith.constant 0 : index
    %c0_9 = arith.constant 0 : index
    %10 = vector.load %arg5[%c0_8, %c0_9] : memref<1x32xf32, #tpu.memory_space<vmem>>, vector<1x32xf32>
    %cst_10 = arith.constant 0.000000e+00 : f32
    %11 = vector.broadcast %cst_10 : f32 to vector<1x32xf32>
    %12 = arith.cmpf ogt, %10, %11 : vector<1x32xf32>
    %cst_11 = arith.constant 0.000000e+00 : f32
    %13 = vector.broadcast %cst_11 : f32 to vector<64x32xf32>
    %14 = arith.maximumf %9, %13 : vector<64x32xf32>
    %15 = vector.shape_cast %12 : vector<1x32xi1> to vector<1x32xi1>
    %16 = vector.broadcast %15 : vector<1x32xi1> to vector<64x32xi1>
    %17 = arith.select %16, %14, %9 : vector<64x32xi1>, vector<64x32xf32>
    %18 = arith.truncf %17 : vector<64x32xf32> to vector<64x32xbf16>
    %c0_12 = arith.constant 0 : index
    %c0_13 = arith.constant 0 : index
    %c0_14 = arith.constant 0 : index
    %19 = vector.load %arg6[%c0_12, %c0_13, %c0_14] : memref<1x64x32xbf16, #tpu.memory_space<vmem>>, vector<1x64x32xbf16>
    %20 = vector.shape_cast %19 : vector<1x64x32xbf16> to vector<64x32xbf16>
    %21 = vector.shape_cast %18 : vector<64x32xbf16> to vector<1x64x32xbf16>
    tpu.vector_store %arg6[%c0_12, %c0_13, %c0_14], %21 {strides = array<i32>} : memref<1x64x32xbf16, #tpu.memory_space<vmem>>, vector<1x64x32xbf16>,
    return
  }
  func.func @transform_0(%arg0: i32) -> (i32, i32, i32) {
    %c0_i32 = arith.constant 0 : i32
    %c0_i32_0 = arith.constant 0 : i32
    %c0_i32_1 = arith.constant 0 : i32
    return %arg0, %c0_i32, %c0_i32_0 : i32, i32, i32
  }
  func.func @transform_1(%arg0: i32) -> (i32, i32) {
    %c0_i32 = arith.constant 0 : i32
    %c0_i32_0 = arith.constant 0 : i32
    %c0_i32_1 = arith.constant 0 : i32
    return %c0_i32, %c0_i32_0 : i32, i32
  }
  func.func @transform_2(%arg0: i32) -> (i32, i32) {
    %c0_i32 = arith.constant 0 : i32
    %c0_i32_0 = arith.constant 0 : i32
    %c0_i32_1 = arith.constant 0 : i32
    return %c0_i32, %c0_i32_0 : i32, i32
  }
  func.func @transform_3(%arg0: i32) -> (i32, i32) {
    %c0_i32 = arith.constant 0 : i32
    %c0_i32_0 = arith.constant 0 : i32
    %c0_i32_1 = arith.constant 0 : i32
    return %c0_i32, %c0_i32_0 : i32, i32
  }
  func.func @transform_4(%arg0: i32) -> (i32, i32) {
    %c0_i32 = arith.constant 0 : i32
    %c0_i32_0 = arith.constant 0 : i32
    %c0_i32_1 = arith.constant 0 : i32
    return %c0_i32, %c0_i32_0 : i32, i32
  }
  func.func @transform_5(%arg0: i32) -> (i32, i32, i32) {
    %c0_i32 = arith.constant 0 : i32
    %c0_i32_0 = arith.constant 0 : i32
    %c0_i32_1 = arith.constant 0 : i32
    return %arg0, %c0_i32, %c0_i32_0 : i32, i32, i32
  }
}

module attributes {stable_mosaic.version = 11 : i64} {
  func.func @_conv_mm_kernel(%arg0: i32, %arg1: memref<1x64x864xbf16, #tpu.memory_space<vmem>>, %arg2: memref<864x32xbf16, #tpu.memory_space<vmem>>, %arg3: memref<1x32xf32, #tpu.memory_space<vmem>>, %arg4: memref<1x32xf32, #tpu.memory_space<vmem>>, %arg5: memref<1x32xf32, #tpu.memory_space<vmem>>, %arg6: memref<1x64x32xbf16, #tpu.memory_space<vmem>>) attributes {dimension_semantics = [#tpu.dimension_semantics<parallel>], iteration_bounds = array<i64: 2>, scalar_prefetch = 0 : i64, scratch_operands = 0 : i64, tpu.core_type = #tpu.core_type<tc>, window_params = [{transform_indices = @transform_0, window_bounds = array<i64: 1, 64, 864>}, {pipeline_mode = #tpu.pipeline_mode<synchronous>, transform_indices = @transform_1, window_bounds = array<i64: 864, 32>}, {pipeline_mode = #tpu.pipeline_mode<synchronous>, transform_indices = @transform_2, window_bounds = array<i64: 1, 32>}, {pipeline_mode = #tpu.pipeline_mode<synchronous>, transform_indices = @transform_3, window_bounds = array<i64: 1, 32>}, {pipeline_mode = #tpu.pipeline_mode<synchronous>, transform_indices = @transform_4, window_bounds = array<i64: 1, 32>}, {transform_indices = @transform_5, window_bounds = array<i64: 1, 64, 32>}]} {
    %c0 = arith.constant 0 : index
    %c0_0 = arith.constant 0 : index
    %c0_1 = arith.constant 0 : index
    %0 = vector.load %arg1[%c0, %c0_0, %c0_1] : memref<1x64x864xbf16, #tpu.memory_space<vmem>>, vector<1x64x864xbf16>
    %1 = vector.shape_cast %0 : vector<1x64x864xbf16> to vector<64x864xbf16>
    %c0_2 = arith.constant 0 : index
    %c0_3 = arith.constant 0 : index
    %2 = vector.load %arg2[%c0_2, %c0_3] : memref<864x32xbf16, #tpu.memory_space<vmem>>, vector<864x32xbf16>
    %cst = arith.constant dense<0.000000e+00> : vector<64x32xf32>
    %3 = tpu.matmul %1, %2, %cst {dimension_numbers = #tpu.dot_dimension_numbers<[1], [0], [0], [1], [0, 0, 1, 1], [], []>} : vector<64x864xbf16>, vector<864x32xbf16>, vector<64x32xf32> -> vector<64x32xf32>
    %c0_4 = arith.constant 0 : index
    %c0_5 = arith.constant 0 : index
    %4 = vector.load %arg3[%c0_4, %c0_5] : memref<1x32xf32, #tpu.memory_space<vmem>>, vector<1x32xf32>
    %5 = vector.broadcast %4 : vector<1x32xf32> to vector<64x32xf32>
    %6 = arith.mulf %3, %5 : vector<64x32xf32>
    %c0_6 = arith.constant 0 : index
    %c0_7 = arith.constant 0 : index
    %7 = vector.load %arg4[%c0_6, %c0_7] : memref<1x32xf32, #tpu.memory_space<vmem>>, vector<1x32xf32>
    %8 = vector.broadcast %7 : vector<1x32xf32> to vector<64x32xf32>
    %9 = arith.addf %6, %8 : vector<64x32xf32>
    %c0_8 = arith.constant 0 : index
    %c0_9 = arith.constant 0 : index
    %10 = vector.load %arg5[%c0_8, %c0_9] : memref<1x32xf32, #tpu.memory_space<vmem>>, vector<1x32xf32>
    %cst_10 = arith.constant 0.000000e+00 : f32
    %11 = vector.broadcast %cst_10 : f32 to vector<1x32xf32>
    %12 = arith.cmpf ogt, %10, %11 : vector<1x32xf32>
    %cst_11 = arith.constant 0.000000e+00 : f32
    %13 = vector.broadcast %cst_11 : f32 to vector<64x32xf32>
    %14 = arith.maximumf %9, %13 : vector<64x32xf32>
    %15 = vector.shape_cast %12 : vector<1x32xi1> to vector<1x32xi1>
    %16 = vector.broadcast %15 : vector<1x32xi1> to vector<64x32xi1>
    %17 = arith.select %16, %14, %9 : vector<64x32xi1>, vector<64x32xf32>
    %18 = arith.truncf %17 : vector<64x32xf32> to vector<64x32xbf16>
    %c0_12 = arith.constant 0 : index
    %c0_13 = arith.constant 0 : index
    %c0_14 = arith.constant 0 : index
    %19 = vector.load %arg6[%c0_12, %c0_13, %c0_14] : memref<1x64x32xbf16, #tpu.memory_space<vmem>>, vector<1x64x32xbf16>
    %20 = vector.shape_cast %19 : vector<1x64x32xbf16> to vector<64x32xbf16>
    %21 = vector.shape_cast %18 : vector<64x32xbf16> to vector<1x64x32xbf16>
    tpu.vector_store %arg6[%c0_12, %c0_13, %c0_14], %21 {strides = array<i32>} : memref<1x64x32xbf16, #tpu.memory_space<vmem>>, vector<1x64x32xbf16>,
    return
  }
  func.func @transform_0(%arg0: i32) -> (i32, i32, i32) {
    %c0_i32 = arith.constant 0 : i32
    %c0_i32_0 = arith.constant 0 : i32
    %c0_i32_1 = arith.constant 0 : i32
    return %arg0, %c0_i32, %c0_i32_0 : i32, i32, i32
  }
  func.func @transform_1(%arg0: i32) -> (i32, i32) {
    %c0_i32 = arith.constant 0 : i32
    %c0_i32_0 = arith.constant 0 : i32
    %c0_i32_1 = arith.constant 0 : i32
    return %c0_i32, %c0_i32_0 : i32, i32
  }
  func.func @transform_2(%arg0: i32) -> (i32, i32) {
    %c0_i32 = arith.constant 0 : i32
    %c0_i32_0 = arith.constant 0 : i32
    %c0_i32_1 = arith.constant 0 : i32
    return %c0_i32, %c0_i32_0 : i32, i32
  }
  func.func @transform_3(%arg0: i32) -> (i32, i32) {
    %c0_i32 = arith.constant 0 : i32
    %c0_i32_0 = arith.constant 0 : i32
    %c0_i32_1 = arith.constant 0 : i32
    return %c0_i32, %c0_i32_0 : i32, i32
  }
  func.func @transform_4(%arg0: i32) -> (i32, i32) {
    %c0_i32 = arith.constant 0 : i32
    %c0_i32_0 = arith.constant 0 : i32
    %c0_i32_1 = arith.constant 0 : i32
    return %c0_i32, %c0_i32_0 : i32, i32
  }
  func.func @transform_5(%arg0: i32) -> (i32, i32, i32) {
    %c0_i32 = arith.constant 0 : i32
    %c0_i32_0 = arith.constant 0 : i32
    %c0_i32_1 = arith.constant 0 : i32
    return %arg0, %c0_i32, %c0_i32_0 : i32, i32, i32
  }
}

module attributes {stable_mosaic.version = 11 : i64} {
  func.func @_conv_mm_kernel(%arg0: i32, %arg1: memref<1x64x2160xbf16, #tpu.memory_space<vmem>>, %arg2: memref<2160x64xbf16, #tpu.memory_space<vmem>>, %arg3: memref<1x64xf32, #tpu.memory_space<vmem>>, %arg4: memref<1x64xf32, #tpu.memory_space<vmem>>, %arg5: memref<1x64xf32, #tpu.memory_space<vmem>>, %arg6: memref<1x64x64xbf16, #tpu.memory_space<vmem>>) attributes {dimension_semantics = [#tpu.dimension_semantics<parallel>], iteration_bounds = array<i64: 2>, scalar_prefetch = 0 : i64, scratch_operands = 0 : i64, tpu.core_type = #tpu.core_type<tc>, window_params = [{transform_indices = @transform_0, window_bounds = array<i64: 1, 64, 2160>}, {pipeline_mode = #tpu.pipeline_mode<synchronous>, transform_indices = @transform_1, window_bounds = array<i64: 2160, 64>}, {pipeline_mode = #tpu.pipeline_mode<synchronous>, transform_indices = @transform_2, window_bounds = array<i64: 1, 64>}, {pipeline_mode = #tpu.pipeline_mode<synchronous>, transform_indices = @transform_3, window_bounds = array<i64: 1, 64>}, {pipeline_mode = #tpu.pipeline_mode<synchronous>, transform_indices = @transform_4, window_bounds = array<i64: 1, 64>}, {transform_indices = @transform_5, window_bounds = array<i64: 1, 64, 64>}]} {
    %c0 = arith.constant 0 : index
    %c0_0 = arith.constant 0 : index
    %c0_1 = arith.constant 0 : index
    %0 = vector.load %arg1[%c0, %c0_0, %c0_1] : memref<1x64x2160xbf16, #tpu.memory_space<vmem>>, vector<1x64x2160xbf16>
    %1 = vector.shape_cast %0 : vector<1x64x2160xbf16> to vector<64x2160xbf16>
    %c0_2 = arith.constant 0 : index
    %c0_3 = arith.constant 0 : index
    %2 = vector.load %arg2[%c0_2, %c0_3] : memref<2160x64xbf16, #tpu.memory_space<vmem>>, vector<2160x64xbf16>
    %cst = arith.constant dense<0.000000e+00> : vector<64x64xf32>
    %3 = tpu.matmul %1, %2, %cst {dimension_numbers = #tpu.dot_dimension_numbers<[1], [0], [0], [1], [0, 0, 1, 1], [], []>} : vector<64x2160xbf16>, vector<2160x64xbf16>, vector<64x64xf32> -> vector<64x64xf32>
    %c0_4 = arith.constant 0 : index
    %c0_5 = arith.constant 0 : index
    %4 = vector.load %arg3[%c0_4, %c0_5] : memref<1x64xf32, #tpu.memory_space<vmem>>, vector<1x64xf32>
    %5 = vector.broadcast %4 : vector<1x64xf32> to vector<64x64xf32>
    %6 = arith.mulf %3, %5 : vector<64x64xf32>
    %c0_6 = arith.constant 0 : index
    %c0_7 = arith.constant 0 : index
    %7 = vector.load %arg4[%c0_6, %c0_7] : memref<1x64xf32, #tpu.memory_space<vmem>>, vector<1x64xf32>
    %8 = vector.broadcast %7 : vector<1x64xf32> to vector<64x64xf32>
    %9 = arith.addf %6, %8 : vector<64x64xf32>
    %c0_8 = arith.constant 0 : index
    %c0_9 = arith.constant 0 : index
    %10 = vector.load %arg5[%c0_8, %c0_9] : memref<1x64xf32, #tpu.memory_space<vmem>>, vector<1x64xf32>
    %cst_10 = arith.constant 0.000000e+00 : f32
    %11 = vector.broadcast %cst_10 : f32 to vector<1x64xf32>
    %12 = arith.cmpf ogt, %10, %11 : vector<1x64xf32>
    %cst_11 = arith.constant 0.000000e+00 : f32
    %13 = vector.broadcast %cst_11 : f32 to vector<64x64xf32>
    %14 = arith.maximumf %9, %13 : vector<64x64xf32>
    %15 = vector.shape_cast %12 : vector<1x64xi1> to vector<1x64xi1>
    %16 = vector.broadcast %15 : vector<1x64xi1> to vector<64x64xi1>
    %17 = arith.select %16, %14, %9 : vector<64x64xi1>, vector<64x64xf32>
    %18 = arith.truncf %17 : vector<64x64xf32> to vector<64x64xbf16>
    %c0_12 = arith.constant 0 : index
    %c0_13 = arith.constant 0 : index
    %c0_14 = arith.constant 0 : index
    %19 = vector.load %arg6[%c0_12, %c0_13, %c0_14] : memref<1x64x64xbf16, #tpu.memory_space<vmem>>, vector<1x64x64xbf16>
    %20 = vector.shape_cast %19 : vector<1x64x64xbf16> to vector<64x64xbf16>
    %21 = vector.shape_cast %18 : vector<64x64xbf16> to vector<1x64x64xbf16>
    tpu.vector_store %arg6[%c0_12, %c0_13, %c0_14], %21 {strides = array<i32>} : memref<1x64x64xbf16, #tpu.memory_space<vmem>>, vector<1x64x64xbf16>,
    return
  }
  func.func @transform_0(%arg0: i32) -> (i32, i32, i32) {
    %c0_i32 = arith.constant 0 : i32
    %c0_i32_0 = arith.constant 0 : i32
    %c0_i32_1 = arith.constant 0 : i32
    return %arg0, %c0_i32, %c0_i32_0 : i32, i32, i32
  }
  func.func @transform_1(%arg0: i32) -> (i32, i32) {
    %c0_i32 = arith.constant 0 : i32
    %c0_i32_0 = arith.constant 0 : i32
    %c0_i32_1 = arith.constant 0 : i32
    return %c0_i32, %c0_i32_0 : i32, i32
  }
  func.func @transform_2(%arg0: i32) -> (i32, i32) {
    %c0_i32 = arith.constant 0 : i32
    %c0_i32_0 = arith.constant 0 : i32
    %c0_i32_1 = arith.constant 0 : i32
    return %c0_i32, %c0_i32_0 : i32, i32
  }
  func.func @transform_3(%arg0: i32) -> (i32, i32) {
    %c0_i32 = arith.constant 0 : i32
    %c0_i32_0 = arith.constant 0 : i32
    %c0_i32_1 = arith.constant 0 : i32
    return %c0_i32, %c0_i32_0 : i32, i32
  }
  func.func @transform_4(%arg0: i32) -> (i32, i32) {
    %c0_i32 = arith.constant 0 : i32
    %c0_i32_0 = arith.constant 0 : i32
    %c0_i32_1 = arith.constant 0 : i32
    return %c0_i32, %c0_i32_0 : i32, i32
  }
  func.func @transform_5(%arg0: i32) -> (i32, i32, i32) {
    %c0_i32 = arith.constant 0 : i32
    %c0_i32_0 = arith.constant 0 : i32
    %c0_i32_1 = arith.constant 0 : i32
    return %arg0, %c0_i32, %c0_i32_0 : i32, i32, i32
  }
}

module attributes {stable_mosaic.version = 11 : i64} {
  func.func @_conv_mm_kernel(%arg0: i32, %arg1: memref<1x64x432xbf16, #tpu.memory_space<vmem>>, %arg2: memref<432x16xbf16, #tpu.memory_space<vmem>>, %arg3: memref<1x16xf32, #tpu.memory_space<vmem>>, %arg4: memref<1x16xf32, #tpu.memory_space<vmem>>, %arg5: memref<1x16xf32, #tpu.memory_space<vmem>>, %arg6: memref<1x64x16xbf16, #tpu.memory_space<vmem>>) attributes {dimension_semantics = [#tpu.dimension_semantics<parallel>], iteration_bounds = array<i64: 2>, scalar_prefetch = 0 : i64, scratch_operands = 0 : i64, tpu.core_type = #tpu.core_type<tc>, window_params = [{transform_indices = @transform_0, window_bounds = array<i64: 1, 64, 432>}, {pipeline_mode = #tpu.pipeline_mode<synchronous>, transform_indices = @transform_1, window_bounds = array<i64: 432, 16>}, {pipeline_mode = #tpu.pipeline_mode<synchronous>, transform_indices = @transform_2, window_bounds = array<i64: 1, 16>}, {pipeline_mode = #tpu.pipeline_mode<synchronous>, transform_indices = @transform_3, window_bounds = array<i64: 1, 16>}, {pipeline_mode = #tpu.pipeline_mode<synchronous>, transform_indices = @transform_4, window_bounds = array<i64: 1, 16>}, {transform_indices = @transform_5, window_bounds = array<i64: 1, 64, 16>}]} {
    %c0 = arith.constant 0 : index
    %c0_0 = arith.constant 0 : index
    %c0_1 = arith.constant 0 : index
    %0 = vector.load %arg1[%c0, %c0_0, %c0_1] : memref<1x64x432xbf16, #tpu.memory_space<vmem>>, vector<1x64x432xbf16>
    %1 = vector.shape_cast %0 : vector<1x64x432xbf16> to vector<64x432xbf16>
    %c0_2 = arith.constant 0 : index
    %c0_3 = arith.constant 0 : index
    %2 = vector.load %arg2[%c0_2, %c0_3] : memref<432x16xbf16, #tpu.memory_space<vmem>>, vector<432x16xbf16>
    %cst = arith.constant dense<0.000000e+00> : vector<64x16xf32>
    %3 = tpu.matmul %1, %2, %cst {dimension_numbers = #tpu.dot_dimension_numbers<[1], [0], [0], [1], [0, 0, 1, 1], [], []>} : vector<64x432xbf16>, vector<432x16xbf16>, vector<64x16xf32> -> vector<64x16xf32>
    %c0_4 = arith.constant 0 : index
    %c0_5 = arith.constant 0 : index
    %4 = vector.load %arg3[%c0_4, %c0_5] : memref<1x16xf32, #tpu.memory_space<vmem>>, vector<1x16xf32>
    %5 = vector.broadcast %4 : vector<1x16xf32> to vector<64x16xf32>
    %6 = arith.mulf %3, %5 : vector<64x16xf32>
    %c0_6 = arith.constant 0 : index
    %c0_7 = arith.constant 0 : index
    %7 = vector.load %arg4[%c0_6, %c0_7] : memref<1x16xf32, #tpu.memory_space<vmem>>, vector<1x16xf32>
    %8 = vector.broadcast %7 : vector<1x16xf32> to vector<64x16xf32>
    %9 = arith.addf %6, %8 : vector<64x16xf32>
    %c0_8 = arith.constant 0 : index
    %c0_9 = arith.constant 0 : index
    %10 = vector.load %arg5[%c0_8, %c0_9] : memref<1x16xf32, #tpu.memory_space<vmem>>, vector<1x16xf32>
    %cst_10 = arith.constant 0.000000e+00 : f32
    %11 = vector.broadcast %cst_10 : f32 to vector<1x16xf32>
    %12 = arith.cmpf ogt, %10, %11 : vector<1x16xf32>
    %cst_11 = arith.constant 0.000000e+00 : f32
    %13 = vector.broadcast %cst_11 : f32 to vector<64x16xf32>
    %14 = arith.maximumf %9, %13 : vector<64x16xf32>
    %15 = vector.shape_cast %12 : vector<1x16xi1> to vector<1x16xi1>
    %16 = vector.broadcast %15 : vector<1x16xi1> to vector<64x16xi1>
    %17 = arith.select %16, %14, %9 : vector<64x16xi1>, vector<64x16xf32>
    %18 = arith.truncf %17 : vector<64x16xf32> to vector<64x16xbf16>
    %c0_12 = arith.constant 0 : index
    %c0_13 = arith.constant 0 : index
    %c0_14 = arith.constant 0 : index
    %19 = vector.load %arg6[%c0_12, %c0_13, %c0_14] : memref<1x64x16xbf16, #tpu.memory_space<vmem>>, vector<1x64x16xbf16>
    %20 = vector.shape_cast %19 : vector<1x64x16xbf16> to vector<64x16xbf16>
    %21 = vector.shape_cast %18 : vector<64x16xbf16> to vector<1x64x16xbf16>
    tpu.vector_store %arg6[%c0_12, %c0_13, %c0_14], %21 {strides = array<i32>} : memref<1x64x16xbf16, #tpu.memory_space<vmem>>, vector<1x64x16xbf16>,
    return
  }
  func.func @transform_0(%arg0: i32) -> (i32, i32, i32) {
    %c0_i32 = arith.constant 0 : i32
    %c0_i32_0 = arith.constant 0 : i32
    %c0_i32_1 = arith.constant 0 : i32
    return %arg0, %c0_i32, %c0_i32_0 : i32, i32, i32
  }
  func.func @transform_1(%arg0: i32) -> (i32, i32) {
    %c0_i32 = arith.constant 0 : i32
    %c0_i32_0 = arith.constant 0 : i32
    %c0_i32_1 = arith.constant 0 : i32
    return %c0_i32, %c0_i32_0 : i32, i32
  }
  func.func @transform_2(%arg0: i32) -> (i32, i32) {
    %c0_i32 = arith.constant 0 : i32
    %c0_i32_0 = arith.constant 0 : i32
    %c0_i32_1 = arith.constant 0 : i32
    return %c0_i32, %c0_i32_0 : i32, i32
  }
  func.func @transform_3(%arg0: i32) -> (i32, i32) {
    %c0_i32 = arith.constant 0 : i32
    %c0_i32_0 = arith.constant 0 : i32
    %c0_i32_1 = arith.constant 0 : i32
    return %c0_i32, %c0_i32_0 : i32, i32
  }
  func.func @transform_4(%arg0: i32) -> (i32, i32) {
    %c0_i32 = arith.constant 0 : i32
    %c0_i32_0 = arith.constant 0 : i32
    %c0_i32_1 = arith.constant 0 : i32
    return %c0_i32, %c0_i32_0 : i32, i32
  }
  func.func @transform_5(%arg0: i32) -> (i32, i32, i32) {
    %c0_i32 = arith.constant 0 : i32
    %c0_i32_0 = arith.constant 0 : i32
    %c0_i32_1 = arith.constant 0 : i32
    return %arg0, %c0_i32, %c0_i32_0 : i32, i32, i32
  }
}

module attributes {stable_mosaic.version = 11 : i64} {
  func.func @_conv_mm_kernel(%arg0: i32, %arg1: memref<1x512x1728xbf16, #tpu.memory_space<vmem>>, %arg2: memref<1728x64xbf16, #tpu.memory_space<vmem>>, %arg3: memref<1x64xf32, #tpu.memory_space<vmem>>, %arg4: memref<1x64xf32, #tpu.memory_space<vmem>>, %arg5: memref<1x64xf32, #tpu.memory_space<vmem>>, %arg6: memref<1x512x64xbf16, #tpu.memory_space<vmem>>) attributes {dimension_semantics = [#tpu.dimension_semantics<parallel>], iteration_bounds = array<i64: 2>, scalar_prefetch = 0 : i64, scratch_operands = 0 : i64, tpu.core_type = #tpu.core_type<tc>, window_params = [{transform_indices = @transform_0, window_bounds = array<i64: 1, 512, 1728>}, {pipeline_mode = #tpu.pipeline_mode<synchronous>, transform_indices = @transform_1, window_bounds = array<i64: 1728, 64>}, {pipeline_mode = #tpu.pipeline_mode<synchronous>, transform_indices = @transform_2, window_bounds = array<i64: 1, 64>}, {pipeline_mode = #tpu.pipeline_mode<synchronous>, transform_indices = @transform_3, window_bounds = array<i64: 1, 64>}, {pipeline_mode = #tpu.pipeline_mode<synchronous>, transform_indices = @transform_4, window_bounds = array<i64: 1, 64>}, {transform_indices = @transform_5, window_bounds = array<i64: 1, 512, 64>}]} {
    %c0 = arith.constant 0 : index
    %c0_0 = arith.constant 0 : index
    %c0_1 = arith.constant 0 : index
    %0 = vector.load %arg1[%c0, %c0_0, %c0_1] : memref<1x512x1728xbf16, #tpu.memory_space<vmem>>, vector<1x512x1728xbf16>
    %1 = vector.shape_cast %0 : vector<1x512x1728xbf16> to vector<512x1728xbf16>
    %c0_2 = arith.constant 0 : index
    %c0_3 = arith.constant 0 : index
    %2 = vector.load %arg2[%c0_2, %c0_3] : memref<1728x64xbf16, #tpu.memory_space<vmem>>, vector<1728x64xbf16>
    %cst = arith.constant dense<0.000000e+00> : vector<512x64xf32>
    %3 = tpu.matmul %1, %2, %cst {dimension_numbers = #tpu.dot_dimension_numbers<[1], [0], [0], [1], [0, 0, 1, 1], [], []>} : vector<512x1728xbf16>, vector<1728x64xbf16>, vector<512x64xf32> -> vector<512x64xf32>
    %c0_4 = arith.constant 0 : index
    %c0_5 = arith.constant 0 : index
    %4 = vector.load %arg3[%c0_4, %c0_5] : memref<1x64xf32, #tpu.memory_space<vmem>>, vector<1x64xf32>
    %5 = vector.broadcast %4 : vector<1x64xf32> to vector<512x64xf32>
    %6 = arith.mulf %3, %5 : vector<512x64xf32>
    %c0_6 = arith.constant 0 : index
    %c0_7 = arith.constant 0 : index
    %7 = vector.load %arg4[%c0_6, %c0_7] : memref<1x64xf32, #tpu.memory_space<vmem>>, vector<1x64xf32>
    %8 = vector.broadcast %7 : vector<1x64xf32> to vector<512x64xf32>
    %9 = arith.addf %6, %8 : vector<512x64xf32>
    %c0_8 = arith.constant 0 : index
    %c0_9 = arith.constant 0 : index
    %10 = vector.load %arg5[%c0_8, %c0_9] : memref<1x64xf32, #tpu.memory_space<vmem>>, vector<1x64xf32>
    %cst_10 = arith.constant 0.000000e+00 : f32
    %11 = vector.broadcast %cst_10 : f32 to vector<1x64xf32>
    %12 = arith.cmpf ogt, %10, %11 : vector<1x64xf32>
    %cst_11 = arith.constant 0.000000e+00 : f32
    %13 = vector.broadcast %cst_11 : f32 to vector<512x64xf32>
    %14 = arith.maximumf %9, %13 : vector<512x64xf32>
    %15 = vector.shape_cast %12 : vector<1x64xi1> to vector<1x64xi1>
    %16 = vector.broadcast %15 : vector<1x64xi1> to vector<512x64xi1>
    %17 = arith.select %16, %14, %9 : vector<512x64xi1>, vector<512x64xf32>
    %18 = arith.truncf %17 : vector<512x64xf32> to vector<512x64xbf16>
    %c0_12 = arith.constant 0 : index
    %c0_13 = arith.constant 0 : index
    %c0_14 = arith.constant 0 : index
    %19 = vector.load %arg6[%c0_12, %c0_13, %c0_14] : memref<1x512x64xbf16, #tpu.memory_space<vmem>>, vector<1x512x64xbf16>
    %20 = vector.shape_cast %19 : vector<1x512x64xbf16> to vector<512x64xbf16>
    %21 = vector.shape_cast %18 : vector<512x64xbf16> to vector<1x512x64xbf16>
    tpu.vector_store %arg6[%c0_12, %c0_13, %c0_14], %21 {strides = array<i32>} : memref<1x512x64xbf16, #tpu.memory_space<vmem>>, vector<1x512x64xbf16>,
    return
  }
  func.func @transform_0(%arg0: i32) -> (i32, i32, i32) {
    %c0_i32 = arith.constant 0 : i32
    %c0_i32_0 = arith.constant 0 : i32
    %c0_i32_1 = arith.constant 0 : i32
    return %arg0, %c0_i32, %c0_i32_0 : i32, i32, i32
  }
  func.func @transform_1(%arg0: i32) -> (i32, i32) {
    %c0_i32 = arith.constant 0 : i32
    %c0_i32_0 = arith.constant 0 : i32
    %c0_i32_1 = arith.constant 0 : i32
    return %c0_i32, %c0_i32_0 : i32, i32
  }
  func.func @transform_2(%arg0: i32) -> (i32, i32) {
    %c0_i32 = arith.constant 0 : i32
    %c0_i32_0 = arith.constant 0 : i32
    %c0_i32_1 = arith.constant 0 : i32
    return %c0_i32, %c0_i32_0 : i32, i32
  }
  func.func @transform_3(%arg0: i32) -> (i32, i32) {
    %c0_i32 = arith.constant 0 : i32
    %c0_i32_0 = arith.constant 0 : i32
    %c0_i32_1 = arith.constant 0 : i32
    return %c0_i32, %c0_i32_0 : i32, i32
  }
  func.func @transform_4(%arg0: i32) -> (i32, i32) {
    %c0_i32 = arith.constant 0 : i32
    %c0_i32_0 = arith.constant 0 : i32
    %c0_i32_1 = arith.constant 0 : i32
    return %c0_i32, %c0_i32_0 : i32, i32
  }
  func.func @transform_5(%arg0: i32) -> (i32, i32, i32) {
    %c0_i32 = arith.constant 0 : i32
    %c0_i32_0 = arith.constant 0 : i32
    %c0_i32_1 = arith.constant 0 : i32
    return %arg0, %c0_i32, %c0_i32_0 : i32, i32, i32
  }
}

</mosaic_0001>

<bundles_post_ra>
// kernel: _lambda_.8
= control target key start
LH: loop header
LB: loop body
LE: loop exit
PB: predicated region body
PF: predicated region fallthrough
CT: control target
= control target key end

     0   :  { %s1965_s18 = smov 0   ;;  %s2537_s0 = inlined_call_operand.vmem [shape: bf16[2,512,81], index: 0, kind: input, shape index: {}]   ;;  %s2538_s1 = inlined_call_operand.vmem [shape: bf16[81,16], index: 1, kind: input, shape index: {}]   ;;  %s2539_s2 = inlined_call_operand.vmem [shape: f32[1,16], index: 2, kind: input, shape index: {}]   ;;  %s2540_s3 = inlined_call_operand.vmem [shape: f32[1,16], index: 3, kind: input, shape index: {}]   ;;  %s2541_s4 = inlined_call_operand.vmem [shape: f32[1,16], index: 4, kind: input, shape index: {}]   ;;  %s2542_s5 = inlined_call_operand.vmem [shape: bf16[2,512,16], index: 5, kind: output, shape index: {}]  }
   0x1 LB: > { %s1540_s19 = sadd.s32 4294967295, %s1932_s18   ;;  %p1544_p0 = scmp.ge.s32.totalorder %s1932_s18, 1  ;;  %s1932_s18 = sphi %s1965_s18, %s15_s18  }
   0x2   : > { %p187_p1 = scmp.lt.s32.totalorder %s1932_s18, 3 }
   0x4   : > { %p188_p2 = pnand %p1544_p0, %p187_p1 }
   0x5   : > { %v1888_v0 = vld [vmem:[%s2538_s1] sm:$0xff] (!%p188_p2)   ;;  %v1889_v1 = vld [vmem:[%s2538_s1 + $0x8] sm:$0xff] (!%p188_p2)   ;;  %v1890_v2 = vld [vmem:[%s2538_s1 + $0x10] sm:$0xff] (!%p188_p2)   ;;  %p215_p3 = scmp.lt.s32.totalorder (!%p188_p2), %s1540_s19, 1  ;;  %vm591_vm0 = vcmask (!%p188_p2), 1040384   ;;  %vm494_vm1 = vcmask (!%p188_p2), 662528   ;;  %v1095_v41 = vlaneseq (!%p188_p2) }
   0x6   : > { %191 = sbr.rel (%p188_p2) target bundleno = 331 (0x14b), region = 40  ;;  %1791 = vmatprep.subr.bf16.mxu0 (!%p188_p2), %v1888_v0  ;;  %1867 = vmatprep.subr.bf16.mxu1 (!%p188_p2), %v1888_v0  ;;  %v1891_v3 = vld [vmem:[%s2538_s1 + $0x18] sm:$0xff] (!%p188_p2)   ;;  %v1893_v4 = vld [vmem:[%s2538_s1 + $0x28] ss:$0 sps:$4 sm:$0x11] (!%p188_p2)   ;;  %v1892_v7 = vld [vmem:[%s2538_s1 + $0x20] sm:$0xff] (!%p188_p2)  }
   0x7   : > { %1792 = vmatpush3.bf16.msra.mxu0 (!%p188_p2), %v1888_v0  ;;  %1873 = vmatpush3.bf16.msra.mxu1 (!%p188_p2), %v1888_v0  ;;  %v1934_v8 = vmov (!%p188_p2), 0   ;;  %v1028_v42 = vld [vmem:[%s2541_s4] sm:$0x1] (!%p188_p2)  ;;  %v1096_v43 = vshrl.u32 (!%p188_p2), %v1095_v41, 7  ;;  %vm1420_vm4 = vcmask (!%p188_p2), 125952  }
   0x8   : > { %1793 = vmatprep.subr.bf16.mxu0 (!%p188_p2), %v1889_v1  ;;  %1868 = vmatprep.subr.bf16.mxu1 (!%p188_p2), %v1889_v1  ;;  %v593_v9 = vsel (!%p188_p2), %vm591_vm0, 65535, %v1934_v8  ;;  %vm1029_vm2 = vcmp.gt.f32.partialorder (!%p188_p2), %v1028_v42, 0.0  ;;  %v2075_v47 = vld [vmem:[%s2539_s2] ss:$0 sm:$0xff] (!%p188_p2) }
   0x9   : > { %v595_v10 = vand.u32 (!%p188_p2), %v1893_v4, %v593_v9  ;;  %v1097_v44 = vsub.s32 (!%p188_p2), 0, %v1096_v43  ;;  %v1094_v45 = vsel (!%p188_p2), %vm1029_vm2, 1, %v1934_v8  ;;  %v2080_v49 = vld [vmem:[%s2540_s3] ss:$0 sm:$0xff] (!%p188_p2) }
   0xb   : > { %1794 = vmatpush3.bf16.msra.mxu0 (!%p188_p2), %v1889_v1  ;;  %1874 = vmatpush3.bf16.msra.mxu1 (!%p188_p2), %v1889_v1  ;;  %v2070_v46 = vrot.slane (!%p188_p2), %v1094_v45, %v1097_v44 }
   0xc   : > { %1795 = vmatprep.subr.bf16.mxu0 (!%p188_p2), %v1890_v2  ;;  %1869 = vmatprep.subr.bf16.mxu1 (!%p188_p2), %v1890_v2 }
   0xd   : > { %s2544_s19 = smov (!%p215_p3, %s1540_s19), 1  ;;  %vm1099_vm3 = vcmp.eq.s32.totalorder %v2070_v46, 1 }
   0xe   : > { %s1687_s28 = sshll.u32 %s2544_s19, 8 }
   0xf   : > { %s1993_s6 = scalar_lea.vmem %s2537_s0, %s1687_s28  ;;  %1796 = vmatpush3.bf16.msra.mxu0 %v1890_v2  ;;  %1875 = vmatpush3.bf16.msra.mxu1 %v1890_v2  ;;  %s2104_s21 = scalar_lea.vmem %s2542_s5, %s1687_s28 }
  0x10   : > { %v1894_v5 = vld [vmem:[%s1993_s6] sm:$0xff]   ;;  %1797 = vmatprep.subr.bf16.mxu0 %v1891_v3  ;;  %1870 = vmatprep.subr.bf16.mxu1 %v1891_v3  ;;  %v1896_v11 = vld [vmem:[%s1993_s6 + $0x8] sm:$0xff]   ;;  %v1898_v13 = vld [vmem:[%s1993_s6 + $0x10] sm:$0xff]  }
  0x11   : > { %v1895_v6 = vld [vmem:[%s1993_s6 + $0x80] sm:$0xff]   ;;  %1803 = vmatprep.mubr.msk.bf16.mxu0 %vm494_vm1, %v1894_v5  ;;  %v1897_v12 = vld [vmem:[%s1993_s6 + $0x88] sm:$0xff]   ;;  %v1899_v14 = vld [vmem:[%s1993_s6 + $0x90] sm:$0xff]  }
  0x12   : > { %1835 = vmatprep.mubr.msk.bf16.mxu1 %vm494_vm1, %v1895_v6  ;;  %v1900_v15 = vld [vmem:[%s1993_s6 + $0x18] sm:$0xff]   ;;  %v1902_v17 = vld [vmem:[%s1993_s6 + $0x20] sm:$0xff]   ;;  %v1904_v19 = vld [vmem:[%s1993_s6 + $0x28] sm:$0xff]  }
  0x13   : > { %1798 = vmatpush3.bf16.msra.mxu0 %v1891_v3  ;;  %1876 = vmatpush3.bf16.msra.mxu1 %v1891_v3  ;;  %v1901_v16 = vld [vmem:[%s1993_s6 + $0x98] sm:$0xff]   ;;  %v1903_v18 = vld [vmem:[%s1993_s6 + $0xa0] sm:$0xff]   ;;  %v1905_v20 = vld [vmem:[%s1993_s6 + $0xa8] sm:$0xff]  }
  0x14   : > { %1799 = vmatprep.subr.bf16.mxu0 %v1892_v7  ;;  %1871 = vmatprep.subr.bf16.mxu1 %v1892_v7  ;;  %v1906_v21 = vld [vmem:[%s1993_s6 + $0x30] sm:$0xff]   ;;  %v1908_v23 = vld [vmem:[%s1993_s6 + $0x38] sm:$0xff]   ;;  %v1910_v25 = vld [vmem:[%s1993_s6 + $0x40] sm:$0xff]  }
  0x15   : > { %v1907_v22 = vld [vmem:[%s1993_s6 + $0xb0] sm:$0xff]   ;;  %v1909_v24 = vld [vmem:[%s1993_s6 + $0xb8] sm:$0xff]   ;;  %v1911_v26 = vld [vmem:[%s1993_s6 + $0xc0] sm:$0xff]  }
  0x16   : > { %v1912_v27 = vld [vmem:[%s1993_s6 + $0x48] sm:$0xff]   ;;  %v1914_v29 = vld [vmem:[%s1993_s6 + $0x50] sm:$0xff]   ;;  %v1916_v31 = vld [vmem:[%s1993_s6 + $0x58] sm:$0xff]  }
  0x17   : > { %1800 = vmatpush3.bf16.msra.mxu0 %v1892_v7  ;;  %1877 = vmatpush3.bf16.msra.mxu1 %v1892_v7  ;;  %v1913_v28 = vld [vmem:[%s1993_s6 + $0xc8] sm:$0xff]   ;;  %v1915_v30 = vld [vmem:[%s1993_s6 + $0xd0] sm:$0xff]   ;;  %v1917_v32 = vld [vmem:[%s1993_s6 + $0xd8] sm:$0xff]  }
  0x18   : > { %1801 = vmatprep.subr.bf16.mxu0 %v595_v10  ;;  %1872 = vmatprep.subr.bf16.mxu1 %v595_v10  ;;  %v1918_v33 = vld [vmem:[%s1993_s6 + $0x60] sm:$0xff]   ;;  %v1920_v35 = vld [vmem:[%s1993_s6 + $0x68] sm:$0xff]   ;;  %v1922_v37 = vld [vmem:[%s1993_s6 + $0x70] sm:$0xff]  }
  0x19   : > { %v1919_v34 = vld [vmem:[%s1993_s6 + $0xe0] sm:$0xff]   ;;  %v1921_v36 = vld [vmem:[%s1993_s6 + $0xe8] sm:$0xff]   ;;  %v1923_v38 = vld [vmem:[%s1993_s6 + $0xf0] sm:$0xff]  }
  0x1a   : > { %v1924_v39 = vld [vmem:[%s1993_s6 + $0x78] sm:$0xff]  }
  0x1b   : > { %1802 = vmatpush3.bf16.msra.mxu0 %v595_v10  ;;  %1878 = vmatpush3.bf16.msra.mxu1 %v595_v10  ;;  %v1925_v40 = vld [vmem:[%s1993_s6 + $0xf8] sm:$0xff]  }
  0x1e   : > { %1804 = vmatmul.mubr.msk.bf16.vlgmr.msra.gmra.mrb[0].mxu0 %vm494_vm1, %v1896_v11  ;;  %1836 = vmatmul.mubr.msk.bf16.vlgmr.msra.gmra.mrb[0].mxu1 %vm494_vm1, %v1897_v12 }
  0x1f   : > { %1807 = vmatprep.mubr.msk.bf16.mxu0 %vm494_vm1, %v1898_v13  ;;  %1839 = vmatprep.mubr.msk.bf16.mxu1 %vm494_vm1, %v1899_v14 }
  0x26   : > { %1808 = vmatmul.mubr.msk.bf16.gmra.mrb[4].mxu0 %vm494_vm1, %v1900_v15  ;;  %1840 = vmatmul.mubr.msk.bf16.gmra.mrb[4].mxu1 %vm494_vm1, %v1901_v16 }
  0x27   : > { %1811 = vmatprep.mubr.msk.bf16.mxu0 %vm494_vm1, %v1902_v17  ;;  %1843 = vmatprep.mubr.msk.bf16.mxu1 %vm494_vm1, %v1903_v18 }
  0x2e   : > { %1812 = vmatmul.mubr.msk.bf16.gmra.mrb[8].mxu0 %vm494_vm1, %v1904_v19  ;;  %1844 = vmatmul.mubr.msk.bf16.gmra.mrb[8].mxu1 %vm494_vm1, %v1905_v20 }
  0x2f   : > { %1815 = vmatprep.mubr.msk.bf16.mxu0 %vm494_vm1, %v1906_v21  ;;  %1847 = vmatprep.mubr.msk.bf16.mxu1 %vm494_vm1, %v1907_v22 }
  0x36   : > { %1816 = vmatmul.mubr.msk.bf16.gmra.mrb[12].mxu0 %vm494_vm1, %v1908_v23  ;;  %1848 = vmatmul.mubr.msk.bf16.gmra.mrb[12].mxu1 %vm494_vm1, %v1909_v24 }
  0x37   : > { %1819 = vmatprep.mubr.msk.bf16.mxu0 %vm494_vm1, %v1910_v25  ;;  %1851 = vmatprep.mubr.msk.bf16.mxu1 %vm494_vm1, %v1911_v26 }
  0x3e   : > { %1820 = vmatmul.mubr.msk.bf16.gmra.mrb[16].mxu0 %vm494_vm1, %v1912_v27  ;;  %1852 = vmatmul.mubr.msk.bf16.gmra.mrb[16].mxu1 %vm494_vm1, %v1913_v28 }
  0x3f   : > { %1823 = vmatprep.mubr.msk.bf16.mxu0 %vm494_vm1, %v1914_v29  ;;  %1855 = vmatprep.mubr.msk.bf16.mxu1 %vm494_vm1, %v1915_v30 }
  0x46   : > { %1824 = vmatmul.mubr.msk.bf16.gmra.mrb[20].mxu0 %vm494_vm1, %v1916_v31  ;;  %1856 = vmatmul.mubr.msk.bf16.gmra.mrb[20].mxu1 %vm494_vm1, %v1917_v32 }
  0x47   : > { %1827 = vmatprep.mubr.msk.bf16.mxu0 %vm494_vm1, %v1918_v33  ;;  %1859 = vmatprep.mubr.msk.bf16.mxu1 %vm494_vm1, %v1919_v34 }
  0x4e   : > { %1828 = vmatmul.mubr.msk.bf16.gmra.mrb[24].mxu0 %vm494_vm1, %v1920_v35  ;;  %1860 = vmatmul.mubr.msk.bf16.gmra.mrb[24].mxu1 %vm494_vm1, %v1921_v36 }
  0x4f   : > { %1831 = vmatprep.mubr.msk.bf16.mxu0 %vm494_vm1, %v1922_v37  ;;  %1863 = vmatprep.mubr.msk.bf16.mxu1 %vm494_vm1, %v1923_v38 }
  0x56   : > { %1832 = vmatmul.mubr.msk.bf16.gmra.mrb[28].mxu0 %vm494_vm1, %v1924_v39  ;;  %1864 = vmatmul.mubr.msk.bf16.gmra.mrb[28].mxu1 %vm494_vm1, %v1925_v40 }
  0xf1   : > { %v1805_v48 = vpop.f32.mrb[0].mxu0  ;;  %v1837_v50 = vpop.f32.mrb[0].mxu1 }
  0xf2   : > { %v895_v51 = vmul.f32 %v1805_v48, %v2075_v47  ;;  %v927_v52 = vmul.f32 %v1837_v50, %v2075_v47  ;;  %v631_v53 = vpop.f32.mrb[1].mxu0  ;;  %v759_v54 = vpop.f32.mrb[1].mxu1 }
  0xf3   : > { %v893_v55 = vmul.f32 %v2075_v47, %v631_v53  ;;  %v925_v56 = vmul.f32 %v2075_v47, %v759_v54  ;;  %v1806_v57 = vpop.f32.mrb[2].mxu0  ;;  %v1838_v58 = vpop.f32.mrb[2].mxu1 }
  0xf4   : > { %v966_v59 = vadd.f32 %v2080_v49, %v895_v51  ;;  %v998_v60 = vadd.f32 %v2080_v49, %v927_v52  ;;  %v896_v61 = vmul.f32 %v1806_v57, %v2075_v47  ;;  %v928_v62 = vmul.f32 %v1838_v58, %v2075_v47  ;;  %v634_v63 = vpop.f32.mrb[3].mxu0  ;;  %v762_v0 = vpop.f32.mrb[3].mxu1 }
  0xf5   : > { %v964_v1 = vadd.f32 %v2080_v49, %v893_v55  ;;  %v996_v2 = vadd.f32 %v2080_v49, %v925_v56  ;;  %v894_v3 = vmul.f32 %v2075_v47, %v634_v63  ;;  %v926_v4 = vmul.f32 %v2075_v47, %v762_v0 }
  0xf6   : > { %v1032_v5 = vmax.f32 %v966_v59, 0.0  ;;  %v1064_v6 = vmax.f32 %v998_v60, 0.0  ;;  %v967_v7 = vadd.f32 %v2080_v49, %v896_v61  ;;  %v999_v8 = vadd.f32 %v2080_v49, %v928_v62 }
  0xf7   : > { %v1030_v9 = vmax.f32 %v964_v1, 0.0  ;;  %v1062_v10 = vmax.f32 %v996_v2, 0.0  ;;  %v965_v11 = vadd.f32 %v2080_v49, %v894_v3  ;;  %v997_v12 = vadd.f32 %v2080_v49, %v926_v4 }
  0xf8   : > { %v1102_v13 = vsel %vm1099_vm3, %v1032_v5, %v966_v59  ;;  %v1134_v14 = vsel %vm1099_vm3, %v1064_v6, %v998_v60  ;;  %v1033_v15 = vmax.f32 %v967_v7, 0.0  ;;  %v1065_v16 = vmax.f32 %v999_v8, 0.0 }
  0xf9   : > { %v1691_v17 = vpack.c.bf16 %v1102_v13, %v1102_v13  ;;  %v1723_v18 = vpack.c.bf16 %v1134_v14, %v1134_v14  ;;  %v1100_v19 = vsel %vm1099_vm3, %v1030_v9, %v964_v1  ;;  %v1132_v20 = vsel %vm1099_vm3, %v1062_v10, %v996_v2  ;;  %v1809_v21 = vpop.f32.mrb[4].mxu0  ;;  %v1841_v22 = vpop.f32.mrb[4].mxu1 }
  0xfa   : > { %v1689_v23 = vpack.c.bf16 %v1100_v19, %v1100_v19  ;;  %v1721_v24 = vpack.c.bf16 %v1132_v20, %v1132_v20  ;;  %v1103_v25 = vsel %vm1099_vm3, %v1033_v15, %v967_v7  ;;  %v1135_v26 = vsel %vm1099_vm3, %v1065_v16, %v999_v8  ;;  %v647_v27 = vpop.f32.mrb[5].mxu0  ;;  %v775_v28 = vpop.f32.mrb[5].mxu1 }
  0xfb   : > { %1423 = vst.msk [vmem:[%s2104_s21 + $0x8] sm:$0xf] %vm1420_vm4, %v1691_v17  ;;  %1455 = vst.msk [vmem:[%s2104_s21 + $0x88] sm:$0xf] %vm1420_vm4, %v1723_v18  ;;  %v1692_v29 = vpack.c.bf16 %v1103_v25, %v1103_v25  ;;  %v1724_v30 = vpack.c.bf16 %v1135_v26, %v1135_v26  ;;  %v1031_v31 = vmax.f32 %v965_v11, 0.0  ;;  %v1063_v32 = vmax.f32 %v997_v12, 0.0 }
  0xfc   : > { %v1810_v33 = vpop.f32.mrb[6].mxu0  ;;  %v1842_v34 = vpop.f32.mrb[6].mxu1  ;;  %1421 = vst.msk [vmem:[%s2104_s21] sm:$0xf] %vm1420_vm4, %v1689_v23  ;;  %1453 = vst.msk [vmem:[%s2104_s21 + $0x80] sm:$0xf] %vm1420_vm4, %v1721_v24  ;;  %v899_v35 = vmul.f32 %v1809_v21, %v2075_v47  ;;  %v931_v36 = vmul.f32 %v1841_v22, %v2075_v47  ;;  %v897_v37 = vmul.f32 %v2075_v47, %v647_v27 }
  0xfd   : > { %v929_v38 = vmul.f32 %v2075_v47, %v775_v28  ;;  %v650_v39 = vpop.f32.mrb[7].mxu0  ;;  %v778_v40 = vpop.f32.mrb[7].mxu1  ;;  %1424 = vst.msk [vmem:[%s2104_s21 + $0xc] sm:$0xf] %vm1420_vm4, %v1692_v29  ;;  %1456 = vst.msk [vmem:[%s2104_s21 + $0x8c] sm:$0xf] %vm1420_vm4, %v1724_v30  ;;  %v1101_v41 = vsel %vm1099_vm3, %v1031_v31, %v965_v11  ;;  %v1133_v42 = vsel %vm1099_vm3, %v1063_v32, %v997_v12 }
  0xfe   : > { %v900_v43 = vmul.f32 %v1810_v33, %v2075_v47  ;;  %v932_v44 = vmul.f32 %v1842_v34, %v2075_v47  ;;  %v1690_v45 = vpack.c.bf16 %v1101_v41, %v1101_v41  ;;  %v1722_v48 = vpack.c.bf16 %v1133_v42, %v1133_v42 }
  0xff   : > { %v970_v50 = vadd.f32 %v2080_v49, %v899_v35  ;;  %v1002_v51 = vadd.f32 %v2080_v49, %v931_v36  ;;  %v968_v52 = vadd.f32 %v2080_v49, %v897_v37  ;;  %v1000_v53 = vadd.f32 %v2080_v49, %v929_v38 }
 0x100   : > { %v971_v54 = vadd.f32 %v2080_v49, %v900_v43  ;;  %v1003_v55 = vadd.f32 %v2080_v49, %v932_v44  ;;  %1422 = vst.msk [vmem:[%s2104_s21 + $0x4] sm:$0xf] %vm1420_vm4, %v1690_v45  ;;  %1454 = vst.msk [vmem:[%s2104_s21 + $0x84] sm:$0xf] %vm1420_vm4, %v1722_v48  ;;  %v898_v58 = vmul.f32 %v2075_v47, %v650_v39 }
 0x101   : > { %v1036_v56 = vmax.f32 %v970_v50, 0.0  ;;  %v1068_v57 = vmax.f32 %v1002_v51, 0.0  ;;  %v930_v59 = vmul.f32 %v2075_v47, %v778_v40  ;;  %v1034_v60 = vmax.f32 %v968_v52, 0.0  ;;  %v1813_v0 = vpop.f32.mrb[8].mxu0  ;;  %v1845_v1 = vpop.f32.mrb[8].mxu1 }
 0x102   : > { %v1066_v61 = vmax.f32 %v1000_v53, 0.0  ;;  %v1037_v62 = vmax.f32 %v971_v54, 0.0  ;;  %v1069_v63 = vmax.f32 %v1003_v55, 0.0  ;;  %v969_v4 = vadd.f32 %v2080_v49, %v898_v58  ;;  %v663_v6 = vpop.f32.mrb[9].mxu0  ;;  %v791_v7 = vpop.f32.mrb[9].mxu1 }
 0x103   : > { %v1106_v2 = vsel %vm1099_vm3, %v1036_v56, %v970_v50  ;;  %v1138_v3 = vsel %vm1099_vm3, %v1068_v57, %v1002_v51  ;;  %v1001_v5 = vadd.f32 %v2080_v49, %v930_v59  ;;  %v1104_v10 = vsel %vm1099_vm3, %v1034_v60, %v968_v52  ;;  %v1814_v12 = vpop.f32.mrb[10].mxu0  ;;  %v1846_v13 = vpop.f32.mrb[10].mxu1 }
 0x104   : > { %v1695_v8 = vpack.c.bf16 %v1106_v2, %v1106_v2  ;;  %v1727_v9 = vpack.c.bf16 %v1138_v3, %v1138_v3  ;;  %v1136_v11 = vsel %vm1099_vm3, %v1066_v61, %v1000_v53  ;;  %v1693_v14 = vpack.c.bf16 %v1104_v10, %v1104_v10  ;;  %v666_v18 = vpop.f32.mrb[11].mxu0  ;;  %v794_v19 = vpop.f32.mrb[11].mxu1 }
 0x105   : > { %v1725_v15 = vpack.c.bf16 %v1136_v11, %v1136_v11  ;;  %v1107_v16 = vsel %vm1099_vm3, %v1037_v62, %v971_v54  ;;  %v1139_v17 = vsel %vm1099_vm3, %v1069_v63, %v1003_v55  ;;  %v1035_v22 = vmax.f32 %v969_v4, 0.0 }
 0x106   : > { %1427 = vst.msk [vmem:[%s2104_s21 + $0x18] sm:$0xf] %vm1420_vm4, %v1695_v8  ;;  %1459 = vst.msk [vmem:[%s2104_s21 + $0x98] sm:$0xf] %vm1420_vm4, %v1727_v9  ;;  %v1696_v20 = vpack.c.bf16 %v1107_v16, %v1107_v16  ;;  %v1728_v21 = vpack.c.bf16 %v1139_v17, %v1139_v17  ;;  %v1067_v23 = vmax.f32 %v1001_v5, 0.0  ;;  %v903_v24 = vmul.f32 %v1813_v0, %v2075_v47 }
 0x107   : > { %1425 = vst.msk [vmem:[%s2104_s21 + $0x10] sm:$0xf] %vm1420_vm4, %v1693_v14  ;;  %1457 = vst.msk [vmem:[%s2104_s21 + $0x90] sm:$0xf] %vm1420_vm4, %v1725_v15  ;;  %v935_v25 = vmul.f32 %v1845_v1, %v2075_v47  ;;  %v901_v26 = vmul.f32 %v2075_v47, %v663_v6  ;;  %v933_v27 = vmul.f32 %v2075_v47, %v791_v7 }
 0x108   : > { %1428 = vst.msk [vmem:[%s2104_s21 + $0x1c] sm:$0xf] %vm1420_vm4, %v1696_v20  ;;  %1460 = vst.msk [vmem:[%s2104_s21 + $0x9c] sm:$0xf] %vm1420_vm4, %v1728_v21  ;;  %v1105_v28 = vsel %vm1099_vm3, %v1035_v22, %v969_v4  ;;  %v1137_v29 = vsel %vm1099_vm3, %v1067_v23, %v1001_v5  ;;  %v904_v30 = vmul.f32 %v1814_v12, %v2075_v47 }
 0x109   : > { %v936_v31 = vmul.f32 %v1846_v13, %v2075_v47  ;;  %v1694_v32 = vpack.c.bf16 %v1105_v28, %v1105_v28  ;;  %v1726_v33 = vpack.c.bf16 %v1137_v29, %v1137_v29  ;;  %v974_v34 = vadd.f32 %v2080_v49, %v903_v24  ;;  %v1817_v40 = vpop.f32.mrb[12].mxu0  ;;  %v1849_v41 = vpop.f32.mrb[12].mxu1 }
 0x10a   : > { %v1006_v35 = vadd.f32 %v2080_v49, %v935_v25  ;;  %v972_v36 = vadd.f32 %v2080_v49, %v901_v26  ;;  %v1004_v37 = vadd.f32 %v2080_v49, %v933_v27  ;;  %v975_v38 = vadd.f32 %v2080_v49, %v904_v30  ;;  %v679_v48 = vpop.f32.mrb[13].mxu0  ;;  %v807_v50 = vpop.f32.mrb[13].mxu1 }
 0x10b   : > { %v1007_v39 = vadd.f32 %v2080_v49, %v936_v31  ;;  %1426 = vst.msk [vmem:[%s2104_s21 + $0x14] sm:$0xf] %vm1420_vm4, %v1694_v32  ;;  %1458 = vst.msk [vmem:[%s2104_s21 + $0x94] sm:$0xf] %vm1420_vm4, %v1726_v33  ;;  %v1040_v42 = vmax.f32 %v974_v34, 0.0  ;;  %v902_v44 = vmul.f32 %v2075_v47, %v666_v18  ;;  %v934_v45 = vmul.f32 %v2075_v47, %v794_v19  ;;  %v1818_v55 = vpop.f32.mrb[14].mxu0 }
 0x10c   : > { %v1072_v43 = vmax.f32 %v1006_v35, 0.0  ;;  %v1038_v51 = vmax.f32 %v972_v36, 0.0  ;;  %v1070_v52 = vmax.f32 %v1004_v37, 0.0  ;;  %v1041_v53 = vmax.f32 %v975_v38, 0.0  ;;  %v1850_v56 = vpop.f32.mrb[14].mxu1  ;;  %v682_v61 = vpop.f32.mrb[15].mxu0 }
 0x10d   : > { %v1073_v54 = vmax.f32 %v1007_v39, 0.0  ;;  %v1110_v57 = vsel %vm1099_vm3, %v1040_v42, %v974_v34  ;;  %v973_v59 = vadd.f32 %v2080_v49, %v902_v44  ;;  %v1005_v60 = vadd.f32 %v2080_v49, %v934_v45  ;;  %v810_v62 = vpop.f32.mrb[15].mxu1 }
 0x10e   : > { %v1142_v58 = vsel %vm1099_vm3, %v1072_v43, %v1006_v35  ;;  %v1699_v63 = vpack.c.bf16 %v1110_v57, %v1110_v57  ;;  %v1108_v1 = vsel %vm1099_vm3, %v1038_v51, %v972_v36  ;;  %v1140_v2 = vsel %vm1099_vm3, %v1070_v52, %v1004_v37 }
 0x10f   : > { %v1731_v0 = vpack.c.bf16 %v1142_v58, %v1142_v58  ;;  %v1697_v3 = vpack.c.bf16 %v1108_v1, %v1108_v1  ;;  %v1729_v4 = vpack.c.bf16 %v1140_v2, %v1140_v2  ;;  %v1111_v5 = vsel %vm1099_vm3, %v1041_v53, %v975_v38 }
 0x110   : > { %v1143_v6 = vsel %vm1099_vm3, %v1073_v54, %v1007_v39  ;;  %1431 = vst.msk [vmem:[%s2104_s21 + $0x28] sm:$0xf] %vm1420_vm4, %v1699_v63  ;;  %v1700_v7 = vpack.c.bf16 %v1111_v5, %v1111_v5  ;;  %v1039_v9 = vmax.f32 %v973_v59, 0.0  ;;  %v1071_v10 = vmax.f32 %v1005_v60, 0.0 }
 0x111   : > { %1463 = vst.msk [vmem:[%s2104_s21 + $0xa8] sm:$0xf] %vm1420_vm4, %v1731_v0  ;;  %v1732_v8 = vpack.c.bf16 %v1143_v6, %v1143_v6  ;;  %1429 = vst.msk [vmem:[%s2104_s21 + $0x20] sm:$0xf] %vm1420_vm4, %v1697_v3  ;;  %v907_v11 = vmul.f32 %v1817_v40, %v2075_v47  ;;  %v939_v12 = vmul.f32 %v1849_v41, %v2075_v47  ;;  %v1821_v19 = vpop.f32.mrb[16].mxu0  ;;  %v1853_v20 = vpop.f32.mrb[16].mxu1 }
 0x112   : > { %1461 = vst.msk [vmem:[%s2104_s21 + $0xa0] sm:$0xf] %vm1420_vm4, %v1729_v4  ;;  %v905_v13 = vmul.f32 %v2075_v47, %v679_v48  ;;  %v937_v14 = vmul.f32 %v2075_v47, %v807_v50  ;;  %1432 = vst.msk [vmem:[%s2104_s21 + $0x2c] sm:$0xf] %vm1420_vm4, %v1700_v7  ;;  %v1109_v15 = vsel %vm1099_vm3, %v1039_v9, %v973_v59  ;;  %v695_v25 = vpop.f32.mrb[17].mxu0  ;;  %v823_v26 = vpop.f32.mrb[17].mxu1 }
 0x113   : > { %1464 = vst.msk [vmem:[%s2104_s21 + $0xac] sm:$0xf] %vm1420_vm4, %v1732_v8  ;;  %v1141_v16 = vsel %vm1099_vm3, %v1071_v10, %v1005_v60  ;;  %v908_v17 = vmul.f32 %v1818_v55, %v2075_v47  ;;  %v940_v18 = vmul.f32 %v1850_v56, %v2075_v47  ;;  %v1698_v21 = vpack.c.bf16 %v1109_v15, %v1109_v15  ;;  %v1822_v31 = vpop.f32.mrb[18].mxu0  ;;  %v1854_v32 = vpop.f32.mrb[18].mxu1 }
 0x114   : > { %v1730_v22 = vpack.c.bf16 %v1141_v16, %v1141_v16  ;;  %v978_v23 = vadd.f32 %v2080_v49, %v907_v11  ;;  %v1010_v24 = vadd.f32 %v2080_v49, %v939_v12  ;;  %v976_v27 = vadd.f32 %v2080_v49, %v905_v13  ;;  %v698_v37 = vpop.f32.mrb[19].mxu0  ;;  %v826_v38 = vpop.f32.mrb[19].mxu1 }
 0x115   : > { %v1008_v28 = vadd.f32 %v2080_v49, %v937_v14  ;;  %v979_v29 = vadd.f32 %v2080_v49, %v908_v17  ;;  %v1011_v30 = vadd.f32 %v2080_v49, %v940_v18  ;;  %1430 = vst.msk [vmem:[%s2104_s21 + $0x24] sm:$0xf] %vm1420_vm4, %v1698_v21  ;;  %v906_v35 = vmul.f32 %v2075_v47, %v682_v61 }
 0x116   : > { %1462 = vst.msk [vmem:[%s2104_s21 + $0xa4] sm:$0xf] %vm1420_vm4, %v1730_v22  ;;  %v1044_v33 = vmax.f32 %v978_v23, 0.0  ;;  %v1076_v34 = vmax.f32 %v1010_v24, 0.0  ;;  %v938_v36 = vmul.f32 %v2075_v47, %v810_v62  ;;  %v1042_v39 = vmax.f32 %v976_v27, 0.0 }
 0x117   : > { %v1074_v40 = vmax.f32 %v1008_v28, 0.0  ;;  %v1045_v41 = vmax.f32 %v979_v29, 0.0  ;;  %v1077_v42 = vmax.f32 %v1011_v30, 0.0  ;;  %v977_v45 = vadd.f32 %v2080_v49, %v906_v35 }
 0x118   : > { %v1114_v43 = vsel %vm1099_vm3, %v1044_v33, %v978_v23  ;;  %v1146_v44 = vsel %vm1099_vm3, %v1076_v34, %v1010_v24  ;;  %v1009_v48 = vadd.f32 %v2080_v49, %v938_v36  ;;  %v1112_v52 = vsel %vm1099_vm3, %v1042_v39, %v976_v27 }
 0x119   : > { %v1703_v50 = vpack.c.bf16 %v1114_v43, %v1114_v43  ;;  %v1735_v51 = vpack.c.bf16 %v1146_v44, %v1146_v44  ;;  %v1144_v53 = vsel %vm1099_vm3, %v1074_v40, %v1008_v28  ;;  %v1701_v54 = vpack.c.bf16 %v1112_v52, %v1112_v52  ;;  %v2266_v62 = vpop.f32.mrb[20].mxu0  ;;  %v2268_v63 = vpop.f32.mrb[20].mxu1 }
 0x11a   : > { %v1733_v55 = vpack.c.bf16 %v1144_v53, %v1144_v53  ;;  %v1115_v56 = vsel %vm1099_vm3, %v1045_v41, %v979_v29  ;;  %v1147_v57 = vsel %vm1099_vm3, %v1077_v42, %v1011_v30  ;;  %v1043_v60 = vmax.f32 %v977_v45, 0.0  ;;  %v711_v4 = vpop.f32.mrb[21].mxu0  ;;  %v839_v5 = vpop.f32.mrb[21].mxu1 }
 0x11b   : > { %1435 = vst.msk [vmem:[%s2104_s21 + $0x38] sm:$0xf] %vm1420_vm4, %v1703_v50  ;;  %1467 = vst.msk [vmem:[%s2104_s21 + $0xb8] sm:$0xf] %vm1420_vm4, %v1735_v51  ;;  %v1704_v58 = vpack.c.bf16 %v1115_v56, %v1115_v56  ;;  %v1736_v59 = vpack.c.bf16 %v1147_v57, %v1147_v57  ;;  %v1075_v61 = vmax.f32 %v1009_v48, 0.0  ;;  %v911_v0 = vmul.f32 %v1821_v19, %v2075_v47  ;;  %v1826_v10 = vpop.f32.mrb[22].mxu0 }
 0x11c   : > { %1433 = vst.msk [vmem:[%s2104_s21 + $0x30] sm:$0xf] %vm1420_vm4, %v1701_v54  ;;  %1465 = vst.msk [vmem:[%s2104_s21 + $0xb0] sm:$0xf] %vm1420_vm4, %v1733_v55  ;;  %v943_v1 = vmul.f32 %v1853_v20, %v2075_v47  ;;  %v909_v2 = vmul.f32 %v2075_v47, %v695_v25  ;;  %v941_v3 = vmul.f32 %v2075_v47, %v823_v26  ;;  %v1858_v11 = vpop.f32.mrb[22].mxu1  ;;  %v2290_v16 = vpop.f32.mrb[23].mxu0 }
 0x11d   : > { %1436 = vst.msk [vmem:[%s2104_s21 + $0x3c] sm:$0xf] %vm1420_vm4, %v1704_v58  ;;  %1468 = vst.msk [vmem:[%s2104_s21 + $0xbc] sm:$0xf] %vm1420_vm4, %v1736_v59  ;;  %v1113_v6 = vsel %vm1099_vm3, %v1043_v60, %v977_v45  ;;  %v1145_v7 = vsel %vm1099_vm3, %v1075_v61, %v1009_v48  ;;  %v912_v8 = vmul.f32 %v1822_v31, %v2075_v47  ;;  %v2292_v17 = vpop.f32.mrb[23].mxu1 }
 0x11e   : > { %v944_v9 = vmul.f32 %v1854_v32, %v2075_v47  ;;  %v1702_v12 = vpack.c.bf16 %v1113_v6, %v1113_v6  ;;  %v1734_v13 = vpack.c.bf16 %v1145_v7, %v1145_v7  ;;  %v982_v14 = vadd.f32 %v2080_v49, %v911_v0 }
 0x11f   : > { %v1014_v15 = vadd.f32 %v2080_v49, %v943_v1  ;;  %v980_v18 = vadd.f32 %v2080_v49, %v909_v2  ;;  %v1012_v19 = vadd.f32 %v2080_v49, %v941_v3  ;;  %v983_v20 = vadd.f32 %v2080_v49, %v912_v8 }
 0x120   : > { %v1015_v21 = vadd.f32 %v2080_v49, %v944_v9  ;;  %1434 = vst.msk [vmem:[%s2104_s21 + $0x34] sm:$0xf] %vm1420_vm4, %v1702_v12  ;;  %1466 = vst.msk [vmem:[%s2104_s21 + $0xb4] sm:$0xf] %vm1420_vm4, %v1734_v13  ;;  %v1048_v22 = vmax.f32 %v982_v14, 0.0  ;;  %v910_v24 = vmul.f32 %v2075_v47, %v698_v37  ;;  %v942_v25 = vmul.f32 %v2075_v47, %v826_v38 }
 0x121   : > { %v1080_v23 = vmax.f32 %v1014_v15, 0.0  ;;  %v1046_v26 = vmax.f32 %v980_v18, 0.0  ;;  %v1078_v27 = vmax.f32 %v1012_v19, 0.0  ;;  %v1049_v28 = vmax.f32 %v983_v20, 0.0  ;;  %v2314_v38 = vpop.f32.mrb[24].mxu0  ;;  %v2316_v39 = vpop.f32.mrb[24].mxu1 }
 0x122   : > { %v1081_v29 = vmax.f32 %v1015_v21, 0.0  ;;  %v1118_v30 = vsel %vm1099_vm3, %v1048_v22, %v982_v14  ;;  %v981_v32 = vadd.f32 %v2080_v49, %v910_v24  ;;  %v1013_v33 = vadd.f32 %v2080_v49, %v942_v25  ;;  %v2322_v44 = vpop.f32.mrb[25].mxu0  ;;  %v2324_v45 = vpop.f32.mrb[25].mxu1 }
 0x123   : > { %v1150_v31 = vsel %vm1099_vm3, %v1080_v23, %v1014_v15  ;;  %v1707_v34 = vpack.c.bf16 %v1118_v30, %v1118_v30  ;;  %v1116_v36 = vsel %vm1099_vm3, %v1046_v26, %v980_v18  ;;  %v1148_v37 = vsel %vm1099_vm3, %v1078_v27, %v1012_v19  ;;  %v2330_v53 = vpop.f32.mrb[26].mxu0  ;;  %v2332_v54 = vpop.f32.mrb[26].mxu1 }
 0x124   : > { %v1739_v35 = vpack.c.bf16 %v1150_v31, %v1150_v31  ;;  %v1705_v40 = vpack.c.bf16 %v1116_v36, %v1116_v36  ;;  %v1737_v41 = vpack.c.bf16 %v1148_v37, %v1148_v37  ;;  %v1119_v42 = vsel %vm1099_vm3, %v1049_v28, %v983_v20  ;;  %v2344_v59 = vpop.f32.mrb[27].mxu0  ;;  %v2346_v60 = vpop.f32.mrb[27].mxu1 }
 0x125   : > { %v1151_v43 = vsel %vm1099_vm3, %v1081_v29, %v1015_v21  ;;  %1439 = vst.msk [vmem:[%s2104_s21 + $0x48] sm:$0xf] %vm1420_vm4, %v1707_v34  ;;  %v1708_v48 = vpack.c.bf16 %v1119_v42, %v1119_v42  ;;  %v1047_v51 = vmax.f32 %v981_v32, 0.0  ;;  %v1079_v52 = vmax.f32 %v1013_v33, 0.0 }
 0x126   : > { %1471 = vst.msk [vmem:[%s2104_s21 + $0xc8] sm:$0xf] %vm1420_vm4, %v1739_v35  ;;  %v1740_v50 = vpack.c.bf16 %v1151_v43, %v1151_v43  ;;  %1437 = vst.msk [vmem:[%s2104_s21 + $0x40] sm:$0xf] %vm1420_vm4, %v1705_v40  ;;  %v915_v55 = vmul.f32 %v2266_v62, %v2075_v47  ;;  %v947_v56 = vmul.f32 %v2268_v63, %v2075_v47 }
 0x127   : > { %1469 = vst.msk [vmem:[%s2104_s21 + $0xc0] sm:$0xf] %vm1420_vm4, %v1737_v41  ;;  %v913_v57 = vmul.f32 %v2075_v47, %v711_v4  ;;  %v945_v58 = vmul.f32 %v2075_v47, %v839_v5  ;;  %1440 = vst.msk [vmem:[%s2104_s21 + $0x4c] sm:$0xf] %vm1420_vm4, %v1708_v48  ;;  %v1117_v61 = vsel %vm1099_vm3, %v1047_v51, %v981_v32 }
 0x128   : > { %1472 = vst.msk [vmem:[%s2104_s21 + $0xcc] sm:$0xf] %vm1420_vm4, %v1740_v50  ;;  %v1149_v62 = vsel %vm1099_vm3, %v1079_v52, %v1013_v33  ;;  %v916_v63 = vmul.f32 %v1826_v10, %v2075_v47  ;;  %v948_v0 = vmul.f32 %v1858_v11, %v2075_v47  ;;  %v1706_v1 = vpack.c.bf16 %v1117_v61, %v1117_v61 }
 0x129   : > { %v1738_v2 = vpack.c.bf16 %v1149_v62, %v1149_v62  ;;  %v986_v3 = vadd.f32 %v2080_v49, %v915_v55  ;;  %v1018_v4 = vadd.f32 %v2080_v49, %v947_v56  ;;  %v984_v5 = vadd.f32 %v2080_v49, %v913_v57  ;;  %v2372_v19 = vpop.f32.mrb[28].mxu0  ;;  %v2374_v20 = vpop.f32.mrb[28].mxu1 }
 0x12a   : > { %v1016_v6 = vadd.f32 %v2080_v49, %v945_v58  ;;  %v987_v7 = vadd.f32 %v2080_v49, %v916_v63  ;;  %v1019_v8 = vadd.f32 %v2080_v49, %v948_v0  ;;  %1438 = vst.msk [vmem:[%s2104_s21 + $0x44] sm:$0xf] %vm1420_vm4, %v1706_v1  ;;  %v914_v11 = vmul.f32 %v2075_v47, %v2290_v16  ;;  %v2384_v24 = vpop.f32.mrb[29].mxu1 }
 0x12b   : > { %1470 = vst.msk [vmem:[%s2104_s21 + $0xc4] sm:$0xf] %vm1420_vm4, %v1738_v2  ;;  %v1052_v9 = vmax.f32 %v986_v3, 0.0  ;;  %v1084_v10 = vmax.f32 %v1018_v4, 0.0  ;;  %v946_v12 = vmul.f32 %v2075_v47, %v2292_v17  ;;  %v1050_v13 = vmax.f32 %v984_v5, 0.0  ;;  %v2382_v17 = vpop.f32.mrb[29].mxu0 }
 0x12c   : > { %v1082_v14 = vmax.f32 %v1016_v6, 0.0  ;;  %v1053_v15 = vmax.f32 %v987_v7, 0.0  ;;  %v1085_v18 = vmax.f32 %v1019_v8, 0.0  ;;  %v985_v23 = vadd.f32 %v2080_v49, %v914_v11  ;;  %v2390_v29 = vpop.f32.mrb[30].mxu0  ;;  %v2392_v30 = vpop.f32.mrb[30].mxu1 }
 0x12d   : > { %v1122_v21 = vsel %vm1099_vm3, %v1052_v9, %v986_v3  ;;  %v1154_v22 = vsel %vm1099_vm3, %v1084_v10, %v1018_v4  ;;  %v1017_v16 = vadd.f32 %v2080_v49, %v946_v12  ;;  %v1120_v27 = vsel %vm1099_vm3, %v1050_v13, %v984_v5  ;;  %v2398_v35 = vpop.f32.mrb[31].mxu0  ;;  %v2400_v36 = vpop.f32.mrb[31].mxu1 }
 0x12e   : > { %v1711_v25 = vpack.c.bf16 %v1122_v21, %v1122_v21  ;;  %v1743_v26 = vpack.c.bf16 %v1154_v22, %v1154_v22  ;;  %v1152_v28 = vsel %vm1099_vm3, %v1082_v14, %v1016_v6  ;;  %v1709_v31 = vpack.c.bf16 %v1120_v27, %v1120_v27 }
 0x12f   : > { %v1741_v32 = vpack.c.bf16 %v1152_v28, %v1152_v28  ;;  %v1123_v33 = vsel %vm1099_vm3, %v1053_v15, %v987_v7  ;;  %v1155_v34 = vsel %vm1099_vm3, %v1085_v18, %v1019_v8  ;;  %v1051_v41 = vmax.f32 %v985_v23, 0.0 }
 0x130   : > { %1443 = vst.msk [vmem:[%s2104_s21 + $0x58] sm:$0xf] %vm1420_vm4, %v1711_v25  ;;  %1475 = vst.msk [vmem:[%s2104_s21 + $0xd8] sm:$0xf] %vm1420_vm4, %v1743_v26  ;;  %v1712_v37 = vpack.c.bf16 %v1123_v33, %v1123_v33  ;;  %v1744_v40 = vpack.c.bf16 %v1155_v34, %v1155_v34  ;;  %v1083_v42 = vmax.f32 %v1017_v16, 0.0  ;;  %v919_v43 = vmul.f32 %v2314_v38, %v2075_v47 }
 0x131   : > { %1441 = vst.msk [vmem:[%s2104_s21 + $0x50] sm:$0xf] %vm1420_vm4, %v1709_v31  ;;  %1473 = vst.msk [vmem:[%s2104_s21 + $0xd0] sm:$0xf] %vm1420_vm4, %v1741_v32  ;;  %v951_v48 = vmul.f32 %v2316_v39, %v2075_v47  ;;  %v917_v50 = vmul.f32 %v2075_v47, %v2322_v44  ;;  %v949_v51 = vmul.f32 %v2075_v47, %v2324_v45 }
 0x132   : > { %1444 = vst.msk [vmem:[%s2104_s21 + $0x5c] sm:$0xf] %vm1420_vm4, %v1712_v37  ;;  %1476 = vst.msk [vmem:[%s2104_s21 + $0xdc] sm:$0xf] %vm1420_vm4, %v1744_v40  ;;  %v1121_v52 = vsel %vm1099_vm3, %v1051_v41, %v985_v23  ;;  %v1153_v38 = vsel %vm1099_vm3, %v1083_v42, %v1017_v16  ;;  %v920_v39 = vmul.f32 %v2330_v53, %v2075_v47 }
 0x133   : > { %v952_v44 = vmul.f32 %v2332_v54, %v2075_v47  ;;  %v1710_v55 = vpack.c.bf16 %v1121_v52, %v1121_v52  ;;  %v1742_v56 = vpack.c.bf16 %v1153_v38, %v1153_v38  ;;  %v990_v45 = vadd.f32 %v2080_v49, %v919_v43 }
 0x134   : > { %v1022_v57 = vadd.f32 %v2080_v49, %v951_v48  ;;  %v988_v58 = vadd.f32 %v2080_v49, %v917_v50  ;;  %v1020_v61 = vadd.f32 %v2080_v49, %v949_v51  ;;  %v991_v62 = vadd.f32 %v2080_v49, %v920_v39 }
 0x135   : > { %v1023_v63 = vadd.f32 %v2080_v49, %v952_v44  ;;  %1442 = vst.msk [vmem:[%s2104_s21 + $0x54] sm:$0xf] %vm1420_vm4, %v1710_v55  ;;  %1474 = vst.msk [vmem:[%s2104_s21 + $0xd4] sm:$0xf] %vm1420_vm4, %v1742_v56  ;;  %v1056_v53 = vmax.f32 %v990_v45, 0.0  ;;  %v918_v0 = vmul.f32 %v2075_v47, %v2344_v59  ;;  %v950_v1 = vmul.f32 %v2075_v47, %v2346_v60 }
 0x136   : > { %v1088_v54 = vmax.f32 %v1022_v57, 0.0  ;;  %v1054_v2 = vmax.f32 %v988_v58, 0.0  ;;  %v1086_v3 = vmax.f32 %v1020_v61, 0.0  ;;  %v1057_v4 = vmax.f32 %v991_v62, 0.0 }
 0x137   : > { %v1089_v5 = vmax.f32 %v1023_v63, 0.0  ;;  %v1126_v6 = vsel %vm1099_vm3, %v1056_v53, %v990_v45  ;;  %v989_v8 = vadd.f32 %v2080_v49, %v918_v0  ;;  %v1021_v59 = vadd.f32 %v2080_v49, %v950_v1 }
 0x138   : > { %v1158_v7 = vsel %vm1099_vm3, %v1088_v54, %v1022_v57  ;;  %v1715_v9 = vpack.c.bf16 %v1126_v6, %v1126_v6  ;;  %v1124_v10 = vsel %vm1099_vm3, %v1054_v2, %v988_v58  ;;  %v1156_v11 = vsel %vm1099_vm3, %v1086_v3, %v1020_v61 }
 0x139   : > { %v1747_v60 = vpack.c.bf16 %v1158_v7, %v1158_v7  ;;  %v1713_v12 = vpack.c.bf16 %v1124_v10, %v1124_v10  ;;  %v1745_v13 = vpack.c.bf16 %v1156_v11, %v1156_v11  ;;  %v1127_v14 = vsel %vm1099_vm3, %v1057_v4, %v991_v62 }
 0x13a   : > { %v1159_v15 = vsel %vm1099_vm3, %v1089_v5, %v1023_v63  ;;  %1447 = vst.msk [vmem:[%s2104_s21 + $0x68] sm:$0xf] %vm1420_vm4, %v1715_v9  ;;  %v1716_v18 = vpack.c.bf16 %v1127_v14, %v1127_v14  ;;  %v1055_v22 = vmax.f32 %v989_v8, 0.0  ;;  %v1087_v23 = vmax.f32 %v1021_v59, 0.0 }
 0x13b   : > { %1479 = vst.msk [vmem:[%s2104_s21 + $0xe8] sm:$0xf] %vm1420_vm4, %v1747_v60  ;;  %v1748_v21 = vpack.c.bf16 %v1159_v15, %v1159_v15  ;;  %1445 = vst.msk [vmem:[%s2104_s21 + $0x60] sm:$0xf] %vm1420_vm4, %v1713_v12  ;;  %v923_v16 = vmul.f32 %v2372_v19, %v2075_v47  ;;  %v955_v25 = vmul.f32 %v2374_v20, %v2075_v47 }
 0x13c   : > { %1477 = vst.msk [vmem:[%s2104_s21 + $0xe0] sm:$0xf] %vm1420_vm4, %v1745_v13  ;;  %v921_v26 = vmul.f32 %v2075_v47, %v2382_v17  ;;  %v953_v27 = vmul.f32 %v2075_v47, %v2384_v24  ;;  %1448 = vst.msk [vmem:[%s2104_s21 + $0x6c] sm:$0xf] %vm1420_vm4, %v1716_v18  ;;  %v1125_v28 = vsel %vm1099_vm3, %v1055_v22, %v989_v8 }
 0x13d   : > { %1480 = vst.msk [vmem:[%s2104_s21 + $0xec] sm:$0xf] %vm1420_vm4, %v1748_v21  ;;  %v1157_v19 = vsel %vm1099_vm3, %v1087_v23, %v1021_v59  ;;  %v924_v20 = vmul.f32 %v2390_v29, %v2075_v47  ;;  %v956_v17 = vmul.f32 %v2392_v30, %v2075_v47  ;;  %v1714_v31 = vpack.c.bf16 %v1125_v28, %v1125_v28 }
 0x13e   : > { %v1746_v32 = vpack.c.bf16 %v1157_v19, %v1157_v19  ;;  %v994_v24 = vadd.f32 %v2080_v49, %v923_v16  ;;  %v1026_v33 = vadd.f32 %v2080_v49, %v955_v25  ;;  %v992_v34 = vadd.f32 %v2080_v49, %v921_v26 }
 0x13f   : > { %v1024_v37 = vadd.f32 %v2080_v49, %v953_v27  ;;  %v995_v40 = vadd.f32 %v2080_v49, %v924_v20  ;;  %v1027_v41 = vadd.f32 %v2080_v49, %v956_v17  ;;  %1446 = vst.msk [vmem:[%s2104_s21 + $0x64] sm:$0xf] %vm1420_vm4, %v1714_v31  ;;  %v922_v42 = vmul.f32 %v2075_v47, %v2398_v35 }
 0x140   : > { %1478 = vst.msk [vmem:[%s2104_s21 + $0xe4] sm:$0xf] %vm1420_vm4, %v1746_v32  ;;  %v1060_v29 = vmax.f32 %v994_v24, 0.0  ;;  %v1092_v30 = vmax.f32 %v1026_v33, 0.0  ;;  %v954_v43 = vmul.f32 %v2075_v47, %v2400_v36  ;;  %v1058_v48 = vmax.f32 %v992_v34, 0.0 }
 0x141   : > { %v1090_v50 = vmax.f32 %v1024_v37, 0.0  ;;  %v1061_v51 = vmax.f32 %v995_v40, 0.0  ;;  %v1093_v52 = vmax.f32 %v1027_v41, 0.0  ;;  %v993_v44 = vadd.f32 %v2080_v49, %v922_v42 }
 0x142   : > { %v1130_v38 = vsel %vm1099_vm3, %v1060_v29, %v994_v24  ;;  %v1162_v39 = vsel %vm1099_vm3, %v1092_v30, %v1026_v33  ;;  %v1025_v35 = vadd.f32 %v2080_v49, %v954_v43  ;;  %v1128_v36 = vsel %vm1099_vm3, %v1058_v48, %v992_v34 }
 0x143   : > { %v1719_v55 = vpack.c.bf16 %v1130_v38, %v1130_v38  ;;  %v1751_v47 = vpack.c.bf16 %v1162_v39, %v1162_v39  ;;  %v1160_v56 = vsel %vm1099_vm3, %v1090_v50, %v1024_v37  ;;  %v1717_v45 = vpack.c.bf16 %v1128_v36, %v1128_v36 }
 0x144   : > { %v1749_v57 = vpack.c.bf16 %v1160_v56, %v1160_v56  ;;  %v1131_v58 = vsel %vm1099_vm3, %v1061_v51, %v995_v40  ;;  %v1163_v49 = vsel %vm1099_vm3, %v1093_v52, %v1027_v41  ;;  %v1059_v63 = vmax.f32 %v993_v44, 0.0 }
 0x145   : > { %1451 = vst.msk [vmem:[%s2104_s21 + $0x78] sm:$0xf] %vm1420_vm4, %v1719_v55  ;;  %1483 = vst.msk [vmem:[%s2104_s21 + $0xf8] sm:$0xf] %vm1420_vm4, %v1751_v47  ;;  %v1720_v61 = vpack.c.bf16 %v1131_v58, %v1131_v58  ;;  %v1752_v62 = vpack.c.bf16 %v1163_v49, %v1163_v49  ;;  %v1091_v53 = vmax.f32 %v1025_v35, 0.0 }
 0x146   : > { %1449 = vst.msk [vmem:[%s2104_s21 + $0x70] sm:$0xf] %vm1420_vm4, %v1717_v45  ;;  %1481 = vst.msk [vmem:[%s2104_s21 + $0xf0] sm:$0xf] %vm1420_vm4, %v1749_v57  ;;  %v1129_v54 = vsel %vm1099_vm3, %v1059_v63, %v993_v44 }
 0x147   : > { %1452 = vst.msk [vmem:[%s2104_s21 + $0x7c] sm:$0xf] %vm1420_vm4, %v1720_v61  ;;  %1484 = vst.msk [vmem:[%s2104_s21 + $0xfc] sm:$0xf] %vm1420_vm4, %v1752_v62  ;;  %v1161_v0 = vsel %vm1099_vm3, %v1091_v53, %v1025_v35  ;;  %v1718_v1 = vpack.c.bf16 %v1129_v54, %v1129_v54 }
 0x148   : > { %v1750_v2 = vpack.c.bf16 %v1161_v0, %v1161_v0 }
 0x149   : > { %1450 = vst.msk [vmem:[%s2104_s21 + $0x74] sm:$0xf] %vm1420_vm4, %v1718_v1 }
 0x14a   : > { %1482 = vst.msk [vmem:[%s2104_s21 + $0xf4] sm:$0xf] %vm1420_vm4, %v1750_v2 }
 0x14b PF: > { %s15_s18 = sadd.s32 1, %s1932_s18  }
 0x14c   : > { %p12_p4 = scmp.ge.s32.totalorder %s15_s18, 4  }
 0x14e   :  { %14 = sbr.rel (!%p12_p4) target bundleno = 1 (0x1), region = 70 }

// kernel: _lambda_.9
= control target key start
LH: loop header
LB: loop body
LE: loop exit
PB: predicated region body
PF: predicated region fallthrough
CT: control target
= control target key end

     0   :  { %s3165_s18 = smov 0   ;;  %s3881_s0 = inlined_call_operand.vmem [shape: bf16[2,512,432], index: 0, kind: input, shape index: {}]   ;;  %s3882_s1 = inlined_call_operand.vmem [shape: bf16[432,16], index: 1, kind: input, shape index: {}]   ;;  %s3883_s2 = inlined_call_operand.vmem [shape: f32[1,16], index: 2, kind: input, shape index: {}]   ;;  %s3884_s3 = inlined_call_operand.vmem [shape: f32[1,16], index: 3, kind: input, shape index: {}]   ;;  %s3885_s4 = inlined_call_operand.vmem [shape: f32[1,16], index: 4, kind: input, shape index: {}]   ;;  %s3886_s5 = inlined_call_operand.vmem [shape: bf16[2,512,16], index: 5, kind: output, shape index: {}]  }
   0x1 LB: > { %s2507_s19 = sadd.s32 4294967295, %s3132_s18   ;;  %p2511_p0 = scmp.ge.s32.totalorder %s3132_s18, 1  ;;  %s3132_s18 = sphi %s3165_s18, %s15_s18  }
   0x2   : > { %p187_p1 = scmp.lt.s32.totalorder %s3132_s18, 3 }
   0x4   : > { %p188_p2 = pnand %p2511_p0, %p187_p1 }
   0x5   : > { %v2910_v0 = vld [vmem:[%s3882_s1] sm:$0xff] (!%p188_p2)   ;;  %v3134_v1 = vmov (!%p188_p2), 0   ;;  %v2911_v2 = vld [vmem:[%s3882_s1 + $0x8] sm:$0xff] (!%p188_p2)   ;;  %v2912_v4 = vld [vmem:[%s3882_s1 + $0x10] sm:$0xff] (!%p188_p2)   ;;  %p215_p3 = scmp.lt.s32.totalorder (!%p188_p2), %s2507_s19, 1  ;;  %vm1178_vm0 = vcmask (!%p188_p2), 392192  }
   0x6   : > { %191 = sbr.rel (%p188_p2) target bundleno = 544 (0x220), region = 40  ;;  %1275 = vmatprep.subr.bf16.mxu1 (!%p188_p2), %v3134_v1  ;;  %1564 = vmatprep.subr.bf16.mxu0 (!%p188_p2), %v3134_v1  ;;  %v2915_v3 = vld [vmem:[%s3882_s1 + $0x80] sm:$0xff] (!%p188_p2)   ;;  %v2917_v5 = vld [vmem:[%s3882_s1 + $0x88] sm:$0xff] (!%p188_p2)   ;;  %v2913_v6 = vld [vmem:[%s3882_s1 + $0x18] sm:$0xff] (!%p188_p2)   ;;  %vm2387_vm3 = vcmask (!%p188_p2), 125952  }
   0x7   : > { %1276 = vmatpush1.bf16.msra.mxu1 (!%p188_p2), %v2910_v0  ;;  %1565 = vmatpush1.bf16.msra.mxu0 (!%p188_p2), %v2915_v3  ;;  %v2919_v7 = vld [vmem:[%s3882_s1 + $0x90] sm:$0xff] (!%p188_p2)   ;;  %v2914_v8 = vld [vmem:[%s3882_s1 + $0x20] sm:$0xff] (!%p188_p2)   ;;  %v2921_v9 = vld [vmem:[%s3882_s1 + $0x98] sm:$0xff] (!%p188_p2)  }
   0x8   : > { %1277 = vmatprep.subr.bf16.mxu1 (!%p188_p2), %v3134_v1  ;;  %1566 = vmatprep.subr.bf16.mxu0 (!%p188_p2), %v3134_v1  ;;  %v2916_v10 = vld [vmem:[%s3882_s1 + $0x28] sm:$0xff] (!%p188_p2)   ;;  %v2923_v11 = vld [vmem:[%s3882_s1 + $0xa0] sm:$0xff] (!%p188_p2)   ;;  %v2918_v12 = vld [vmem:[%s3882_s1 + $0x30] sm:$0xff] (!%p188_p2)  }
   0x9   : > { %v2925_v13 = vld [vmem:[%s3882_s1 + $0xa8] sm:$0xff] (!%p188_p2)   ;;  %v2920_v14 = vld [vmem:[%s3882_s1 + $0x38] sm:$0xff] (!%p188_p2)   ;;  %v2927_v15 = vld [vmem:[%s3882_s1 + $0xb0] sm:$0xff] (!%p188_p2)  }
   0xa   : > { %v2922_v18 = vld [vmem:[%s3882_s1 + $0x40] sm:$0xff] (!%p188_p2)   ;;  %v2929_v19 = vld [vmem:[%s3882_s1 + $0xb8] sm:$0xff] (!%p188_p2)   ;;  %v2924_v20 = vld [vmem:[%s3882_s1 + $0x48] sm:$0xff] (!%p188_p2)  }
   0xb   : > { %1278 = vmatpush1.bf16.msra.mxu1 (!%p188_p2), %v2911_v2  ;;  %1567 = vmatpush1.bf16.msra.mxu0 (!%p188_p2), %v2917_v5  ;;  %v2931_v21 = vld [vmem:[%s3882_s1 + $0xc0] sm:$0xff] (!%p188_p2)   ;;  %v2926_v22 = vld [vmem:[%s3882_s1 + $0x50] sm:$0xff] (!%p188_p2)   ;;  %v2933_v23 = vld [vmem:[%s3882_s1 + $0xc8] sm:$0xff] (!%p188_p2)  }
   0xc   : > { %1279 = vmatprep.subr.bf16.mxu1 (!%p188_p2), %v3134_v1  ;;  %1568 = vmatprep.subr.bf16.mxu0 (!%p188_p2), %v3134_v1  ;;  %v2928_v24 = vld [vmem:[%s3882_s1 + $0x58] sm:$0xff] (!%p188_p2)   ;;  %v2935_v25 = vld [vmem:[%s3882_s1 + $0xd0] sm:$0xff] (!%p188_p2)   ;;  %v2930_v26 = vld [vmem:[%s3882_s1 + $0x60] sm:$0xff] (!%p188_p2)  }
   0xd   : > { %s3888_s19 = smov (!%p215_p3, %s2507_s19), 1  ;;  %v2932_v29 = vld [vmem:[%s3882_s1 + $0x68] sm:$0xff]   ;;  %v2934_v30 = vld [vmem:[%s3882_s1 + $0x70] sm:$0xff]   ;;  %v2939_v33 = vld [vmem:[%s3882_s1 + $0x78] sm:$0xff]  }
   0xe   : > { %s2771_s17 = sshll.u32 %s3888_s19, 10  ;;  %s2772_s14 = sshll.u32 %s3888_s19, 8 }
   0xf   : > { %1280 = vmatpush1.bf16.msra.mxu1 %v2912_v4  ;;  %1569 = vmatpush1.bf16.msra.mxu0 %v2919_v7  ;;  %s3235_s26 = scalar_lea.vmem %s3881_s0, %s2771_s17  ;;  %s3474_s17 = scalar_lea.vmem %s3886_s5, %s2772_s14 }
  0x10   : > { %1281 = vmatprep.subr.bf16.mxu1 %v3134_v1  ;;  %1570 = vmatprep.subr.bf16.mxu0 %v3134_v1  ;;  %v2938_v16 = vld [vmem:[%s3235_s26 + $0xc] ss:$16 sps:$4 sm:$0xff]   ;;  %v2942_v17 = vld [vmem:[%s3235_s26 + $0x4] ss:$16 sps:$4 sm:$0xff]   ;;  %v2936_v27 = vld [vmem:[%s3235_s26 + $0x8] ss:$16 sps:$4 sm:$0xff]  }
  0x11   : > { %2671 = vmatprep.mubr.msk.bf16.mxu0 %vm1178_vm0, %v2938_v16  ;;  %1307 = vmatprep.mubr.bf16.mxu1 %v2942_v17  ;;  %v2943_v28 = vld [vmem:[%s3235_s26 + $0x2c] ss:$16 sps:$4 sm:$0xff]   ;;  %v2945_v31 = vld [vmem:[%s3235_s26 + $0x28] ss:$16 sps:$4 sm:$0xff]   ;;  %v2940_v34 = vld [vmem:[%s3235_s26] ss:$16 sps:$4 sm:$0xff]  }
  0x12   : > { %v2949_v32 = vld [vmem:[%s3235_s26 + $0x4c] ss:$16 sps:$4 sm:$0xff]   ;;  %v2946_v35 = vld [vmem:[%s3235_s26 + $0x24] ss:$16 sps:$4 sm:$0xff]   ;;  %v2951_v36 = vld [vmem:[%s3235_s26 + $0x48] ss:$16 sps:$4 sm:$0xff]  }
  0x13   : > { %1282 = vmatpush1.bf16.msra.mxu1 %v2913_v6  ;;  %1571 = vmatpush1.bf16.msra.mxu0 %v2921_v9  ;;  %v2955_v37 = vld [vmem:[%s3235_s26 + $0x6c] ss:$16 sps:$4 sm:$0xff]   ;;  %v2948_v38 = vld [vmem:[%s3235_s26 + $0x20] ss:$16 sps:$4 sm:$0xff]   ;;  %v2952_v39 = vld [vmem:[%s3235_s26 + $0x44] ss:$16 sps:$4 sm:$0xff]  }
  0x14   : > { %1283 = vmatprep.subr.bf16.mxu1 %v3134_v1  ;;  %1572 = vmatprep.subr.bf16.mxu0 %v3134_v1  ;;  %v2957_v40 = vld [vmem:[%s3235_s26 + $0x68] ss:$16 sps:$4 sm:$0xff]   ;;  %v2961_v41 = vld [vmem:[%s3235_s26 + $0x8c] ss:$16 sps:$4 sm:$0xff]   ;;  %v2954_v42 = vld [vmem:[%s3235_s26 + $0x40] ss:$16 sps:$4 sm:$0xff]  }
  0x15   : > { %v2958_v43 = vld [vmem:[%s3235_s26 + $0x64] ss:$16 sps:$4 sm:$0xff]   ;;  %v2963_v44 = vld [vmem:[%s3235_s26 + $0x88] ss:$16 sps:$4 sm:$0xff]   ;;  %v2967_v45 = vld [vmem:[%s3235_s26 + $0xac] ss:$16 sps:$4 sm:$0xff]  }
  0x16   : > { %v2960_v46 = vld [vmem:[%s3235_s26 + $0x60] ss:$16 sps:$4 sm:$0xff]   ;;  %v2964_v47 = vld [vmem:[%s3235_s26 + $0x84] ss:$16 sps:$4 sm:$0xff]   ;;  %v2969_v48 = vld [vmem:[%s3235_s26 + $0xa8] ss:$16 sps:$4 sm:$0xff]  }
  0x17   : > { %1284 = vmatpush1.bf16.msra.mxu1 %v2914_v8  ;;  %1573 = vmatpush1.bf16.msra.mxu0 %v2923_v11  ;;  %v2973_v49 = vld [vmem:[%s3235_s26 + $0xcc] ss:$16 sps:$4 sm:$0xff]   ;;  %v2966_v50 = vld [vmem:[%s3235_s26 + $0x80] ss:$16 sps:$4 sm:$0xff]   ;;  %v2970_v51 = vld [vmem:[%s3235_s26 + $0xa4] ss:$16 sps:$4 sm:$0xff]  }
  0x18   : > { %1285 = vmatprep.subr.bf16.mxu1 %v3134_v1  ;;  %1574 = vmatprep.subr.bf16.mxu0 %v3134_v1  ;;  %v2975_v52 = vld [vmem:[%s3235_s26 + $0xc8] ss:$16 sps:$4 sm:$0xff]   ;;  %v2979_v53 = vld [vmem:[%s3235_s26 + $0xec] ss:$16 sps:$4 sm:$0xff]   ;;  %v2972_v54 = vld [vmem:[%s3235_s26 + $0xa0] ss:$16 sps:$4 sm:$0xff]  }
  0x19   : > { %v2976_v55 = vld [vmem:[%s3235_s26 + $0xc4] ss:$16 sps:$4 sm:$0xff]   ;;  %v2981_v56 = vld [vmem:[%s3235_s26 + $0xe8] ss:$16 sps:$4 sm:$0xff]   ;;  %v2985_v57 = vld [vmem:[%s3235_s26 + $0x10c] ss:$16 sps:$4 sm:$0xff]  }
  0x1a   : > { %v2978_v58 = vld [vmem:[%s3235_s26 + $0xc0] ss:$16 sps:$4 sm:$0xff]   ;;  %v2982_v59 = vld [vmem:[%s3235_s26 + $0xe4] ss:$16 sps:$4 sm:$0xff]   ;;  %v2987_v60 = vld [vmem:[%s3235_s26 + $0x108] ss:$16 sps:$4 sm:$0xff]  }
  0x1b   : > { %1286 = vmatpush1.bf16.msra.mxu1 %v2916_v10  ;;  %1575 = vmatpush1.bf16.msra.mxu0 %v2925_v13  ;;  %v2991_v61 = vld [vmem:[%s3235_s26 + $0x12c] ss:$16 sps:$4 sm:$0xff]   ;;  %v2984_v62 = vld [vmem:[%s3235_s26 + $0xe0] ss:$16 sps:$4 sm:$0xff]   ;;  %v2988_v63 = vld [vmem:[%s3235_s26 + $0x104] ss:$16 sps:$4 sm:$0xff]  }
  0x1c   : > { %1287 = vmatprep.subr.bf16.mxu1 %v3134_v1  ;;  %1576 = vmatprep.subr.bf16.mxu0 %v3134_v1  ;;  %v2993_v0 = vld [vmem:[%s3235_s26 + $0x128] ss:$16 sps:$4 sm:$0xff]   ;;  %v2997_v2 = vld [vmem:[%s3235_s26 + $0x14c] ss:$16 sps:$4 sm:$0xff]   ;;  %v2990_v3 = vld [vmem:[%s3235_s26 + $0x100] ss:$16 sps:$4 sm:$0xff]  }
  0x1d   : > { %v2994_v4 = vld [vmem:[%s3235_s26 + $0x124] ss:$16 sps:$4 sm:$0xff]   ;;  %v2999_v5 = vld [vmem:[%s3235_s26 + $0x148] ss:$16 sps:$4 sm:$0xff]   ;;  %v3003_v6 = vld [vmem:[%s3235_s26 + $0x16c] ss:$16 sps:$4 sm:$0xff]  }
  0x1e   : > { %v2996_v7 = vld [vmem:[%s3235_s26 + $0x120] ss:$16 sps:$4 sm:$0xff]   ;;  %v3000_v8 = vld [vmem:[%s3235_s26 + $0x144] ss:$16 sps:$4 sm:$0xff]   ;;  %v3005_v9 = vld [vmem:[%s3235_s26 + $0x168] ss:$16 sps:$4 sm:$0xff]  }
  0x1f   : > { %1288 = vmatpush1.bf16.msra.mxu1 %v2918_v12  ;;  %1577 = vmatpush1.bf16.msra.mxu0 %v2927_v15  ;;  %v3009_v10 = vld [vmem:[%s3235_s26 + $0x18c] ss:$16 sps:$4 sm:$0xff]   ;;  %v3002_v11 = vld [vmem:[%s3235_s26 + $0x140] ss:$16 sps:$4 sm:$0xff]   ;;  %v3006_v12 = vld [vmem:[%s3235_s26 + $0x164] ss:$16 sps:$4 sm:$0xff]  }
  0x20   : > { %1289 = vmatprep.subr.bf16.mxu1 %v3134_v1  ;;  %1578 = vmatprep.subr.bf16.mxu0 %v3134_v1  ;;  %v3011_v13 = vld [vmem:[%s3235_s26 + $0x188] ss:$16 sps:$4 sm:$0xff]   ;;  %v3008_v15 = vld [vmem:[%s3235_s26 + $0x160] ss:$16 sps:$4 sm:$0xff]   ;;  %v3012_v16 = vld [vmem:[%s3235_s26 + $0x184] ss:$16 sps:$4 sm:$0xff]  }
  0x21   : > { %v3017_v17 = vld [vmem:[%s3235_s26 + $0x1a8] ss:$16 sps:$4 sm:$0xff]  }
  0x23   : > { %1290 = vmatpush1.bf16.msra.mxu1 %v2920_v14  ;;  %1579 = vmatpush1.bf16.msra.mxu0 %v2929_v19  ;;  %v3015_v14 = vld [vmem:[%s3235_s26 + $0x1ac] ss:$16 sps:$4 sm:$0xff]   ;;  %v3014_v19 = vld [vmem:[%s3235_s26 + $0x180] ss:$16 sps:$4 sm:$0xff]  }
  0x24   : > { %1291 = vmatprep.subr.bf16.mxu1 %v3134_v1  ;;  %1580 = vmatprep.subr.bf16.mxu0 %v3134_v1 }
  0x27   : > { %1292 = vmatpush1.bf16.msra.mxu1 %v2922_v18  ;;  %1581 = vmatpush1.bf16.msra.mxu0 %v2931_v21  ;;  %v3021_v18 = vld [vmem:[%s3235_s26 + $0x1cc] ss:$16 sps:$4 sm:$0xff]   ;;  %v3023_v21 = vld [vmem:[%s3235_s26 + $0x1c8] ss:$16 sps:$4 sm:$0xff]  }
  0x28   : > { %1293 = vmatprep.subr.bf16.mxu1 %v3134_v1  ;;  %1582 = vmatprep.subr.bf16.mxu0 %v3134_v1 }
  0x2b   : > { %1294 = vmatpush1.bf16.msra.mxu1 %v2924_v20  ;;  %1583 = vmatpush1.bf16.msra.mxu0 %v2933_v23  ;;  %v3018_v20 = vld [vmem:[%s3235_s26 + $0x1a4] ss:$16 sps:$4 sm:$0xff]   ;;  %v3020_v23 = vld [vmem:[%s3235_s26 + $0x1a0] ss:$16 sps:$4 sm:$0xff]  }
  0x2c   : > { %1295 = vmatprep.subr.bf16.mxu1 %v3134_v1  ;;  %1584 = vmatprep.subr.bf16.mxu0 %v3134_v1 }
  0x2f   : > { %1296 = vmatpush1.bf16.msra.mxu1 %v2926_v22  ;;  %1585 = vmatpush1.bf16.msra.mxu0 %v2935_v25  ;;  %v3027_v22 = vld [vmem:[%s3235_s26 + $0x1ec] ss:$16 sps:$4 sm:$0xff]   ;;  %v3029_v25 = vld [vmem:[%s3235_s26 + $0x1e8] ss:$16 sps:$4 sm:$0xff]  }
  0x30   : > { %1297 = vmatprep.subr.bf16.mxu1 %v3134_v1 }
  0x32   : > { %1597 = vmatmul.mubr.bf16.vlgmr.msra.gmra.mrb[0].mxu0 %v2936_v27  ;;  %v3026_v27 = vld [vmem:[%s3235_s26 + $0x1c0] ss:$16 sps:$4 sm:$0xff]  }
  0x33   : > { %1298 = vmatpush1.bf16.msra.mxu1 %v2928_v24  ;;  %2672 = vmatprep.mubr.msk.bf16.mxu0 %vm1178_vm0, %v2943_v28  ;;  %v3024_v24 = vld [vmem:[%s3235_s26 + $0x1c4] ss:$16 sps:$4 sm:$0xff]  }
  0x34   : > { %1299 = vmatprep.subr.bf16.mxu1 %v3134_v1  ;;  %v3030_v28 = vld [vmem:[%s3235_s26 + $0x1e4] ss:$16 sps:$4 sm:$0xff]  }
  0x37   : > { %1300 = vmatpush1.bf16.msra.mxu1 %v2930_v26  ;;  %v3033_v26 = vld [vmem:[%s3235_s26 + $0x20c] ss:$16 sps:$4 sm:$0xff]  }
  0x38   : > { %1301 = vmatprep.subr.bf16.mxu1 %v3134_v1 }
  0x3a   : > { %1605 = vmatmul.mubr.bf16.gmra.mrb[4].mxu0 %v2945_v31  ;;  %v3032_v31 = vld [vmem:[%s3235_s26 + $0x1e0] ss:$16 sps:$4 sm:$0xff]  }
  0x3b   : > { %1302 = vmatpush1.bf16.msra.mxu1 %v2932_v29  ;;  %2673 = vmatprep.mubr.msk.bf16.mxu0 %vm1178_vm0, %v2949_v32  ;;  %v3035_v29 = vld [vmem:[%s3235_s26 + $0x208] ss:$16 sps:$4 sm:$0xff]   ;;  %v3036_v32 = vld [vmem:[%s3235_s26 + $0x204] ss:$16 sps:$4 sm:$0xff]  }
  0x3c   : > { %1303 = vmatprep.subr.bf16.mxu1 %v3134_v1 }
  0x3f   : > { %1304 = vmatpush1.bf16.msra.mxu1 %v2934_v30  ;;  %v3039_v30 = vld [vmem:[%s3235_s26 + $0x22c] ss:$16 sps:$4 sm:$0xff]  }
  0x40   : > { %1305 = vmatprep.subr.bf16.mxu1 %v3134_v1 }
  0x42   : > { %1613 = vmatmul.mubr.bf16.gmra.mrb[8].mxu0 %v2951_v36  ;;  %v3042_v36 = vld [vmem:[%s3235_s26 + $0x224] ss:$16 sps:$4 sm:$0xff]  }
  0x43   : > { %1306 = vmatpush1.bf16.msra.mxu1 %v2939_v33  ;;  %2674 = vmatprep.mubr.msk.bf16.mxu0 %vm1178_vm0, %v2955_v37  ;;  %v3041_v33 = vld [vmem:[%s3235_s26 + $0x228] ss:$16 sps:$4 sm:$0xff]  }
  0x44   : > { %v3047_v37 = vld [vmem:[%s3235_s26 + $0x248] ss:$16 sps:$4 sm:$0xff]  }
  0x46   : > { %1308 = vmatmul.mubr.bf16.vlgmr.msra.gmra.mrb[0].mxu1 %v2940_v34  ;;  %v3045_v34 = vld [vmem:[%s3235_s26 + $0x24c] ss:$16 sps:$4 sm:$0xff]  }
  0x47   : > { %1315 = vmatprep.mubr.bf16.mxu1 %v2946_v35  ;;  %v3038_v35 = vld [vmem:[%s3235_s26 + $0x200] ss:$16 sps:$4 sm:$0xff]  }
  0x4a   : > { %1621 = vmatmul.mubr.bf16.gmra.mrb[12].mxu0 %v2957_v40  ;;  %v3048_v40 = vld [vmem:[%s3235_s26 + $0x244] ss:$16 sps:$4 sm:$0xff]  }
  0x4b   : > { %2675 = vmatprep.mubr.msk.bf16.mxu0 %vm1178_vm0, %v2961_v41  ;;  %v3053_v41 = vld [vmem:[%s3235_s26 + $0x268] ss:$16 sps:$4 sm:$0xff]  }
  0x4e   : > { %1316 = vmatmul.mubr.bf16.gmra.mrb[4].mxu1 %v2948_v38  ;;  %v3051_v38 = vld [vmem:[%s3235_s26 + $0x26c] ss:$16 sps:$4 sm:$0xff]  }
  0x4f   : > { %1323 = vmatprep.mubr.bf16.mxu1 %v2952_v39  ;;  %v3044_v39 = vld [vmem:[%s3235_s26 + $0x220] ss:$16 sps:$4 sm:$0xff]  }
  0x52   : > { %1629 = vmatmul.mubr.bf16.gmra.mrb[16].mxu0 %v2963_v44  ;;  %v3054_v44 = vld [vmem:[%s3235_s26 + $0x264] ss:$16 sps:$4 sm:$0xff]  }
  0x53   : > { %2676 = vmatprep.mubr.msk.bf16.mxu0 %vm1178_vm0, %v2967_v45  ;;  %v3059_v45 = vld [vmem:[%s3235_s26 + $0x288] ss:$16 sps:$4 sm:$0xff]  }
  0x56   : > { %1324 = vmatmul.mubr.bf16.gmra.mrb[8].mxu1 %v2954_v42  ;;  %v3057_v42 = vld [vmem:[%s3235_s26 + $0x28c] ss:$16 sps:$4 sm:$0xff]  }
  0x57   : > { %1331 = vmatprep.mubr.bf16.mxu1 %v2958_v43  ;;  %v3050_v43 = vld [vmem:[%s3235_s26 + $0x240] ss:$16 sps:$4 sm:$0xff]  }
  0x5a   : > { %1637 = vmatmul.mubr.bf16.gmra.mrb[20].mxu0 %v2969_v48  ;;  %v3060_v48 = vld [vmem:[%s3235_s26 + $0x284] ss:$16 sps:$4 sm:$0xff]  }
  0x5b   : > { %2677 = vmatprep.mubr.msk.bf16.mxu0 %vm1178_vm0, %v2973_v49  ;;  %v3065_v49 = vld [vmem:[%s3235_s26 + $0x2a8] ss:$16 sps:$4 sm:$0xff]  }
  0x5e   : > { %1332 = vmatmul.mubr.bf16.gmra.mrb[12].mxu1 %v2960_v46  ;;  %v3063_v46 = vld [vmem:[%s3235_s26 + $0x2ac] ss:$16 sps:$4 sm:$0xff]  }
  0x5f   : > { %1339 = vmatprep.mubr.bf16.mxu1 %v2964_v47  ;;  %v3056_v47 = vld [vmem:[%s3235_s26 + $0x260] ss:$16 sps:$4 sm:$0xff]  }
  0x62   : > { %1645 = vmatmul.mubr.bf16.gmra.mrb[24].mxu0 %v2975_v52  ;;  %v3066_v52 = vld [vmem:[%s3235_s26 + $0x2a4] ss:$16 sps:$4 sm:$0xff]  }
  0x63   : > { %2678 = vmatprep.mubr.msk.bf16.mxu0 %vm1178_vm0, %v2979_v53  ;;  %v3071_v53 = vld [vmem:[%s3235_s26 + $0x2c8] ss:$16 sps:$4 sm:$0xff]  }
  0x66   : > { %1340 = vmatmul.mubr.bf16.gmra.mrb[16].mxu1 %v2966_v50  ;;  %v3069_v50 = vld [vmem:[%s3235_s26 + $0x2cc] ss:$16 sps:$4 sm:$0xff]  }
  0x67   : > { %1347 = vmatprep.mubr.bf16.mxu1 %v2970_v51  ;;  %v3062_v51 = vld [vmem:[%s3235_s26 + $0x280] ss:$16 sps:$4 sm:$0xff]  }
  0x6a   : > { %1653 = vmatmul.mubr.bf16.gmra.mrb[28].mxu0 %v2981_v56  ;;  %v3072_v56 = vld [vmem:[%s3235_s26 + $0x2c4] ss:$16 sps:$4 sm:$0xff]  }
  0x6b   : > { %2679 = vmatprep.mubr.msk.bf16.mxu0 %vm1178_vm0, %v2985_v57  ;;  %v3077_v57 = vld [vmem:[%s3235_s26 + $0x2e8] ss:$16 sps:$4 sm:$0xff]  }
  0x6e   : > { %1348 = vmatmul.mubr.bf16.gmra.mrb[20].mxu1 %v2972_v54  ;;  %v3075_v54 = vld [vmem:[%s3235_s26 + $0x2ec] ss:$16 sps:$4 sm:$0xff]  }
  0x6f   : > { %1355 = vmatprep.mubr.bf16.mxu1 %v2976_v55  ;;  %v3068_v55 = vld [vmem:[%s3235_s26 + $0x2a0] ss:$16 sps:$4 sm:$0xff]  }
  0x72   : > { %1661 = vmatmul.mubr.bf16.gmra.mrb[32].mxu0 %v2987_v60  ;;  %v3078_v60 = vld [vmem:[%s3235_s26 + $0x2e4] ss:$16 sps:$4 sm:$0xff]  }
  0x73   : > { %2680 = vmatprep.mubr.msk.bf16.mxu0 %vm1178_vm0, %v2991_v61  ;;  %v3083_v61 = vld [vmem:[%s3235_s26 + $0x308] ss:$16 sps:$4 sm:$0xff]  }
  0x76   : > { %1356 = vmatmul.mubr.bf16.gmra.mrb[24].mxu1 %v2978_v58  ;;  %v3081_v58 = vld [vmem:[%s3235_s26 + $0x30c] ss:$16 sps:$4 sm:$0xff]  }
  0x77   : > { %1363 = vmatprep.mubr.bf16.mxu1 %v2982_v59  ;;  %v3074_v59 = vld [vmem:[%s3235_s26 + $0x2c0] ss:$16 sps:$4 sm:$0xff]  }
  0x7a   : > { %1669 = vmatmul.mubr.bf16.gmra.mrb[36].mxu0 %v2993_v0  ;;  %v3084_v0 = vld [vmem:[%s3235_s26 + $0x304] ss:$16 sps:$4 sm:$0xff]  }
  0x7b   : > { %2681 = vmatprep.mubr.msk.bf16.mxu0 %vm1178_vm0, %v2997_v2  ;;  %v3089_v2 = vld [vmem:[%s3235_s26 + $0x328] ss:$16 sps:$4 sm:$0xff]  }
  0x7e   : > { %1364 = vmatmul.mubr.bf16.gmra.mrb[28].mxu1 %v2984_v62  ;;  %v3087_v62 = vld [vmem:[%s3235_s26 + $0x32c] ss:$16 sps:$4 sm:$0xff]  }
  0x7f   : > { %1371 = vmatprep.mubr.bf16.mxu1 %v2988_v63  ;;  %v3080_v63 = vld [vmem:[%s3235_s26 + $0x2e0] ss:$16 sps:$4 sm:$0xff]  }
  0x82   : > { %1677 = vmatmul.mubr.bf16.gmra.mrb[40].mxu0 %v2999_v5  ;;  %v3090_v5 = vld [vmem:[%s3235_s26 + $0x324] ss:$16 sps:$4 sm:$0xff]  }
  0x83   : > { %2682 = vmatprep.mubr.msk.bf16.mxu0 %vm1178_vm0, %v3003_v6  ;;  %v3095_v6 = vld [vmem:[%s3235_s26 + $0x348] ss:$16 sps:$4 sm:$0xff]  }
  0x86   : > { %1372 = vmatmul.mubr.bf16.gmra.mrb[32].mxu1 %v2990_v3  ;;  %v3093_v3 = vld [vmem:[%s3235_s26 + $0x34c] ss:$16 sps:$4 sm:$0xff]  }
  0x87   : > { %1379 = vmatprep.mubr.bf16.mxu1 %v2994_v4  ;;  %v3086_v4 = vld [vmem:[%s3235_s26 + $0x300] ss:$16 sps:$4 sm:$0xff]  }
  0x8a   : > { %1685 = vmatmul.mubr.bf16.gmra.mrb[44].mxu0 %v3005_v9  ;;  %v337_v9 = vld [vmem:[%s3235_s26 + $0x378] sm:$0xff] }
  0x8b   : > { %2683 = vmatprep.mubr.msk.bf16.mxu0 %vm1178_vm0, %v3009_v10  ;;  %v3092_v10 = vld [vmem:[%s3235_s26 + $0x320] ss:$16 sps:$4 sm:$0xff]  }
  0x8e   : > { %1380 = vmatmul.mubr.bf16.gmra.mrb[36].mxu1 %v2996_v7  ;;  %v3099_v7 = vld [vmem:[%s3235_s26 + $0x36c] ss:$16 sps:$4 sm:$0xff]  }
  0x8f   : > { %1387 = vmatprep.mubr.bf16.mxu1 %v3000_v8  ;;  %v335_v8 = vld [vmem:[%s3235_s26 + $0x368] sm:$0xff] }
  0x92   : > { %1693 = vmatmul.mubr.bf16.gmra.mrb[48].mxu0 %v3011_v13 }
  0x93   : > { %2684 = vmatprep.mubr.msk.bf16.mxu0 %vm1178_vm0, %v3015_v14  ;;  %v2626_v14 = vcombine.low %v335_v8, %v337_v9 }
  0x96   : > { %1388 = vmatmul.mubr.bf16.gmra.mrb[40].mxu1 %v3002_v11 }
  0x97   : > { %1395 = vmatprep.mubr.bf16.mxu1 %v3006_v12  ;;  %v3096_v12 = vld [vmem:[%s3235_s26 + $0x344] ss:$16 sps:$4 sm:$0xff]  }
  0x9a   : > { %1701 = vmatmul.mubr.bf16.gmra.mrb[52].mxu0 %v3017_v17 }
  0x9b   : > { %2685 = vmatprep.mubr.msk.bf16.mxu0 %vm1178_vm0, %v3021_v18  ;;  %v2062_v18 = vlaneseq }
  0x9e   : > { %1396 = vmatmul.mubr.bf16.gmra.mrb[44].mxu1 %v3008_v15 }
  0x9f   : > { %1403 = vmatprep.mubr.bf16.mxu1 %v3012_v16  ;;  %v3104_v16 = vld [vmem:[%s3235_s26 + $0x38c] ss:$16 sps:$4 sm:$0xff]  }
  0xa2   : > { %1709 = vmatmul.mubr.bf16.gmra.mrb[56].mxu0 %v3023_v21  ;;  %v3098_v21 = vld [vmem:[%s3235_s26 + $0x340] ss:$16 sps:$4 sm:$0xff]  }
  0xa3   : > { %2686 = vmatprep.mubr.msk.bf16.mxu0 %vm1178_vm0, %v3027_v22  ;;  %v1995_v22 = vld [vmem:[%s3885_s4] sm:$0x1] }
  0xa4   : > { %vm1996_vm1 = vcmp.gt.f32.partialorder %v1995_v22, 0.0 }
  0xa6   : > { %1404 = vmatmul.mubr.bf16.gmra.mrb[48].mxu1 %v3014_v19  ;;  %v339_v19 = vld [vmem:[%s3235_s26 + $0x388] sm:$0xff] }
  0xa7   : > { %1411 = vmatprep.mubr.bf16.mxu1 %v3018_v20  ;;  %v341_v20 = vld [vmem:[%s3235_s26 + $0x398] sm:$0xff] }
  0xaa   : > { %1717 = vmatmul.mubr.bf16.gmra.mrb[60].mxu0 %v3029_v25  ;;  %v3101_v25 = vld [vmem:[%s3235_s26 + $0x364] ss:$16 sps:$4 sm:$0xff]  }
  0xab   : > { %2687 = vmatprep.mubr.msk.bf16.mxu0 %vm1178_vm0, %v3033_v26 }
  0xae   : > { %1412 = vmatmul.mubr.bf16.gmra.mrb[52].mxu1 %v3020_v23 }
  0xaf   : > { %1419 = vmatprep.mubr.bf16.mxu1 %v3024_v24  ;;  %v2063_v24 = vshrl.u32 %v2062_v18, 7 }
  0xb2   : > { %1725 = vmatmul.mubr.bf16.gmra.mrb[64].mxu0 %v3035_v29  ;;  %v3109_v29 = vld [vmem:[%s3235_s26 + $0x3ac] ss:$16 sps:$4 sm:$0xff]  }
  0xb3   : > { %2688 = vmatprep.mubr.msk.bf16.mxu0 %vm1178_vm0, %v3039_v30 }
  0xb6   : > { %1420 = vmatmul.mubr.bf16.gmra.mrb[56].mxu1 %v3026_v27  ;;  %v2630_v27 = vcombine.low %v339_v19, %v341_v20  ;;  %v351_v19 = vld [vmem:[%s3235_s26 + $0x3e8] sm:$0xff]  ;;  %v353_v20 = vld [vmem:[%s3235_s26 + $0x3f8] sm:$0xff] }
  0xb7   : > { %1427 = vmatprep.mubr.bf16.mxu1 %v3030_v28 }
  0xba   : > { %1733 = vmatmul.mubr.bf16.gmra.mrb[68].mxu0 %v3041_v33  ;;  %v343_v33 = vld [vmem:[%s3235_s26 + $0x3a8] sm:$0xff] }
  0xbb   : > { %2689 = vmatprep.mubr.msk.bf16.mxu0 %vm1178_vm0, %v3045_v34  ;;  %v345_v34 = vld [vmem:[%s3235_s26 + $0x3b8] sm:$0xff] }
  0xbe   : > { %1428 = vmatmul.mubr.bf16.gmra.mrb[60].mxu1 %v3032_v31  ;;  %v2064_v31 = vsub.s32 0, %v2063_v24 }
  0xbf   : > { %1435 = vmatprep.mubr.bf16.mxu1 %v3036_v32  ;;  %v2061_v32 = vsel %vm1996_vm1, 1, %v3134_v1  ;;  %v3454_v1 = vld [vmem:[%s3884_s3] ss:$0 sm:$0xff] }
  0xc2   : > { %1741 = vmatmul.mubr.bf16.gmra.mrb[72].mxu0 %v3047_v37 }
  0xc3   : > { %2690 = vmatprep.mubr.msk.bf16.mxu0 %vm1178_vm0, %v3051_v38 }
  0xc6   : > { %1436 = vmatmul.mubr.bf16.gmra.mrb[64].mxu1 %v3038_v35 }
  0xc7   : > { %1443 = vmatprep.mubr.bf16.mxu1 %v3042_v36  ;;  %v3448_v36 = vld [vmem:[%s3883_s2] ss:$0 sm:$0xff] }
  0xca   : > { %1749 = vmatmul.mubr.bf16.gmra.mrb[76].mxu0 %v3053_v41  ;;  %v3456_v41 = vrot.slane %v2061_v32, %v2064_v31  ;;  %v2642_v32 = vcombine.low %v351_v19, %v353_v20 }
  0xcb   : > { %2691 = vmatprep.mubr.msk.bf16.mxu0 %vm1178_vm0, %v3057_v42 }
  0xcc   : > { %vm2066_vm2 = vcmp.eq.s32.totalorder %v3456_v41, 1 }
  0xce   : > { %1444 = vmatmul.mubr.bf16.gmra.mrb[68].mxu1 %v3044_v39  ;;  %v3103_v39 = vld [vmem:[%s3235_s26 + $0x360] ss:$16 sps:$4 sm:$0xff]  }
  0xcf   : > { %1451 = vmatprep.mubr.bf16.mxu1 %v3048_v40 }
  0xd2   : > { %1757 = vmatmul.mubr.bf16.gmra.mrb[80].mxu0 %v3059_v45  ;;  %v2634_v45 = vcombine.low %v343_v33, %v345_v34 }
  0xd3   : > { %2692 = vmatprep.mubr.msk.bf16.mxu0 %vm1178_vm0, %v3063_v46 }
  0xd6   : > { %1452 = vmatmul.mubr.bf16.gmra.mrb[72].mxu1 %v3050_v43  ;;  %v3106_v43 = vld [vmem:[%s3235_s26 + $0x384] ss:$16 sps:$4 sm:$0xff]  }
  0xd7   : > { %1459 = vmatprep.mubr.bf16.mxu1 %v3054_v44 }
  0xda   : > { %1765 = vmatmul.mubr.bf16.gmra.mrb[84].mxu0 %v3065_v49 }
  0xdb   : > { %2693 = vmatprep.mubr.msk.bf16.mxu0 %vm1178_vm0, %v3069_v50  ;;  %v3114_v50 = vld [vmem:[%s3235_s26 + $0x3cc] ss:$16 sps:$4 sm:$0xff]  }
  0xde   : > { %1460 = vmatmul.mubr.bf16.gmra.mrb[76].mxu1 %v3056_v47 }
  0xdf   : > { %1467 = vmatprep.mubr.bf16.mxu1 %v3060_v48 }
  0xe2   : > { %1773 = vmatmul.mubr.bf16.gmra.mrb[88].mxu0 %v3071_v53 }
  0xe3   : > { %2694 = vmatprep.mubr.msk.bf16.mxu0 %vm1178_vm0, %v3075_v54 }
  0xe6   : > { %1468 = vmatmul.mubr.bf16.gmra.mrb[80].mxu1 %v3062_v51 }
  0xe7   : > { %1475 = vmatprep.mubr.bf16.mxu1 %v3066_v52 }
  0xea   : > { %1781 = vmatmul.mubr.bf16.gmra.mrb[92].mxu0 %v3077_v57  ;;  %v349_v57 = vld [vmem:[%s3235_s26 + $0x3d8] sm:$0xff] }
  0xeb   : > { %2695 = vmatprep.mubr.msk.bf16.mxu0 %vm1178_vm0, %v3081_v58 }
  0xee   : > { %1476 = vmatmul.mubr.bf16.gmra.mrb[84].mxu1 %v3068_v55 }
  0xef   : > { %1483 = vmatprep.mubr.bf16.mxu1 %v3072_v56  ;;  %v347_v56 = vld [vmem:[%s3235_s26 + $0x3c8] sm:$0xff] }
  0xf2   : > { %1789 = vmatmul.mubr.bf16.gmra.mrb[96].mxu0 %v3083_v61 }
  0xf3   : > { %2696 = vmatprep.mubr.msk.bf16.mxu0 %vm1178_vm0, %v3087_v62 }
  0xf6   : > { %1484 = vmatmul.mubr.bf16.gmra.mrb[88].mxu1 %v3074_v59 }
  0xf7   : > { %1491 = vmatprep.mubr.bf16.mxu1 %v3078_v60 }
  0xfa   : > { %1797 = vmatmul.mubr.bf16.gmra.mrb[100].mxu0 %v3089_v2 }
  0xfb   : > { %2697 = vmatprep.mubr.msk.bf16.mxu0 %vm1178_vm0, %v3093_v3 }
  0xfe   : > { %1492 = vmatmul.mubr.bf16.gmra.mrb[92].mxu1 %v3080_v63  ;;  %v3108_v63 = vld [vmem:[%s3235_s26 + $0x380] ss:$16 sps:$4 sm:$0xff]  }
  0xff   : > { %1499 = vmatprep.mubr.bf16.mxu1 %v3084_v0 }
 0x102   : > { %1805 = vmatmul.mubr.bf16.gmra.mrb[104].mxu0 %v3095_v6  ;;  %v2638_v6 = vcombine.low %v347_v56, %v349_v57 }
 0x103   : > { %2698 = vmatprep.mubr.msk.bf16.mxu0 %vm1178_vm0, %v3099_v7 }
 0x105   : > { %v1598_v11 = vpop.f32.mrb[0].mxu0 }
 0x106   : > { %1500 = vmatmul.mubr.bf16.gmra.mrb[96].mxu1 %v3086_v4  ;;  %v1600_v13 = vpop.f32.mrb[1].mxu0  ;;  %v3111_v4 = vld [vmem:[%s3235_s26 + $0x3a4] ss:$16 sps:$4 sm:$0xff]  }
 0x107   : > { %1507 = vmatprep.mubr.bf16.mxu1 %v3090_v5  ;;  %v1601_v15 = vpop.f32.mrb[2].mxu0 }
 0x108   : > { %v1603_v17 = vpop.f32.mrb[3].mxu0 }
 0x10a   : > { %1813 = vmatmul.mubr.bf16.gmra.mrb[108].mxu0 %v2626_v14 }
 0x10b   : > { %2699 = vmatprep.mubr.msk.bf16.mxu0 %vm1178_vm0, %v3104_v16 }
 0x10d   : > { %v1606_v23 = vpop.f32.mrb[4].mxu0 }
 0x10e   : > { %1508 = vmatmul.mubr.bf16.gmra.mrb[100].mxu1 %v3092_v10  ;;  %v1608_v26 = vpop.f32.mrb[5].mxu0 }
 0x10f   : > { %1515 = vmatprep.mubr.bf16.mxu1 %v3096_v12  ;;  %v1609_v28 = vpop.f32.mrb[6].mxu0  ;;  %v3119_v12 = vld [vmem:[%s3235_s26 + $0x3ec] ss:$16 sps:$4 sm:$0xff]   ;;  %v3113_v26 = vld [vmem:[%s3235_s26 + $0x3a0] ss:$16 sps:$4 sm:$0xff]  }
 0x110   : > { %v1611_v30 = vpop.f32.mrb[7].mxu0 }
 0x111   : > { %v3116_v30 = vld [vmem:[%s3235_s26 + $0x3c4] ss:$16 sps:$4 sm:$0xff]  }
 0x112   : > { %1821 = vmatmul.mubr.bf16.gmra.mrb[112].mxu0 %v2630_v27 }
 0x113   : > { %2700 = vmatprep.mubr.msk.bf16.mxu0 %vm1178_vm0, %v3109_v29 }
 0x115   : > { %v1614_v40 = vpop.f32.mrb[8].mxu0 }
 0x116   : > { %1516 = vmatmul.mubr.bf16.gmra.mrb[104].mxu1 %v3098_v21  ;;  %v1616_v44 = vpop.f32.mrb[9].mxu0 }
 0x117   : > { %1523 = vmatprep.mubr.bf16.mxu1 %v3101_v25  ;;  %v3460_v49 = vpop.f32.mrb[10].mxu0 }
 0x118   : > { %v1619_v51 = vpop.f32.mrb[11].mxu0 }
 0x119   : > { %v1309_v35 = vpop.f32.mrb[0].mxu1  ;;  %v3118_v51 = vld [vmem:[%s3235_s26 + $0x3c0] ss:$16 sps:$4 sm:$0xff]  }
 0x11a   : > { %v1599_v37 = vadd.f32 %v1598_v11, %v1309_v35  ;;  %v1311_v38 = vpop.f32.mrb[1].mxu1  ;;  %1829 = vmatmul.mubr.bf16.gmra.mrb[116].mxu0 %v2634_v45 }
 0x11b   : > { %v1312_v42 = vpop.f32.mrb[2].mxu1  ;;  %2701 = vmatprep.mubr.msk.bf16.mxu0 %vm1178_vm0, %v3114_v50 }
 0x11c   : > { %v1860_v46 = vmul.f32 %v3448_v36, %v1599_v37  ;;  %v1602_v47 = vadd.f32 %v1601_v15, %v1312_v42  ;;  %v1314_v48 = vpop.f32.mrb[3].mxu1 }
 0x11d   : > { %v1622_v0 = vpop.f32.mrb[12].mxu0 }
 0x11e   : > { %v1931_v52 = vadd.f32 %v3454_v1, %v1860_v46  ;;  %v1861_v53 = vmul.f32 %v3448_v36, %v1602_v47  ;;  %1524 = vmatmul.mubr.bf16.gmra.mrb[108].mxu1 %v3103_v39  ;;  %v1624_v5 = vpop.f32.mrb[13].mxu0 }
 0x11f   : > { %1531 = vmatprep.mubr.bf16.mxu1 %v3106_v43  ;;  %v1625_v11 = vpop.f32.mrb[14].mxu0 }
 0x120   : > { %v1997_v54 = vmax.f32 %v1931_v52, 0.0  ;;  %v1932_v55 = vadd.f32 %v3454_v1, %v1861_v53  ;;  %v1627_v14 = vpop.f32.mrb[15].mxu0 }
 0x121   : > { %v1317_v58 = vpop.f32.mrb[4].mxu1 }
 0x122   : > { %v2067_v59 = vsel %vm2066_vm2, %v1997_v54, %v1931_v52  ;;  %v1998_v60 = vmax.f32 %v1932_v55, 0.0  ;;  %v1607_v61 = vadd.f32 %v1606_v23, %v1317_v58  ;;  %v1319_v62 = vpop.f32.mrb[5].mxu1  ;;  %1837 = vmatmul.mubr.bf16.gmra.mrb[120].mxu0 %v2638_v6 }
 0x123   : > { %v2773_v2 = vpack.c.bf16 %v2067_v59, %v2067_v59  ;;  %v1320_v3 = vpop.f32.mrb[6].mxu1  ;;  %2702 = vmatprep.mubr.msk.bf16.mxu0 %vm1178_vm0, %v3119_v12 }
 0x124   : > { %v2068_v7 = vsel %vm2066_vm2, %v1998_v60, %v1932_v55  ;;  %v1862_v8 = vmul.f32 %v3448_v36, %v1607_v61  ;;  %v1610_v9 = vadd.f32 %v1609_v28, %v1320_v3  ;;  %v1322_v10 = vpop.f32.mrb[7].mxu1  ;;  %v3121_v55 = vld [vmem:[%s3235_s26 + $0x3e4] ss:$16 sps:$4 sm:$0xff]  }
 0x125   : > { %2388 = vst.msk [vmem:[%s3474_s17] sm:$0xf] %vm2387_vm3, %v2773_v2  ;;  %v2774_v13 = vpack.c.bf16 %v2068_v7, %v2068_v7  ;;  %v1630_v27 = vpop.f32.mrb[16].mxu0  ;;  %v3123_v10 = vld [vmem:[%s3235_s26 + $0x3e0] ss:$16 sps:$4 sm:$0xff]  }
 0x126   : > { %v1933_v15 = vadd.f32 %v3454_v1, %v1862_v8  ;;  %v1863_v16 = vmul.f32 %v3448_v36, %v1610_v9  ;;  %1532 = vmatmul.mubr.bf16.gmra.mrb[112].mxu1 %v3108_v63  ;;  %v1632_v31 = vpop.f32.mrb[17].mxu0 }
 0x127   : > { %2389 = vst.msk [vmem:[%s3474_s17 + $0x4] sm:$0xf] %vm2387_vm3, %v2774_v13  ;;  %1539 = vmatprep.mubr.bf16.mxu1 %v3111_v4  ;;  %v1633_v38 = vpop.f32.mrb[18].mxu0 }
 0x128   : > { %v1999_v17 = vmax.f32 %v1933_v15, 0.0  ;;  %v1934_v18 = vadd.f32 %v3454_v1, %v1863_v16 }
 0x129   : > { %v1325_v21 = vpop.f32.mrb[8].mxu1 }
 0x12a   : > { %v2069_v22 = vsel %vm2066_vm2, %v1999_v17, %v1933_v15  ;;  %v2000_v23 = vmax.f32 %v1934_v18, 0.0  ;;  %v1615_v24 = vadd.f32 %v1614_v40, %v1325_v21  ;;  %v1327_v25 = vpop.f32.mrb[9].mxu1  ;;  %v1635_v40 = vpop.f32.mrb[19].mxu0  ;;  %1845 = vmatmul.mubr.bf16.gmra.mrb[124].mxu0 %v2642_v32 }
 0x12b   : > { %v2775_v28 = vpack.c.bf16 %v2069_v22, %v2069_v22  ;;  %v1328_v29 = vpop.f32.mrb[10].mxu1 }
 0x12c   : > { %v2070_v33 = vsel %vm2066_vm2, %v2000_v23, %v1934_v18  ;;  %v1864_v34 = vmul.f32 %v3448_v36, %v1615_v24  ;;  %v1618_v35 = vadd.f32 %v3460_v49, %v1328_v29  ;;  %v1330_v37 = vpop.f32.mrb[11].mxu1 }
 0x12d   : > { %2390 = vst.msk [vmem:[%s3474_s17 + $0x8] sm:$0xf] %vm2387_vm3, %v2775_v28  ;;  %v2776_v39 = vpack.c.bf16 %v2070_v33, %v2070_v33  ;;  %v1638_v52 = vpop.f32.mrb[20].mxu0 }
 0x12e   : > { %v1935_v42 = vadd.f32 %v3454_v1, %v1864_v34  ;;  %v1865_v43 = vmul.f32 %v3448_v36, %v1618_v35  ;;  %1540 = vmatmul.mubr.bf16.gmra.mrb[116].mxu1 %v3113_v26  ;;  %v1640_v56 = vpop.f32.mrb[21].mxu0 }
 0x12f   : > { %2391 = vst.msk [vmem:[%s3474_s17 + $0xc] sm:$0xf] %vm2387_vm3, %v2776_v39  ;;  %1547 = vmatprep.mubr.bf16.mxu1 %v3116_v30  ;;  %v1641_v61 = vpop.f32.mrb[22].mxu0 }
 0x130   : > { %v2001_v44 = vmax.f32 %v1935_v42, 0.0  ;;  %v1936_v45 = vadd.f32 %v3454_v1, %v1865_v43  ;;  %v1643_v63 = vpop.f32.mrb[23].mxu0 }
 0x131   : > { %v1333_v46 = vpop.f32.mrb[12].mxu1 }
 0x132   : > { %v2071_v47 = vsel %vm2066_vm2, %v2001_v44, %v1935_v42  ;;  %v2002_v48 = vmax.f32 %v1936_v45, 0.0  ;;  %v1623_v49 = vadd.f32 %v1622_v0, %v1333_v46  ;;  %v1335_v50 = vpop.f32.mrb[13].mxu1 }
 0x133   : > { %v2777_v53 = vpack.c.bf16 %v2071_v47, %v2071_v47  ;;  %v1336_v54 = vpop.f32.mrb[14].mxu1 }
 0x134   : > { %v2072_v57 = vsel %vm2066_vm2, %v2002_v48, %v1936_v45  ;;  %v1866_v58 = vmul.f32 %v3448_v36, %v1623_v49  ;;  %v1626_v59 = vadd.f32 %v1625_v11, %v1336_v54  ;;  %v1338_v60 = vpop.f32.mrb[15].mxu1 }
 0x135   : > { %2392 = vst.msk [vmem:[%s3474_s17 + $0x10] sm:$0xf] %vm2387_vm3, %v2777_v53  ;;  %v2778_v62 = vpack.c.bf16 %v2072_v57, %v2072_v57  ;;  %v1646_v11 = vpop.f32.mrb[24].mxu0 }
 0x136   : > { %v1937_v0 = vadd.f32 %v3454_v1, %v1866_v58  ;;  %v1867_v2 = vmul.f32 %v3448_v36, %v1626_v59  ;;  %1548 = vmatmul.mubr.bf16.gmra.mrb[120].mxu1 %v3118_v51  ;;  %v1648_v14 = vpop.f32.mrb[25].mxu0 }
 0x137   : > { %2393 = vst.msk [vmem:[%s3474_s17 + $0x14] sm:$0xf] %vm2387_vm3, %v2778_v62  ;;  %1555 = vmatprep.mubr.bf16.mxu1 %v3121_v55  ;;  %v1649_v19 = vpop.f32.mrb[26].mxu0 }
 0x138   : > { %v2003_v3 = vmax.f32 %v1937_v0, 0.0  ;;  %v1938_v4 = vadd.f32 %v3454_v1, %v1867_v2  ;;  %v1651_v21 = vpop.f32.mrb[27].mxu0 }
 0x139   : > { %v1341_v5 = vpop.f32.mrb[16].mxu1 }
 0x13a   : > { %v2073_v6 = vsel %vm2066_vm2, %v2003_v3, %v1937_v0  ;;  %v2004_v7 = vmax.f32 %v1938_v4, 0.0  ;;  %v1631_v8 = vadd.f32 %v1630_v27, %v1341_v5  ;;  %v1343_v9 = vpop.f32.mrb[17].mxu1 }
 0x13b   : > { %v2779_v12 = vpack.c.bf16 %v2073_v6, %v2073_v6  ;;  %v1344_v13 = vpop.f32.mrb[18].mxu1 }
 0x13c   : > { %v2074_v15 = vsel %vm2066_vm2, %v2004_v7, %v1938_v4  ;;  %v1868_v16 = vmul.f32 %v3448_v36, %v1631_v8  ;;  %v1634_v17 = vadd.f32 %v1633_v38, %v1344_v13  ;;  %v1346_v18 = vpop.f32.mrb[19].mxu1 }
 0x13d   : > { %2394 = vst.msk [vmem:[%s3474_s17 + $0x18] sm:$0xf] %vm2387_vm3, %v2779_v12  ;;  %v2780_v20 = vpack.c.bf16 %v2074_v15, %v2074_v15  ;;  %v1654_v31 = vpop.f32.mrb[28].mxu0 }
 0x13e   : > { %v1939_v22 = vadd.f32 %v3454_v1, %v1868_v16  ;;  %v1869_v23 = vmul.f32 %v3448_v36, %v1634_v17  ;;  %1556 = vmatmul.mubr.bf16.gmra.mrb[124].mxu1 %v3123_v10  ;;  %v1656_v34 = vpop.f32.mrb[29].mxu0 }
 0x13f   : > { %2395 = vst.msk [vmem:[%s3474_s17 + $0x1c] sm:$0xf] %vm2387_vm3, %v2780_v20  ;;  %v1657_v40 = vpop.f32.mrb[30].mxu0 }
 0x140   : > { %v2005_v24 = vmax.f32 %v1939_v22, 0.0  ;;  %v1940_v25 = vadd.f32 %v3454_v1, %v1869_v23  ;;  %v1659_v43 = vpop.f32.mrb[31].mxu0 }
 0x141   : > { %v1349_v26 = vpop.f32.mrb[20].mxu1 }
 0x142   : > { %v2075_v27 = vsel %vm2066_vm2, %v2005_v24, %v1939_v22  ;;  %v2006_v28 = vmax.f32 %v1940_v25, 0.0  ;;  %v1639_v29 = vadd.f32 %v1638_v52, %v1349_v26  ;;  %v1351_v30 = vpop.f32.mrb[21].mxu1 }
 0x143   : > { %v2781_v32 = vpack.c.bf16 %v2075_v27, %v2075_v27  ;;  %v1352_v33 = vpop.f32.mrb[22].mxu1 }
 0x144   : > { %v2076_v35 = vsel %vm2066_vm2, %v2006_v28, %v1940_v25  ;;  %v1870_v37 = vmul.f32 %v3448_v36, %v1639_v29  ;;  %v1642_v38 = vadd.f32 %v1641_v61, %v1352_v33  ;;  %v1354_v39 = vpop.f32.mrb[23].mxu1 }
 0x145   : > { %2396 = vst.msk [vmem:[%s3474_s17 + $0x20] sm:$0xf] %vm2387_vm3, %v2781_v32  ;;  %v2782_v42 = vpack.c.bf16 %v2076_v35, %v2076_v35  ;;  %v1662_v53 = vpop.f32.mrb[32].mxu0 }
 0x146   : > { %v1941_v44 = vadd.f32 %v3454_v1, %v1870_v37  ;;  %v1871_v45 = vmul.f32 %v3448_v36, %v1642_v38  ;;  %v1664_v56 = vpop.f32.mrb[33].mxu0 }
 0x147   : > { %2397 = vst.msk [vmem:[%s3474_s17 + $0x24] sm:$0xf] %vm2387_vm3, %v2782_v42  ;;  %v1665_v61 = vpop.f32.mrb[34].mxu0 }
 0x148   : > { %v2007_v46 = vmax.f32 %v1941_v44, 0.0  ;;  %v1942_v47 = vadd.f32 %v3454_v1, %v1871_v45  ;;  %v1667_v63 = vpop.f32.mrb[35].mxu0 }
 0x149   : > { %v1357_v48 = vpop.f32.mrb[24].mxu1 }
 0x14a   : > { %v2077_v49 = vsel %vm2066_vm2, %v2007_v46, %v1941_v44  ;;  %v2008_v50 = vmax.f32 %v1942_v47, 0.0  ;;  %v1647_v51 = vadd.f32 %v1646_v11, %v1357_v48  ;;  %v1359_v52 = vpop.f32.mrb[25].mxu1 }
 0x14b   : > { %v2783_v54 = vpack.c.bf16 %v2077_v49, %v2077_v49  ;;  %v1360_v55 = vpop.f32.mrb[26].mxu1 }
 0x14c   : > { %v2078_v57 = vsel %vm2066_vm2, %v2008_v50, %v1942_v47  ;;  %v1872_v58 = vmul.f32 %v3448_v36, %v1647_v51  ;;  %v1650_v59 = vadd.f32 %v1649_v19, %v1360_v55  ;;  %v1362_v60 = vpop.f32.mrb[27].mxu1 }
 0x14d   : > { %2398 = vst.msk [vmem:[%s3474_s17 + $0x28] sm:$0xf] %vm2387_vm3, %v2783_v54  ;;  %v2784_v62 = vpack.c.bf16 %v2078_v57, %v2078_v57  ;;  %v1670_v10 = vpop.f32.mrb[36].mxu0 }
 0x14e   : > { %v1943_v0 = vadd.f32 %v3454_v1, %v1872_v58  ;;  %v1873_v2 = vmul.f32 %v3448_v36, %v1650_v59  ;;  %v1672_v13 = vpop.f32.mrb[37].mxu0 }
 0x14f   : > { %2399 = vst.msk [vmem:[%s3474_s17 + $0x2c] sm:$0xf] %vm2387_vm3, %v2784_v62  ;;  %v1673_v18 = vpop.f32.mrb[38].mxu0 }
 0x150   : > { %v2009_v3 = vmax.f32 %v1943_v0, 0.0  ;;  %v1944_v4 = vadd.f32 %v3454_v1, %v1873_v2  ;;  %v1675_v20 = vpop.f32.mrb[39].mxu0 }
 0x151   : > { %v1365_v5 = vpop.f32.mrb[28].mxu1 }
 0x152   : > { %v2079_v6 = vsel %vm2066_vm2, %v2009_v3, %v1943_v0  ;;  %v2010_v7 = vmax.f32 %v1944_v4, 0.0  ;;  %v1655_v8 = vadd.f32 %v1654_v31, %v1365_v5  ;;  %v1367_v9 = vpop.f32.mrb[29].mxu1 }
 0x153   : > { %v2785_v11 = vpack.c.bf16 %v2079_v6, %v2079_v6  ;;  %v1368_v12 = vpop.f32.mrb[30].mxu1 }
 0x154   : > { %v2080_v14 = vsel %vm2066_vm2, %v2010_v7, %v1944_v4  ;;  %v1874_v15 = vmul.f32 %v3448_v36, %v1655_v8  ;;  %v1658_v16 = vadd.f32 %v1657_v40, %v1368_v12  ;;  %v1370_v17 = vpop.f32.mrb[31].mxu1 }
 0x155   : > { %2400 = vst.msk [vmem:[%s3474_s17 + $0x30] sm:$0xf] %vm2387_vm3, %v2785_v11  ;;  %v2786_v19 = vpack.c.bf16 %v2080_v14, %v2080_v14  ;;  %v1678_v30 = vpop.f32.mrb[40].mxu0 }
 0x156   : > { %v1945_v21 = vadd.f32 %v3454_v1, %v1874_v15  ;;  %v1875_v22 = vmul.f32 %v3448_v36, %v1658_v16  ;;  %v1680_v33 = vpop.f32.mrb[41].mxu0 }
 0x157   : > { %2401 = vst.msk [vmem:[%s3474_s17 + $0x34] sm:$0xf] %vm2387_vm3, %v2786_v19  ;;  %v1681_v39 = vpop.f32.mrb[42].mxu0 }
 0x158   : > { %v2011_v23 = vmax.f32 %v1945_v21, 0.0  ;;  %v1946_v24 = vadd.f32 %v3454_v1, %v1875_v22  ;;  %v1683_v42 = vpop.f32.mrb[43].mxu0 }
 0x159   : > { %v1373_v25 = vpop.f32.mrb[32].mxu1 }
 0x15a   : > { %v2081_v26 = vsel %vm2066_vm2, %v2011_v23, %v1945_v21  ;;  %v2012_v27 = vmax.f32 %v1946_v24, 0.0  ;;  %v1663_v28 = vadd.f32 %v1662_v53, %v1373_v25  ;;  %v1375_v29 = vpop.f32.mrb[33].mxu1 }
 0x15b   : > { %v2787_v31 = vpack.c.bf16 %v2081_v26, %v2081_v26  ;;  %v1376_v32 = vpop.f32.mrb[34].mxu1 }
 0x15c   : > { %v2082_v34 = vsel %vm2066_vm2, %v2012_v27, %v1946_v24  ;;  %v1876_v35 = vmul.f32 %v3448_v36, %v1663_v28  ;;  %v1666_v37 = vadd.f32 %v1665_v61, %v1376_v32  ;;  %v1378_v38 = vpop.f32.mrb[35].mxu1 }
 0x15d   : > { %2402 = vst.msk [vmem:[%s3474_s17 + $0x38] sm:$0xf] %vm2387_vm3, %v2787_v31  ;;  %v2788_v40 = vpack.c.bf16 %v2082_v34, %v2082_v34  ;;  %v1686_v52 = vpop.f32.mrb[44].mxu0 }
 0x15e   : > { %v1947_v43 = vadd.f32 %v3454_v1, %v1876_v35  ;;  %v1877_v44 = vmul.f32 %v3448_v36, %v1666_v37  ;;  %v1688_v55 = vpop.f32.mrb[45].mxu0 }
 0x15f   : > { %2403 = vst.msk [vmem:[%s3474_s17 + $0x3c] sm:$0xf] %vm2387_vm3, %v2788_v40  ;;  %v1689_v60 = vpop.f32.mrb[46].mxu0 }
 0x160   : > { %v2013_v45 = vmax.f32 %v1947_v43, 0.0  ;;  %v1948_v46 = vadd.f32 %v3454_v1, %v1877_v44  ;;  %v1691_v62 = vpop.f32.mrb[47].mxu0 }
 0x161   : > { %v1381_v47 = vpop.f32.mrb[36].mxu1 }
 0x162   : > { %v2083_v48 = vsel %vm2066_vm2, %v2013_v45, %v1947_v43  ;;  %v2014_v49 = vmax.f32 %v1948_v46, 0.0  ;;  %v1671_v50 = vadd.f32 %v1670_v10, %v1381_v47  ;;  %v1383_v51 = vpop.f32.mrb[37].mxu1 }
 0x163   : > { %v2789_v53 = vpack.c.bf16 %v2083_v48, %v2083_v48  ;;  %v1384_v54 = vpop.f32.mrb[38].mxu1 }
 0x164   : > { %v2084_v56 = vsel %vm2066_vm2, %v2014_v49, %v1948_v46  ;;  %v1878_v57 = vmul.f32 %v3448_v36, %v1671_v50  ;;  %v1674_v58 = vadd.f32 %v1673_v18, %v1384_v54  ;;  %v1386_v59 = vpop.f32.mrb[39].mxu1 }
 0x165   : > { %2404 = vst.msk [vmem:[%s3474_s17 + $0x40] sm:$0xf] %vm2387_vm3, %v2789_v53  ;;  %v2790_v61 = vpack.c.bf16 %v2084_v56, %v2084_v56  ;;  %v1694_v9 = vpop.f32.mrb[48].mxu0 }
 0x166   : > { %v1949_v63 = vadd.f32 %v3454_v1, %v1878_v57  ;;  %v1879_v0 = vmul.f32 %v3448_v36, %v1674_v58  ;;  %v1696_v12 = vpop.f32.mrb[49].mxu0 }
 0x167   : > { %2405 = vst.msk [vmem:[%s3474_s17 + $0x44] sm:$0xf] %vm2387_vm3, %v2790_v61  ;;  %v1697_v17 = vpop.f32.mrb[50].mxu0 }
 0x168   : > { %v2015_v2 = vmax.f32 %v1949_v63, 0.0  ;;  %v1950_v3 = vadd.f32 %v3454_v1, %v1879_v0  ;;  %v1699_v19 = vpop.f32.mrb[51].mxu0 }
 0x169   : > { %v1389_v4 = vpop.f32.mrb[40].mxu1 }
 0x16a   : > { %v2085_v5 = vsel %vm2066_vm2, %v2015_v2, %v1949_v63  ;;  %v2016_v6 = vmax.f32 %v1950_v3, 0.0  ;;  %v1679_v7 = vadd.f32 %v1678_v30, %v1389_v4  ;;  %v1391_v8 = vpop.f32.mrb[41].mxu1 }
 0x16b   : > { %v2791_v10 = vpack.c.bf16 %v2085_v5, %v2085_v5  ;;  %v1392_v11 = vpop.f32.mrb[42].mxu1 }
 0x16c   : > { %v2086_v13 = vsel %vm2066_vm2, %v2016_v6, %v1950_v3  ;;  %v1880_v14 = vmul.f32 %v3448_v36, %v1679_v7  ;;  %v1682_v15 = vadd.f32 %v1681_v39, %v1392_v11  ;;  %v1394_v16 = vpop.f32.mrb[43].mxu1 }
 0x16d   : > { %2406 = vst.msk [vmem:[%s3474_s17 + $0x48] sm:$0xf] %vm2387_vm3, %v2791_v10  ;;  %v2792_v18 = vpack.c.bf16 %v2086_v13, %v2086_v13  ;;  %v1702_v29 = vpop.f32.mrb[52].mxu0 }
 0x16e   : > { %v1951_v20 = vadd.f32 %v3454_v1, %v1880_v14  ;;  %v1881_v21 = vmul.f32 %v3448_v36, %v1682_v15  ;;  %v1704_v32 = vpop.f32.mrb[53].mxu0 }
 0x16f   : > { %2407 = vst.msk [vmem:[%s3474_s17 + $0x4c] sm:$0xf] %vm2387_vm3, %v2792_v18  ;;  %v1705_v38 = vpop.f32.mrb[54].mxu0 }
 0x170   : > { %v2017_v22 = vmax.f32 %v1951_v20, 0.0  ;;  %v1952_v23 = vadd.f32 %v3454_v1, %v1881_v21  ;;  %v1707_v40 = vpop.f32.mrb[55].mxu0 }
 0x171   : > { %v1397_v24 = vpop.f32.mrb[44].mxu1 }
 0x172   : > { %v2087_v25 = vsel %vm2066_vm2, %v2017_v22, %v1951_v20  ;;  %v2018_v26 = vmax.f32 %v1952_v23, 0.0  ;;  %v1687_v27 = vadd.f32 %v1686_v52, %v1397_v24  ;;  %v1399_v28 = vpop.f32.mrb[45].mxu1 }
 0x173   : > { %v2793_v30 = vpack.c.bf16 %v2087_v25, %v2087_v25  ;;  %v1400_v31 = vpop.f32.mrb[46].mxu1 }
 0x174   : > { %v2088_v33 = vsel %vm2066_vm2, %v2018_v26, %v1952_v23  ;;  %v1882_v34 = vmul.f32 %v3448_v36, %v1687_v27  ;;  %v1690_v35 = vadd.f32 %v1689_v60, %v1400_v31  ;;  %v1402_v37 = vpop.f32.mrb[47].mxu1 }
 0x175   : > { %2408 = vst.msk [vmem:[%s3474_s17 + $0x50] sm:$0xf] %vm2387_vm3, %v2793_v30  ;;  %v2794_v39 = vpack.c.bf16 %v2088_v33, %v2088_v33  ;;  %v1710_v51 = vpop.f32.mrb[56].mxu0 }
 0x176   : > { %v1953_v42 = vadd.f32 %v3454_v1, %v1882_v34  ;;  %v1883_v43 = vmul.f32 %v3448_v36, %v1690_v35  ;;  %v1712_v54 = vpop.f32.mrb[57].mxu0 }
 0x177   : > { %2409 = vst.msk [vmem:[%s3474_s17 + $0x54] sm:$0xf] %vm2387_vm3, %v2794_v39  ;;  %v1713_v59 = vpop.f32.mrb[58].mxu0 }
 0x178   : > { %v2019_v44 = vmax.f32 %v1953_v42, 0.0  ;;  %v1954_v45 = vadd.f32 %v3454_v1, %v1883_v43  ;;  %v1715_v61 = vpop.f32.mrb[59].mxu0 }
 0x179   : > { %v1405_v46 = vpop.f32.mrb[48].mxu1 }
 0x17a   : > { %v2089_v47 = vsel %vm2066_vm2, %v2019_v44, %v1953_v42  ;;  %v2020_v48 = vmax.f32 %v1954_v45, 0.0  ;;  %v1695_v49 = vadd.f32 %v1694_v9, %v1405_v46  ;;  %v1407_v50 = vpop.f32.mrb[49].mxu1 }
 0x17b   : > { %v2795_v52 = vpack.c.bf16 %v2089_v47, %v2089_v47  ;;  %v1408_v53 = vpop.f32.mrb[50].mxu1 }
 0x17c   : > { %v2090_v55 = vsel %vm2066_vm2, %v2020_v48, %v1954_v45  ;;  %v1884_v56 = vmul.f32 %v3448_v36, %v1695_v49  ;;  %v1698_v57 = vadd.f32 %v1697_v17, %v1408_v53  ;;  %v1410_v58 = vpop.f32.mrb[51].mxu1 }
 0x17d   : > { %2410 = vst.msk [vmem:[%s3474_s17 + $0x58] sm:$0xf] %vm2387_vm3, %v2795_v52  ;;  %v2796_v60 = vpack.c.bf16 %v2090_v55, %v2090_v55  ;;  %v1718_v8 = vpop.f32.mrb[60].mxu0 }
 0x17e   : > { %v1955_v62 = vadd.f32 %v3454_v1, %v1884_v56  ;;  %v1885_v63 = vmul.f32 %v3448_v36, %v1698_v57  ;;  %v1720_v11 = vpop.f32.mrb[61].mxu0 }
 0x17f   : > { %2411 = vst.msk [vmem:[%s3474_s17 + $0x5c] sm:$0xf] %vm2387_vm3, %v2796_v60  ;;  %v1721_v16 = vpop.f32.mrb[62].mxu0 }
 0x180   : > { %v2021_v0 = vmax.f32 %v1955_v62, 0.0  ;;  %v1956_v2 = vadd.f32 %v3454_v1, %v1885_v63  ;;  %v1723_v18 = vpop.f32.mrb[63].mxu0 }
 0x181   : > { %v1413_v3 = vpop.f32.mrb[52].mxu1 }
 0x182   : > { %v2091_v4 = vsel %vm2066_vm2, %v2021_v0, %v1955_v62  ;;  %v2022_v5 = vmax.f32 %v1956_v2, 0.0  ;;  %v1703_v6 = vadd.f32 %v1702_v29, %v1413_v3  ;;  %v1415_v7 = vpop.f32.mrb[53].mxu1 }
 0x183   : > { %v2797_v9 = vpack.c.bf16 %v2091_v4, %v2091_v4  ;;  %v1416_v10 = vpop.f32.mrb[54].mxu1 }
 0x184   : > { %v2092_v12 = vsel %vm2066_vm2, %v2022_v5, %v1956_v2  ;;  %v1886_v13 = vmul.f32 %v3448_v36, %v1703_v6  ;;  %v1706_v14 = vadd.f32 %v1705_v38, %v1416_v10  ;;  %v1418_v15 = vpop.f32.mrb[55].mxu1 }
 0x185   : > { %2412 = vst.msk [vmem:[%s3474_s17 + $0x60] sm:$0xf] %vm2387_vm3, %v2797_v9  ;;  %v2798_v17 = vpack.c.bf16 %v2092_v12, %v2092_v12  ;;  %v1726_v28 = vpop.f32.mrb[64].mxu0 }
 0x186   : > { %v1957_v19 = vadd.f32 %v3454_v1, %v1886_v13  ;;  %v1887_v20 = vmul.f32 %v3448_v36, %v1706_v14  ;;  %v1728_v31 = vpop.f32.mrb[65].mxu0 }
 0x187   : > { %2413 = vst.msk [vmem:[%s3474_s17 + $0x64] sm:$0xf] %vm2387_vm3, %v2798_v17  ;;  %v1729_v37 = vpop.f32.mrb[66].mxu0 }
 0x188   : > { %v2023_v21 = vmax.f32 %v1957_v19, 0.0  ;;  %v1958_v22 = vadd.f32 %v3454_v1, %v1887_v20  ;;  %v1731_v39 = vpop.f32.mrb[67].mxu0 }
 0x189   : > { %v1421_v23 = vpop.f32.mrb[56].mxu1 }
 0x18a   : > { %v2093_v24 = vsel %vm2066_vm2, %v2023_v21, %v1957_v19  ;;  %v2024_v25 = vmax.f32 %v1958_v22, 0.0  ;;  %v1711_v26 = vadd.f32 %v1710_v51, %v1421_v23  ;;  %v1423_v27 = vpop.f32.mrb[57].mxu1 }
 0x18b   : > { %v2799_v29 = vpack.c.bf16 %v2093_v24, %v2093_v24  ;;  %v1424_v30 = vpop.f32.mrb[58].mxu1 }
 0x18c   : > { %v2094_v32 = vsel %vm2066_vm2, %v2024_v25, %v1958_v22  ;;  %v1888_v33 = vmul.f32 %v3448_v36, %v1711_v26  ;;  %v1714_v34 = vadd.f32 %v1713_v59, %v1424_v30  ;;  %v1426_v35 = vpop.f32.mrb[59].mxu1 }
 0x18d   : > { %2414 = vst.msk [vmem:[%s3474_s17 + $0x68] sm:$0xf] %vm2387_vm3, %v2799_v29  ;;  %v2800_v38 = vpack.c.bf16 %v2094_v32, %v2094_v32  ;;  %v1734_v50 = vpop.f32.mrb[68].mxu0 }
 0x18e   : > { %v1959_v40 = vadd.f32 %v3454_v1, %v1888_v33  ;;  %v1889_v42 = vmul.f32 %v3448_v36, %v1714_v34  ;;  %v1736_v53 = vpop.f32.mrb[69].mxu0 }
 0x18f   : > { %2415 = vst.msk [vmem:[%s3474_s17 + $0x6c] sm:$0xf] %vm2387_vm3, %v2800_v38  ;;  %v1737_v58 = vpop.f32.mrb[70].mxu0 }
 0x190   : > { %v2025_v43 = vmax.f32 %v1959_v40, 0.0  ;;  %v1960_v44 = vadd.f32 %v3454_v1, %v1889_v42  ;;  %v1739_v60 = vpop.f32.mrb[71].mxu0 }
 0x191   : > { %v1429_v45 = vpop.f32.mrb[60].mxu1 }
 0x192   : > { %v2095_v46 = vsel %vm2066_vm2, %v2025_v43, %v1959_v40  ;;  %v2026_v47 = vmax.f32 %v1960_v44, 0.0  ;;  %v1719_v48 = vadd.f32 %v1718_v8, %v1429_v45  ;;  %v1431_v49 = vpop.f32.mrb[61].mxu1 }
 0x193   : > { %v2801_v51 = vpack.c.bf16 %v2095_v46, %v2095_v46  ;;  %v1432_v52 = vpop.f32.mrb[62].mxu1 }
 0x194   : > { %v2096_v54 = vsel %vm2066_vm2, %v2026_v47, %v1960_v44  ;;  %v1890_v55 = vmul.f32 %v3448_v36, %v1719_v48  ;;  %v1722_v56 = vadd.f32 %v1721_v16, %v1432_v52  ;;  %v1434_v57 = vpop.f32.mrb[63].mxu1 }
 0x195   : > { %2416 = vst.msk [vmem:[%s3474_s17 + $0x70] sm:$0xf] %vm2387_vm3, %v2801_v51  ;;  %v2802_v59 = vpack.c.bf16 %v2096_v54, %v2096_v54  ;;  %v1742_v7 = vpop.f32.mrb[72].mxu0 }
 0x196   : > { %v1961_v61 = vadd.f32 %v3454_v1, %v1890_v55  ;;  %v1891_v62 = vmul.f32 %v3448_v36, %v1722_v56  ;;  %v1744_v10 = vpop.f32.mrb[73].mxu0 }
 0x197   : > { %2417 = vst.msk [vmem:[%s3474_s17 + $0x74] sm:$0xf] %vm2387_vm3, %v2802_v59  ;;  %v1745_v15 = vpop.f32.mrb[74].mxu0 }
 0x198   : > { %v2027_v63 = vmax.f32 %v1961_v61, 0.0  ;;  %v1962_v0 = vadd.f32 %v3454_v1, %v1891_v62  ;;  %v1747_v17 = vpop.f32.mrb[75].mxu0 }
 0x199   : > { %v1437_v2 = vpop.f32.mrb[64].mxu1 }
 0x19a   : > { %v2097_v3 = vsel %vm2066_vm2, %v2027_v63, %v1961_v61  ;;  %v2028_v4 = vmax.f32 %v1962_v0, 0.0  ;;  %v1727_v5 = vadd.f32 %v1726_v28, %v1437_v2  ;;  %v1439_v6 = vpop.f32.mrb[65].mxu1 }
 0x19b   : > { %v2803_v8 = vpack.c.bf16 %v2097_v3, %v2097_v3  ;;  %v1440_v9 = vpop.f32.mrb[66].mxu1 }
 0x19c   : > { %v2098_v11 = vsel %vm2066_vm2, %v2028_v4, %v1962_v0  ;;  %v1892_v12 = vmul.f32 %v3448_v36, %v1727_v5  ;;  %v1730_v13 = vadd.f32 %v1729_v37, %v1440_v9  ;;  %v1442_v14 = vpop.f32.mrb[67].mxu1 }
 0x19d   : > { %2418 = vst.msk [vmem:[%s3474_s17 + $0x78] sm:$0xf] %vm2387_vm3, %v2803_v8  ;;  %v2804_v16 = vpack.c.bf16 %v2098_v11, %v2098_v11  ;;  %v1750_v27 = vpop.f32.mrb[76].mxu0 }
 0x19e   : > { %v1963_v18 = vadd.f32 %v3454_v1, %v1892_v12  ;;  %v1893_v19 = vmul.f32 %v3448_v36, %v1730_v13  ;;  %v1752_v30 = vpop.f32.mrb[77].mxu0 }
 0x19f   : > { %2419 = vst.msk [vmem:[%s3474_s17 + $0x7c] sm:$0xf] %vm2387_vm3, %v2804_v16  ;;  %v1753_v35 = vpop.f32.mrb[78].mxu0 }
 0x1a0   : > { %v2029_v20 = vmax.f32 %v1963_v18, 0.0  ;;  %v1964_v21 = vadd.f32 %v3454_v1, %v1893_v19  ;;  %v1755_v38 = vpop.f32.mrb[79].mxu0 }
 0x1a1   : > { %v1445_v22 = vpop.f32.mrb[68].mxu1 }
 0x1a2   : > { %v2099_v23 = vsel %vm2066_vm2, %v2029_v20, %v1963_v18  ;;  %v2030_v24 = vmax.f32 %v1964_v21, 0.0  ;;  %v1735_v25 = vadd.f32 %v1734_v50, %v1445_v22  ;;  %v1447_v26 = vpop.f32.mrb[69].mxu1 }
 0x1a3   : > { %v2805_v28 = vpack.c.bf16 %v2099_v23, %v2099_v23  ;;  %v1448_v29 = vpop.f32.mrb[70].mxu1 }
 0x1a4   : > { %v2100_v31 = vsel %vm2066_vm2, %v2030_v24, %v1964_v21  ;;  %v1894_v32 = vmul.f32 %v3448_v36, %v1735_v25  ;;  %v1738_v33 = vadd.f32 %v1737_v58, %v1448_v29  ;;  %v1450_v34 = vpop.f32.mrb[71].mxu1 }
 0x1a5   : > { %2420 = vst.msk [vmem:[%s3474_s17 + $0x80] sm:$0xf] %vm2387_vm3, %v2805_v28  ;;  %v2806_v37 = vpack.c.bf16 %v2100_v31, %v2100_v31  ;;  %v1758_v49 = vpop.f32.mrb[80].mxu0 }
 0x1a6   : > { %v1965_v39 = vadd.f32 %v3454_v1, %v1894_v32  ;;  %v1895_v40 = vmul.f32 %v3448_v36, %v1738_v33  ;;  %v1760_v52 = vpop.f32.mrb[81].mxu0 }
 0x1a7   : > { %2421 = vst.msk [vmem:[%s3474_s17 + $0x84] sm:$0xf] %vm2387_vm3, %v2806_v37  ;;  %v1761_v57 = vpop.f32.mrb[82].mxu0 }
 0x1a8   : > { %v2031_v42 = vmax.f32 %v1965_v39, 0.0  ;;  %v1966_v43 = vadd.f32 %v3454_v1, %v1895_v40  ;;  %v1763_v59 = vpop.f32.mrb[83].mxu0 }
 0x1a9   : > { %v1453_v44 = vpop.f32.mrb[72].mxu1 }
 0x1aa   : > { %v2101_v45 = vsel %vm2066_vm2, %v2031_v42, %v1965_v39  ;;  %v2032_v46 = vmax.f32 %v1966_v43, 0.0  ;;  %v1743_v47 = vadd.f32 %v1742_v7, %v1453_v44  ;;  %v1455_v48 = vpop.f32.mrb[73].mxu1 }
 0x1ab   : > { %v2807_v50 = vpack.c.bf16 %v2101_v45, %v2101_v45  ;;  %v1456_v51 = vpop.f32.mrb[74].mxu1 }
 0x1ac   : > { %v2102_v53 = vsel %vm2066_vm2, %v2032_v46, %v1966_v43  ;;  %v1896_v54 = vmul.f32 %v3448_v36, %v1743_v47  ;;  %v1746_v55 = vadd.f32 %v1745_v15, %v1456_v51  ;;  %v1458_v56 = vpop.f32.mrb[75].mxu1 }
 0x1ad   : > { %2422 = vst.msk [vmem:[%s3474_s17 + $0x88] sm:$0xf] %vm2387_vm3, %v2807_v50  ;;  %v2808_v58 = vpack.c.bf16 %v2102_v53, %v2102_v53  ;;  %v1766_v6 = vpop.f32.mrb[84].mxu0 }
 0x1ae   : > { %v1967_v60 = vadd.f32 %v3454_v1, %v1896_v54  ;;  %v1897_v61 = vmul.f32 %v3448_v36, %v1746_v55  ;;  %v1768_v9 = vpop.f32.mrb[85].mxu0 }
 0x1af   : > { %2423 = vst.msk [vmem:[%s3474_s17 + $0x8c] sm:$0xf] %vm2387_vm3, %v2808_v58  ;;  %v1769_v14 = vpop.f32.mrb[86].mxu0 }
 0x1b0   : > { %v2033_v62 = vmax.f32 %v1967_v60, 0.0  ;;  %v1968_v63 = vadd.f32 %v3454_v1, %v1897_v61  ;;  %v1771_v16 = vpop.f32.mrb[87].mxu0 }
 0x1b1   : > { %v1461_v0 = vpop.f32.mrb[76].mxu1 }
 0x1b2   : > { %v2103_v2 = vsel %vm2066_vm2, %v2033_v62, %v1967_v60  ;;  %v2034_v3 = vmax.f32 %v1968_v63, 0.0  ;;  %v1751_v4 = vadd.f32 %v1750_v27, %v1461_v0  ;;  %v1463_v5 = vpop.f32.mrb[77].mxu1 }
 0x1b3   : > { %v2809_v7 = vpack.c.bf16 %v2103_v2, %v2103_v2  ;;  %v1464_v8 = vpop.f32.mrb[78].mxu1 }
 0x1b4   : > { %v2104_v10 = vsel %vm2066_vm2, %v2034_v3, %v1968_v63  ;;  %v1898_v11 = vmul.f32 %v3448_v36, %v1751_v4  ;;  %v1754_v12 = vadd.f32 %v1753_v35, %v1464_v8  ;;  %v1466_v13 = vpop.f32.mrb[79].mxu1 }
 0x1b5   : > { %2424 = vst.msk [vmem:[%s3474_s17 + $0x90] sm:$0xf] %vm2387_vm3, %v2809_v7  ;;  %v2810_v15 = vpack.c.bf16 %v2104_v10, %v2104_v10  ;;  %v1774_v26 = vpop.f32.mrb[88].mxu0 }
 0x1b6   : > { %v1969_v17 = vadd.f32 %v3454_v1, %v1898_v11  ;;  %v1899_v18 = vmul.f32 %v3448_v36, %v1754_v12  ;;  %v1776_v29 = vpop.f32.mrb[89].mxu0 }
 0x1b7   : > { %2425 = vst.msk [vmem:[%s3474_s17 + $0x94] sm:$0xf] %vm2387_vm3, %v2810_v15  ;;  %v1777_v34 = vpop.f32.mrb[90].mxu0  ;;  %v3755_v15 = vld [vmem:[%s3884_s3] ss:$0 sm:$0xff] }
 0x1b8   : > { %v2035_v19 = vmax.f32 %v1969_v17, 0.0  ;;  %v1970_v20 = vadd.f32 %v3454_v1, %v1899_v18  ;;  %v1779_v37 = vpop.f32.mrb[91].mxu0 }
 0x1b9   : > { %v1469_v21 = vpop.f32.mrb[80].mxu1 }
 0x1ba   : > { %v2105_v22 = vsel %vm2066_vm2, %v2035_v19, %v1969_v17  ;;  %v2036_v23 = vmax.f32 %v1970_v20, 0.0  ;;  %v1759_v24 = vadd.f32 %v1758_v49, %v1469_v21  ;;  %v1471_v25 = vpop.f32.mrb[81].mxu1 }
 0x1bb   : > { %v2811_v27 = vpack.c.bf16 %v2105_v22, %v2105_v22  ;;  %v1472_v28 = vpop.f32.mrb[82].mxu1 }
 0x1bc   : > { %v2106_v30 = vsel %vm2066_vm2, %v2036_v23, %v1970_v20  ;;  %v1900_v31 = vmul.f32 %v3448_v36, %v1759_v24  ;;  %v1762_v32 = vadd.f32 %v1761_v57, %v1472_v28  ;;  %v1474_v33 = vpop.f32.mrb[83].mxu1 }
 0x1bd   : > { %2426 = vst.msk [vmem:[%s3474_s17 + $0x98] sm:$0xf] %vm2387_vm3, %v2811_v27  ;;  %v2812_v35 = vpack.c.bf16 %v2106_v30, %v2106_v30  ;;  %v1782_v48 = vpop.f32.mrb[92].mxu0 }
 0x1be   : > { %v1971_v38 = vadd.f32 %v3454_v1, %v1900_v31  ;;  %v1901_v39 = vmul.f32 %v3448_v36, %v1762_v32  ;;  %v1784_v51 = vpop.f32.mrb[93].mxu0 }
 0x1bf   : > { %2427 = vst.msk [vmem:[%s3474_s17 + $0x9c] sm:$0xf] %vm2387_vm3, %v2812_v35  ;;  %v1785_v56 = vpop.f32.mrb[94].mxu0 }
 0x1c0   : > { %v2037_v40 = vmax.f32 %v1971_v38, 0.0  ;;  %v1972_v42 = vadd.f32 %v3454_v1, %v1901_v39  ;;  %v1787_v58 = vpop.f32.mrb[95].mxu0 }
 0x1c1   : > { %v1477_v43 = vpop.f32.mrb[84].mxu1 }
 0x1c2   : > { %v2107_v44 = vsel %vm2066_vm2, %v2037_v40, %v1971_v38  ;;  %v2038_v45 = vmax.f32 %v1972_v42, 0.0  ;;  %v1767_v46 = vadd.f32 %v1766_v6, %v1477_v43  ;;  %v1479_v47 = vpop.f32.mrb[85].mxu1 }
 0x1c3   : > { %v2813_v49 = vpack.c.bf16 %v2107_v44, %v2107_v44  ;;  %v1480_v50 = vpop.f32.mrb[86].mxu1 }
 0x1c4   : > { %v2108_v52 = vsel %vm2066_vm2, %v2038_v45, %v1972_v42  ;;  %v1902_v53 = vmul.f32 %v3448_v36, %v1767_v46  ;;  %v1770_v54 = vadd.f32 %v1769_v14, %v1480_v50  ;;  %v1482_v55 = vpop.f32.mrb[87].mxu1 }
 0x1c5   : > { %2428 = vst.msk [vmem:[%s3474_s17 + $0xa0] sm:$0xf] %vm2387_vm3, %v2813_v49  ;;  %v2814_v57 = vpack.c.bf16 %v2108_v52, %v2108_v52  ;;  %v1790_v5 = vpop.f32.mrb[96].mxu0 }
 0x1c6   : > { %v1973_v59 = vadd.f32 %v3454_v1, %v1902_v53  ;;  %v1903_v60 = vmul.f32 %v3448_v36, %v1770_v54  ;;  %v1792_v8 = vpop.f32.mrb[97].mxu0 }
 0x1c7   : > { %2429 = vst.msk [vmem:[%s3474_s17 + $0xa4] sm:$0xf] %vm2387_vm3, %v2814_v57  ;;  %v1793_v12 = vpop.f32.mrb[98].mxu0 }
 0x1c8   : > { %v2039_v61 = vmax.f32 %v1973_v59, 0.0  ;;  %v1974_v62 = vadd.f32 %v3454_v1, %v1903_v60  ;;  %v3747_v1 = vld [vmem:[%s3883_s2] ss:$0 sm:$0xff]  ;;  %v1795_v14 = vpop.f32.mrb[99].mxu0 }
 0x1c9   : > { %v1485_v63 = vpop.f32.mrb[88].mxu1 }
 0x1ca   : > { %v2109_v0 = vsel %vm2066_vm2, %v2039_v61, %v1973_v59  ;;  %v2040_v2 = vmax.f32 %v1974_v62, 0.0  ;;  %v1775_v3 = vadd.f32 %v1774_v26, %v1485_v63  ;;  %v1487_v4 = vpop.f32.mrb[89].mxu1 }
 0x1cb   : > { %v2815_v6 = vpack.c.bf16 %v2109_v0, %v2109_v0  ;;  %v1488_v7 = vpop.f32.mrb[90].mxu1 }
 0x1cc   : > { %v2110_v36 = vsel %vm2066_vm2, %v2040_v2, %v1974_v62  ;;  %v1904_v9 = vmul.f32 %v3747_v1, %v1775_v3  ;;  %v1778_v10 = vadd.f32 %v1777_v34, %v1488_v7  ;;  %v1490_v11 = vpop.f32.mrb[91].mxu1 }
 0x1cd   : > { %2430 = vst.msk [vmem:[%s3474_s17 + $0xa8] sm:$0xf] %vm2387_vm3, %v2815_v6  ;;  %v2816_v13 = vpack.c.bf16 %v2110_v36, %v2110_v36  ;;  %v1798_v25 = vpop.f32.mrb[100].mxu0 }
 0x1ce   : > { %v1975_v16 = vadd.f32 %v3755_v15, %v1904_v9  ;;  %v1905_v17 = vmul.f32 %v3747_v1, %v1778_v10  ;;  %v1800_v28 = vpop.f32.mrb[101].mxu0 }
 0x1cf   : > { %2431 = vst.msk [vmem:[%s3474_s17 + $0xac] sm:$0xf] %vm2387_vm3, %v2816_v13  ;;  %v1801_v33 = vpop.f32.mrb[102].mxu0 }
 0x1d0   : > { %v2041_v18 = vmax.f32 %v1975_v16, 0.0  ;;  %v1976_v19 = vadd.f32 %v3755_v15, %v1905_v17  ;;  %v1803_v35 = vpop.f32.mrb[103].mxu0 }
 0x1d1   : > { %v1493_v20 = vpop.f32.mrb[92].mxu1 }
 0x1d2   : > { %v2111_v21 = vsel %vm2066_vm2, %v2041_v18, %v1975_v16  ;;  %v2042_v22 = vmax.f32 %v1976_v19, 0.0  ;;  %v1783_v23 = vadd.f32 %v1782_v48, %v1493_v20  ;;  %v1495_v24 = vpop.f32.mrb[93].mxu1 }
 0x1d3   : > { %v2817_v26 = vpack.c.bf16 %v2111_v21, %v2111_v21  ;;  %v1496_v27 = vpop.f32.mrb[94].mxu1 }
 0x1d4   : > { %v2112_v29 = vsel %vm2066_vm2, %v2042_v22, %v1976_v19  ;;  %v1906_v30 = vmul.f32 %v3747_v1, %v1783_v23  ;;  %v1786_v31 = vadd.f32 %v1785_v56, %v1496_v27  ;;  %v1498_v32 = vpop.f32.mrb[95].mxu1 }
 0x1d5   : > { %2432 = vst.msk [vmem:[%s3474_s17 + $0xb0] sm:$0xf] %vm2387_vm3, %v2817_v26  ;;  %v2818_v34 = vpack.c.bf16 %v2112_v29, %v2112_v29  ;;  %v1806_v47 = vpop.f32.mrb[104].mxu0 }
 0x1d6   : > { %v1977_v37 = vadd.f32 %v3755_v15, %v1906_v30  ;;  %v1907_v38 = vmul.f32 %v3747_v1, %v1786_v31  ;;  %v1808_v50 = vpop.f32.mrb[105].mxu0 }
 0x1d7   : > { %2433 = vst.msk [vmem:[%s3474_s17 + $0xb4] sm:$0xf] %vm2387_vm3, %v2818_v34  ;;  %v1809_v55 = vpop.f32.mrb[106].mxu0 }
 0x1d8   : > { %v2043_v39 = vmax.f32 %v1977_v37, 0.0  ;;  %v1978_v40 = vadd.f32 %v3755_v15, %v1907_v38  ;;  %v1811_v57 = vpop.f32.mrb[107].mxu0 }
 0x1d9   : > { %v1501_v42 = vpop.f32.mrb[96].mxu1 }
 0x1da   : > { %v2113_v43 = vsel %vm2066_vm2, %v2043_v39, %v1977_v37  ;;  %v2044_v44 = vmax.f32 %v1978_v40, 0.0  ;;  %v1791_v45 = vadd.f32 %v1790_v5, %v1501_v42  ;;  %v1503_v46 = vpop.f32.mrb[97].mxu1 }
 0x1db   : > { %v2819_v48 = vpack.c.bf16 %v2113_v43, %v2113_v43  ;;  %v1504_v49 = vpop.f32.mrb[98].mxu1 }
 0x1dc   : > { %v2114_v51 = vsel %vm2066_vm2, %v2044_v44, %v1978_v40  ;;  %v1908_v52 = vmul.f32 %v3747_v1, %v1791_v45  ;;  %v1794_v53 = vadd.f32 %v1793_v12, %v1504_v49  ;;  %v1506_v54 = vpop.f32.mrb[99].mxu1 }
 0x1dd   : > { %2434 = vst.msk [vmem:[%s3474_s17 + $0xb8] sm:$0xf] %vm2387_vm3, %v2819_v48  ;;  %v2820_v56 = vpack.c.bf16 %v2114_v51, %v2114_v51  ;;  %v1814_v4 = vpop.f32.mrb[108].mxu0 }
 0x1de   : > { %v1979_v58 = vadd.f32 %v3755_v15, %v1908_v52  ;;  %v1909_v59 = vmul.f32 %v3747_v1, %v1794_v53  ;;  %v1816_v7 = vpop.f32.mrb[109].mxu0 }
 0x1df   : > { %2435 = vst.msk [vmem:[%s3474_s17 + $0xbc] sm:$0xf] %vm2387_vm3, %v2820_v56  ;;  %v1817_v11 = vpop.f32.mrb[110].mxu0 }
 0x1e0   : > { %v2045_v60 = vmax.f32 %v1979_v58, 0.0  ;;  %v1980_v61 = vadd.f32 %v3755_v15, %v1909_v59  ;;  %v1819_v13 = vpop.f32.mrb[111].mxu0 }
 0x1e1   : > { %v1509_v62 = vpop.f32.mrb[100].mxu1 }
 0x1e2   : > { %v2115_v63 = vsel %vm2066_vm2, %v2045_v60, %v1979_v58  ;;  %v2046_v0 = vmax.f32 %v1980_v61, 0.0  ;;  %v1799_v2 = vadd.f32 %v1798_v25, %v1509_v62  ;;  %v1511_v3 = vpop.f32.mrb[101].mxu1 }
 0x1e3   : > { %v2821_v5 = vpack.c.bf16 %v2115_v63, %v2115_v63  ;;  %v1512_v6 = vpop.f32.mrb[102].mxu1 }
 0x1e4   : > { %v2116_v8 = vsel %vm2066_vm2, %v2046_v0, %v1980_v61  ;;  %v1910_v36 = vmul.f32 %v3747_v1, %v1799_v2  ;;  %v1802_v9 = vadd.f32 %v1801_v33, %v1512_v6  ;;  %v1514_v10 = vpop.f32.mrb[103].mxu1 }
 0x1e5   : > { %2436 = vst.msk [vmem:[%s3474_s17 + $0xc0] sm:$0xf] %vm2387_vm3, %v2821_v5  ;;  %v2822_v12 = vpack.c.bf16 %v2116_v8, %v2116_v8  ;;  %v1822_v24 = vpop.f32.mrb[112].mxu0 }
 0x1e6   : > { %v1981_v14 = vadd.f32 %v3755_v15, %v1910_v36  ;;  %v1911_v16 = vmul.f32 %v3747_v1, %v1802_v9  ;;  %v1824_v27 = vpop.f32.mrb[113].mxu0 }
 0x1e7   : > { %2437 = vst.msk [vmem:[%s3474_s17 + $0xc4] sm:$0xf] %vm2387_vm3, %v2822_v12  ;;  %v1825_v32 = vpop.f32.mrb[114].mxu0 }
 0x1e8   : > { %v2047_v17 = vmax.f32 %v1981_v14, 0.0  ;;  %v1982_v18 = vadd.f32 %v3755_v15, %v1911_v16  ;;  %v1827_v34 = vpop.f32.mrb[115].mxu0 }
 0x1e9   : > { %v1517_v19 = vpop.f32.mrb[104].mxu1 }
 0x1ea   : > { %v2117_v20 = vsel %vm2066_vm2, %v2047_v17, %v1981_v14  ;;  %v2048_v21 = vmax.f32 %v1982_v18, 0.0  ;;  %v1807_v22 = vadd.f32 %v1806_v47, %v1517_v19  ;;  %v1519_v23 = vpop.f32.mrb[105].mxu1 }
 0x1eb   : > { %v2823_v25 = vpack.c.bf16 %v2117_v20, %v2117_v20  ;;  %v1520_v26 = vpop.f32.mrb[106].mxu1 }
 0x1ec   : > { %v2118_v28 = vsel %vm2066_vm2, %v2048_v21, %v1982_v18  ;;  %v1912_v29 = vmul.f32 %v3747_v1, %v1807_v22  ;;  %v1810_v30 = vadd.f32 %v1809_v55, %v1520_v26  ;;  %v1522_v31 = vpop.f32.mrb[107].mxu1 }
 0x1ed   : > { %2438 = vst.msk [vmem:[%s3474_s17 + $0xc8] sm:$0xf] %vm2387_vm3, %v2823_v25  ;;  %v2824_v33 = vpack.c.bf16 %v2118_v28, %v2118_v28  ;;  %v1830_v46 = vpop.f32.mrb[116].mxu0 }
 0x1ee   : > { %v1983_v35 = vadd.f32 %v3755_v15, %v1912_v29  ;;  %v1913_v37 = vmul.f32 %v3747_v1, %v1810_v30  ;;  %v1832_v49 = vpop.f32.mrb[117].mxu0 }
 0x1ef   : > { %2439 = vst.msk [vmem:[%s3474_s17 + $0xcc] sm:$0xf] %vm2387_vm3, %v2824_v33  ;;  %v1833_v54 = vpop.f32.mrb[118].mxu0 }
 0x1f0   : > { %v2049_v38 = vmax.f32 %v1983_v35, 0.0  ;;  %v1984_v39 = vadd.f32 %v3755_v15, %v1913_v37  ;;  %v1835_v56 = vpop.f32.mrb[119].mxu0 }
 0x1f1   : > { %v1525_v40 = vpop.f32.mrb[108].mxu1 }
 0x1f2   : > { %v2119_v42 = vsel %vm2066_vm2, %v2049_v38, %v1983_v35  ;;  %v2050_v43 = vmax.f32 %v1984_v39, 0.0  ;;  %v1815_v44 = vadd.f32 %v1814_v4, %v1525_v40  ;;  %v1527_v45 = vpop.f32.mrb[109].mxu1 }
 0x1f3   : > { %v2825_v47 = vpack.c.bf16 %v2119_v42, %v2119_v42  ;;  %v1528_v48 = vpop.f32.mrb[110].mxu1 }
 0x1f4   : > { %v2120_v50 = vsel %vm2066_vm2, %v2050_v43, %v1984_v39  ;;  %v1914_v51 = vmul.f32 %v3747_v1, %v1815_v44  ;;  %v1818_v52 = vadd.f32 %v1817_v11, %v1528_v48  ;;  %v1530_v53 = vpop.f32.mrb[111].mxu1 }
 0x1f5   : > { %2440 = vst.msk [vmem:[%s3474_s17 + $0xd0] sm:$0xf] %vm2387_vm3, %v2825_v47  ;;  %v2826_v55 = vpack.c.bf16 %v2120_v50, %v2120_v50  ;;  %v1838_v3 = vpop.f32.mrb[120].mxu0 }
 0x1f6   : > { %v1985_v57 = vadd.f32 %v3755_v15, %v1914_v51  ;;  %v1915_v58 = vmul.f32 %v3747_v1, %v1818_v52  ;;  %v1840_v6 = vpop.f32.mrb[121].mxu0 }
 0x1f7   : > { %2441 = vst.msk [vmem:[%s3474_s17 + $0xd4] sm:$0xf] %vm2387_vm3, %v2826_v55  ;;  %v1841_v10 = vpop.f32.mrb[122].mxu0 }
 0x1f8   : > { %v2051_v59 = vmax.f32 %v1985_v57, 0.0  ;;  %v1986_v60 = vadd.f32 %v3755_v15, %v1915_v58  ;;  %v1843_v12 = vpop.f32.mrb[123].mxu0 }
 0x1f9   : > { %v1533_v61 = vpop.f32.mrb[112].mxu1 }
 0x1fa   : > { %v2121_v62 = vsel %vm2066_vm2, %v2051_v59, %v1985_v57  ;;  %v2052_v63 = vmax.f32 %v1986_v60, 0.0  ;;  %v1823_v0 = vadd.f32 %v1822_v24, %v1533_v61  ;;  %v1535_v2 = vpop.f32.mrb[113].mxu1 }
 0x1fb   : > { %v2827_v4 = vpack.c.bf16 %v2121_v62, %v2121_v62  ;;  %v1536_v5 = vpop.f32.mrb[114].mxu1 }
 0x1fc   : > { %v2122_v7 = vsel %vm2066_vm2, %v2052_v63, %v1986_v60  ;;  %v1916_v8 = vmul.f32 %v3747_v1, %v1823_v0  ;;  %v1826_v36 = vadd.f32 %v1825_v32, %v1536_v5  ;;  %v1538_v9 = vpop.f32.mrb[115].mxu1 }
 0x1fd   : > { %2442 = vst.msk [vmem:[%s3474_s17 + $0xd8] sm:$0xf] %vm2387_vm3, %v2827_v4  ;;  %v2828_v11 = vpack.c.bf16 %v2122_v7, %v2122_v7  ;;  %v1846_v23 = vpop.f32.mrb[124].mxu0 }
 0x1fe   : > { %v1987_v13 = vadd.f32 %v3755_v15, %v1916_v8  ;;  %v1917_v14 = vmul.f32 %v3747_v1, %v1826_v36  ;;  %v1848_v26 = vpop.f32.mrb[125].mxu0 }
 0x1ff   : > { %2443 = vst.msk [vmem:[%s3474_s17 + $0xdc] sm:$0xf] %vm2387_vm3, %v2828_v11  ;;  %v1849_v31 = vpop.f32.mrb[126].mxu0 }
 0x200   : > { %v2053_v16 = vmax.f32 %v1987_v13, 0.0  ;;  %v1988_v17 = vadd.f32 %v3755_v15, %v1917_v14  ;;  %v1851_v33 = vpop.f32.mrb[127].mxu0 }
 0x201   : > { %v1541_v18 = vpop.f32.mrb[116].mxu1 }
 0x202   : > { %v2123_v19 = vsel %vm2066_vm2, %v2053_v16, %v1987_v13  ;;  %v2054_v20 = vmax.f32 %v1988_v17, 0.0  ;;  %v1831_v21 = vadd.f32 %v1830_v46, %v1541_v18  ;;  %v1543_v22 = vpop.f32.mrb[117].mxu1 }
 0x203   : > { %v2829_v24 = vpack.c.bf16 %v2123_v19, %v2123_v19  ;;  %v1544_v25 = vpop.f32.mrb[118].mxu1 }
 0x204   : > { %v2124_v27 = vsel %vm2066_vm2, %v2054_v20, %v1988_v17  ;;  %v1918_v28 = vmul.f32 %v3747_v1, %v1831_v21  ;;  %v1834_v29 = vadd.f32 %v1833_v54, %v1544_v25  ;;  %v1546_v30 = vpop.f32.mrb[119].mxu1 }
 0x205   : > { %2444 = vst.msk [vmem:[%s3474_s17 + $0xe0] sm:$0xf] %vm2387_vm3, %v2829_v24  ;;  %v2830_v32 = vpack.c.bf16 %v2124_v27, %v2124_v27 }
 0x206   : > { %v1989_v34 = vadd.f32 %v3755_v15, %v1918_v28  ;;  %v1919_v35 = vmul.f32 %v3747_v1, %v1834_v29 }
 0x207   : > { %2445 = vst.msk [vmem:[%s3474_s17 + $0xe4] sm:$0xf] %vm2387_vm3, %v2830_v32 }
 0x208   : > { %v2055_v37 = vmax.f32 %v1989_v34, 0.0  ;;  %v1990_v38 = vadd.f32 %v3755_v15, %v1919_v35 }
 0x209   : > { %v1549_v39 = vpop.f32.mrb[120].mxu1 }
 0x20a   : > { %v2125_v40 = vsel %vm2066_vm2, %v2055_v37, %v1989_v34  ;;  %v2056_v42 = vmax.f32 %v1990_v38, 0.0  ;;  %v1839_v43 = vadd.f32 %v1838_v3, %v1549_v39  ;;  %v1551_v44 = vpop.f32.mrb[121].mxu1 }
 0x20b   : > { %v2831_v45 = vpack.c.bf16 %v2125_v40, %v2125_v40  ;;  %v1552_v46 = vpop.f32.mrb[122].mxu1 }
 0x20c   : > { %v2126_v47 = vsel %vm2066_vm2, %v2056_v42, %v1990_v38  ;;  %v1920_v48 = vmul.f32 %v3747_v1, %v1839_v43  ;;  %v1842_v49 = vadd.f32 %v1841_v10, %v1552_v46  ;;  %v1554_v50 = vpop.f32.mrb[123].mxu1 }
 0x20d   : > { %2446 = vst.msk [vmem:[%s3474_s17 + $0xe8] sm:$0xf] %vm2387_vm3, %v2831_v45  ;;  %v2832_v51 = vpack.c.bf16 %v2126_v47, %v2126_v47 }
 0x20e   : > { %v1991_v52 = vadd.f32 %v3755_v15, %v1920_v48  ;;  %v1921_v53 = vmul.f32 %v3747_v1, %v1842_v49 }
 0x20f   : > { %2447 = vst.msk [vmem:[%s3474_s17 + $0xec] sm:$0xf] %vm2387_vm3, %v2832_v51 }
 0x210   : > { %v2057_v54 = vmax.f32 %v1991_v52, 0.0  ;;  %v1992_v55 = vadd.f32 %v3755_v15, %v1921_v53 }
 0x211   : > { %v1557_v56 = vpop.f32.mrb[124].mxu1 }
 0x212   : > { %v2127_v57 = vsel %vm2066_vm2, %v2057_v54, %v1991_v52  ;;  %v2058_v58 = vmax.f32 %v1992_v55, 0.0  ;;  %v1847_v59 = vadd.f32 %v1846_v23, %v1557_v56  ;;  %v1559_v60 = vpop.f32.mrb[125].mxu1 }
 0x213   : > { %v2833_v61 = vpack.c.bf16 %v2127_v57, %v2127_v57  ;;  %v1560_v62 = vpop.f32.mrb[126].mxu1 }
 0x214   : > { %v2128_v63 = vsel %vm2066_vm2, %v2058_v58, %v1992_v55  ;;  %v1922_v0 = vmul.f32 %v3747_v1, %v1847_v59  ;;  %v1850_v2 = vadd.f32 %v1849_v31, %v1560_v62  ;;  %v1562_v3 = vpop.f32.mrb[127].mxu1 }
 0x215   : > { %2448 = vst.msk [vmem:[%s3474_s17 + $0xf0] sm:$0xf] %vm2387_vm3, %v2833_v61  ;;  %v2834_v4 = vpack.c.bf16 %v2128_v63, %v2128_v63 }
 0x216   : > { %v1993_v5 = vadd.f32 %v3755_v15, %v1922_v0  ;;  %v1923_v6 = vmul.f32 %v3747_v1, %v1850_v2 }
 0x217   : > { %2449 = vst.msk [vmem:[%s3474_s17 + $0xf4] sm:$0xf] %vm2387_vm3, %v2834_v4 }
 0x218   : > { %v2059_v7 = vmax.f32 %v1993_v5, 0.0  ;;  %v1994_v8 = vadd.f32 %v3755_v15, %v1923_v6 }
 0x21a   : > { %v2129_v36 = vsel %vm2066_vm2, %v2059_v7, %v1993_v5  ;;  %v2060_v9 = vmax.f32 %v1994_v8, 0.0 }
 0x21b   : > { %v2835_v10 = vpack.c.bf16 %v2129_v36, %v2129_v36 }
 0x21c   : > { %v2130_v11 = vsel %vm2066_vm2, %v2060_v9, %v1994_v8 }
 0x21d   : > { %2450 = vst.msk [vmem:[%s3474_s17 + $0xf8] sm:$0xf] %vm2387_vm3, %v2835_v10  ;;  %v2836_v12 = vpack.c.bf16 %v2130_v11, %v2130_v11 }
 0x21f   : > { %2451 = vst.msk [vmem:[%s3474_s17 + $0xfc] sm:$0xf] %vm2387_vm3, %v2836_v12 }
 0x220 PF: > { %s15_s18 = sadd.s32 1, %s3132_s18  }
 0x221   : > { %p12_p4 = scmp.ge.s32.totalorder %s15_s18, 4  }
 0x223   :  { %14 = sbr.rel (!%p12_p4) target bundleno = 1 (0x1), region = 70 }

// kernel: _lambda_.10
= control target key start
LH: loop header
LB: loop body
LE: loop exit
PB: predicated region body
PF: predicated region fallthrough
CT: control target
= control target key end

     0   :  { %s1044_s18 = smov 0   ;;  %s1250_s0 = inlined_call_operand.vmem [shape: bf16[2,64,432], index: 0, kind: input, shape index: {}]   ;;  %s1251_s1 = inlined_call_operand.vmem [shape: bf16[432,32], index: 1, kind: input, shape index: {}]   ;;  %s1252_s2 = inlined_call_operand.vmem [shape: f32[1,32], index: 2, kind: input, shape index: {}]   ;;  %s1253_s3 = inlined_call_operand.vmem [shape: f32[1,32], index: 3, kind: input, shape index: {}]   ;;  %s1254_s4 = inlined_call_operand.vmem [shape: f32[1,32], index: 4, kind: input, shape index: {}]   ;;  %s1255_s5 = inlined_call_operand.vmem [shape: bf16[2,64,32], index: 5, kind: output, shape index: {}]  }
   0x1 LB: > { %s827_s19 = sadd.s32 4294967295, %s1011_s18   ;;  %p831_p0 = scmp.ge.s32.totalorder %s1011_s18, 1  ;;  %s1011_s18 = sphi %s1044_s18, %s15_s18  }
   0x2   : > { %p187_p1 = scmp.lt.s32.totalorder %s1011_s18, 3 }
   0x4   : > { %p188_p2 = pnand %p831_p0, %p187_p1 }
   0x5   : > { %v954_v0 = vld [vmem:[%s1251_s1 + $0x80] sm:$0xff] (!%p188_p2)   ;;  %v1013_v1 = vmov (!%p188_p2), 0   ;;  %v955_v2 = vld [vmem:[%s1251_s1 + $0x88] sm:$0xff] (!%p188_p2)   ;;  %v958_v5 = vld [vmem:[%s1251_s1 + $0x90] sm:$0xff] (!%p188_p2)   ;;  %p215_p3 = scmp.lt.s32.totalorder (!%p188_p2), %s827_s19, 1  ;;  %vm534_vm0 = vcmask (!%p188_p2), 392192   ;;  %v718_v44 = vlaneseq (!%p188_p2) }
   0x6   : > { %191 = sbr.rel (%p188_p2) target bundleno = 300 (0x12c), region = 40  ;;  %612 = vmatprep.subr.bf16.mxu1 (!%p188_p2), %v1013_v1  ;;  %v956_v3 = vld [vmem:[%s1251_s1 + $0x40] sm:$0xff] (!%p188_p2)   ;;  %v959_v6 = vld [vmem:[%s1251_s1 + $0x48] sm:$0xff] (!%p188_p2)   ;;  %v962_v8 = vld [vmem:[%s1251_s1 + $0x50] sm:$0xff] (!%p188_p2)   ;;  %vm763_vm3 = vcmask (!%p188_p2), 257024  }
   0x7   : > { %613 = vmatpush1.bf16.msra.mxu1 (!%p188_p2), %v954_v0  ;;  %v957_v4 = vld [vmem:[%s1251_s1] sm:$0xff] (!%p188_p2)   ;;  %905 = vmatprep.subr.bf16.mxu0 (!%p188_p2), %v956_v3  ;;  %v960_v7 = vld [vmem:[%s1251_s1 + $0x8] sm:$0xff] (!%p188_p2)   ;;  %v963_v9 = vld [vmem:[%s1251_s1 + $0x10] sm:$0xff] (!%p188_p2)   ;;  %v719_v51 = vshrl.u32 (!%p188_p2), %v718_v44, 7 }
   0x8   : > { %614 = vmatprep.subr.bf16.mxu1 (!%p188_p2), %v1013_v1  ;;  %906 = vmatpush3.bf16.msra.mxu0 (!%p188_p2), %v957_v4  ;;  %v961_v10 = vld [vmem:[%s1251_s1 + $0x98] sm:$0xff] (!%p188_p2)   ;;  %v964_v12 = vld [vmem:[%s1251_s1 + $0xa0] sm:$0xff] (!%p188_p2)   ;;  %v967_v15 = vld [vmem:[%s1251_s1 + $0xa8] sm:$0xff] (!%p188_p2)  }
   0x9   : > { %907 = vmatprep.subr.bf16.mxu0 (!%p188_p2), %v959_v6  ;;  %v965_v11 = vld [vmem:[%s1251_s1 + $0x58] sm:$0xff] (!%p188_p2)   ;;  %v968_v14 = vld [vmem:[%s1251_s1 + $0x60] sm:$0xff] (!%p188_p2)   ;;  %v971_v17 = vld [vmem:[%s1251_s1 + $0x68] sm:$0xff] (!%p188_p2)   ;;  %v720_v53 = vsub.s32 (!%p188_p2), 0, %v719_v51 }
   0xa   : > { %v966_v13 = vld [vmem:[%s1251_s1 + $0x18] sm:$0xff] (!%p188_p2)   ;;  %v969_v16 = vld [vmem:[%s1251_s1 + $0x20] sm:$0xff] (!%p188_p2)   ;;  %v970_v18 = vld [vmem:[%s1251_s1 + $0xb0] sm:$0xff] (!%p188_p2)  }
   0xb   : > { %615 = vmatpush1.bf16.msra.mxu1 (!%p188_p2), %v955_v2  ;;  %v972_v19 = vld [vmem:[%s1251_s1 + $0x28] sm:$0xff] (!%p188_p2)   ;;  %v974_v20 = vld [vmem:[%s1251_s1 + $0x70] sm:$0xff] (!%p188_p2)   ;;  %v973_v21 = vld [vmem:[%s1251_s1 + $0xb8] sm:$0xff] (!%p188_p2)  }
   0xc   : > { %616 = vmatprep.subr.bf16.mxu1 (!%p188_p2), %v1013_v1  ;;  %908 = vmatpush3.bf16.msra.mxu0 (!%p188_p2), %v960_v7  ;;  %v975_v22 = vld [vmem:[%s1251_s1 + $0x30] sm:$0xff] (!%p188_p2)   ;;  %v977_v23 = vld [vmem:[%s1251_s1 + $0x78] sm:$0xff] (!%p188_p2)   ;;  %v976_v27 = vld [vmem:[%s1251_s1 + $0xc0] sm:$0xff] (!%p188_p2)  }
   0xd   : > { %909 = vmatprep.subr.bf16.mxu0 %v962_v8  ;;  %s1257_s19 = smov (!%p215_p3, %s827_s19), 1  ;;  %v978_v25 = vld [vmem:[%s1251_s1 + $0x38] sm:$0xff]   ;;  %v982_v30 = vld [vmem:[%s1251_s1 + $0xc8] sm:$0xff]   ;;  %v983_v31 = vld [vmem:[%s1251_s1 + $0xd0] sm:$0xff]  }
   0xe   : > { %s895_s8 = sshll.u32 %s1257_s19, 7  ;;  %v707_v49 = vld [vmem:[%s1254_s4] sm:$0x1]  ;;  %s896_s13 = sshll.u32 %s1257_s19, 5 }
   0xf   : > { %617 = vmatpush1.bf16.msra.mxu1 %v958_v5  ;;  %s1129_s15 = scalar_lea.vmem %s1250_s0, %s895_s8  ;;  %vm708_vm1 = vcmp.gt.f32.partialorder %v707_v49, 0.0  ;;  %v1183_v57 = vld [vmem:[%s1252_s2] ss:$0 sm:$0xff]  ;;  %s1201_s16 = scalar_lea.vmem %s1255_s5, %s896_s13 }
  0x10   : > { %618 = vmatprep.subr.bf16.mxu1 %v1013_v1  ;;  %910 = vmatpush3.bf16.msra.mxu0 %v963_v9  ;;  %v981_v24 = vld [vmem:[%s1129_s15 + $0x4] ss:$16 sps:$4 sm:$0xff]   ;;  %v986_v26 = vld [vmem:[%s1129_s15 + $0xc] ss:$16 sps:$4 sm:$0xff]   ;;  %v979_v28 = vld [vmem:[%s1129_s15] ss:$16 sps:$4 sm:$0xff]  }
  0x11   : > { %911 = vmatprep.subr.bf16.mxu0 %v965_v11  ;;  %579 = vmatprep.mubr.bf16.mxu0 %v981_v24  ;;  %v987_v29 = vld [vmem:[%s1129_s15 + $0x24] ss:$16 sps:$4 sm:$0xff]   ;;  %v989_v32 = vld [vmem:[%s1129_s15 + $0x20] ss:$16 sps:$4 sm:$0xff]   ;;  %v984_v33 = vld [vmem:[%s1129_s15 + $0x8] ss:$16 sps:$4 sm:$0xff]  }
  0x12   : > { %879 = vmatprep.mubr.msk.bf16.mxu1 %vm534_vm0, %v986_v26  ;;  %v993_v34 = vld [vmem:[%s1129_s15 + $0x44] ss:$16 sps:$4 sm:$0xff]   ;;  %v990_v35 = vld [vmem:[%s1129_s15 + $0x2c] ss:$16 sps:$4 sm:$0xff]   ;;  %v995_v36 = vld [vmem:[%s1129_s15 + $0x40] ss:$16 sps:$4 sm:$0xff]  }
  0x13   : > { %619 = vmatpush1.bf16.msra.mxu1 %v961_v10  ;;  %v992_v37 = vld [vmem:[%s1129_s15 + $0x28] ss:$16 sps:$4 sm:$0xff]   ;;  %v999_v38 = vld [vmem:[%s1129_s15 + $0x64] ss:$16 sps:$4 sm:$0xff]   ;;  %v996_v39 = vld [vmem:[%s1129_s15 + $0x4c] ss:$16 sps:$4 sm:$0xff]  }
  0x14   : > { %620 = vmatprep.subr.bf16.mxu1 %v1013_v1  ;;  %912 = vmatpush3.bf16.msra.mxu0 %v966_v13  ;;  %v1001_v40 = vld [vmem:[%s1129_s15 + $0x60] ss:$16 sps:$4 sm:$0xff]   ;;  %v998_v41 = vld [vmem:[%s1129_s15 + $0x48] ss:$16 sps:$4 sm:$0xff]   ;;  %v1002_v42 = vld [vmem:[%s1129_s15 + $0x6c] ss:$16 sps:$4 sm:$0xff]  }
  0x15   : > { %913 = vmatprep.subr.bf16.mxu0 %v968_v14  ;;  %v1004_v43 = vld [vmem:[%s1129_s15 + $0x68] ss:$16 sps:$4 sm:$0xff]   ;;  %v717_v54 = vsel %vm708_vm1, 1, %v1013_v1  ;;  %v1188_v63 = vld [vmem:[%s1253_s3] ss:$0 sm:$0xff] }
  0x16   : > { %v1190_v0 = vrot.slane %v717_v54, %v720_v53 }
  0x17   : > { %621 = vmatpush1.bf16.msra.mxu1 %v964_v12 }
  0x18   : > { %622 = vmatprep.subr.bf16.mxu1 %v1013_v1  ;;  %914 = vmatpush3.bf16.msra.mxu0 %v969_v16  ;;  %vm722_vm2 = vcmp.eq.s32.totalorder %v1190_v0, 1 }
  0x19   : > { %915 = vmatprep.subr.bf16.mxu0 %v971_v17 }
  0x1b   : > { %623 = vmatpush1.bf16.msra.mxu1 %v967_v15 }
  0x1c   : > { %624 = vmatprep.subr.bf16.mxu1 %v1013_v1  ;;  %916 = vmatpush3.bf16.msra.mxu0 %v972_v19 }
  0x1d   : > { %917 = vmatprep.subr.bf16.mxu0 %v974_v20 }
  0x1f   : > { %625 = vmatpush1.bf16.msra.mxu1 %v970_v18 }
  0x20   : > { %626 = vmatprep.subr.bf16.mxu1 %v1013_v1  ;;  %918 = vmatpush3.bf16.msra.mxu0 %v975_v22 }
  0x21   : > { %919 = vmatprep.subr.bf16.mxu0 %v977_v23 }
  0x23   : > { %627 = vmatpush1.bf16.msra.mxu1 %v973_v21 }
  0x24   : > { %628 = vmatprep.subr.bf16.mxu1 %v1013_v1  ;;  %920 = vmatpush3.bf16.msra.mxu0 %v978_v25 }
  0x27   : > { %629 = vmatpush1.bf16.msra.mxu1 %v976_v27  ;;  %580 = vmatmul.mubr.bf16.vlgmr.msra.gmra.mrb[0].mxu0 %v979_v28 }
  0x28   : > { %630 = vmatprep.subr.bf16.mxu1 %v1013_v1  ;;  %587 = vmatprep.mubr.bf16.mxu0 %v987_v29 }
  0x2b   : > { %631 = vmatpush1.bf16.msra.mxu1 %v982_v30 }
  0x2c   : > { %632 = vmatprep.subr.bf16.mxu1 %v1013_v1 }
  0x2f   : > { %633 = vmatpush1.bf16.msra.mxu1 %v983_v31  ;;  %588 = vmatmul.mubr.bf16.gmra.mrb[4].mxu0 %v989_v32 }
  0x30   : > { %595 = vmatprep.mubr.bf16.mxu0 %v993_v34 }
  0x32   : > { %645 = vmatmul.mubr.bf16.vlgmr.msra.gmra.mrb[0].mxu1 %v984_v33 }
  0x33   : > { %880 = vmatprep.mubr.msk.bf16.mxu1 %vm534_vm0, %v990_v35 }
  0x37   : > { %596 = vmatmul.mubr.bf16.gmra.mrb[8].mxu0 %v995_v36 }
  0x38   : > { %603 = vmatprep.mubr.bf16.mxu0 %v999_v38 }
  0x3a   : > { %653 = vmatmul.mubr.bf16.gmra.mrb[4].mxu1 %v992_v37 }
  0x3b   : > { %881 = vmatprep.mubr.msk.bf16.mxu1 %vm534_vm0, %v996_v39 }
  0x3f   : > { %604 = vmatmul.mubr.bf16.gmra.mrb[12].mxu0 %v1001_v40 }
  0x42   : > { %661 = vmatmul.mubr.bf16.gmra.mrb[8].mxu1 %v998_v41 }
  0x43   : > { %882 = vmatprep.mubr.msk.bf16.mxu1 %vm534_vm0, %v1002_v42 }
  0x4a   : > { %669 = vmatmul.mubr.bf16.gmra.mrb[12].mxu1 %v1004_v43 }
  0xfa   : > { %v921_v45 = vpop.f32.mrb[0].mxu0 }
  0xfb   : > { %v922_v46 = vpop.f32.mrb[1].mxu0 }
  0xfc   : > { %v923_v47 = vadd.f32 %v922_v46, %v921_v45  ;;  %v924_v48 = vpop.f32.mrb[2].mxu0 }
  0xfd   : > { %v925_v50 = vpop.f32.mrb[3].mxu0 }
  0xfe   : > { %v926_v52 = vadd.f32 %v925_v50, %v924_v48 }
 0x102   : > { %v927_v55 = vpop.f32.mrb[4].mxu0 }
 0x103   : > { %v928_v58 = vpop.f32.mrb[5].mxu0 }
 0x104   : > { %v929_v61 = vadd.f32 %v928_v58, %v927_v55  ;;  %v930_v62 = vpop.f32.mrb[6].mxu0 }
 0x105   : > { %v646_v56 = vpop.f32.mrb[0].mxu1  ;;  %v931_v2 = vpop.f32.mrb[7].mxu0 }
 0x106   : > { %v647_v59 = vadd.f32 %v923_v47, %v646_v56  ;;  %v648_v60 = vpop.f32.mrb[1].mxu1  ;;  %v932_v6 = vadd.f32 %v931_v2, %v930_v62 }
 0x107   : > { %v649_v1 = vpop.f32.mrb[2].mxu1 }
 0x108   : > { %v684_v3 = vmul.f32 %v1183_v57, %v647_v59  ;;  %v650_v4 = vadd.f32 %v926_v52, %v649_v1  ;;  %v651_v5 = vpop.f32.mrb[3].mxu1 }
 0x10a   : > { %v699_v7 = vadd.f32 %v1188_v63, %v684_v3  ;;  %v685_v8 = vmul.f32 %v1183_v57, %v650_v4  ;;  %v933_v11 = vpop.f32.mrb[8].mxu0 }
 0x10b   : > { %v934_v13 = vpop.f32.mrb[9].mxu0 }
 0x10c   : > { %v709_v9 = vmax.f32 %v699_v7, 0.0  ;;  %v700_v10 = vadd.f32 %v1188_v63, %v685_v8  ;;  %v935_v18 = vadd.f32 %v934_v13, %v933_v11  ;;  %v936_v19 = vpop.f32.mrb[10].mxu0 }
 0x10d   : > { %v654_v12 = vpop.f32.mrb[4].mxu1  ;;  %v937_v22 = vpop.f32.mrb[11].mxu0 }
 0x10e   : > { %v723_v14 = vsel %vm722_vm2, %v709_v9, %v699_v7  ;;  %v710_v15 = vmax.f32 %v700_v10, 0.0  ;;  %v655_v16 = vadd.f32 %v929_v61, %v654_v12  ;;  %v656_v17 = vpop.f32.mrb[5].mxu1  ;;  %v938_v27 = vadd.f32 %v937_v22, %v936_v19 }
 0x10f   : > { %v897_v20 = vpack.c.bf16 %v723_v14, %v723_v14  ;;  %v657_v21 = vpop.f32.mrb[6].mxu1 }
 0x110   : > { %v724_v23 = vsel %vm722_vm2, %v710_v15, %v700_v10  ;;  %v686_v24 = vmul.f32 %v1183_v57, %v655_v16  ;;  %v658_v25 = vadd.f32 %v932_v6, %v657_v21  ;;  %v659_v26 = vpop.f32.mrb[7].mxu1 }
 0x111   : > { %764 = vst.msk [vmem:[%s1201_s16] sm:$0xf] %vm763_vm3, %v897_v20  ;;  %v898_v28 = vpack.c.bf16 %v724_v23, %v724_v23 }
 0x112   : > { %v701_v29 = vadd.f32 %v1188_v63, %v686_v24  ;;  %v687_v30 = vmul.f32 %v1183_v57, %v658_v25  ;;  %v939_v33 = vpop.f32.mrb[12].mxu0 }
 0x113   : > { %765 = vst.msk [vmem:[%s1201_s16 + $0x4] sm:$0xf] %vm763_vm3, %v898_v28  ;;  %v940_v35 = vpop.f32.mrb[13].mxu0 }
 0x114   : > { %v711_v31 = vmax.f32 %v701_v29, 0.0  ;;  %v702_v32 = vadd.f32 %v1188_v63, %v687_v30  ;;  %v941_v40 = vadd.f32 %v940_v35, %v939_v33  ;;  %v942_v41 = vpop.f32.mrb[14].mxu0 }
 0x115   : > { %v662_v34 = vpop.f32.mrb[8].mxu1  ;;  %v943_v44 = vpop.f32.mrb[15].mxu0 }
 0x116   : > { %v725_v36 = vsel %vm722_vm2, %v711_v31, %v701_v29  ;;  %v712_v37 = vmax.f32 %v702_v32, 0.0  ;;  %v663_v38 = vadd.f32 %v935_v18, %v662_v34  ;;  %v664_v39 = vpop.f32.mrb[9].mxu1  ;;  %v944_v49 = vadd.f32 %v943_v44, %v942_v41 }
 0x117   : > { %v899_v42 = vpack.c.bf16 %v725_v36, %v725_v36  ;;  %v665_v43 = vpop.f32.mrb[10].mxu1 }
 0x118   : > { %v726_v45 = vsel %vm722_vm2, %v712_v37, %v702_v32  ;;  %v688_v46 = vmul.f32 %v1183_v57, %v663_v38  ;;  %v666_v47 = vadd.f32 %v938_v27, %v665_v43  ;;  %v667_v48 = vpop.f32.mrb[11].mxu1 }
 0x119   : > { %766 = vst.msk [vmem:[%s1201_s16 + $0x8] sm:$0xf] %vm763_vm3, %v899_v42  ;;  %v900_v50 = vpack.c.bf16 %v726_v45, %v726_v45 }
 0x11a   : > { %v703_v51 = vadd.f32 %v1188_v63, %v688_v46  ;;  %v689_v52 = vmul.f32 %v1183_v57, %v666_v47 }
 0x11b   : > { %767 = vst.msk [vmem:[%s1201_s16 + $0xc] sm:$0xf] %vm763_vm3, %v900_v50 }
 0x11c   : > { %v713_v53 = vmax.f32 %v703_v51, 0.0  ;;  %v704_v54 = vadd.f32 %v1188_v63, %v689_v52 }
 0x11d   : > { %v670_v55 = vpop.f32.mrb[12].mxu1 }
 0x11e   : > { %v727_v56 = vsel %vm722_vm2, %v713_v53, %v703_v51  ;;  %v714_v58 = vmax.f32 %v704_v54, 0.0  ;;  %v671_v59 = vadd.f32 %v941_v40, %v670_v55  ;;  %v672_v60 = vpop.f32.mrb[13].mxu1 }
 0x11f   : > { %v901_v61 = vpack.c.bf16 %v727_v56, %v727_v56  ;;  %v673_v62 = vpop.f32.mrb[14].mxu1 }
 0x120   : > { %v728_v1 = vsel %vm722_vm2, %v714_v58, %v704_v54  ;;  %v690_v2 = vmul.f32 %v1183_v57, %v671_v59  ;;  %v674_v3 = vadd.f32 %v944_v49, %v673_v62  ;;  %v675_v4 = vpop.f32.mrb[15].mxu1 }
 0x121   : > { %768 = vst.msk [vmem:[%s1201_s16 + $0x10] sm:$0xf] %vm763_vm3, %v901_v61  ;;  %v902_v5 = vpack.c.bf16 %v728_v1, %v728_v1 }
 0x122   : > { %v705_v6 = vadd.f32 %v1188_v63, %v690_v2  ;;  %v691_v7 = vmul.f32 %v1183_v57, %v674_v3 }
 0x123   : > { %769 = vst.msk [vmem:[%s1201_s16 + $0x14] sm:$0xf] %vm763_vm3, %v902_v5 }
 0x124   : > { %v715_v8 = vmax.f32 %v705_v6, 0.0  ;;  %v706_v9 = vadd.f32 %v1188_v63, %v691_v7 }
 0x126   : > { %v729_v10 = vsel %vm722_vm2, %v715_v8, %v705_v6  ;;  %v716_v11 = vmax.f32 %v706_v9, 0.0 }
 0x127   : > { %v903_v12 = vpack.c.bf16 %v729_v10, %v729_v10 }
 0x128   : > { %v730_v13 = vsel %vm722_vm2, %v716_v11, %v706_v9 }
 0x129   : > { %770 = vst.msk [vmem:[%s1201_s16 + $0x18] sm:$0xf] %vm763_vm3, %v903_v12  ;;  %v904_v14 = vpack.c.bf16 %v730_v13, %v730_v13 }
 0x12b   : > { %771 = vst.msk [vmem:[%s1201_s16 + $0x1c] sm:$0xf] %vm763_vm3, %v904_v14 }
 0x12c PF: > { %s15_s18 = sadd.s32 1, %s1011_s18  }
 0x12d   : > { %p12_p4 = scmp.ge.s32.totalorder %s15_s18, 4  }
 0x12f   :  { %14 = sbr.rel (!%p12_p4) target bundleno = 1 (0x1), region = 70 }

// kernel: _lambda_.11
= control target key start
LH: loop header
LB: loop body
LE: loop exit
PB: predicated region body
PF: predicated region fallthrough
CT: control target
= control target key end

     0   :  { %s1661_s18 = smov 0   ;;  %s1966_s0 = inlined_call_operand.vmem [shape: bf16[2,64,864], index: 0, kind: input, shape index: {}]   ;;  %s1967_s1 = inlined_call_operand.vmem [shape: bf16[864,32], index: 1, kind: input, shape index: {}]   ;;  %s1968_s2 = inlined_call_operand.vmem [shape: f32[1,32], index: 2, kind: input, shape index: {}]   ;;  %s1969_s3 = inlined_call_operand.vmem [shape: f32[1,32], index: 3, kind: input, shape index: {}]   ;;  %s1970_s4 = inlined_call_operand.vmem [shape: f32[1,32], index: 4, kind: input, shape index: {}]   ;;  %s1971_s5 = inlined_call_operand.vmem [shape: bf16[2,64,32], index: 5, kind: output, shape index: {}]  }
   0x1 LB: > { %s1253_s19 = sadd.s32 4294967295, %s1628_s18   ;;  %p1257_p0 = scmp.ge.s32.totalorder %s1628_s18, 1  ;;  %s1628_s18 = sphi %s1661_s18, %s15_s18  }
   0x2   : > { %p187_p1 = scmp.lt.s32.totalorder %s1628_s18, 3 }
   0x4   : > { %p188_p2 = pnand %p1257_p0, %p187_p1 }
   0x5   : > { %v1528_v0 = vld [vmem:[%s1967_s1 + $0x40] sm:$0xff] (!%p188_p2)   ;;  %v1532_v4 = vld [vmem:[%s1967_s1 + $0x48] sm:$0xff] (!%p188_p2)   ;;  %v1536_v8 = vld [vmem:[%s1967_s1 + $0x50] sm:$0xff] (!%p188_p2)   ;;  %p215_p3 = scmp.lt.s32.totalorder (!%p188_p2), %s1253_s19, 1  ;;  %vm830_vm0 = vcmask (!%p188_p2), 785408   ;;  %vm1189_vm3 = vcmask (!%p188_p2), 257024  }
   0x6   : > { %191 = sbr.rel (%p188_p2) target bundleno = 326 (0x146), region = 40  ;;  %v1529_v1 = vld [vmem:[%s1967_s1 + $0xc0] sm:$0xff] (!%p188_p2)   ;;  %1368 = vmatprep.subr.bf16.mxu0 (!%p188_p2), %v1528_v0  ;;  %v1533_v5 = vld [vmem:[%s1967_s1 + $0xc8] sm:$0xff] (!%p188_p2)   ;;  %v1537_v9 = vld [vmem:[%s1967_s1 + $0xd0] sm:$0xff] (!%p188_p2)  }
   0x7   : > { %v1530_v2 = vld [vmem:[%s1967_s1] sm:$0xff] (!%p188_p2)   ;;  %1408 = vmatprep.subr.bf16.mxu1 (!%p188_p2), %v1529_v1  ;;  %v1534_v6 = vld [vmem:[%s1967_s1 + $0x8] sm:$0xff] (!%p188_p2)   ;;  %v1538_v10 = vld [vmem:[%s1967_s1 + $0x10] sm:$0xff] (!%p188_p2)  }
   0x8   : > { %v1531_v3 = vld [vmem:[%s1967_s1 + $0x80] sm:$0xff] (!%p188_p2)   ;;  %1369 = vmatpush3.bf16.msra.mxu0 (!%p188_p2), %v1530_v2  ;;  %v1535_v7 = vld [vmem:[%s1967_s1 + $0x88] sm:$0xff] (!%p188_p2)   ;;  %v1539_v11 = vld [vmem:[%s1967_s1 + $0x90] sm:$0xff] (!%p188_p2)  }
   0x9   : > { %1409 = vmatpush3.bf16.msra.mxu1 (!%p188_p2), %v1531_v3  ;;  %1370 = vmatprep.subr.bf16.mxu0 (!%p188_p2), %v1532_v4  ;;  %v1540_v12 = vld [vmem:[%s1967_s1 + $0x58] sm:$0xff] (!%p188_p2)   ;;  %v1544_v16 = vld [vmem:[%s1967_s1 + $0x60] sm:$0xff] (!%p188_p2)   ;;  %v1548_v20 = vld [vmem:[%s1967_s1 + $0x68] sm:$0xff] (!%p188_p2)  }
   0xa   : > { %1410 = vmatprep.subr.bf16.mxu1 (!%p188_p2), %v1533_v5  ;;  %v1541_v13 = vld [vmem:[%s1967_s1 + $0xd8] sm:$0xff] (!%p188_p2)   ;;  %v1545_v17 = vld [vmem:[%s1967_s1 + $0xe0] sm:$0xff] (!%p188_p2)   ;;  %v1549_v21 = vld [vmem:[%s1967_s1 + $0xe8] sm:$0xff] (!%p188_p2)  }
   0xb   : > { %v1542_v14 = vld [vmem:[%s1967_s1 + $0x18] sm:$0xff] (!%p188_p2)   ;;  %v1546_v18 = vld [vmem:[%s1967_s1 + $0x20] sm:$0xff] (!%p188_p2)   ;;  %v1550_v22 = vld [vmem:[%s1967_s1 + $0x28] sm:$0xff] (!%p188_p2)  }
   0xc   : > { %1371 = vmatpush3.bf16.msra.mxu0 (!%p188_p2), %v1534_v6  ;;  %v1543_v15 = vld [vmem:[%s1967_s1 + $0x98] sm:$0xff] (!%p188_p2)   ;;  %v1547_v19 = vld [vmem:[%s1967_s1 + $0xa0] sm:$0xff] (!%p188_p2)   ;;  %v1551_v23 = vld [vmem:[%s1967_s1 + $0xa8] sm:$0xff] (!%p188_p2)  }
   0xd   : > { %1411 = vmatpush3.bf16.msra.mxu1 %v1535_v7  ;;  %1372 = vmatprep.subr.bf16.mxu0 %v1536_v8  ;;  %s1973_s19 = smov (!%p215_p3, %s1253_s19), 1  ;;  %v1552_v24 = vld [vmem:[%s1967_s1 + $0x70] sm:$0xff]   ;;  %v1556_v28 = vld [vmem:[%s1967_s1 + $0x78] sm:$0xff]   ;;  %v1566_v36 = vld [vmem:[%s1967_s1 + $0x140] sm:$0xff]  }
   0xe   : > { %1412 = vmatprep.subr.bf16.mxu1 %v1537_v9  ;;  %v1553_v25 = vld [vmem:[%s1967_s1 + $0xf0] sm:$0xff]   ;;  %s1518_s26 = smul.u32 224, %s1973_s19  ;;  %v1557_v29 = vld [vmem:[%s1967_s1 + $0xf8] sm:$0xff]   ;;  %v1567_v37 = vld [vmem:[%s1967_s1 + $0x100] sm:$0xff]   ;;  %s1359_s24 = sshll.u32 %s1973_s19, 5 }
   0xf   : > { %v1554_v26 = vld [vmem:[%s1967_s1 + $0x30] sm:$0xff]   ;;  %v1558_v30 = vld [vmem:[%s1967_s1 + $0x38] sm:$0xff]   ;;  %v1568_v38 = vld [vmem:[%s1967_s1 + $0x148] sm:$0xff]   ;;  %s1912_s27 = scalar_lea.vmem %s1971_s5, %s1359_s24 }
  0x10   : > { %1373 = vmatpush3.bf16.msra.mxu0 %v1538_v10  ;;  %v1555_v27 = vld [vmem:[%s1967_s1 + $0xb0] sm:$0xff]   ;;  %s1769_s12 = scalar_lea.vmem %s1966_s0, %s1518_s26  ;;  %v1559_v31 = vld [vmem:[%s1967_s1 + $0xb8] sm:$0xff]   ;;  %v1569_v39 = vld [vmem:[%s1967_s1 + $0x108] sm:$0xff]  }
  0x11   : > { %1413 = vmatpush3.bf16.msra.mxu1 %v1539_v11  ;;  %1374 = vmatprep.subr.bf16.mxu0 %v1540_v12  ;;  %v1560_v32 = vld [vmem:[%s1769_s12] ss:$28 sps:$4 sm:$0xff]   ;;  %v1563_v34 = vld [vmem:[%s1769_s12 + $0x8] ss:$28 sps:$4 sm:$0xff]   ;;  %v1574_v42 = vld [vmem:[%s1769_s12 + $0x38] ss:$28 sps:$4 sm:$0xff]  }
  0x12   : > { %1414 = vmatprep.subr.bf16.mxu1 %v1541_v13  ;;  %v1562_v33 = vld [vmem:[%s1769_s12 + $0x4] ss:$28 sps:$4 sm:$0xff]   ;;  %v1565_v35 = vld [vmem:[%s1769_s12 + $0xc] ss:$28 sps:$4 sm:$0xff]   ;;  %v1570_v40 = vld [vmem:[%s1769_s12 + $0x3c] ss:$28 sps:$4 sm:$0xff]  }
  0x13   : > { %875 = vmatprep.mubr.bf16.mxu0 %v1562_v33  ;;  %940 = vmatprep.mubr.bf16.mxu1 %v1565_v35  ;;  %v1572_v41 = vld [vmem:[%s1769_s12 + $0x44] ss:$28 sps:$4 sm:$0xff]   ;;  %v1576_v44 = vld [vmem:[%s1967_s1 + $0x150] sm:$0xff]   ;;  %v1578_v46 = vld [vmem:[%s1967_s1 + $0x158] sm:$0xff]  }
  0x14   : > { %1375 = vmatpush3.bf16.msra.mxu0 %v1542_v14  ;;  %v1575_v43 = vld [vmem:[%s1769_s12 + $0x40] ss:$28 sps:$4 sm:$0xff]   ;;  %v1577_v45 = vld [vmem:[%s1967_s1 + $0x110] sm:$0xff]   ;;  %v1588_v54 = vld [vmem:[%s1967_s1 + $0x188] sm:$0xff]  }
  0x15   : > { %1415 = vmatpush3.bf16.msra.mxu1 %v1543_v15  ;;  %1376 = vmatprep.subr.bf16.mxu0 %v1544_v16  ;;  %v1579_v47 = vld [vmem:[%s1967_s1 + $0x180] sm:$0xff]   ;;  %v1580_v48 = vld [vmem:[%s1967_s1 + $0x118] sm:$0xff]   ;;  %v1581_v49 = vld [vmem:[%s1769_s12 + $0x74] ss:$28 sps:$4 sm:$0xff]  }
  0x16   : > { %1416 = vmatprep.subr.bf16.mxu1 %v1545_v17  ;;  %v1583_v50 = vld [vmem:[%s1769_s12 + $0x7c] ss:$28 sps:$4 sm:$0xff]   ;;  %v1585_v51 = vld [vmem:[%s1769_s12 + $0x70] ss:$28 sps:$4 sm:$0xff]   ;;  %v1587_v53 = vld [vmem:[%s1967_s1 + $0x160] sm:$0xff]  }
  0x17   : > { %v1586_v52 = vld [vmem:[%s1769_s12 + $0x78] ss:$28 sps:$4 sm:$0xff]   ;;  %v1589_v55 = vld [vmem:[%s1967_s1 + $0x120] sm:$0xff]   ;;  %v1590_v56 = vld [vmem:[%s1967_s1 + $0x168] sm:$0xff]  }
  0x18   : > { %1377 = vmatpush3.bf16.msra.mxu0 %v1546_v18  ;;  %v1591_v57 = vld [vmem:[%s1967_s1 + $0x190] sm:$0xff]   ;;  %v1592_v58 = vld [vmem:[%s1967_s1 + $0x128] sm:$0xff]   ;;  %v1600_v0 = vld [vmem:[%s1967_s1 + $0x198] sm:$0xff]  }
  0x19   : > { %1417 = vmatpush3.bf16.msra.mxu1 %v1547_v19  ;;  %1378 = vmatprep.subr.bf16.mxu0 %v1548_v20  ;;  %v1593_v59 = vld [vmem:[%s1769_s12 + $0xac] ss:$28 sps:$4 sm:$0xff]   ;;  %v1595_v60 = vld [vmem:[%s1769_s12 + $0xb4] ss:$28 sps:$4 sm:$0xff]   ;;  %v1602_v2 = vld [vmem:[%s1967_s1 + $0x178] sm:$0xff]  }
  0x1a   : > { %1418 = vmatprep.subr.bf16.mxu1 %v1549_v21  ;;  %v1597_v61 = vld [vmem:[%s1769_s12 + $0xa8] ss:$28 sps:$4 sm:$0xff]   ;;  %v1598_v62 = vld [vmem:[%s1769_s12 + $0xb0] ss:$28 sps:$4 sm:$0xff]   ;;  %v1604_v4 = vld [vmem:[%s1967_s1 + $0x138] sm:$0xff]  }
  0x1b   : > { %v1599_v63 = vld [vmem:[%s1967_s1 + $0x170] sm:$0xff]   ;;  %v1603_v3 = vld [vmem:[%s1967_s1 + $0x1a0] sm:$0xff]   ;;  %v1608_v7 = vld [vmem:[%s1967_s1 + $0x1a8] sm:$0xff]  }
  0x1c   : > { %1379 = vmatpush3.bf16.msra.mxu0 %v1550_v22  ;;  %v1601_v1 = vld [vmem:[%s1967_s1 + $0x130] sm:$0xff]   ;;  %v1611_v9 = vld [vmem:[%s1769_s12 + $0x4c] ss:$28 sps:$4 sm:$0xff]   ;;  %v1614_v13 = vld [vmem:[%s1769_s12 + $0x84] ss:$28 sps:$4 sm:$0xff]  }
  0x1d   : > { %1419 = vmatpush3.bf16.msra.mxu1 %v1551_v23  ;;  %1380 = vmatprep.subr.bf16.mxu0 %v1552_v24  ;;  %v1605_v5 = vld [vmem:[%s1769_s12 + $0x10] ss:$28 sps:$4 sm:$0xff]   ;;  %v1609_v8 = vld [vmem:[%s1769_s12 + $0x18] ss:$28 sps:$4 sm:$0xff]   ;;  %v1617_v11 = vld [vmem:[%s1769_s12 + $0x88] ss:$28 sps:$4 sm:$0xff]  }
  0x1e   : > { %1420 = vmatprep.subr.bf16.mxu1 %v1553_v25  ;;  %v1607_v6 = vld [vmem:[%s1769_s12 + $0x14] ss:$28 sps:$4 sm:$0xff]   ;;  %v1613_v12 = vld [vmem:[%s1769_s12 + $0x48] ss:$28 sps:$4 sm:$0xff]   ;;  %v1618_v14 = vld [vmem:[%s1769_s12 + $0xc0] ss:$28 sps:$4 sm:$0xff]  }
  0x1f   : > { %v1610_v10 = vld [vmem:[%s1769_s12 + $0x50] ss:$28 sps:$4 sm:$0xff]   ;;  %v1616_v15 = vld [vmem:[%s1769_s12 + $0x80] ss:$28 sps:$4 sm:$0xff]   ;;  %v1621_v17 = vld [vmem:[%s1769_s12 + $0xb8] ss:$28 sps:$4 sm:$0xff]  }
  0x20   : > { %1381 = vmatpush3.bf16.msra.mxu0 %v1554_v26  ;;  %v1619_v16 = vld [vmem:[%s1769_s12 + $0xbc] ss:$28 sps:$4 sm:$0xff]  }
  0x21   : > { %1421 = vmatpush3.bf16.msra.mxu1 %v1555_v27  ;;  %1382 = vmatprep.subr.bf16.mxu0 %v1556_v28 }
  0x22   : > { %1422 = vmatprep.subr.bf16.mxu1 %v1557_v29 }
  0x24   : > { %1383 = vmatpush3.bf16.msra.mxu0 %v1558_v30 }
  0x25   : > { %1423 = vmatpush3.bf16.msra.mxu1 %v1559_v31  ;;  %1448 = vmatprep.subr.bf16.mxu0 %v1566_v36 }
  0x26   : > { %1498 = vmatprep.subr.bf16.mxu1 %v1579_v47 }
  0x27   : > { %876 = vmatmul.mubr.bf16.vlgmr.msra.gmra.mrb[0].mxu0 %v1560_v32 }
  0x28   : > { %941 = vmatmul.mubr.bf16.vlgmr.msra.gmra.mrb[0].mxu1 %v1563_v34  ;;  %1449 = vmatpush3.bf16.msra.mxu0 %v1567_v37 }
  0x29   : > { %1450 = vmatprep.subr.bf16.mxu0 %v1568_v38  ;;  %883 = vmatprep.mubr.bf16.mxu0 %v1570_v40 }
  0x2a   : > { %948 = vmatprep.mubr.bf16.mxu1 %v1572_v41  ;;  %1499 = vmatpush3.bf16.msra.mxu1 %v1579_v47 }
  0x2b   : > { %1500 = vmatprep.subr.bf16.mxu1 %v1588_v54 }
  0x2c   : > { %1451 = vmatpush3.bf16.msra.mxu0 %v1569_v39 }
  0x2d   : > { %1452 = vmatprep.subr.bf16.mxu0 %v1576_v44 }
  0x2e   : > { %1501 = vmatpush3.bf16.msra.mxu1 %v1588_v54 }
  0x2f   : > { %884 = vmatmul.mubr.bf16.gmra.mrb[4].mxu0 %v1574_v42  ;;  %1502 = vmatprep.subr.bf16.mxu1 %v1591_v57 }
  0x30   : > { %949 = vmatmul.mubr.bf16.gmra.mrb[4].mxu1 %v1575_v43  ;;  %1453 = vmatpush3.bf16.msra.mxu0 %v1577_v45 }
  0x31   : > { %1454 = vmatprep.subr.bf16.mxu0 %v1578_v46  ;;  %891 = vmatprep.mubr.bf16.mxu0 %v1581_v49 }
  0x32   : > { %956 = vmatprep.mubr.bf16.mxu1 %v1583_v50  ;;  %1503 = vmatpush3.bf16.msra.mxu1 %v1591_v57 }
  0x33   : > { %1504 = vmatprep.subr.bf16.mxu1 %v1600_v0 }
  0x34   : > { %1455 = vmatpush3.bf16.msra.mxu0 %v1580_v48 }
  0x35   : > { %1456 = vmatprep.subr.bf16.mxu0 %v1587_v53 }
  0x36   : > { %1505 = vmatpush3.bf16.msra.mxu1 %v1600_v0 }
  0x37   : > { %892 = vmatmul.mubr.bf16.gmra.mrb[8].mxu0 %v1585_v51  ;;  %1506 = vmatprep.subr.bf16.mxu1 %v1603_v3 }
  0x38   : > { %957 = vmatmul.mubr.bf16.gmra.mrb[8].mxu1 %v1586_v52  ;;  %1457 = vmatpush3.bf16.msra.mxu0 %v1589_v55 }
  0x39   : > { %1458 = vmatprep.subr.bf16.mxu0 %v1590_v56  ;;  %899 = vmatprep.mubr.bf16.mxu0 %v1593_v59 }
  0x3a   : > { %964 = vmatprep.mubr.bf16.mxu1 %v1595_v60  ;;  %1507 = vmatpush3.bf16.msra.mxu1 %v1603_v3 }
  0x3b   : > { %1508 = vmatprep.subr.bf16.mxu1 %v1608_v7 }
  0x3c   : > { %1459 = vmatpush3.bf16.msra.mxu0 %v1592_v58 }
  0x3d   : > { %1460 = vmatprep.subr.bf16.mxu0 %v1599_v63 }
  0x3e   : > { %1509 = vmatpush3.bf16.msra.mxu1 %v1608_v7  ;;  %v1144_v7 = vlaneseq }
  0x3f   : > { %900 = vmatmul.mubr.bf16.gmra.mrb[12].mxu0 %v1597_v61 }
  0x40   : > { %965 = vmatmul.mubr.bf16.gmra.mrb[12].mxu1 %v1598_v62  ;;  %1461 = vmatpush3.bf16.msra.mxu0 %v1601_v1 }
  0x41   : > { %1462 = vmatprep.subr.bf16.mxu0 %v1602_v2  ;;  %1005 = vmatprep.mubr.bf16.mxu0 %v1607_v6 }
  0x42   : > { %1510 = vmatprep.mubr.msk.bf16.mxu1 %vm830_vm0, %v1609_v8 }
  0x44   : > { %1463 = vmatpush3.bf16.msra.mxu0 %v1604_v4 }
  0x47   : > { %1006 = vmatmul.mubr.bf16.vlgmr.msra.gmra.mrb[16].mxu0 %v1605_v5 }
  0x48   : > { %1013 = vmatprep.mubr.bf16.mxu0 %v1611_v9  ;;  %1511 = vmatmul.mubr.msk.bf16.vlgmr.msra.gmra.mrb[16].mxu1 %vm830_vm0, %v1610_v10 }
  0x49   : > { %1514 = vmatprep.mubr.msk.bf16.mxu1 %vm830_vm0, %v1617_v11  ;;  %v1133_v11 = vld [vmem:[%s1970_s4] sm:$0x1] }
  0x4a   : > { %vm1134_vm1 = vcmp.gt.f32.partialorder %v1133_v11, 0.0 }
  0x4f   : > { %1014 = vmatmul.mubr.bf16.gmra.mrb[20].mxu0 %v1613_v12  ;;  %v1145_v12 = vshrl.u32 %v1144_v7, 7 }
  0x50   : > { %1021 = vmatprep.mubr.bf16.mxu0 %v1614_v13  ;;  %1515 = vmatmul.mubr.msk.bf16.gmra.mrb[20].mxu1 %vm830_vm0, %v1618_v14 }
  0x57   : > { %1022 = vmatmul.mubr.bf16.gmra.mrb[24].mxu0 %v1616_v15 }
  0x58   : > { %1029 = vmatprep.mubr.bf16.mxu0 %v1619_v16 }
  0x5f   : > { %1030 = vmatmul.mubr.bf16.gmra.mrb[28].mxu0 %v1621_v17 }
  0xfa   : > { %v1384_v18 = vpop.f32.mrb[0].mxu0 }
  0xfb   : > { %v1424_v19 = vpop.f32.mrb[0].mxu1  ;;  %v1385_v20 = vpop.f32.mrb[1].mxu0 }
  0xfc   : > { %v1386_v21 = vadd.f32 %v1385_v20, %v1384_v18  ;;  %v1425_v22 = vpop.f32.mrb[1].mxu1  ;;  %v1387_v23 = vpop.f32.mrb[2].mxu0  ;;  %v1146_v18 = vsub.s32 0, %v1145_v12 }
  0xfd   : > { %v1426_v24 = vadd.f32 %v1425_v22, %v1424_v19  ;;  %v1427_v25 = vpop.f32.mrb[2].mxu1  ;;  %v1388_v26 = vpop.f32.mrb[3].mxu0  ;;  %v1630_v22 = vmov 0  }
  0xfe   : > { %v1389_v27 = vadd.f32 %v1388_v26, %v1387_v23  ;;  %v1428_v28 = vpop.f32.mrb[3].mxu1  ;;  %v1143_v23 = vsel %vm1134_vm1, 1, %v1630_v22 }
  0xff   : > { %v943_v29 = vadd.f32 %v1426_v24, %v1386_v21  ;;  %v1429_v30 = vadd.f32 %v1428_v28, %v1427_v25  ;;  %v1893_v25 = vld [vmem:[%s1968_s2] ss:$0 sm:$0xff] }
 0x101   : > { %v946_v31 = vadd.f32 %v1429_v30, %v1389_v27  ;;  %v1898_v30 = vld [vmem:[%s1969_s3] ss:$0 sm:$0xff] }
 0x102   : > { %v1390_v32 = vpop.f32.mrb[4].mxu0 }
 0x103   : > { %v1430_v33 = vpop.f32.mrb[4].mxu1  ;;  %v1391_v34 = vpop.f32.mrb[5].mxu0 }
 0x104   : > { %v1392_v35 = vadd.f32 %v1391_v34, %v1390_v32  ;;  %v1431_v36 = vpop.f32.mrb[5].mxu1  ;;  %v1393_v37 = vpop.f32.mrb[6].mxu0  ;;  %v1900_v32 = vrot.slane %v1143_v23, %v1146_v18 }
 0x105   : > { %v1432_v38 = vadd.f32 %v1431_v36, %v1430_v33  ;;  %v1433_v39 = vpop.f32.mrb[6].mxu1  ;;  %v1394_v40 = vpop.f32.mrb[7].mxu0 }
 0x106   : > { %v1395_v41 = vadd.f32 %v1394_v40, %v1393_v37  ;;  %v1434_v42 = vpop.f32.mrb[7].mxu1  ;;  %vm1148_vm2 = vcmp.eq.s32.totalorder %v1900_v32, 1 }
 0x107   : > { %v1875_v43 = vadd.f32 %v1432_v38, %v1392_v35  ;;  %v1435_v44 = vadd.f32 %v1434_v42, %v1433_v39 }
 0x109   : > { %v1877_v45 = vadd.f32 %v1435_v44, %v1395_v41 }
 0x10a   : > { %v1396_v46 = vpop.f32.mrb[8].mxu0 }
 0x10b   : > { %v1436_v47 = vpop.f32.mrb[8].mxu1  ;;  %v1397_v48 = vpop.f32.mrb[9].mxu0 }
 0x10c   : > { %v1398_v49 = vadd.f32 %v1397_v48, %v1396_v46  ;;  %v1437_v50 = vpop.f32.mrb[9].mxu1  ;;  %v1399_v51 = vpop.f32.mrb[10].mxu0 }
 0x10d   : > { %v1438_v52 = vadd.f32 %v1437_v50, %v1436_v47  ;;  %v1439_v53 = vpop.f32.mrb[10].mxu1  ;;  %v1400_v54 = vpop.f32.mrb[11].mxu0 }
 0x10e   : > { %v1401_v55 = vadd.f32 %v1400_v54, %v1399_v51  ;;  %v1440_v56 = vpop.f32.mrb[11].mxu1 }
 0x10f   : > { %v1879_v57 = vadd.f32 %v1438_v52, %v1398_v49  ;;  %v1441_v58 = vadd.f32 %v1440_v56, %v1439_v53 }
 0x111   : > { %v1881_v59 = vadd.f32 %v1441_v58, %v1401_v55 }
 0x112   : > { %v1402_v60 = vpop.f32.mrb[12].mxu0 }
 0x113   : > { %v1442_v61 = vpop.f32.mrb[12].mxu1  ;;  %v1403_v62 = vpop.f32.mrb[13].mxu0 }
 0x114   : > { %v1404_v63 = vadd.f32 %v1403_v62, %v1402_v60  ;;  %v1443_v0 = vpop.f32.mrb[13].mxu1  ;;  %v1405_v1 = vpop.f32.mrb[14].mxu0 }
 0x115   : > { %v1444_v2 = vadd.f32 %v1443_v0, %v1442_v61  ;;  %v1445_v3 = vpop.f32.mrb[14].mxu1  ;;  %v1406_v4 = vpop.f32.mrb[15].mxu0 }
 0x116   : > { %v1407_v5 = vadd.f32 %v1406_v4, %v1405_v1  ;;  %v1446_v6 = vpop.f32.mrb[15].mxu1 }
 0x117   : > { %v1883_v8 = vadd.f32 %v1444_v2, %v1404_v63  ;;  %v1447_v9 = vadd.f32 %v1446_v6, %v1445_v3 }
 0x119   : > { %v1885_v10 = vadd.f32 %v1447_v9, %v1407_v5 }
 0x11a   : > { %v1464_v13 = vpop.f32.mrb[16].mxu0 }
 0x11b   : > { %v1465_v14 = vpop.f32.mrb[17].mxu0  ;;  %v1512_v20 = vpop.f32.mrb[16].mxu1 }
 0x11c   : > { %v1466_v15 = vadd.f32 %v1465_v14, %v1464_v13  ;;  %v1467_v16 = vpop.f32.mrb[18].mxu0  ;;  %v1072_v24 = vpop.f32.mrb[17].mxu1 }
 0x11d   : > { %v1468_v17 = vpop.f32.mrb[19].mxu0  ;;  %v1513_v27 = vpop.f32.mrb[18].mxu1 }
 0x11e   : > { %v1469_v19 = vadd.f32 %v1468_v17, %v1467_v16  ;;  %v1008_v21 = vadd.f32 %v1466_v15, %v943_v29  ;;  %v1075_v29 = vpop.f32.mrb[19].mxu1 }
 0x120   : > { %v1073_v26 = vadd.f32 %v1072_v24, %v1008_v21  ;;  %v1011_v28 = vadd.f32 %v1469_v19, %v946_v31 }
 0x122   : > { %v1110_v33 = vmul.f32 %v1893_v25, %v1073_v26  ;;  %v1076_v34 = vadd.f32 %v1075_v29, %v1011_v28  ;;  %v1470_v35 = vpop.f32.mrb[20].mxu0 }
 0x123   : > { %v1471_v36 = vpop.f32.mrb[21].mxu0  ;;  %v1516_v47 = vpop.f32.mrb[20].mxu1 }
 0x124   : > { %v1125_v37 = vadd.f32 %v1898_v30, %v1110_v33  ;;  %v1111_v38 = vmul.f32 %v1893_v25, %v1076_v34  ;;  %v1472_v39 = vadd.f32 %v1471_v36, %v1470_v35  ;;  %v1473_v40 = vpop.f32.mrb[22].mxu0  ;;  %v1088_v48 = vpop.f32.mrb[21].mxu1 }
 0x125   : > { %v1474_v31 = vpop.f32.mrb[23].mxu0  ;;  %v1517_v53 = vpop.f32.mrb[22].mxu1 }
 0x126   : > { %v1135_v41 = vmax.f32 %v1125_v37, 0.0  ;;  %v1126_v42 = vadd.f32 %v1898_v30, %v1111_v38  ;;  %v1016_v44 = vadd.f32 %v1472_v39, %v1875_v43  ;;  %v1475_v46 = vadd.f32 %v1474_v31, %v1473_v40  ;;  %v1091_v54 = vpop.f32.mrb[23].mxu1 }
 0x128   : > { %v1149_v49 = vsel %vm1148_vm2, %v1135_v41, %v1125_v37  ;;  %v1136_v50 = vmax.f32 %v1126_v42, 0.0  ;;  %v1081_v51 = vadd.f32 %v1512_v20, %v1016_v44  ;;  %v1019_v52 = vadd.f32 %v1475_v46, %v1877_v45 }
 0x129   : > { %v1360_v43 = vpack.c.bf16 %v1149_v49, %v1149_v49 }
 0x12a   : > { %v1150_v55 = vsel %vm1148_vm2, %v1136_v50, %v1126_v42  ;;  %v1112_v56 = vmul.f32 %v1893_v25, %v1081_v51  ;;  %v1084_v58 = vadd.f32 %v1513_v27, %v1019_v52  ;;  %v1476_v60 = vpop.f32.mrb[24].mxu0 }
 0x12b   : > { %1190 = vst.msk [vmem:[%s1912_s27] sm:$0xf] %vm1189_vm3, %v1360_v43  ;;  %v1361_v61 = vpack.c.bf16 %v1150_v55, %v1150_v55  ;;  %v1477_v62 = vpop.f32.mrb[25].mxu0 }
 0x12c   : > { %v1127_v63 = vadd.f32 %v1898_v30, %v1112_v56  ;;  %v1113_v0 = vmul.f32 %v1893_v25, %v1084_v58  ;;  %v1478_v1 = vadd.f32 %v1477_v62, %v1476_v60  ;;  %v1479_v45 = vpop.f32.mrb[26].mxu0 }
 0x12d   : > { %1191 = vst.msk [vmem:[%s1912_s27 + $0x4] sm:$0xf] %vm1189_vm3, %v1361_v61  ;;  %v1480_v2 = vpop.f32.mrb[27].mxu0 }
 0x12e   : > { %v1137_v3 = vmax.f32 %v1127_v63, 0.0  ;;  %v1128_v4 = vadd.f32 %v1898_v30, %v1113_v0  ;;  %v1481_v5 = vadd.f32 %v1480_v2, %v1479_v45  ;;  %v1024_v6 = vadd.f32 %v1478_v1, %v1879_v57 }
 0x130   : > { %v1151_v7 = vsel %vm1148_vm2, %v1137_v3, %v1127_v63  ;;  %v1138_v9 = vmax.f32 %v1128_v4, 0.0  ;;  %v1089_v11 = vadd.f32 %v1088_v48, %v1024_v6  ;;  %v1027_v12 = vadd.f32 %v1481_v5, %v1881_v59 }
 0x131   : > { %v1362_v13 = vpack.c.bf16 %v1151_v7, %v1151_v7 }
 0x132   : > { %v1152_v14 = vsel %vm1148_vm2, %v1138_v9, %v1128_v4  ;;  %v1114_v15 = vmul.f32 %v1893_v25, %v1089_v11  ;;  %v1092_v16 = vadd.f32 %v1091_v54, %v1027_v12  ;;  %v1482_v17 = vpop.f32.mrb[28].mxu0 }
 0x133   : > { %1192 = vst.msk [vmem:[%s1912_s27 + $0x8] sm:$0xf] %vm1189_vm3, %v1362_v13  ;;  %v1363_v18 = vpack.c.bf16 %v1152_v14, %v1152_v14  ;;  %v1483_v57 = vpop.f32.mrb[29].mxu0 }
 0x134   : > { %v1129_v19 = vadd.f32 %v1898_v30, %v1114_v15  ;;  %v1115_v20 = vmul.f32 %v1893_v25, %v1092_v16  ;;  %v1484_v21 = vadd.f32 %v1483_v57, %v1482_v17  ;;  %v1485_v22 = vpop.f32.mrb[30].mxu0 }
 0x135   : > { %1193 = vst.msk [vmem:[%s1912_s27 + $0xc] sm:$0xf] %vm1189_vm3, %v1363_v18  ;;  %v1486_v59 = vpop.f32.mrb[31].mxu0 }
 0x136   : > { %v1139_v23 = vmax.f32 %v1129_v19, 0.0  ;;  %v1130_v24 = vadd.f32 %v1898_v30, %v1115_v20  ;;  %v1032_v26 = vadd.f32 %v1484_v21, %v1883_v8  ;;  %v1487_v27 = vadd.f32 %v1486_v59, %v1485_v22 }
 0x138   : > { %v1153_v28 = vsel %vm1148_vm2, %v1139_v23, %v1129_v19  ;;  %v1140_v29 = vmax.f32 %v1130_v24, 0.0  ;;  %v1097_v33 = vadd.f32 %v1516_v47, %v1032_v26  ;;  %v1035_v34 = vadd.f32 %v1487_v27, %v1885_v10 }
 0x139   : > { %v1364_v35 = vpack.c.bf16 %v1153_v28, %v1153_v28 }
 0x13a   : > { %v1154_v36 = vsel %vm1148_vm2, %v1140_v29, %v1130_v24  ;;  %v1116_v37 = vmul.f32 %v1893_v25, %v1097_v33  ;;  %v1100_v38 = vadd.f32 %v1517_v53, %v1035_v34 }
 0x13b   : > { %1194 = vst.msk [vmem:[%s1912_s27 + $0x10] sm:$0xf] %vm1189_vm3, %v1364_v35  ;;  %v1365_v8 = vpack.c.bf16 %v1154_v36, %v1154_v36 }
 0x13c   : > { %v1131_v39 = vadd.f32 %v1898_v30, %v1116_v37  ;;  %v1117_v40 = vmul.f32 %v1893_v25, %v1100_v38 }
 0x13d   : > { %1195 = vst.msk [vmem:[%s1912_s27 + $0x14] sm:$0xf] %vm1189_vm3, %v1365_v8 }
 0x13e   : > { %v1141_v31 = vmax.f32 %v1131_v39, 0.0  ;;  %v1132_v10 = vadd.f32 %v1898_v30, %v1117_v40 }
 0x140   : > { %v1155_v41 = vsel %vm1148_vm2, %v1141_v31, %v1131_v39  ;;  %v1142_v42 = vmax.f32 %v1132_v10, 0.0 }
 0x141   : > { %v1366_v44 = vpack.c.bf16 %v1155_v41, %v1155_v41 }
 0x142   : > { %v1156_v46 = vsel %vm1148_vm2, %v1142_v42, %v1132_v10 }
 0x143   : > { %1196 = vst.msk [vmem:[%s1912_s27 + $0x18] sm:$0xf] %vm1189_vm3, %v1366_v44  ;;  %v1367_v47 = vpack.c.bf16 %v1156_v46, %v1156_v46 }
 0x145   : > { %1197 = vst.msk [vmem:[%s1912_s27 + $0x1c] sm:$0xf] %vm1189_vm3, %v1367_v47 }
 0x146 PF: > { %s15_s18 = sadd.s32 1, %s1628_s18  }
 0x147   : > { %p12_p4 = scmp.ge.s32.totalorder %s15_s18, 4  }
 0x149   :  { %14 = sbr.rel (!%p12_p4) target bundleno = 1 (0x1), region = 70 }

// kernel: _lambda_.12
= control target key start
LH: loop header
LB: loop body
LE: loop exit
PB: predicated region body
PF: predicated region fallthrough
CT: control target
= control target key end

     0   :  { %s3353_s18 = smov 0   ;;  %s3919_s0 = inlined_call_operand.vmem [shape: bf16[2,64,2160], index: 0, kind: input, shape index: {}]   ;;  %s3920_s1 = inlined_call_operand.vmem [shape: bf16[2160,64], index: 1, kind: input, shape index: {}]   ;;  %s3921_s2 = inlined_call_operand.vmem [shape: f32[1,64], index: 2, kind: input, shape index: {}]   ;;  %s3922_s3 = inlined_call_operand.vmem [shape: f32[1,64], index: 3, kind: input, shape index: {}]   ;;  %s3923_s4 = inlined_call_operand.vmem [shape: f32[1,64], index: 4, kind: input, shape index: {}]   ;;  %s3924_s5 = inlined_call_operand.vmem [shape: bf16[2,64,64], index: 5, kind: output, shape index: {}]  }
   0x1 LB: > { %s2466_s19 = sadd.s32 4294967295, %s3320_s18   ;;  %p2470_p0 = scmp.ge.s32.totalorder %s3320_s18, 1  ;;  %s3320_s18 = sphi %s3353_s18, %s15_s18  }
   0x2   : > { %p187_p1 = scmp.lt.s32.totalorder %s3320_s18, 3 }
   0x4   : > { %p188_p2 = pnand %p2470_p0, %p187_p1 }
   0x5   : > { %v3079_v0 = vld [vmem:[%s3920_s1 + $0x40] sm:$0xff] (!%p188_p2)   ;;  %v3083_v4 = vld [vmem:[%s3920_s1 + $0x48] sm:$0xff] (!%p188_p2)   ;;  %v3087_v8 = vld [vmem:[%s3920_s1 + $0x50] sm:$0xff] (!%p188_p2)   ;;  %p215_p3 = scmp.lt.s32.totalorder (!%p188_p2), %s2466_s19, 1  ;;  %vm1718_vm0 = vcmask (!%p188_p2), 916480   ;;  %vm2402_vm3 = vcmask (!%p188_p2), 519168  }
   0x6   : > { %191 = sbr.rel (%p188_p2) target bundleno = 397 (0x18d), region = 40  ;;  %v3080_v1 = vld [vmem:[%s3920_s1 + $0xc0] sm:$0xff] (!%p188_p2)   ;;  %2702 = vmatprep.subr.bf16.mxu0 (!%p188_p2), %v3079_v0  ;;  %v3084_v5 = vld [vmem:[%s3920_s1 + $0xc8] sm:$0xff] (!%p188_p2)   ;;  %v3088_v9 = vld [vmem:[%s3920_s1 + $0xd0] sm:$0xff] (!%p188_p2)  }
   0x7   : > { %v3081_v2 = vld [vmem:[%s3920_s1] sm:$0xff] (!%p188_p2)   ;;  %2742 = vmatprep.subr.bf16.mxu1 (!%p188_p2), %v3080_v1  ;;  %v3085_v6 = vld [vmem:[%s3920_s1 + $0x8] sm:$0xff] (!%p188_p2)   ;;  %v3089_v10 = vld [vmem:[%s3920_s1 + $0x10] sm:$0xff] (!%p188_p2)  }
   0x8   : > { %v3082_v3 = vld [vmem:[%s3920_s1 + $0x80] sm:$0xff] (!%p188_p2)   ;;  %2703 = vmatpush3.bf16.msra.mxu0 (!%p188_p2), %v3081_v2  ;;  %v3086_v7 = vld [vmem:[%s3920_s1 + $0x88] sm:$0xff] (!%p188_p2)   ;;  %v3090_v11 = vld [vmem:[%s3920_s1 + $0x90] sm:$0xff] (!%p188_p2)  }
   0x9   : > { %2743 = vmatpush3.bf16.msra.mxu1 (!%p188_p2), %v3082_v3  ;;  %2704 = vmatprep.subr.bf16.mxu0 (!%p188_p2), %v3083_v4  ;;  %v3091_v12 = vld [vmem:[%s3920_s1 + $0x58] sm:$0xff] (!%p188_p2)   ;;  %v3095_v16 = vld [vmem:[%s3920_s1 + $0x60] sm:$0xff] (!%p188_p2)   ;;  %v3099_v20 = vld [vmem:[%s3920_s1 + $0x68] sm:$0xff] (!%p188_p2)  }
   0xa   : > { %2744 = vmatprep.subr.bf16.mxu1 (!%p188_p2), %v3084_v5  ;;  %v3092_v13 = vld [vmem:[%s3920_s1 + $0xd8] sm:$0xff] (!%p188_p2)   ;;  %v3096_v17 = vld [vmem:[%s3920_s1 + $0xe0] sm:$0xff] (!%p188_p2)   ;;  %v3100_v21 = vld [vmem:[%s3920_s1 + $0xe8] sm:$0xff] (!%p188_p2)  }
   0xb   : > { %v3093_v14 = vld [vmem:[%s3920_s1 + $0x18] sm:$0xff] (!%p188_p2)   ;;  %v3097_v18 = vld [vmem:[%s3920_s1 + $0x20] sm:$0xff] (!%p188_p2)   ;;  %v3101_v22 = vld [vmem:[%s3920_s1 + $0x28] sm:$0xff] (!%p188_p2)  }
   0xc   : > { %2705 = vmatpush3.bf16.msra.mxu0 (!%p188_p2), %v3085_v6  ;;  %v3094_v15 = vld [vmem:[%s3920_s1 + $0x98] sm:$0xff] (!%p188_p2)   ;;  %v3098_v19 = vld [vmem:[%s3920_s1 + $0xa0] sm:$0xff] (!%p188_p2)   ;;  %v3102_v23 = vld [vmem:[%s3920_s1 + $0xa8] sm:$0xff] (!%p188_p2)  }
   0xd   : > { %2745 = vmatpush3.bf16.msra.mxu1 %v3086_v7  ;;  %2706 = vmatprep.subr.bf16.mxu0 %v3087_v8  ;;  %s3926_s19 = smov (!%p215_p3, %s2466_s19), 1  ;;  %v3103_v24 = vld [vmem:[%s3920_s1 + $0x70] sm:$0xff]   ;;  %v3107_v28 = vld [vmem:[%s3920_s1 + $0x78] sm:$0xff]   ;;  %v3117_v36 = vld [vmem:[%s3920_s1 + $0x140] sm:$0xff]  }
   0xe   : > { %2746 = vmatprep.subr.bf16.mxu1 %v3088_v9  ;;  %v3104_v25 = vld [vmem:[%s3920_s1 + $0xf0] sm:$0xff]   ;;  %s3069_s26 = smul.u32 544, %s3926_s19  ;;  %v3108_v29 = vld [vmem:[%s3920_s1 + $0xf8] sm:$0xff]   ;;  %v3118_v37 = vld [vmem:[%s3920_s1 + $0x1c0] sm:$0xff]   ;;  %s2693_s7 = sshll.u32 %s3926_s19, 5 }
   0xf   : > { %v3105_v26 = vld [vmem:[%s3920_s1 + $0x30] sm:$0xff]   ;;  %v3109_v30 = vld [vmem:[%s3920_s1 + $0x38] sm:$0xff]   ;;  %v3119_v38 = vld [vmem:[%s3920_s1 + $0x100] sm:$0xff]   ;;  %s224_s10 = scalar_lea.vmem %s3924_s5, %s2693_s7 }
  0x10   : > { %2707 = vmatpush3.bf16.msra.mxu0 %v3089_v10  ;;  %v3106_v27 = vld [vmem:[%s3920_s1 + $0xb0] sm:$0xff]   ;;  %s3461_s12 = scalar_lea.vmem %s3919_s0, %s3069_s26  ;;  %v3110_v31 = vld [vmem:[%s3920_s1 + $0xb8] sm:$0xff]   ;;  %v3120_v39 = vld [vmem:[%s3920_s1 + $0x180] sm:$0xff]  }
  0x11   : > { %2747 = vmatpush3.bf16.msra.mxu1 %v3090_v11  ;;  %2708 = vmatprep.subr.bf16.mxu0 %v3091_v12  ;;  %v3111_v32 = vld [vmem:[%s3461_s12] ss:$68 sps:$4 sm:$0xff]   ;;  %v3114_v34 = vld [vmem:[%s3461_s12 + $0x8] ss:$68 sps:$4 sm:$0xff]   ;;  %v3127_v45 = vld [vmem:[%s3461_s12 + $0x94] ss:$68 sps:$4 sm:$0xff]  }
  0x12   : > { %2748 = vmatprep.subr.bf16.mxu1 %v3092_v13  ;;  %v3113_v33 = vld [vmem:[%s3461_s12 + $0x4] ss:$68 sps:$4 sm:$0xff]   ;;  %v3116_v35 = vld [vmem:[%s3461_s12 + $0xc] ss:$68 sps:$4 sm:$0xff]   ;;  %v3135_v52 = vld [vmem:[%s3920_s1 + $0x158] sm:$0xff]  }
  0x13   : > { %1763 = vmatprep.mubr.bf16.mxu0 %v3113_v33  ;;  %1828 = vmatprep.mubr.bf16.mxu1 %v3116_v35  ;;  %v3121_v40 = vld [vmem:[%s3920_s1 + $0x148] sm:$0xff]   ;;  %v3130_v47 = vld [vmem:[%s3461_s12 + $0x90] ss:$68 sps:$4 sm:$0xff]   ;;  %v3136_v53 = vld [vmem:[%s3920_s1 + $0x1d8] sm:$0xff]  }
  0x14   : > { %2709 = vmatpush3.bf16.msra.mxu0 %v3093_v14  ;;  %v3122_v41 = vld [vmem:[%s3920_s1 + $0x1c8] sm:$0xff]   ;;  %v3131_v48 = vld [vmem:[%s3920_s1 + $0x150] sm:$0xff]   ;;  %v3137_v54 = vld [vmem:[%s3920_s1 + $0x118] sm:$0xff]  }
  0x15   : > { %2749 = vmatpush3.bf16.msra.mxu1 %v3094_v15  ;;  %2710 = vmatprep.subr.bf16.mxu0 %v3095_v16  ;;  %v3123_v42 = vld [vmem:[%s3920_s1 + $0x108] sm:$0xff]   ;;  %v3132_v49 = vld [vmem:[%s3920_s1 + $0x1d0] sm:$0xff]   ;;  %v3138_v55 = vld [vmem:[%s3920_s1 + $0x198] sm:$0xff]  }
  0x16   : > { %2750 = vmatprep.subr.bf16.mxu1 %v3096_v17  ;;  %v3124_v43 = vld [vmem:[%s3920_s1 + $0x188] sm:$0xff]   ;;  %v3133_v50 = vld [vmem:[%s3920_s1 + $0x110] sm:$0xff]   ;;  %v3141_v57 = vld [vmem:[%s3461_s12 + $0x11c] ss:$68 sps:$4 sm:$0xff]  }
  0x17   : > { %v3125_v44 = vld [vmem:[%s3461_s12 + $0x8c] ss:$68 sps:$4 sm:$0xff]   ;;  %v3139_v56 = vld [vmem:[%s3461_s12 + $0x114] ss:$68 sps:$4 sm:$0xff]   ;;  %v3145_v60 = vld [vmem:[%s3920_s1 + $0x160] sm:$0xff]  }
  0x18   : > { %2711 = vmatpush3.bf16.msra.mxu0 %v3097_v18  ;;  %v3129_v46 = vld [vmem:[%s3461_s12 + $0x88] ss:$68 sps:$4 sm:$0xff]   ;;  %v3134_v51 = vld [vmem:[%s3920_s1 + $0x190] sm:$0xff]   ;;  %v3144_v59 = vld [vmem:[%s3461_s12 + $0x118] ss:$68 sps:$4 sm:$0xff]  }
  0x19   : > { %2751 = vmatpush3.bf16.msra.mxu1 %v3098_v19  ;;  %2712 = vmatprep.subr.bf16.mxu0 %v3099_v20  ;;  %v3143_v58 = vld [vmem:[%s3461_s12 + $0x110] ss:$68 sps:$4 sm:$0xff]   ;;  %v3146_v61 = vld [vmem:[%s3920_s1 + $0x1e0] sm:$0xff]   ;;  %v3149_v0 = vld [vmem:[%s3920_s1 + $0x168] sm:$0xff]  }
  0x1a   : > { %2752 = vmatprep.subr.bf16.mxu1 %v3100_v21  ;;  %v3147_v62 = vld [vmem:[%s3920_s1 + $0x120] sm:$0xff]   ;;  %v3150_v1 = vld [vmem:[%s3920_s1 + $0x1e8] sm:$0xff]   ;;  %v3157_v6 = vld [vmem:[%s3461_s12 + $0x198] ss:$68 sps:$4 sm:$0xff]  }
  0x1b   : > { %v3148_v63 = vld [vmem:[%s3920_s1 + $0x1a0] sm:$0xff]   ;;  %v3151_v2 = vld [vmem:[%s3920_s1 + $0x128] sm:$0xff]   ;;  %v3159_v8 = vld [vmem:[%s3920_s1 + $0x170] sm:$0xff]  }
  0x1c   : > { %2713 = vmatpush3.bf16.msra.mxu0 %v3101_v22  ;;  %v3152_v3 = vld [vmem:[%s3920_s1 + $0x1a8] sm:$0xff]   ;;  %v3153_v4 = vld [vmem:[%s3461_s12 + $0x19c] ss:$68 sps:$4 sm:$0xff]   ;;  %v3160_v9 = vld [vmem:[%s3920_s1 + $0x1f0] sm:$0xff]  }
  0x1d   : > { %2753 = vmatpush3.bf16.msra.mxu1 %v3102_v23  ;;  %2714 = vmatprep.subr.bf16.mxu0 %v3103_v24  ;;  %v3155_v5 = vld [vmem:[%s3461_s12 + $0x1a4] ss:$68 sps:$4 sm:$0xff]   ;;  %v3161_v10 = vld [vmem:[%s3920_s1 + $0x130] sm:$0xff]   ;;  %v3163_v12 = vld [vmem:[%s3920_s1 + $0x178] sm:$0xff]  }
  0x1e   : > { %2754 = vmatprep.subr.bf16.mxu1 %v3104_v25  ;;  %v3158_v7 = vld [vmem:[%s3461_s12 + $0x1a0] ss:$68 sps:$4 sm:$0xff]   ;;  %v3162_v11 = vld [vmem:[%s3920_s1 + $0x1b0] sm:$0xff]   ;;  %v3164_v13 = vld [vmem:[%s3920_s1 + $0x1f8] sm:$0xff]  }
  0x1f   : > { %v3165_v14 = vld [vmem:[%s3920_s1 + $0x138] sm:$0xff]   ;;  %v3167_v16 = vld [vmem:[%s3461_s12 + $0x10] ss:$68 sps:$4 sm:$0xff]   ;;  %v3173_v20 = vld [vmem:[%s3920_s1 + $0x240] sm:$0xff]  }
  0x20   : > { %2715 = vmatpush3.bf16.msra.mxu0 %v3105_v26  ;;  %v3166_v15 = vld [vmem:[%s3920_s1 + $0x1b8] sm:$0xff]   ;;  %v3174_v21 = vld [vmem:[%s3920_s1 + $0x2c0] sm:$0xff]   ;;  %v3177_v24 = vld [vmem:[%s3920_s1 + $0x248] sm:$0xff]  }
  0x21   : > { %2755 = vmatpush3.bf16.msra.mxu1 %v3106_v27  ;;  %2716 = vmatprep.subr.bf16.mxu0 %v3107_v28  ;;  %v3169_v17 = vld [vmem:[%s3461_s12 + $0x14] ss:$68 sps:$4 sm:$0xff]   ;;  %v3172_v19 = vld [vmem:[%s3461_s12 + $0x1c] ss:$68 sps:$4 sm:$0xff]   ;;  %v3178_v25 = vld [vmem:[%s3920_s1 + $0x2c8] sm:$0xff]  }
  0x22   : > { %2756 = vmatprep.subr.bf16.mxu1 %v3108_v29  ;;  %v3170_v18 = vld [vmem:[%s3461_s12 + $0x18] ss:$68 sps:$4 sm:$0xff]   ;;  %v3175_v22 = vld [vmem:[%s3920_s1 + $0x200] sm:$0xff]   ;;  %v3179_v26 = vld [vmem:[%s3920_s1 + $0x208] sm:$0xff]  }
  0x23   : > { %v3176_v23 = vld [vmem:[%s3920_s1 + $0x280] sm:$0xff]   ;;  %v3180_v27 = vld [vmem:[%s3920_s1 + $0x288] sm:$0xff]   ;;  %v3188_v33 = vld [vmem:[%s3920_s1 + $0x2d0] sm:$0xff]  }
  0x24   : > { %2717 = vmatpush3.bf16.msra.mxu0 %v3109_v30  ;;  %v3181_v28 = vld [vmem:[%s3461_s12 + $0x9c] ss:$68 sps:$4 sm:$0xff]   ;;  %v3183_v29 = vld [vmem:[%s3461_s12 + $0xa4] ss:$68 sps:$4 sm:$0xff]   ;;  %v3190_v35 = vld [vmem:[%s3920_s1 + $0x290] sm:$0xff]  }
  0x25   : > { %2757 = vmatpush3.bf16.msra.mxu1 %v3110_v31  ;;  %2782 = vmatprep.subr.bf16.mxu0 %v3117_v36  ;;  %v3185_v30 = vld [vmem:[%s3461_s12 + $0x98] ss:$68 sps:$4 sm:$0xff]   ;;  %v3186_v31 = vld [vmem:[%s3461_s12 + $0xa0] ss:$68 sps:$4 sm:$0xff]  }
  0x26   : > { %2822 = vmatprep.subr.bf16.mxu1 %v3118_v37  ;;  %v3191_v36 = vld [vmem:[%s3920_s1 + $0x258] sm:$0xff]  }
  0x27   : > { %1764 = vmatmul.mubr.bf16.vlgmr.msra.gmra.mrb[0].mxu0 %v3111_v32  ;;  %v3187_v32 = vld [vmem:[%s3920_s1 + $0x250] sm:$0xff]   ;;  %v3192_v37 = vld [vmem:[%s3920_s1 + $0x2d8] sm:$0xff]  }
  0x28   : > { %1829 = vmatmul.mubr.bf16.vlgmr.msra.gmra.mrb[0].mxu1 %v3114_v34  ;;  %2783 = vmatpush3.bf16.msra.mxu0 %v3119_v38  ;;  %v3189_v34 = vld [vmem:[%s3920_s1 + $0x210] sm:$0xff]   ;;  %v3193_v38 = vld [vmem:[%s3920_s1 + $0x218] sm:$0xff]  }
  0x29   : > { %2823 = vmatpush3.bf16.msra.mxu1 %v3120_v39  ;;  %2784 = vmatprep.subr.bf16.mxu0 %v3121_v40  ;;  %v3194_v39 = vld [vmem:[%s3920_s1 + $0x298] sm:$0xff]   ;;  %v3195_v40 = vld [vmem:[%s3461_s12 + $0x124] ss:$68 sps:$4 sm:$0xff]  }
  0x2a   : > { %2824 = vmatprep.subr.bf16.mxu1 %v3122_v41  ;;  %1771 = vmatprep.mubr.bf16.mxu0 %v3125_v44  ;;  %v3197_v41 = vld [vmem:[%s3461_s12 + $0x12c] ss:$68 sps:$4 sm:$0xff]   ;;  %v3201_v44 = vld [vmem:[%s3920_s1 + $0x260] sm:$0xff]  }
  0x2b   : > { %1836 = vmatprep.mubr.bf16.mxu1 %v3127_v45  ;;  %v3202_v45 = vld [vmem:[%s3920_s1 + $0x2e0] sm:$0xff]  }
  0x2c   : > { %2785 = vmatpush3.bf16.msra.mxu0 %v3123_v42  ;;  %v3199_v42 = vld [vmem:[%s3461_s12 + $0x120] ss:$68 sps:$4 sm:$0xff]  }
  0x2d   : > { %2825 = vmatpush3.bf16.msra.mxu1 %v3124_v43  ;;  %2786 = vmatprep.subr.bf16.mxu0 %v3131_v48  ;;  %v3200_v43 = vld [vmem:[%s3461_s12 + $0x128] ss:$68 sps:$4 sm:$0xff]  }
  0x2e   : > { %2826 = vmatprep.subr.bf16.mxu1 %v3132_v49  ;;  %v3205_v48 = vld [vmem:[%s3920_s1 + $0x268] sm:$0xff]  }
  0x2f   : > { %1772 = vmatmul.mubr.bf16.gmra.mrb[4].mxu0 %v3129_v46  ;;  %v3203_v46 = vld [vmem:[%s3920_s1 + $0x220] sm:$0xff]   ;;  %v3206_v49 = vld [vmem:[%s3920_s1 + $0x2e8] sm:$0xff]  }
  0x30   : > { %1837 = vmatmul.mubr.bf16.gmra.mrb[4].mxu1 %v3130_v47  ;;  %2787 = vmatpush3.bf16.msra.mxu0 %v3133_v50  ;;  %v3204_v47 = vld [vmem:[%s3920_s1 + $0x2a0] sm:$0xff]   ;;  %v3207_v50 = vld [vmem:[%s3920_s1 + $0x228] sm:$0xff]  }
  0x31   : > { %2827 = vmatpush3.bf16.msra.mxu1 %v3134_v51  ;;  %2788 = vmatprep.subr.bf16.mxu0 %v3135_v52  ;;  %v3208_v51 = vld [vmem:[%s3920_s1 + $0x2a8] sm:$0xff]  }
  0x32   : > { %2828 = vmatprep.subr.bf16.mxu1 %v3136_v53  ;;  %1779 = vmatprep.mubr.bf16.mxu0 %v3139_v56  ;;  %v3209_v52 = vld [vmem:[%s3461_s12 + $0x1ac] ss:$68 sps:$4 sm:$0xff]   ;;  %v3211_v53 = vld [vmem:[%s3461_s12 + $0x1b4] ss:$68 sps:$4 sm:$0xff]  }
  0x33   : > { %1844 = vmatprep.mubr.bf16.mxu1 %v3141_v57  ;;  %v3215_v56 = vld [vmem:[%s3920_s1 + $0x270] sm:$0xff]  }
  0x34   : > { %2789 = vmatpush3.bf16.msra.mxu0 %v3137_v54  ;;  %v3213_v54 = vld [vmem:[%s3461_s12 + $0x1a8] ss:$68 sps:$4 sm:$0xff]   ;;  %v3216_v57 = vld [vmem:[%s3920_s1 + $0x2f0] sm:$0xff]  }
  0x35   : > { %2829 = vmatpush3.bf16.msra.mxu1 %v3138_v55  ;;  %2790 = vmatprep.subr.bf16.mxu0 %v3145_v60  ;;  %v3214_v55 = vld [vmem:[%s3461_s12 + $0x1b0] ss:$68 sps:$4 sm:$0xff]   ;;  %v3219_v60 = vld [vmem:[%s3920_s1 + $0x278] sm:$0xff]  }
  0x36   : > { %2830 = vmatprep.subr.bf16.mxu1 %v3146_v61  ;;  %v3220_v61 = vld [vmem:[%s3920_s1 + $0x2f8] sm:$0xff]  }
  0x37   : > { %1780 = vmatmul.mubr.bf16.gmra.mrb[8].mxu0 %v3143_v58  ;;  %v3217_v58 = vld [vmem:[%s3920_s1 + $0x230] sm:$0xff]  }
  0x38   : > { %1845 = vmatmul.mubr.bf16.gmra.mrb[8].mxu1 %v3144_v59  ;;  %2791 = vmatpush3.bf16.msra.mxu0 %v3147_v62  ;;  %v3218_v59 = vld [vmem:[%s3920_s1 + $0x2b0] sm:$0xff]   ;;  %v3221_v62 = vld [vmem:[%s3920_s1 + $0x238] sm:$0xff]  }
  0x39   : > { %2831 = vmatpush3.bf16.msra.mxu1 %v3148_v63  ;;  %2792 = vmatprep.subr.bf16.mxu0 %v3149_v0  ;;  %v3222_v63 = vld [vmem:[%s3920_s1 + $0x2b8] sm:$0xff]   ;;  %v3223_v0 = vld [vmem:[%s3461_s12 + $0x20] ss:$68 sps:$4 sm:$0xff]  }
  0x3a   : > { %2832 = vmatprep.subr.bf16.mxu1 %v3150_v1  ;;  %1787 = vmatprep.mubr.bf16.mxu0 %v3153_v4  ;;  %v3225_v1 = vld [vmem:[%s3461_s12 + $0x24] ss:$68 sps:$4 sm:$0xff]  }
  0x3b   : > { %1852 = vmatprep.mubr.bf16.mxu1 %v3155_v5  ;;  %v3229_v4 = vld [vmem:[%s3920_s1 + $0x340] sm:$0xff]  }
  0x3c   : > { %2793 = vmatpush3.bf16.msra.mxu0 %v3151_v2  ;;  %v3226_v2 = vld [vmem:[%s3461_s12 + $0x28] ss:$68 sps:$4 sm:$0xff]   ;;  %v3230_v5 = vld [vmem:[%s3920_s1 + $0x3c0] sm:$0xff]  }
  0x3d   : > { %2833 = vmatpush3.bf16.msra.mxu1 %v3152_v3  ;;  %2794 = vmatprep.subr.bf16.mxu0 %v3159_v8  ;;  %v3228_v3 = vld [vmem:[%s3461_s12 + $0x2c] ss:$68 sps:$4 sm:$0xff]  }
  0x3e   : > { %2834 = vmatprep.subr.bf16.mxu1 %v3160_v9  ;;  %v3233_v8 = vld [vmem:[%s3920_s1 + $0x348] sm:$0xff]  }
  0x3f   : > { %1788 = vmatmul.mubr.bf16.gmra.mrb[12].mxu0 %v3157_v6  ;;  %v3231_v6 = vld [vmem:[%s3920_s1 + $0x300] sm:$0xff]   ;;  %v3234_v9 = vld [vmem:[%s3920_s1 + $0x3c8] sm:$0xff]  }
  0x40   : > { %1853 = vmatmul.mubr.bf16.gmra.mrb[12].mxu1 %v3158_v7  ;;  %2795 = vmatpush3.bf16.msra.mxu0 %v3161_v10  ;;  %v3232_v7 = vld [vmem:[%s3920_s1 + $0x380] sm:$0xff]   ;;  %v3235_v10 = vld [vmem:[%s3920_s1 + $0x308] sm:$0xff]  }
  0x41   : > { %2835 = vmatpush3.bf16.msra.mxu1 %v3162_v11  ;;  %2796 = vmatprep.subr.bf16.mxu0 %v3163_v12  ;;  %v3236_v11 = vld [vmem:[%s3920_s1 + $0x388] sm:$0xff]  }
  0x42   : > { %2836 = vmatprep.subr.bf16.mxu1 %v3164_v13  ;;  %1893 = vmatprep.mubr.bf16.mxu0 %v3169_v17  ;;  %v3237_v12 = vld [vmem:[%s3461_s12 + $0xac] ss:$68 sps:$4 sm:$0xff]   ;;  %v3239_v13 = vld [vmem:[%s3461_s12 + $0xb4] ss:$68 sps:$4 sm:$0xff]  }
  0x43   : > { %1958 = vmatprep.mubr.bf16.mxu1 %v3172_v19  ;;  %v3244_v17 = vld [vmem:[%s3920_s1 + $0x3d0] sm:$0xff]  }
  0x44   : > { %2797 = vmatpush3.bf16.msra.mxu0 %v3165_v14  ;;  %v3241_v14 = vld [vmem:[%s3461_s12 + $0xa8] ss:$68 sps:$4 sm:$0xff]   ;;  %v3246_v19 = vld [vmem:[%s3920_s1 + $0x390] sm:$0xff]  }
  0x45   : > { %2837 = vmatpush3.bf16.msra.mxu1 %v3166_v15  ;;  %2862 = vmatprep.subr.bf16.mxu0 %v3173_v20  ;;  %v3242_v15 = vld [vmem:[%s3461_s12 + $0xb0] ss:$68 sps:$4 sm:$0xff]   ;;  %v3247_v20 = vld [vmem:[%s3920_s1 + $0x358] sm:$0xff]  }
  0x46   : > { %2902 = vmatprep.subr.bf16.mxu1 %v3174_v21  ;;  %v3248_v21 = vld [vmem:[%s3920_s1 + $0x3d8] sm:$0xff]  }
  0x47   : > { %1894 = vmatmul.mubr.bf16.vlgmr.msra.gmra.mrb[16].mxu0 %v3167_v16  ;;  %v3243_v16 = vld [vmem:[%s3920_s1 + $0x350] sm:$0xff]  }
  0x48   : > { %1959 = vmatmul.mubr.bf16.vlgmr.msra.gmra.mrb[16].mxu1 %v3170_v18  ;;  %2863 = vmatpush3.bf16.msra.mxu0 %v3175_v22  ;;  %v3245_v18 = vld [vmem:[%s3920_s1 + $0x310] sm:$0xff]   ;;  %v3249_v22 = vld [vmem:[%s3920_s1 + $0x318] sm:$0xff]  }
  0x49   : > { %2903 = vmatpush3.bf16.msra.mxu1 %v3176_v23  ;;  %2864 = vmatprep.subr.bf16.mxu0 %v3177_v24  ;;  %v3250_v23 = vld [vmem:[%s3920_s1 + $0x398] sm:$0xff]  }
  0x4a   : > { %2904 = vmatprep.subr.bf16.mxu1 %v3178_v25  ;;  %1901 = vmatprep.mubr.bf16.mxu0 %v3181_v28  ;;  %v3251_v24 = vld [vmem:[%s3461_s12 + $0x134] ss:$68 sps:$4 sm:$0xff]   ;;  %v3253_v25 = vld [vmem:[%s3461_s12 + $0x13c] ss:$68 sps:$4 sm:$0xff]  }
  0x4b   : > { %1966 = vmatprep.mubr.bf16.mxu1 %v3183_v29  ;;  %v3257_v28 = vld [vmem:[%s3920_s1 + $0x360] sm:$0xff]  }
  0x4c   : > { %2865 = vmatpush3.bf16.msra.mxu0 %v3179_v26  ;;  %v3255_v26 = vld [vmem:[%s3461_s12 + $0x130] ss:$68 sps:$4 sm:$0xff]   ;;  %v3258_v29 = vld [vmem:[%s3920_s1 + $0x3e0] sm:$0xff]  }
  0x4d   : > { %2905 = vmatpush3.bf16.msra.mxu1 %v3180_v27  ;;  %2866 = vmatprep.subr.bf16.mxu0 %v3187_v32  ;;  %v3256_v27 = vld [vmem:[%s3461_s12 + $0x138] ss:$68 sps:$4 sm:$0xff]   ;;  %v3261_v32 = vld [vmem:[%s3920_s1 + $0x368] sm:$0xff]  }
  0x4e   : > { %2906 = vmatprep.subr.bf16.mxu1 %v3188_v33  ;;  %v3262_v33 = vld [vmem:[%s3920_s1 + $0x3e8] sm:$0xff]  }
  0x4f   : > { %1902 = vmatmul.mubr.bf16.gmra.mrb[20].mxu0 %v3185_v30  ;;  %v3259_v30 = vld [vmem:[%s3920_s1 + $0x320] sm:$0xff]  }
  0x50   : > { %1967 = vmatmul.mubr.bf16.gmra.mrb[20].mxu1 %v3186_v31  ;;  %2867 = vmatpush3.bf16.msra.mxu0 %v3189_v34  ;;  %v3260_v31 = vld [vmem:[%s3920_s1 + $0x3a0] sm:$0xff]   ;;  %v3263_v34 = vld [vmem:[%s3920_s1 + $0x328] sm:$0xff]  }
  0x51   : > { %2907 = vmatpush3.bf16.msra.mxu1 %v3190_v35  ;;  %2868 = vmatprep.subr.bf16.mxu0 %v3191_v36  ;;  %v3264_v35 = vld [vmem:[%s3920_s1 + $0x3a8] sm:$0xff]   ;;  %v3265_v36 = vld [vmem:[%s3461_s12 + $0x1bc] ss:$68 sps:$4 sm:$0xff]  }
  0x52   : > { %2908 = vmatprep.subr.bf16.mxu1 %v3192_v37  ;;  %1909 = vmatprep.mubr.bf16.mxu0 %v3195_v40  ;;  %v3267_v37 = vld [vmem:[%s3461_s12 + $0x1c4] ss:$68 sps:$4 sm:$0xff]   ;;  %v3271_v40 = vld [vmem:[%s3920_s1 + $0x370] sm:$0xff]  }
  0x53   : > { %1974 = vmatprep.mubr.bf16.mxu1 %v3197_v41  ;;  %v3272_v41 = vld [vmem:[%s3920_s1 + $0x3f0] sm:$0xff]  }
  0x54   : > { %2869 = vmatpush3.bf16.msra.mxu0 %v3193_v38  ;;  %v3269_v38 = vld [vmem:[%s3461_s12 + $0x1b8] ss:$68 sps:$4 sm:$0xff]  }
  0x55   : > { %2909 = vmatpush3.bf16.msra.mxu1 %v3194_v39  ;;  %2870 = vmatprep.subr.bf16.mxu0 %v3201_v44  ;;  %v3270_v39 = vld [vmem:[%s3461_s12 + $0x1c0] ss:$68 sps:$4 sm:$0xff]   ;;  %v3275_v44 = vld [vmem:[%s3920_s1 + $0x378] sm:$0xff]  }
  0x56   : > { %2910 = vmatprep.subr.bf16.mxu1 %v3202_v45  ;;  %v3276_v45 = vld [vmem:[%s3920_s1 + $0x3f8] sm:$0xff]  }
  0x57   : > { %1910 = vmatmul.mubr.bf16.gmra.mrb[24].mxu0 %v3199_v42  ;;  %v3273_v42 = vld [vmem:[%s3920_s1 + $0x330] sm:$0xff]  }
  0x58   : > { %1975 = vmatmul.mubr.bf16.gmra.mrb[24].mxu1 %v3200_v43  ;;  %2871 = vmatpush3.bf16.msra.mxu0 %v3203_v46  ;;  %v3274_v43 = vld [vmem:[%s3920_s1 + $0x3b0] sm:$0xff]   ;;  %v3277_v46 = vld [vmem:[%s3920_s1 + $0x338] sm:$0xff]  }
  0x59   : > { %2911 = vmatpush3.bf16.msra.mxu1 %v3204_v47  ;;  %2872 = vmatprep.subr.bf16.mxu0 %v3205_v48  ;;  %v3278_v47 = vld [vmem:[%s3920_s1 + $0x3b8] sm:$0xff]   ;;  %v3279_v48 = vld [vmem:[%s3461_s12 + $0x30] ss:$68 sps:$4 sm:$0xff]  }
  0x5a   : > { %2912 = vmatprep.subr.bf16.mxu1 %v3206_v49  ;;  %1917 = vmatprep.mubr.bf16.mxu0 %v3209_v52  ;;  %v3281_v49 = vld [vmem:[%s3461_s12 + $0x34] ss:$68 sps:$4 sm:$0xff]   ;;  %v3285_v52 = vld [vmem:[%s3920_s1 + $0x400] sm:$0xff]  }
  0x5b   : > { %1982 = vmatprep.mubr.bf16.mxu1 %v3211_v53  ;;  %v3286_v53 = vld [vmem:[%s3920_s1 + $0x408] sm:$0xff]  }
  0x5c   : > { %2873 = vmatpush3.bf16.msra.mxu0 %v3207_v50  ;;  %v3282_v50 = vld [vmem:[%s3461_s12 + $0x38] ss:$68 sps:$4 sm:$0xff]  }
  0x5d   : > { %2913 = vmatpush3.bf16.msra.mxu1 %v3208_v51  ;;  %2874 = vmatprep.subr.bf16.mxu0 %v3215_v56  ;;  %v3284_v51 = vld [vmem:[%s3461_s12 + $0x3c] ss:$68 sps:$4 sm:$0xff]  }
  0x5e   : > { %2914 = vmatprep.subr.bf16.mxu1 %v3216_v57  ;;  %v3291_v56 = vld [vmem:[%s3461_s12 + $0xb8] ss:$68 sps:$4 sm:$0xff]   ;;  %v3293_v57 = vld [vmem:[%s3920_s1 + $0x410] sm:$0xff]  }
  0x5f   : > { %1918 = vmatmul.mubr.bf16.gmra.mrb[28].mxu0 %v3213_v54  ;;  %v3287_v54 = vld [vmem:[%s3461_s12 + $0xbc] ss:$68 sps:$4 sm:$0xff]  }
  0x60   : > { %1983 = vmatmul.mubr.bf16.gmra.mrb[28].mxu1 %v3214_v55  ;;  %2875 = vmatpush3.bf16.msra.mxu0 %v3217_v58  ;;  %v3289_v55 = vld [vmem:[%s3461_s12 + $0xc4] ss:$68 sps:$4 sm:$0xff]  }
  0x61   : > { %2915 = vmatpush3.bf16.msra.mxu1 %v3218_v59  ;;  %2876 = vmatprep.subr.bf16.mxu0 %v3219_v60  ;;  %v3292_v58 = vld [vmem:[%s3461_s12 + $0xc0] ss:$68 sps:$4 sm:$0xff]   ;;  %v3294_v60 = vld [vmem:[%s3920_s1 + $0x418] sm:$0xff]  }
  0x62   : > { %2916 = vmatprep.subr.bf16.mxu1 %v3220_v61  ;;  %2023 = vmatprep.mubr.bf16.mxu0 %v3225_v1  ;;  %v3295_v59 = vld [vmem:[%s3461_s12 + $0x144] ss:$68 sps:$4 sm:$0xff]   ;;  %v3297_v61 = vld [vmem:[%s3461_s12 + $0x14c] ss:$68 sps:$4 sm:$0xff]  }
  0x63   : > { %2088 = vmatprep.mubr.bf16.mxu1 %v3228_v3  ;;  %v3302_v1 = vld [vmem:[%s3461_s12 + $0x1cc] ss:$68 sps:$4 sm:$0xff]  }
  0x64   : > { %2877 = vmatpush3.bf16.msra.mxu0 %v3221_v62  ;;  %v3301_v62 = vld [vmem:[%s3920_s1 + $0x420] sm:$0xff]   ;;  %v3306_v3 = vld [vmem:[%s3920_s1 + $0x428] sm:$0xff]  }
  0x65   : > { %2917 = vmatpush3.bf16.msra.mxu1 %v3222_v63  ;;  %2942 = vmatprep.subr.bf16.mxu0 %v3229_v4  ;;  %v3299_v63 = vld [vmem:[%s3461_s12 + $0x140] ss:$68 sps:$4 sm:$0xff]   ;;  %v3309_v4 = vld [vmem:[%s3920_s1 + $0x430] sm:$0xff]  }
  0x66   : > { %2982 = vmatprep.subr.bf16.mxu1 %v3230_v5  ;;  %v3307_v5 = vld [vmem:[%s3461_s12 + $0x1c8] ss:$68 sps:$4 sm:$0xff]  }
  0x67   : > { %2024 = vmatmul.mubr.bf16.vlgmr.msra.gmra.mrb[32].mxu0 %v3223_v0  ;;  %v3300_v0 = vld [vmem:[%s3461_s12 + $0x148] ss:$68 sps:$4 sm:$0xff]  }
  0x68   : > { %2089 = vmatmul.mubr.bf16.vlgmr.msra.gmra.mrb[32].mxu1 %v3226_v2  ;;  %2943 = vmatpush3.bf16.msra.mxu0 %v3231_v6  ;;  %v3304_v2 = vld [vmem:[%s3461_s12 + $0x1d4] ss:$68 sps:$4 sm:$0xff]  }
  0x69   : > { %2983 = vmatpush3.bf16.msra.mxu1 %v3232_v7  ;;  %2944 = vmatprep.subr.bf16.mxu0 %v3233_v8  ;;  %v3308_v6 = vld [vmem:[%s3461_s12 + $0x1d0] ss:$68 sps:$4 sm:$0xff]   ;;  %v3310_v7 = vld [vmem:[%s3461_s12 + $0x40] ss:$68 sps:$4 sm:$0xff]  }
  0x6a   : > { %2984 = vmatprep.subr.bf16.mxu1 %v3234_v9  ;;  %2031 = vmatprep.mubr.bf16.mxu0 %v3237_v12  ;;  %v3311_v8 = vld [vmem:[%s3461_s12 + $0x150] ss:$68 sps:$4 sm:$0xff]   ;;  %v3312_v9 = vld [vmem:[%s3461_s12 + $0xc8] ss:$68 sps:$4 sm:$0xff]  }
  0x6b   : > { %2096 = vmatprep.mubr.bf16.mxu1 %v3239_v13 }
  0x6c   : > { %2945 = vmatpush3.bf16.msra.mxu0 %v3235_v10  ;;  %v3313_v10 = vld [vmem:[%s3461_s12 + $0x1d8] ss:$68 sps:$4 sm:$0xff]  }
  0x6d   : > { %2985 = vmatpush3.bf16.msra.mxu1 %v3236_v11  ;;  %2946 = vmatprep.subr.bf16.mxu0 %v3243_v16 }
  0x6e   : > { %2986 = vmatprep.subr.bf16.mxu1 %v3244_v17 }
  0x6f   : > { %2032 = vmatmul.mubr.bf16.gmra.mrb[36].mxu0 %v3241_v14 }
  0x70   : > { %2097 = vmatmul.mubr.bf16.gmra.mrb[36].mxu1 %v3242_v15  ;;  %2947 = vmatpush3.bf16.msra.mxu0 %v3245_v18 }
  0x71   : > { %2987 = vmatpush3.bf16.msra.mxu1 %v3246_v19  ;;  %2948 = vmatprep.subr.bf16.mxu0 %v3247_v20 }
  0x72   : > { %2988 = vmatprep.subr.bf16.mxu1 %v3248_v21  ;;  %2039 = vmatprep.mubr.bf16.mxu0 %v3251_v24 }
  0x73   : > { %2104 = vmatprep.mubr.bf16.mxu1 %v3253_v25 }
  0x74   : > { %2949 = vmatpush3.bf16.msra.mxu0 %v3249_v22 }
  0x75   : > { %2989 = vmatpush3.bf16.msra.mxu1 %v3250_v23  ;;  %2950 = vmatprep.subr.bf16.mxu0 %v3257_v28 }
  0x76   : > { %2990 = vmatprep.subr.bf16.mxu1 %v3258_v29 }
  0x77   : > { %2040 = vmatmul.mubr.bf16.gmra.mrb[40].mxu0 %v3255_v26 }
  0x78   : > { %2105 = vmatmul.mubr.bf16.gmra.mrb[40].mxu1 %v3256_v27  ;;  %2951 = vmatpush3.bf16.msra.mxu0 %v3259_v30 }
  0x79   : > { %2991 = vmatpush3.bf16.msra.mxu1 %v3260_v31  ;;  %2952 = vmatprep.subr.bf16.mxu0 %v3261_v32 }
  0x7a   : > { %2992 = vmatprep.subr.bf16.mxu1 %v3262_v33  ;;  %2047 = vmatprep.mubr.bf16.mxu0 %v3265_v36 }
  0x7b   : > { %2112 = vmatprep.mubr.bf16.mxu1 %v3267_v37 }
  0x7c   : > { %2953 = vmatpush3.bf16.msra.mxu0 %v3263_v34 }
  0x7d   : > { %2993 = vmatpush3.bf16.msra.mxu1 %v3264_v35  ;;  %2954 = vmatprep.subr.bf16.mxu0 %v3271_v40 }
  0x7e   : > { %2994 = vmatprep.subr.bf16.mxu1 %v3272_v41 }
  0x7f   : > { %2048 = vmatmul.mubr.bf16.gmra.mrb[44].mxu0 %v3269_v38 }
  0x80   : > { %2113 = vmatmul.mubr.bf16.gmra.mrb[44].mxu1 %v3270_v39  ;;  %2955 = vmatpush3.bf16.msra.mxu0 %v3273_v42 }
  0x81   : > { %2995 = vmatpush3.bf16.msra.mxu1 %v3274_v43  ;;  %2956 = vmatprep.subr.bf16.mxu0 %v3275_v44 }
  0x82   : > { %2996 = vmatprep.subr.bf16.mxu1 %v3276_v45  ;;  %2153 = vmatprep.mubr.bf16.mxu0 %v3281_v49 }
  0x83   : > { %2218 = vmatprep.mubr.bf16.mxu1 %v3284_v51 }
  0x84   : > { %2957 = vmatpush3.bf16.msra.mxu0 %v3277_v46 }
  0x85   : > { %2997 = vmatpush3.bf16.msra.mxu1 %v3278_v47  ;;  %3033 = vmatprep.subr.bf16.mxu0 %v3285_v52 }
  0x86   : > { %3055 = vmatprep.subr.bf16.mxu1 %v3285_v52 }
  0x87   : > { %2154 = vmatmul.mubr.bf16.vlgmr.msra.gmra.mrb[48].mxu0 %v3279_v48 }
  0x88   : > { %2219 = vmatmul.mubr.bf16.vlgmr.msra.gmra.mrb[48].mxu1 %v3282_v50  ;;  %3034 = vmatpush3.bf16.msra.mxu0 %v3285_v52 }
  0x89   : > { %3062 = vmatpush3.bf16.msra.mxu1 %v3285_v52  ;;  %3035 = vmatprep.subr.bf16.mxu0 %v3286_v53 }
  0x8a   : > { %3056 = vmatprep.subr.bf16.mxu1 %v3286_v53  ;;  %2161 = vmatprep.mubr.bf16.mxu0 %v3287_v54 }
  0x8b   : > { %2226 = vmatprep.mubr.bf16.mxu1 %v3289_v55 }
  0x8c   : > { %3036 = vmatpush3.bf16.msra.mxu0 %v3286_v53 }
  0x8d   : > { %3063 = vmatpush3.bf16.msra.mxu1 %v3286_v53  ;;  %3037 = vmatprep.subr.bf16.mxu0 %v3293_v57 }
  0x8e   : > { %3057 = vmatprep.subr.bf16.mxu1 %v3293_v57 }
  0x8f   : > { %2162 = vmatmul.mubr.bf16.gmra.mrb[52].mxu0 %v3291_v56 }
  0x90   : > { %2227 = vmatmul.mubr.bf16.gmra.mrb[52].mxu1 %v3292_v58  ;;  %2169 = vmatprep.mubr.bf16.mxu0 %v3295_v59 }
  0x91   : > { %3038 = vmatpush3.bf16.msra.mxu0 %v3293_v57  ;;  %2234 = vmatprep.mubr.bf16.mxu1 %v3297_v61 }
  0x92   : > { %3064 = vmatpush3.bf16.msra.mxu1 %v3293_v57  ;;  %3039 = vmatprep.subr.bf16.mxu0 %v3294_v60 }
  0x93   : > { %3058 = vmatprep.subr.bf16.mxu1 %v3294_v60 }
  0x95   : > { %3040 = vmatpush3.bf16.msra.mxu0 %v3294_v60 }
  0x96   : > { %3065 = vmatpush3.bf16.msra.mxu1 %v3294_v60  ;;  %3041 = vmatprep.subr.bf16.mxu0 %v3301_v62 }
  0x97   : > { %2170 = vmatmul.mubr.bf16.gmra.mrb[56].mxu0 %v3299_v63  ;;  %3059 = vmatprep.subr.bf16.mxu1 %v3301_v62 }
  0x98   : > { %2235 = vmatmul.mubr.bf16.gmra.mrb[56].mxu1 %v3300_v0  ;;  %2177 = vmatprep.mubr.bf16.mxu0 %v3302_v1 }
  0x99   : > { %3042 = vmatpush3.bf16.msra.mxu0 %v3301_v62  ;;  %2242 = vmatprep.mubr.bf16.mxu1 %v3304_v2 }
  0x9a   : > { %3066 = vmatpush3.bf16.msra.mxu1 %v3301_v62  ;;  %3043 = vmatprep.subr.bf16.mxu0 %v3306_v3 }
  0x9b   : > { %3060 = vmatprep.subr.bf16.mxu1 %v3306_v3 }
  0x9d   : > { %3044 = vmatpush3.bf16.msra.mxu0 %v3306_v3 }
  0x9e   : > { %3067 = vmatpush3.bf16.msra.mxu1 %v3306_v3  ;;  %3045 = vmatprep.subr.bf16.mxu0 %v3309_v4 }
  0x9f   : > { %2178 = vmatmul.mubr.bf16.gmra.mrb[60].mxu0 %v3307_v5  ;;  %3061 = vmatprep.subr.bf16.mxu1 %v3309_v4 }
  0xa0   : > { %2243 = vmatmul.mubr.bf16.gmra.mrb[60].mxu1 %v3308_v6  ;;  %3047 = vmatprep.mubr.msk.bf16.mxu0 %vm1718_vm0, %v3310_v7 }
  0xa1   : > { %3046 = vmatpush3.bf16.msra.mxu0 %v3309_v4  ;;  %3051 = vmatprep.mubr.msk.bf16.mxu1 %vm1718_vm0, %v3311_v8 }
  0xa2   : > { %3068 = vmatpush3.bf16.msra.mxu1 %v3309_v4 }
  0xa7   : > { %3048 = vmatmul.mubr.msk.bf16.vlgmr.msra.gmra.mrb[64].mxu0 %vm1718_vm0, %v3312_v9 }
  0xa8   : > { %3052 = vmatmul.mubr.msk.bf16.vlgmr.msra.gmra.mrb[64].mxu1 %vm1718_vm0, %v3313_v10 }
  0xfa   : > { %v2718_v11 = vpop.f32.mrb[0].mxu0 }
  0xfb   : > { %v2758_v12 = vpop.f32.mrb[0].mxu1  ;;  %v2719_v13 = vpop.f32.mrb[1].mxu0 }
  0xfc   : > { %v2720_v14 = vadd.f32 %v2719_v13, %v2718_v11  ;;  %v2759_v15 = vpop.f32.mrb[1].mxu1  ;;  %v2721_v16 = vpop.f32.mrb[2].mxu0 }
  0xfd   : > { %v2760_v17 = vadd.f32 %v2759_v15, %v2758_v12  ;;  %v2761_v18 = vpop.f32.mrb[2].mxu1  ;;  %v2722_v19 = vpop.f32.mrb[3].mxu0 }
  0xfe   : > { %v2723_v20 = vadd.f32 %v2722_v19, %v2721_v16  ;;  %v2762_v21 = vpop.f32.mrb[3].mxu1 }
  0xff   : > { %v1831_v22 = vadd.f32 %v2760_v17, %v2720_v14  ;;  %v2763_v23 = vadd.f32 %v2762_v21, %v2761_v18 }
 0x101   : > { %v1834_v24 = vadd.f32 %v2763_v23, %v2723_v20 }
 0x102   : > { %v2724_v25 = vpop.f32.mrb[4].mxu0 }
 0x103   : > { %v2764_v26 = vpop.f32.mrb[4].mxu1  ;;  %v2725_v27 = vpop.f32.mrb[5].mxu0 }
 0x104   : > { %v2726_v28 = vadd.f32 %v2725_v27, %v2724_v25  ;;  %v2765_v29 = vpop.f32.mrb[5].mxu1  ;;  %v2727_v30 = vpop.f32.mrb[6].mxu0 }
 0x105   : > { %v2766_v31 = vadd.f32 %v2765_v29, %v2764_v26  ;;  %v2767_v32 = vpop.f32.mrb[6].mxu1  ;;  %v2728_v33 = vpop.f32.mrb[7].mxu0 }
 0x106   : > { %v2729_v34 = vadd.f32 %v2728_v33, %v2727_v30  ;;  %v2768_v35 = vpop.f32.mrb[7].mxu1 }
 0x107   : > { %v1839_v36 = vadd.f32 %v2766_v31, %v2726_v28  ;;  %v2769_v37 = vadd.f32 %v2768_v35, %v2767_v32 }
 0x109   : > { %v1842_v38 = vadd.f32 %v2769_v37, %v2729_v34 }
 0x10a   : > { %v2730_v39 = vpop.f32.mrb[8].mxu0 }
 0x10b   : > { %v2770_v40 = vpop.f32.mrb[8].mxu1  ;;  %v2731_v41 = vpop.f32.mrb[9].mxu0 }
 0x10c   : > { %v2732_v42 = vadd.f32 %v2731_v41, %v2730_v39  ;;  %v2771_v43 = vpop.f32.mrb[9].mxu1  ;;  %v2733_v44 = vpop.f32.mrb[10].mxu0 }
 0x10d   : > { %v2772_v45 = vadd.f32 %v2771_v43, %v2770_v40  ;;  %v2773_v46 = vpop.f32.mrb[10].mxu1  ;;  %v2734_v47 = vpop.f32.mrb[11].mxu0 }
 0x10e   : > { %v2735_v48 = vadd.f32 %v2734_v47, %v2733_v44  ;;  %v2774_v49 = vpop.f32.mrb[11].mxu1 }
 0x10f   : > { %v1847_v50 = vadd.f32 %v2772_v45, %v2732_v42  ;;  %v2775_v51 = vadd.f32 %v2774_v49, %v2773_v46 }
 0x111   : > { %v1850_v52 = vadd.f32 %v2775_v51, %v2735_v48 }
 0x112   : > { %v2736_v53 = vpop.f32.mrb[12].mxu0 }
 0x113   : > { %v2776_v54 = vpop.f32.mrb[12].mxu1  ;;  %v2737_v55 = vpop.f32.mrb[13].mxu0 }
 0x114   : > { %v2777_v56 = vpop.f32.mrb[13].mxu1  ;;  %v2738_v57 = vadd.f32 %v2737_v55, %v2736_v53  ;;  %v2739_v59 = vpop.f32.mrb[14].mxu0 }
 0x115   : > { %v2778_v58 = vadd.f32 %v2777_v56, %v2776_v54  ;;  %v2779_v60 = vpop.f32.mrb[14].mxu1  ;;  %v2740_v61 = vpop.f32.mrb[15].mxu0 }
 0x116   : > { %v2780_v62 = vpop.f32.mrb[15].mxu1  ;;  %v2741_v0 = vadd.f32 %v2740_v61, %v2739_v59 }
 0x117   : > { %v1855_v63 = vadd.f32 %v2778_v58, %v2738_v57  ;;  %v2781_v1 = vadd.f32 %v2780_v62, %v2779_v60 }
 0x119   : > { %v3846_v2 = vadd.f32 %v2781_v1, %v2741_v0 }
 0x11a   : > { %v2798_v3 = vpop.f32.mrb[16].mxu0 }
 0x11b   : > { %v2799_v4 = vpop.f32.mrb[17].mxu0  ;;  %v2838_v5 = vpop.f32.mrb[16].mxu1 }
 0x11c   : > { %v2800_v6 = vadd.f32 %v2799_v4, %v2798_v3  ;;  %v2801_v7 = vpop.f32.mrb[18].mxu0  ;;  %v2839_v8 = vpop.f32.mrb[17].mxu1 }
 0x11d   : > { %v2802_v9 = vpop.f32.mrb[19].mxu0  ;;  %v2840_v11 = vadd.f32 %v2839_v8, %v2838_v5  ;;  %v2841_v12 = vpop.f32.mrb[18].mxu1 }
 0x11e   : > { %v1896_v10 = vadd.f32 %v2800_v6, %v1831_v22  ;;  %v2803_v13 = vadd.f32 %v2802_v9, %v2801_v7  ;;  %v2842_v14 = vpop.f32.mrb[19].mxu1 }
 0x11f   : > { %v2843_v17 = vadd.f32 %v2842_v14, %v2841_v12 }
 0x120   : > { %v1961_v15 = vadd.f32 %v2840_v11, %v1896_v10  ;;  %v1899_v16 = vadd.f32 %v2803_v13, %v1834_v24 }
 0x122   : > { %v3848_v18 = vadd.f32 %v2843_v17, %v1899_v16  ;;  %v2804_v19 = vpop.f32.mrb[20].mxu0 }
 0x123   : > { %v2844_v20 = vpop.f32.mrb[20].mxu1  ;;  %v2805_v21 = vpop.f32.mrb[21].mxu0 }
 0x124   : > { %v2806_v23 = vadd.f32 %v2805_v21, %v2804_v19  ;;  %v2845_v25 = vpop.f32.mrb[21].mxu1  ;;  %v2807_v26 = vpop.f32.mrb[22].mxu0 }
 0x125   : > { %v2846_v27 = vadd.f32 %v2845_v25, %v2844_v20  ;;  %v2847_v28 = vpop.f32.mrb[22].mxu1  ;;  %v2808_v29 = vpop.f32.mrb[23].mxu0 }
 0x126   : > { %v1904_v30 = vadd.f32 %v2806_v23, %v1839_v36  ;;  %v2809_v22 = vadd.f32 %v2808_v29, %v2807_v26  ;;  %v2848_v31 = vpop.f32.mrb[23].mxu1 }
 0x127   : > { %v2849_v32 = vadd.f32 %v2848_v31, %v2847_v28 }
 0x128   : > { %v1969_v33 = vadd.f32 %v2846_v27, %v1904_v30  ;;  %v1907_v34 = vadd.f32 %v2809_v22, %v1842_v38 }
 0x12a   : > { %v3850_v35 = vadd.f32 %v2849_v32, %v1907_v34  ;;  %v2810_v24 = vpop.f32.mrb[24].mxu0 }
 0x12b   : > { %v2850_v37 = vpop.f32.mrb[24].mxu1  ;;  %v2811_v39 = vpop.f32.mrb[25].mxu0 }
 0x12c   : > { %v2851_v40 = vpop.f32.mrb[25].mxu1  ;;  %v2812_v41 = vadd.f32 %v2811_v39, %v2810_v24  ;;  %v2813_v43 = vpop.f32.mrb[26].mxu0 }
 0x12d   : > { %v2852_v42 = vadd.f32 %v2851_v40, %v2850_v37  ;;  %v2853_v44 = vpop.f32.mrb[26].mxu1  ;;  %v2814_v45 = vpop.f32.mrb[27].mxu0 }
 0x12e   : > { %v2854_v46 = vpop.f32.mrb[27].mxu1  ;;  %v1912_v47 = vadd.f32 %v2812_v41, %v1847_v50  ;;  %v2815_v48 = vadd.f32 %v2814_v45, %v2813_v43 }
 0x12f   : > { %v2855_v36 = vadd.f32 %v2854_v46, %v2853_v44 }
 0x130   : > { %v1977_v49 = vadd.f32 %v2852_v42, %v1912_v47  ;;  %v1915_v51 = vadd.f32 %v2815_v48, %v1850_v52 }
 0x132   : > { %v3852_v53 = vadd.f32 %v2855_v36, %v1915_v51  ;;  %v2816_v38 = vpop.f32.mrb[28].mxu0 }
 0x133   : > { %v2856_v54 = vpop.f32.mrb[28].mxu1  ;;  %v2817_v55 = vpop.f32.mrb[29].mxu0 }
 0x134   : > { %v2818_v56 = vadd.f32 %v2817_v55, %v2816_v38  ;;  %v2857_v57 = vpop.f32.mrb[29].mxu1  ;;  %v2819_v58 = vpop.f32.mrb[30].mxu0 }
 0x135   : > { %v2858_v59 = vadd.f32 %v2857_v57, %v2856_v54  ;;  %v2859_v60 = vpop.f32.mrb[30].mxu1  ;;  %v2820_v61 = vpop.f32.mrb[31].mxu0 }
 0x136   : > { %v1920_v62 = vadd.f32 %v2818_v56, %v1855_v63  ;;  %v2821_v0 = vadd.f32 %v2820_v61, %v2819_v58  ;;  %v2860_v1 = vpop.f32.mrb[31].mxu1 }
 0x137   : > { %v2861_v3 = vadd.f32 %v2860_v1, %v2859_v60 }
 0x138   : > { %v1985_v50 = vadd.f32 %v2858_v59, %v1920_v62  ;;  %v1923_v4 = vadd.f32 %v2821_v0, %v3846_v2 }
 0x13a   : > { %v3855_v5 = vadd.f32 %v2861_v3, %v1923_v4  ;;  %v2878_v52 = vpop.f32.mrb[32].mxu0 }
 0x13b   : > { %v2918_v6 = vpop.f32.mrb[32].mxu1  ;;  %v2879_v7 = vpop.f32.mrb[33].mxu0 }
 0x13c   : > { %v2880_v8 = vadd.f32 %v2879_v7, %v2878_v52  ;;  %v2919_v9 = vpop.f32.mrb[33].mxu1  ;;  %v2881_v10 = vpop.f32.mrb[34].mxu0 }
 0x13d   : > { %v2920_v11 = vadd.f32 %v2919_v9, %v2918_v6  ;;  %v2921_v12 = vpop.f32.mrb[34].mxu1  ;;  %v2882_v13 = vpop.f32.mrb[35].mxu0 }
 0x13e   : > { %v2026_v14 = vadd.f32 %v2880_v8, %v1961_v15  ;;  %v2883_v16 = vadd.f32 %v2882_v13, %v2881_v10  ;;  %v2922_v63 = vpop.f32.mrb[35].mxu1 }
 0x13f   : > { %v2923_v17 = vadd.f32 %v2922_v63, %v2921_v12 }
 0x140   : > { %v2091_v19 = vadd.f32 %v2920_v11, %v2026_v14  ;;  %v2029_v20 = vadd.f32 %v2883_v16, %v3848_v18 }
 0x142   : > { %v2094_v21 = vadd.f32 %v2923_v17, %v2029_v20  ;;  %v2884_v2 = vpop.f32.mrb[36].mxu0 }
 0x143   : > { %v2924_v23 = vpop.f32.mrb[36].mxu1  ;;  %v2885_v25 = vpop.f32.mrb[37].mxu0 }
 0x144   : > { %v2925_v26 = vpop.f32.mrb[37].mxu1  ;;  %v2886_v27 = vadd.f32 %v2885_v25, %v2884_v2  ;;  %v2887_v29 = vpop.f32.mrb[38].mxu0 }
 0x145   : > { %v2926_v28 = vadd.f32 %v2925_v26, %v2924_v23  ;;  %v2927_v30 = vpop.f32.mrb[38].mxu1  ;;  %v2888_v22 = vpop.f32.mrb[39].mxu0 }
 0x146   : > { %v2928_v31 = vpop.f32.mrb[39].mxu1  ;;  %v2034_v32 = vadd.f32 %v2886_v27, %v1969_v33  ;;  %v2889_v34 = vadd.f32 %v2888_v22, %v2887_v29 }
 0x147   : > { %v2929_v15 = vadd.f32 %v2928_v31, %v2927_v30 }
 0x148   : > { %v2099_v24 = vadd.f32 %v2926_v28, %v2034_v32  ;;  %v2037_v37 = vadd.f32 %v2889_v34, %v3850_v35 }
 0x14a   : > { %v2102_v39 = vadd.f32 %v2929_v15, %v2037_v37  ;;  %v2890_v40 = vpop.f32.mrb[40].mxu0 }
 0x14b   : > { %v2930_v18 = vpop.f32.mrb[40].mxu1  ;;  %v2891_v41 = vpop.f32.mrb[41].mxu0 }
 0x14c   : > { %v2892_v42 = vadd.f32 %v2891_v41, %v2890_v40  ;;  %v2931_v43 = vpop.f32.mrb[41].mxu1  ;;  %v2893_v44 = vpop.f32.mrb[42].mxu0 }
 0x14d   : > { %v2932_v45 = vadd.f32 %v2931_v43, %v2930_v18  ;;  %v2933_v46 = vpop.f32.mrb[42].mxu1  ;;  %v2894_v47 = vpop.f32.mrb[43].mxu0 }
 0x14e   : > { %v2042_v48 = vadd.f32 %v2892_v42, %v1977_v49  ;;  %v2895_v36 = vadd.f32 %v2894_v47, %v2893_v44  ;;  %v2934_v51 = vpop.f32.mrb[43].mxu1  ;;  %v2357_v47 = vlaneseq }
 0x14f   : > { %v2935_v38 = vadd.f32 %v2934_v51, %v2933_v46 }
 0x150   : > { %v2107_v33 = vadd.f32 %v2932_v45, %v2042_v48  ;;  %v2045_v54 = vadd.f32 %v2895_v36, %v3852_v53 }
 0x152   : > { %v3860_v55 = vadd.f32 %v2935_v38, %v2045_v54  ;;  %v2896_v35 = vpop.f32.mrb[44].mxu0 }
 0x153   : > { %v2936_v56 = vpop.f32.mrb[44].mxu1  ;;  %v2897_v57 = vpop.f32.mrb[45].mxu0 }
 0x154   : > { %v2898_v58 = vadd.f32 %v2897_v57, %v2896_v35  ;;  %v2937_v59 = vpop.f32.mrb[45].mxu1  ;;  %v2899_v60 = vpop.f32.mrb[46].mxu0  ;;  %v2358_v57 = vshrl.u32 %v2357_v47, 7 }
 0x155   : > { %v2938_v61 = vadd.f32 %v2937_v59, %v2936_v56  ;;  %v2939_v62 = vpop.f32.mrb[46].mxu1  ;;  %v2900_v0 = vpop.f32.mrb[47].mxu0 }
 0x156   : > { %v2050_v1 = vadd.f32 %v2898_v58, %v1985_v50  ;;  %v2901_v3 = vadd.f32 %v2900_v0, %v2899_v60  ;;  %v2940_v49 = vpop.f32.mrb[47].mxu1 }
 0x157   : > { %v2941_v4 = vadd.f32 %v2940_v49, %v2939_v62 }
 0x158   : > { %v3862_v52 = vadd.f32 %v2938_v61, %v2050_v1  ;;  %v2053_v6 = vadd.f32 %v2901_v3, %v3855_v5 }
 0x15a   : > { %v3865_v53 = vadd.f32 %v2941_v4, %v2053_v6  ;;  %v2958_v7 = vpop.f32.mrb[48].mxu0 }
 0x15b   : > { %v2998_v8 = vpop.f32.mrb[48].mxu1  ;;  %v2959_v9 = vpop.f32.mrb[49].mxu0 }
 0x15c   : > { %v2960_v10 = vadd.f32 %v2959_v9, %v2958_v7  ;;  %v2999_v11 = vpop.f32.mrb[49].mxu1  ;;  %v2961_v12 = vpop.f32.mrb[50].mxu0  ;;  %v3322_v7 = vmov 0  }
 0x15d   : > { %v3000_v13 = vadd.f32 %v2999_v11, %v2998_v8  ;;  %v3001_v14 = vpop.f32.mrb[50].mxu1  ;;  %v2962_v16 = vpop.f32.mrb[51].mxu0 }
 0x15e   : > { %v2156_v63 = vadd.f32 %v2960_v10, %v2091_v19  ;;  %v2963_v50 = vadd.f32 %v2962_v16, %v2961_v12  ;;  %v3002_v17 = vpop.f32.mrb[51].mxu1 }
 0x15f   : > { %v3003_v20 = vadd.f32 %v3002_v17, %v3001_v14 }
 0x160   : > { %v2159_v2 = vadd.f32 %v2963_v50, %v2094_v21  ;;  %v3867_v23 = vadd.f32 %v3000_v13, %v2156_v63  ;;  %v2681_v63 = vld [vmem:[%s3921_s2] ss:$0 sm:$0xff] }
 0x162   : > { %v2964_v25 = vpop.f32.mrb[52].mxu0  ;;  %v3869_v5 = vadd.f32 %v3003_v20, %v2159_v2 }
 0x163   : > { %v3004_v26 = vpop.f32.mrb[52].mxu1  ;;  %v2965_v27 = vpop.f32.mrb[53].mxu0 }
 0x164   : > { %v2966_v28 = vadd.f32 %v2965_v27, %v2964_v25  ;;  %v3005_v29 = vpop.f32.mrb[53].mxu1  ;;  %v2967_v30 = vpop.f32.mrb[54].mxu0 }
 0x165   : > { %v3006_v22 = vadd.f32 %v3005_v29, %v3004_v26  ;;  %v3007_v31 = vpop.f32.mrb[54].mxu1  ;;  %v2968_v32 = vpop.f32.mrb[55].mxu0 }
 0x166   : > { %v2164_v34 = vadd.f32 %v2966_v28, %v2099_v24  ;;  %v2969_v15 = vadd.f32 %v2968_v32, %v2967_v30  ;;  %v3008_v19 = vpop.f32.mrb[55].mxu1 }
 0x167   : > { %v3009_v37 = vadd.f32 %v3008_v19, %v3007_v31 }
 0x168   : > { %v2167_v40 = vadd.f32 %v2969_v15, %v2102_v39  ;;  %v2229_v18 = vadd.f32 %v3006_v22, %v2164_v34  ;;  %v2346_v39 = vld [vmem:[%s3923_s4] sm:$0x1] }
 0x169   : > { %vm2347_vm1 = vcmp.gt.f32.partialorder %v2346_v39, 0.0 }
 0x16a   : > { %v2970_v21 = vpop.f32.mrb[56].mxu0  ;;  %v2232_v41 = vadd.f32 %v3009_v37, %v2167_v40  ;;  %v2356_v8 = vsel %vm2347_vm1, 1, %v3322_v7 }
 0x16b   : > { %v3010_v42 = vpop.f32.mrb[56].mxu1  ;;  %v2971_v43 = vpop.f32.mrb[57].mxu0 }
 0x16c   : > { %v2972_v44 = vadd.f32 %v2971_v43, %v2970_v21  ;;  %v3011_v45 = vpop.f32.mrb[57].mxu1  ;;  %v2973_v46 = vpop.f32.mrb[58].mxu0 }
 0x16d   : > { %v3012_v48 = vadd.f32 %v3011_v45, %v3010_v42  ;;  %v3013_v36 = vpop.f32.mrb[58].mxu1  ;;  %v2974_v51 = vpop.f32.mrb[59].mxu0 }
 0x16e   : > { %v2172_v38 = vadd.f32 %v2972_v44, %v2107_v33  ;;  %v2975_v54 = vadd.f32 %v2974_v51, %v2973_v46  ;;  %v3014_v35 = vpop.f32.mrb[59].mxu1  ;;  %v2359_v33 = vsub.s32 0, %v2358_v57 }
 0x16f   : > { %v3015_v24 = vadd.f32 %v3014_v35, %v3013_v36 }
 0x170   : > { %v2175_v56 = vadd.f32 %v2975_v54, %v3860_v55  ;;  %v2237_v58 = vadd.f32 %v3012_v48, %v2172_v38  ;;  %v3877_v13 = vrot.slane %v2356_v8, %v2359_v33 }
 0x172   : > { %v2976_v59 = vpop.f32.mrb[60].mxu0  ;;  %v2240_v60 = vadd.f32 %v3015_v24, %v2175_v56  ;;  %vm2361_vm2 = vcmp.eq.s32.totalorder %v3877_v13, 1 }
 0x173   : > { %v3016_v61 = vpop.f32.mrb[60].mxu1  ;;  %v2977_v62 = vpop.f32.mrb[61].mxu0 }
 0x174   : > { %v2978_v0 = vadd.f32 %v2977_v62, %v2976_v59  ;;  %v3017_v1 = vpop.f32.mrb[61].mxu1  ;;  %v2979_v3 = vpop.f32.mrb[62].mxu0 }
 0x175   : > { %v3018_v49 = vadd.f32 %v3017_v1, %v3016_v61  ;;  %v3019_v4 = vpop.f32.mrb[62].mxu1  ;;  %v2980_v6 = vpop.f32.mrb[63].mxu0 }
 0x176   : > { %v2180_v9 = vadd.f32 %v2978_v0, %v3862_v52  ;;  %v2981_v10 = vadd.f32 %v2980_v6, %v2979_v3  ;;  %v3020_v55 = vpop.f32.mrb[63].mxu1  ;;  %v2682_v52 = vld [vmem:[%s3922_s3] ss:$0 sm:$0xff] }
 0x177   : > { %v3021_v11 = vadd.f32 %v3020_v55, %v3019_v4 }
 0x178   : > { %v2183_v12 = vadd.f32 %v2981_v10, %v3865_v53  ;;  %v2245_v14 = vadd.f32 %v3018_v49, %v2180_v9 }
 0x17a   : > { %v3049_v16 = vpop.f32.mrb[64].mxu0  ;;  %v2248_v50 = vadd.f32 %v3021_v11, %v2183_v12 }
 0x17b   : > { %v2294_v17 = vadd.f32 %v3049_v16, %v2229_v18  ;;  %v3053_v20 = vpop.f32.mrb[64].mxu1  ;;  %v2285_v2 = vpop.f32.mrb[65].mxu0 }
 0x17c   : > { %v2310_v25 = vadd.f32 %v3053_v20, %v2245_v14  ;;  %v2286_v53 = vadd.f32 %v2285_v2, %v3867_v23  ;;  %v2301_v26 = vpop.f32.mrb[65].mxu1  ;;  %v3050_v27 = vpop.f32.mrb[66].mxu0 }
 0x17d   : > { %v2325_v28 = vmul.f32 %v2681_v63, %v2294_v17  ;;  %v2302_v29 = vadd.f32 %v2301_v26, %v2237_v58  ;;  %v2297_v30 = vadd.f32 %v3050_v27, %v2232_v41  ;;  %v3054_v22 = vpop.f32.mrb[66].mxu1  ;;  %v2288_v31 = vpop.f32.mrb[67].mxu0 }
 0x17e   : > { %v2329_v32 = vmul.f32 %v2681_v63, %v2310_v25  ;;  %v2323_v34 = vmul.f32 %v2681_v63, %v2286_v53  ;;  %v2313_v15 = vadd.f32 %v3054_v22, %v2248_v50  ;;  %v2289_v19 = vadd.f32 %v2288_v31, %v3869_v5  ;;  %v2304_v37 = vpop.f32.mrb[67].mxu1 }
 0x17f   : > { %v2340_v40 = vadd.f32 %v2682_v52, %v2325_v28  ;;  %v2327_v18 = vmul.f32 %v2681_v63, %v2302_v29  ;;  %v2326_v21 = vmul.f32 %v2681_v63, %v2297_v30  ;;  %v2305_v42 = vadd.f32 %v2304_v37, %v2240_v60 }
 0x180   : > { %v2344_v23 = vadd.f32 %v2682_v52, %v2329_v32  ;;  %v2338_v43 = vadd.f32 %v2682_v52, %v2323_v34  ;;  %v2330_v44 = vmul.f32 %v2681_v63, %v2313_v15  ;;  %v2324_v45 = vmul.f32 %v2681_v63, %v2289_v19 }
 0x181   : > { %v2350_v46 = vmax.f32 %v2340_v40, 0.0  ;;  %v2342_v47 = vadd.f32 %v2682_v52, %v2327_v18  ;;  %v2341_v41 = vadd.f32 %v2682_v52, %v2326_v21  ;;  %v2328_v48 = vmul.f32 %v2681_v63, %v2305_v42 }
 0x182   : > { %v2354_v36 = vmax.f32 %v2344_v23, 0.0  ;;  %v2348_v51 = vmax.f32 %v2338_v43, 0.0  ;;  %v2345_v38 = vadd.f32 %v2682_v52, %v2330_v44  ;;  %v2339_v54 = vadd.f32 %v2682_v52, %v2324_v45 }
 0x183   : > { %v2364_v5 = vsel %vm2361_vm2, %v2350_v46, %v2340_v40  ;;  %v2352_v35 = vmax.f32 %v2342_v47, 0.0  ;;  %v2351_v24 = vmax.f32 %v2341_v41, 0.0  ;;  %v2343_v39 = vadd.f32 %v2682_v52, %v2328_v48 }
 0x184   : > { %v2696_v56 = vpack.c.bf16 %v2364_v5, %v2364_v5  ;;  %v2368_v57 = vsel %vm2361_vm2, %v2354_v36, %v2344_v23  ;;  %v2362_v58 = vsel %vm2361_vm2, %v2348_v51, %v2338_v43  ;;  %v2355_v59 = vmax.f32 %v2345_v38, 0.0 }
 0x185   : > { %v2700_v60 = vpack.c.bf16 %v2368_v57, %v2368_v57  ;;  %v2694_v61 = vpack.c.bf16 %v2362_v58, %v2362_v58  ;;  %v2366_v62 = vsel %vm2361_vm2, %v2352_v35, %v2342_v47  ;;  %v2365_v0 = vsel %vm2361_vm2, %v2351_v24, %v2341_v41 }
 0x186   : > { %2405 = vst.msk [vmem:[%s224_s10 + $0x8] sm:$0xf] %vm2402_vm3, %v2696_v56  ;;  %v2698_v1 = vpack.c.bf16 %v2366_v62, %v2366_v62  ;;  %v2697_v3 = vpack.c.bf16 %v2365_v0, %v2365_v0  ;;  %v2369_v33 = vsel %vm2361_vm2, %v2355_v59, %v2345_v38  ;;  %v2349_v49 = vmax.f32 %v2339_v54, 0.0 }
 0x187   : > { %2409 = vst.msk [vmem:[%s224_s10 + $0x18] sm:$0xf] %vm2402_vm3, %v2700_v60  ;;  %2403 = vst.msk [vmem:[%s224_s10] sm:$0xf] %vm2402_vm3, %v2694_v61  ;;  %v2701_v4 = vpack.c.bf16 %v2369_v33, %v2369_v33  ;;  %v2353_v6 = vmax.f32 %v2343_v39, 0.0 }
 0x188   : > { %2407 = vst.msk [vmem:[%s224_s10 + $0x10] sm:$0xf] %vm2402_vm3, %v2698_v1  ;;  %2406 = vst.msk [vmem:[%s224_s10 + $0xc] sm:$0xf] %vm2402_vm3, %v2697_v3  ;;  %v2363_v7 = vsel %vm2361_vm2, %v2349_v49, %v2339_v54 }
 0x189   : > { %2410 = vst.msk [vmem:[%s224_s10 + $0x1c] sm:$0xf] %vm2402_vm3, %v2701_v4  ;;  %v2695_v8 = vpack.c.bf16 %v2363_v7, %v2363_v7  ;;  %v2367_v9 = vsel %vm2361_vm2, %v2353_v6, %v2343_v39 }
 0x18a   : > { %v2699_v10 = vpack.c.bf16 %v2367_v9, %v2367_v9 }
 0x18b   : > { %2404 = vst.msk [vmem:[%s224_s10 + $0x4] sm:$0xf] %vm2402_vm3, %v2695_v8 }
 0x18c   : > { %2408 = vst.msk [vmem:[%s224_s10 + $0x14] sm:$0xf] %vm2402_vm3, %v2699_v10 }
 0x18d PF: > { %s15_s18 = sadd.s32 1, %s3320_s18  }
 0x18e   : > { %p12_p4 = scmp.ge.s32.totalorder %s15_s18, 4  }
 0x190   :  { %14 = sbr.rel (!%p12_p4) target bundleno = 1 (0x1), region = 70 }

// kernel: _lambda_.13
= control target key start
LH: loop header
LB: loop body
LE: loop exit
PB: predicated region body
PF: predicated region fallthrough
CT: control target
= control target key end

     0   :  { %s1044_s18 = smov 0   ;;  %s1250_s0 = inlined_call_operand.vmem [shape: bf16[2,64,432], index: 0, kind: input, shape index: {}]   ;;  %s1251_s1 = inlined_call_operand.vmem [shape: bf16[432,16], index: 1, kind: input, shape index: {}]   ;;  %s1252_s2 = inlined_call_operand.vmem [shape: f32[1,16], index: 2, kind: input, shape index: {}]   ;;  %s1253_s3 = inlined_call_operand.vmem [shape: f32[1,16], index: 3, kind: input, shape index: {}]   ;;  %s1254_s4 = inlined_call_operand.vmem [shape: f32[1,16], index: 4, kind: input, shape index: {}]   ;;  %s1255_s5 = inlined_call_operand.vmem [shape: bf16[2,64,16], index: 5, kind: output, shape index: {}]  }
   0x1 LB: > { %s827_s19 = sadd.s32 4294967295, %s1011_s18   ;;  %p831_p0 = scmp.ge.s32.totalorder %s1011_s18, 1  ;;  %s1011_s18 = sphi %s1044_s18, %s15_s18  }
   0x2   : > { %p187_p1 = scmp.lt.s32.totalorder %s1011_s18, 3 }
   0x4   : > { %p188_p2 = pnand %p831_p0, %p187_p1 }
   0x5   : > { %v954_v0 = vld [vmem:[%s1251_s1 + $0x80] sm:$0xff] (!%p188_p2)   ;;  %v1013_v1 = vmov (!%p188_p2), 0   ;;  %v955_v2 = vld [vmem:[%s1251_s1 + $0x88] sm:$0xff] (!%p188_p2)   ;;  %v958_v5 = vld [vmem:[%s1251_s1 + $0x90] sm:$0xff] (!%p188_p2)   ;;  %p215_p3 = scmp.lt.s32.totalorder (!%p188_p2), %s827_s19, 1  ;;  %vm534_vm0 = vcmask (!%p188_p2), 392192   ;;  %v718_v44 = vlaneseq (!%p188_p2) }
   0x6   : > { %191 = sbr.rel (%p188_p2) target bundleno = 300 (0x12c), region = 40  ;;  %612 = vmatprep.subr.bf16.mxu1 (!%p188_p2), %v1013_v1  ;;  %v956_v3 = vld [vmem:[%s1251_s1 + $0x40] sm:$0xff] (!%p188_p2)   ;;  %v959_v6 = vld [vmem:[%s1251_s1 + $0x48] sm:$0xff] (!%p188_p2)   ;;  %v962_v8 = vld [vmem:[%s1251_s1 + $0x50] sm:$0xff] (!%p188_p2)   ;;  %vm763_vm3 = vcmask (!%p188_p2), 125952  }
   0x7   : > { %613 = vmatpush1.bf16.msra.mxu1 (!%p188_p2), %v954_v0  ;;  %v957_v4 = vld [vmem:[%s1251_s1] sm:$0xff] (!%p188_p2)   ;;  %905 = vmatprep.subr.bf16.mxu0 (!%p188_p2), %v956_v3  ;;  %v960_v7 = vld [vmem:[%s1251_s1 + $0x8] sm:$0xff] (!%p188_p2)   ;;  %v963_v9 = vld [vmem:[%s1251_s1 + $0x10] sm:$0xff] (!%p188_p2)   ;;  %v719_v51 = vshrl.u32 (!%p188_p2), %v718_v44, 7 }
   0x8   : > { %614 = vmatprep.subr.bf16.mxu1 (!%p188_p2), %v1013_v1  ;;  %906 = vmatpush3.bf16.msra.mxu0 (!%p188_p2), %v957_v4  ;;  %v961_v10 = vld [vmem:[%s1251_s1 + $0x98] sm:$0xff] (!%p188_p2)   ;;  %v964_v12 = vld [vmem:[%s1251_s1 + $0xa0] sm:$0xff] (!%p188_p2)   ;;  %v967_v15 = vld [vmem:[%s1251_s1 + $0xa8] sm:$0xff] (!%p188_p2)  }
   0x9   : > { %907 = vmatprep.subr.bf16.mxu0 (!%p188_p2), %v959_v6  ;;  %v965_v11 = vld [vmem:[%s1251_s1 + $0x58] sm:$0xff] (!%p188_p2)   ;;  %v968_v14 = vld [vmem:[%s1251_s1 + $0x60] sm:$0xff] (!%p188_p2)   ;;  %v971_v17 = vld [vmem:[%s1251_s1 + $0x68] sm:$0xff] (!%p188_p2)   ;;  %v720_v53 = vsub.s32 (!%p188_p2), 0, %v719_v51 }
   0xa   : > { %v966_v13 = vld [vmem:[%s1251_s1 + $0x18] sm:$0xff] (!%p188_p2)   ;;  %v969_v16 = vld [vmem:[%s1251_s1 + $0x20] sm:$0xff] (!%p188_p2)   ;;  %v970_v18 = vld [vmem:[%s1251_s1 + $0xb0] sm:$0xff] (!%p188_p2)  }
   0xb   : > { %615 = vmatpush1.bf16.msra.mxu1 (!%p188_p2), %v955_v2  ;;  %v972_v19 = vld [vmem:[%s1251_s1 + $0x28] sm:$0xff] (!%p188_p2)   ;;  %v974_v20 = vld [vmem:[%s1251_s1 + $0x70] sm:$0xff] (!%p188_p2)   ;;  %v973_v21 = vld [vmem:[%s1251_s1 + $0xb8] sm:$0xff] (!%p188_p2)  }
   0xc   : > { %616 = vmatprep.subr.bf16.mxu1 (!%p188_p2), %v1013_v1  ;;  %908 = vmatpush3.bf16.msra.mxu0 (!%p188_p2), %v960_v7  ;;  %v975_v22 = vld [vmem:[%s1251_s1 + $0x30] sm:$0xff] (!%p188_p2)   ;;  %v977_v23 = vld [vmem:[%s1251_s1 + $0x78] sm:$0xff] (!%p188_p2)   ;;  %v976_v27 = vld [vmem:[%s1251_s1 + $0xc0] sm:$0xff] (!%p188_p2)  }
   0xd   : > { %909 = vmatprep.subr.bf16.mxu0 %v962_v8  ;;  %s1257_s19 = smov (!%p215_p3, %s827_s19), 1  ;;  %v978_v25 = vld [vmem:[%s1251_s1 + $0x38] sm:$0xff]   ;;  %v982_v30 = vld [vmem:[%s1251_s1 + $0xc8] sm:$0xff]   ;;  %v983_v31 = vld [vmem:[%s1251_s1 + $0xd0] sm:$0xff]  }
   0xe   : > { %s895_s8 = sshll.u32 %s1257_s19, 7  ;;  %v707_v49 = vld [vmem:[%s1254_s4] sm:$0x1]  ;;  %s896_s13 = sshll.u32 %s1257_s19, 5 }
   0xf   : > { %617 = vmatpush1.bf16.msra.mxu1 %v958_v5  ;;  %s1129_s15 = scalar_lea.vmem %s1250_s0, %s895_s8  ;;  %vm708_vm1 = vcmp.gt.f32.partialorder %v707_v49, 0.0  ;;  %v1183_v57 = vld [vmem:[%s1252_s2] ss:$0 sm:$0xff]  ;;  %s1201_s16 = scalar_lea.vmem %s1255_s5, %s896_s13 }
  0x10   : > { %618 = vmatprep.subr.bf16.mxu1 %v1013_v1  ;;  %910 = vmatpush3.bf16.msra.mxu0 %v963_v9  ;;  %v981_v24 = vld [vmem:[%s1129_s15 + $0x4] ss:$16 sps:$4 sm:$0xff]   ;;  %v986_v26 = vld [vmem:[%s1129_s15 + $0xc] ss:$16 sps:$4 sm:$0xff]   ;;  %v979_v28 = vld [vmem:[%s1129_s15] ss:$16 sps:$4 sm:$0xff]  }
  0x11   : > { %911 = vmatprep.subr.bf16.mxu0 %v965_v11  ;;  %579 = vmatprep.mubr.bf16.mxu0 %v981_v24  ;;  %v987_v29 = vld [vmem:[%s1129_s15 + $0x24] ss:$16 sps:$4 sm:$0xff]   ;;  %v989_v32 = vld [vmem:[%s1129_s15 + $0x20] ss:$16 sps:$4 sm:$0xff]   ;;  %v984_v33 = vld [vmem:[%s1129_s15 + $0x8] ss:$16 sps:$4 sm:$0xff]  }
  0x12   : > { %879 = vmatprep.mubr.msk.bf16.mxu1 %vm534_vm0, %v986_v26  ;;  %v993_v34 = vld [vmem:[%s1129_s15 + $0x44] ss:$16 sps:$4 sm:$0xff]   ;;  %v990_v35 = vld [vmem:[%s1129_s15 + $0x2c] ss:$16 sps:$4 sm:$0xff]   ;;  %v995_v36 = vld [vmem:[%s1129_s15 + $0x40] ss:$16 sps:$4 sm:$0xff]  }
  0x13   : > { %619 = vmatpush1.bf16.msra.mxu1 %v961_v10  ;;  %v992_v37 = vld [vmem:[%s1129_s15 + $0x28] ss:$16 sps:$4 sm:$0xff]   ;;  %v999_v38 = vld [vmem:[%s1129_s15 + $0x64] ss:$16 sps:$4 sm:$0xff]   ;;  %v996_v39 = vld [vmem:[%s1129_s15 + $0x4c] ss:$16 sps:$4 sm:$0xff]  }
  0x14   : > { %620 = vmatprep.subr.bf16.mxu1 %v1013_v1  ;;  %912 = vmatpush3.bf16.msra.mxu0 %v966_v13  ;;  %v1001_v40 = vld [vmem:[%s1129_s15 + $0x60] ss:$16 sps:$4 sm:$0xff]   ;;  %v998_v41 = vld [vmem:[%s1129_s15 + $0x48] ss:$16 sps:$4 sm:$0xff]   ;;  %v1002_v42 = vld [vmem:[%s1129_s15 + $0x6c] ss:$16 sps:$4 sm:$0xff]  }
  0x15   : > { %913 = vmatprep.subr.bf16.mxu0 %v968_v14  ;;  %v1004_v43 = vld [vmem:[%s1129_s15 + $0x68] ss:$16 sps:$4 sm:$0xff]   ;;  %v717_v54 = vsel %vm708_vm1, 1, %v1013_v1  ;;  %v1188_v63 = vld [vmem:[%s1253_s3] ss:$0 sm:$0xff] }
  0x16   : > { %v1190_v0 = vrot.slane %v717_v54, %v720_v53 }
  0x17   : > { %621 = vmatpush1.bf16.msra.mxu1 %v964_v12 }
  0x18   : > { %622 = vmatprep.subr.bf16.mxu1 %v1013_v1  ;;  %914 = vmatpush3.bf16.msra.mxu0 %v969_v16  ;;  %vm722_vm2 = vcmp.eq.s32.totalorder %v1190_v0, 1 }
  0x19   : > { %915 = vmatprep.subr.bf16.mxu0 %v971_v17 }
  0x1b   : > { %623 = vmatpush1.bf16.msra.mxu1 %v967_v15 }
  0x1c   : > { %624 = vmatprep.subr.bf16.mxu1 %v1013_v1  ;;  %916 = vmatpush3.bf16.msra.mxu0 %v972_v19 }
  0x1d   : > { %917 = vmatprep.subr.bf16.mxu0 %v974_v20 }
  0x1f   : > { %625 = vmatpush1.bf16.msra.mxu1 %v970_v18 }
  0x20   : > { %626 = vmatprep.subr.bf16.mxu1 %v1013_v1  ;;  %918 = vmatpush3.bf16.msra.mxu0 %v975_v22 }
  0x21   : > { %919 = vmatprep.subr.bf16.mxu0 %v977_v23 }
  0x23   : > { %627 = vmatpush1.bf16.msra.mxu1 %v973_v21 }
  0x24   : > { %628 = vmatprep.subr.bf16.mxu1 %v1013_v1  ;;  %920 = vmatpush3.bf16.msra.mxu0 %v978_v25 }
  0x27   : > { %629 = vmatpush1.bf16.msra.mxu1 %v976_v27  ;;  %580 = vmatmul.mubr.bf16.vlgmr.msra.gmra.mrb[0].mxu0 %v979_v28 }
  0x28   : > { %630 = vmatprep.subr.bf16.mxu1 %v1013_v1  ;;  %587 = vmatprep.mubr.bf16.mxu0 %v987_v29 }
  0x2b   : > { %631 = vmatpush1.bf16.msra.mxu1 %v982_v30 }
  0x2c   : > { %632 = vmatprep.subr.bf16.mxu1 %v1013_v1 }
  0x2f   : > { %633 = vmatpush1.bf16.msra.mxu1 %v983_v31  ;;  %588 = vmatmul.mubr.bf16.gmra.mrb[4].mxu0 %v989_v32 }
  0x30   : > { %595 = vmatprep.mubr.bf16.mxu0 %v993_v34 }
  0x32   : > { %645 = vmatmul.mubr.bf16.vlgmr.msra.gmra.mrb[0].mxu1 %v984_v33 }
  0x33   : > { %880 = vmatprep.mubr.msk.bf16.mxu1 %vm534_vm0, %v990_v35 }
  0x37   : > { %596 = vmatmul.mubr.bf16.gmra.mrb[8].mxu0 %v995_v36 }
  0x38   : > { %603 = vmatprep.mubr.bf16.mxu0 %v999_v38 }
  0x3a   : > { %653 = vmatmul.mubr.bf16.gmra.mrb[4].mxu1 %v992_v37 }
  0x3b   : > { %881 = vmatprep.mubr.msk.bf16.mxu1 %vm534_vm0, %v996_v39 }
  0x3f   : > { %604 = vmatmul.mubr.bf16.gmra.mrb[12].mxu0 %v1001_v40 }
  0x42   : > { %661 = vmatmul.mubr.bf16.gmra.mrb[8].mxu1 %v998_v41 }
  0x43   : > { %882 = vmatprep.mubr.msk.bf16.mxu1 %vm534_vm0, %v1002_v42 }
  0x4a   : > { %669 = vmatmul.mubr.bf16.gmra.mrb[12].mxu1 %v1004_v43 }
  0xfa   : > { %v921_v45 = vpop.f32.mrb[0].mxu0 }
  0xfb   : > { %v922_v46 = vpop.f32.mrb[1].mxu0 }
  0xfc   : > { %v923_v47 = vadd.f32 %v922_v46, %v921_v45  ;;  %v924_v48 = vpop.f32.mrb[2].mxu0 }
  0xfd   : > { %v925_v50 = vpop.f32.mrb[3].mxu0 }
  0xfe   : > { %v926_v52 = vadd.f32 %v925_v50, %v924_v48 }
 0x102   : > { %v927_v55 = vpop.f32.mrb[4].mxu0 }
 0x103   : > { %v928_v58 = vpop.f32.mrb[5].mxu0 }
 0x104   : > { %v929_v61 = vadd.f32 %v928_v58, %v927_v55  ;;  %v930_v62 = vpop.f32.mrb[6].mxu0 }
 0x105   : > { %v646_v56 = vpop.f32.mrb[0].mxu1  ;;  %v931_v2 = vpop.f32.mrb[7].mxu0 }
 0x106   : > { %v647_v59 = vadd.f32 %v923_v47, %v646_v56  ;;  %v648_v60 = vpop.f32.mrb[1].mxu1  ;;  %v932_v6 = vadd.f32 %v931_v2, %v930_v62 }
 0x107   : > { %v649_v1 = vpop.f32.mrb[2].mxu1 }
 0x108   : > { %v684_v3 = vmul.f32 %v1183_v57, %v647_v59  ;;  %v650_v4 = vadd.f32 %v926_v52, %v649_v1  ;;  %v651_v5 = vpop.f32.mrb[3].mxu1 }
 0x10a   : > { %v699_v7 = vadd.f32 %v1188_v63, %v684_v3  ;;  %v685_v8 = vmul.f32 %v1183_v57, %v650_v4  ;;  %v933_v11 = vpop.f32.mrb[8].mxu0 }
 0x10b   : > { %v934_v13 = vpop.f32.mrb[9].mxu0 }
 0x10c   : > { %v709_v9 = vmax.f32 %v699_v7, 0.0  ;;  %v700_v10 = vadd.f32 %v1188_v63, %v685_v8  ;;  %v935_v18 = vadd.f32 %v934_v13, %v933_v11  ;;  %v936_v19 = vpop.f32.mrb[10].mxu0 }
 0x10d   : > { %v654_v12 = vpop.f32.mrb[4].mxu1  ;;  %v937_v22 = vpop.f32.mrb[11].mxu0 }
 0x10e   : > { %v723_v14 = vsel %vm722_vm2, %v709_v9, %v699_v7  ;;  %v710_v15 = vmax.f32 %v700_v10, 0.0  ;;  %v655_v16 = vadd.f32 %v929_v61, %v654_v12  ;;  %v656_v17 = vpop.f32.mrb[5].mxu1  ;;  %v938_v27 = vadd.f32 %v937_v22, %v936_v19 }
 0x10f   : > { %v897_v20 = vpack.c.bf16 %v723_v14, %v723_v14  ;;  %v657_v21 = vpop.f32.mrb[6].mxu1 }
 0x110   : > { %v724_v23 = vsel %vm722_vm2, %v710_v15, %v700_v10  ;;  %v686_v24 = vmul.f32 %v1183_v57, %v655_v16  ;;  %v658_v25 = vadd.f32 %v932_v6, %v657_v21  ;;  %v659_v26 = vpop.f32.mrb[7].mxu1 }
 0x111   : > { %764 = vst.msk [vmem:[%s1201_s16] sm:$0xf] %vm763_vm3, %v897_v20  ;;  %v898_v28 = vpack.c.bf16 %v724_v23, %v724_v23 }
 0x112   : > { %v701_v29 = vadd.f32 %v1188_v63, %v686_v24  ;;  %v687_v30 = vmul.f32 %v1183_v57, %v658_v25  ;;  %v939_v33 = vpop.f32.mrb[12].mxu0 }
 0x113   : > { %765 = vst.msk [vmem:[%s1201_s16 + $0x4] sm:$0xf] %vm763_vm3, %v898_v28  ;;  %v940_v35 = vpop.f32.mrb[13].mxu0 }
 0x114   : > { %v711_v31 = vmax.f32 %v701_v29, 0.0  ;;  %v702_v32 = vadd.f32 %v1188_v63, %v687_v30  ;;  %v941_v40 = vadd.f32 %v940_v35, %v939_v33  ;;  %v942_v41 = vpop.f32.mrb[14].mxu0 }
 0x115   : > { %v662_v34 = vpop.f32.mrb[8].mxu1  ;;  %v943_v44 = vpop.f32.mrb[15].mxu0 }
 0x116   : > { %v725_v36 = vsel %vm722_vm2, %v711_v31, %v701_v29  ;;  %v712_v37 = vmax.f32 %v702_v32, 0.0  ;;  %v663_v38 = vadd.f32 %v935_v18, %v662_v34  ;;  %v664_v39 = vpop.f32.mrb[9].mxu1  ;;  %v944_v49 = vadd.f32 %v943_v44, %v942_v41 }
 0x117   : > { %v899_v42 = vpack.c.bf16 %v725_v36, %v725_v36  ;;  %v665_v43 = vpop.f32.mrb[10].mxu1 }
 0x118   : > { %v726_v45 = vsel %vm722_vm2, %v712_v37, %v702_v32  ;;  %v688_v46 = vmul.f32 %v1183_v57, %v663_v38  ;;  %v666_v47 = vadd.f32 %v938_v27, %v665_v43  ;;  %v667_v48 = vpop.f32.mrb[11].mxu1 }
 0x119   : > { %766 = vst.msk [vmem:[%s1201_s16 + $0x8] sm:$0xf] %vm763_vm3, %v899_v42  ;;  %v900_v50 = vpack.c.bf16 %v726_v45, %v726_v45 }
 0x11a   : > { %v703_v51 = vadd.f32 %v1188_v63, %v688_v46  ;;  %v689_v52 = vmul.f32 %v1183_v57, %v666_v47 }
 0x11b   : > { %767 = vst.msk [vmem:[%s1201_s16 + $0xc] sm:$0xf] %vm763_vm3, %v900_v50 }
 0x11c   : > { %v713_v53 = vmax.f32 %v703_v51, 0.0  ;;  %v704_v54 = vadd.f32 %v1188_v63, %v689_v52 }
 0x11d   : > { %v670_v55 = vpop.f32.mrb[12].mxu1 }
 0x11e   : > { %v727_v56 = vsel %vm722_vm2, %v713_v53, %v703_v51  ;;  %v714_v58 = vmax.f32 %v704_v54, 0.0  ;;  %v671_v59 = vadd.f32 %v941_v40, %v670_v55  ;;  %v672_v60 = vpop.f32.mrb[13].mxu1 }
 0x11f   : > { %v901_v61 = vpack.c.bf16 %v727_v56, %v727_v56  ;;  %v673_v62 = vpop.f32.mrb[14].mxu1 }
 0x120   : > { %v728_v1 = vsel %vm722_vm2, %v714_v58, %v704_v54  ;;  %v690_v2 = vmul.f32 %v1183_v57, %v671_v59  ;;  %v674_v3 = vadd.f32 %v944_v49, %v673_v62  ;;  %v675_v4 = vpop.f32.mrb[15].mxu1 }
 0x121   : > { %768 = vst.msk [vmem:[%s1201_s16 + $0x10] sm:$0xf] %vm763_vm3, %v901_v61  ;;  %v902_v5 = vpack.c.bf16 %v728_v1, %v728_v1 }
 0x122   : > { %v705_v6 = vadd.f32 %v1188_v63, %v690_v2  ;;  %v691_v7 = vmul.f32 %v1183_v57, %v674_v3 }
 0x123   : > { %769 = vst.msk [vmem:[%s1201_s16 + $0x14] sm:$0xf] %vm763_vm3, %v902_v5 }
 0x124   : > { %v715_v8 = vmax.f32 %v705_v6, 0.0  ;;  %v706_v9 = vadd.f32 %v1188_v63, %v691_v7 }
 0x126   : > { %v729_v10 = vsel %vm722_vm2, %v715_v8, %v705_v6  ;;  %v716_v11 = vmax.f32 %v706_v9, 0.0 }
 0x127   : > { %v903_v12 = vpack.c.bf16 %v729_v10, %v729_v10 }
 0x128   : > { %v730_v13 = vsel %vm722_vm2, %v716_v11, %v706_v9 }
 0x129   : > { %770 = vst.msk [vmem:[%s1201_s16 + $0x18] sm:$0xf] %vm763_vm3, %v903_v12  ;;  %v904_v14 = vpack.c.bf16 %v730_v13, %v730_v13 }
 0x12b   : > { %771 = vst.msk [vmem:[%s1201_s16 + $0x1c] sm:$0xf] %vm763_vm3, %v904_v14 }
 0x12c PF: > { %s15_s18 = sadd.s32 1, %s1011_s18  }
 0x12d   : > { %p12_p4 = scmp.ge.s32.totalorder %s15_s18, 4  }
 0x12f   :  { %14 = sbr.rel (!%p12_p4) target bundleno = 1 (0x1), region = 70 }

// kernel: _lambda_.14
= control target key start
LH: loop header
LB: loop body
LE: loop exit
PB: predicated region body
PF: predicated region fallthrough
CT: control target
= control target key end

     0   :  { %s8832_s18 = smov 0   ;;  %s10344_s0 = inlined_call_operand.vmem [shape: bf16[2,512,1728], index: 0, kind: input, shape index: {}]   ;;  %s10345_s1 = inlined_call_operand.vmem [shape: bf16[1728,64], index: 1, kind: input, shape index: {}]   ;;  %s10346_s2 = inlined_call_operand.vmem [shape: f32[1,64], index: 2, kind: input, shape index: {}]   ;;  %s10347_s3 = inlined_call_operand.vmem [shape: f32[1,64], index: 3, kind: input, shape index: {}]   ;;  %s10348_s4 = inlined_call_operand.vmem [shape: f32[1,64], index: 4, kind: input, shape index: {}]   ;;  %s10349_s5 = inlined_call_operand.vmem [shape: bf16[2,512,64], index: 5, kind: output, shape index: {}]  }
   0x1 LB: > { %s6520_s19 = sadd.s32 4294967295, %s8799_s18   ;;  %p6524_p0 = scmp.ge.s32.totalorder %s8799_s18, 1  ;;  %s8799_s18 = sphi %s8832_s18, %s15_s18  }
   0x2   : > { %p187_p1 = scmp.lt.s32.totalorder %s8799_s18, 3 }
   0x4   : > { %p188_p2 = pnand %p6524_p0, %p187_p1 }
   0x5   : > { %v7995_v0 = vld [vmem:[%s10345_s1] sm:$0xff] (!%p188_p2)   ;;  %v8801_v1 = vmov (!%p188_p2), 0   ;;  %v7997_v3 = vld [vmem:[%s10345_s1 + $0x8] sm:$0xff] (!%p188_p2)   ;;  %v7999_v5 = vld [vmem:[%s10345_s1 + $0x10] sm:$0xff] (!%p188_p2)   ;;  %p215_p3 = scmp.lt.s32.totalorder (!%p188_p2), %s6520_s19, 1  ;;  %vm3746_vm0 = vcmask (!%p188_p2), 523264  }
   0x6   : > { %191 = sbr.rel (%p188_p2) target bundleno = 1184 (0x4a0), region = 40  ;;  %3843 = vmatprep.subr.bf16.mxu1 (!%p188_p2), %v8801_v1  ;;  %4710 = vmatprep.subr.bf16.mxu0 (!%p188_p2), %v8801_v1  ;;  %v7996_v2 = vld [vmem:[%s10345_s1 + $0x180] sm:$0xff] (!%p188_p2)   ;;  %v7998_v4 = vld [vmem:[%s10345_s1 + $0x188] sm:$0xff] (!%p188_p2)   ;;  %v8000_v6 = vld [vmem:[%s10345_s1 + $0x190] sm:$0xff] (!%p188_p2)   ;;  %vm6400_vm3 = vcmask (!%p188_p2), 519168  }
   0x7   : > { %3844 = vmatpush1.bf16.msra.mxu1 (!%p188_p2), %v7995_v0  ;;  %4711 = vmatpush1.bf16.msra.mxu0 (!%p188_p2), %v7996_v2  ;;  %v8001_v7 = vld [vmem:[%s10345_s1 + $0x18] sm:$0xff] (!%p188_p2)   ;;  %v8003_v9 = vld [vmem:[%s10345_s1 + $0x20] sm:$0xff] (!%p188_p2)   ;;  %v8005_v11 = vld [vmem:[%s10345_s1 + $0x28] sm:$0xff] (!%p188_p2)  }
   0x8   : > { %3845 = vmatprep.subr.bf16.mxu1 (!%p188_p2), %v8801_v1  ;;  %4712 = vmatprep.subr.bf16.mxu0 (!%p188_p2), %v8801_v1  ;;  %v8002_v8 = vld [vmem:[%s10345_s1 + $0x198] sm:$0xff] (!%p188_p2)   ;;  %v8004_v10 = vld [vmem:[%s10345_s1 + $0x1a0] sm:$0xff] (!%p188_p2)   ;;  %v8006_v12 = vld [vmem:[%s10345_s1 + $0x1a8] sm:$0xff] (!%p188_p2)  }
   0x9   : > { %v8007_v13 = vld [vmem:[%s10345_s1 + $0x30] sm:$0xff] (!%p188_p2)   ;;  %v8009_v15 = vld [vmem:[%s10345_s1 + $0x38] sm:$0xff] (!%p188_p2)   ;;  %v8011_v17 = vld [vmem:[%s10345_s1 + $0x40] sm:$0xff] (!%p188_p2)  }
   0xa   : > { %v8008_v14 = vld [vmem:[%s10345_s1 + $0x1b0] sm:$0xff] (!%p188_p2)   ;;  %v8010_v16 = vld [vmem:[%s10345_s1 + $0x1b8] sm:$0xff] (!%p188_p2)   ;;  %v8012_v18 = vld [vmem:[%s10345_s1 + $0x1c0] sm:$0xff] (!%p188_p2)  }
   0xb   : > { %3846 = vmatpush1.bf16.msra.mxu1 (!%p188_p2), %v7997_v3  ;;  %4713 = vmatpush1.bf16.msra.mxu0 (!%p188_p2), %v7998_v4  ;;  %v8013_v20 = vld [vmem:[%s10345_s1 + $0x48] sm:$0xff] (!%p188_p2)   ;;  %v8015_v23 = vld [vmem:[%s10345_s1 + $0x50] sm:$0xff] (!%p188_p2)   ;;  %v8017_v25 = vld [vmem:[%s10345_s1 + $0x58] sm:$0xff] (!%p188_p2)  }
   0xc   : > { %3847 = vmatprep.subr.bf16.mxu1 (!%p188_p2), %v8801_v1  ;;  %4714 = vmatprep.subr.bf16.mxu0 (!%p188_p2), %v8801_v1  ;;  %v8014_v22 = vld [vmem:[%s10345_s1 + $0x1c8] sm:$0xff] (!%p188_p2)   ;;  %v8016_v24 = vld [vmem:[%s10345_s1 + $0x1d0] sm:$0xff] (!%p188_p2)   ;;  %v8018_v26 = vld [vmem:[%s10345_s1 + $0x1d8] sm:$0xff] (!%p188_p2)  }
   0xd   : > { %s10351_s19 = smov (!%p215_p3, %s6520_s19), 1  ;;  %v8019_v27 = vld [vmem:[%s10345_s1 + $0x60] sm:$0xff]   ;;  %v8021_v29 = vld [vmem:[%s10345_s1 + $0x68] sm:$0xff]   ;;  %v8023_v31 = vld [vmem:[%s10345_s1 + $0x70] sm:$0xff]  }
   0xe   : > { %s7985_s27 = smul.u32 3584, %s10351_s19  ;;  %v8020_v28 = vld [vmem:[%s10345_s1 + $0x1e0] sm:$0xff]   ;;  %v8022_v30 = vld [vmem:[%s10345_s1 + $0x1e8] sm:$0xff]   ;;  %v8024_v32 = vld [vmem:[%s10345_s1 + $0x1f0] sm:$0xff]   ;;  %s7184_s10 = sshll.u32 %s10351_s19, 8 }
   0xf   : > { %3848 = vmatpush1.bf16.msra.mxu1 %v7999_v5  ;;  %4715 = vmatpush1.bf16.msra.mxu0 %v8000_v6  ;;  %v8025_v33 = vld [vmem:[%s10345_s1 + $0x78] sm:$0xff]   ;;  %v8033_v37 = vld [vmem:[%s10345_s1 + $0x80] sm:$0xff]   ;;  %v8048_v41 = vld [vmem:[%s10345_s1 + $0x88] sm:$0xff]   ;;  %s9903_s13 = scalar_lea.vmem %s10349_s5, %s7184_s10 }
  0x10   : > { %3849 = vmatprep.subr.bf16.mxu1 %v8801_v1  ;;  %4716 = vmatprep.subr.bf16.mxu0 %v8801_v1  ;;  %s8917_s9 = scalar_lea.vmem %s10344_s0, %s7985_s27  ;;  %v8026_v34 = vld [vmem:[%s10345_s1 + $0x1f8] sm:$0xff]   ;;  %v8034_v38 = vld [vmem:[%s10345_s1 + $0x200] sm:$0xff]   ;;  %v8041_v43 = vld [vmem:[%s10345_s1 + $0x208] sm:$0xff]  }
  0x11   : > { %v8029_v19 = vld [vmem:[%s8917_s9 + $0x4] ss:$56 sps:$4 sm:$0xff]   ;;  %v8027_v35 = vld [vmem:[%s8917_s9] ss:$56 sps:$4 sm:$0xff]   ;;  %v8035_v39 = vld [vmem:[%s8917_s9 + $0x74] ss:$56 sps:$4 sm:$0xff]  }
  0x12   : > { %v8032_v21 = vld [vmem:[%s8917_s9 + $0x1c] ss:$56 sps:$4 sm:$0xff]   ;;  %3875 = vmatprep.mubr.bf16.mxu1 %v8029_v19  ;;  %v8030_v36 = vld [vmem:[%s8917_s9 + $0x18] ss:$56 sps:$4 sm:$0xff]   ;;  %v8037_v40 = vld [vmem:[%s8917_s9 + $0x8c] ss:$56 sps:$4 sm:$0xff]  }
  0x13   : > { %3850 = vmatpush1.bf16.msra.mxu1 %v8001_v7  ;;  %4717 = vmatpush1.bf16.msra.mxu0 %v8002_v8  ;;  %v8039_v42 = vld [vmem:[%s8917_s9 + $0x70] ss:$56 sps:$4 sm:$0xff]   ;;  %v8042_v45 = vld [vmem:[%s8917_s9 + $0xe4] ss:$56 sps:$4 sm:$0xff]   ;;  %v8046_v49 = vld [vmem:[%s8917_s9 + $0xe0] ss:$56 sps:$4 sm:$0xff]  }
  0x14   : > { %3851 = vmatprep.subr.bf16.mxu1 %v8801_v1  ;;  %4718 = vmatprep.subr.bf16.mxu0 %v8801_v1  ;;  %v8040_v44 = vld [vmem:[%s8917_s9 + $0x88] ss:$56 sps:$4 sm:$0xff]   ;;  %v8044_v46 = vld [vmem:[%s8917_s9 + $0xfc] ss:$56 sps:$4 sm:$0xff]   ;;  %v8047_v51 = vld [vmem:[%s8917_s9 + $0xf8] ss:$56 sps:$4 sm:$0xff]  }
  0x15   : > { %4742 = vmatprep.mubr.bf16.mxu0 %v8032_v21  ;;  %v8049_v47 = vld [vmem:[%s10345_s1 + $0x210] sm:$0xff]   ;;  %v8056_v50 = vld [vmem:[%s10345_s1 + $0x218] sm:$0xff]   ;;  %v8052_v54 = vld [vmem:[%s8917_s9 + $0x16c] ss:$56 sps:$4 sm:$0xff]  }
  0x16   : > { %v8063_v48 = vld [vmem:[%s10345_s1 + $0x90] sm:$0xff]   ;;  %v8078_v52 = vld [vmem:[%s10345_s1 + $0x98] sm:$0xff]   ;;  %v8064_v55 = vld [vmem:[%s10345_s1 + $0x220] sm:$0xff]  }
  0x17   : > { %3852 = vmatpush1.bf16.msra.mxu1 %v8003_v9  ;;  %4719 = vmatpush1.bf16.msra.mxu0 %v8004_v10  ;;  %v8050_v53 = vld [vmem:[%s8917_s9 + $0x154] ss:$56 sps:$4 sm:$0xff]   ;;  %v8093_v56 = vld [vmem:[%s10345_s1 + $0xa0] sm:$0xff]   ;;  %v8054_v57 = vld [vmem:[%s8917_s9 + $0x150] ss:$56 sps:$4 sm:$0xff]  }
  0x18   : > { %3853 = vmatprep.subr.bf16.mxu1 %v8801_v1  ;;  %4720 = vmatprep.subr.bf16.mxu0 %v8801_v1  ;;  %v8071_v58 = vld [vmem:[%s10345_s1 + $0x228] sm:$0xff]   ;;  %v8057_v61 = vld [vmem:[%s8917_s9 + $0x1c4] ss:$56 sps:$4 sm:$0xff]   ;;  %v8079_v63 = vld [vmem:[%s10345_s1 + $0x230] sm:$0xff]  }
  0x19   : > { %v8055_v59 = vld [vmem:[%s8917_s9 + $0x168] ss:$56 sps:$4 sm:$0xff]   ;;  %v8059_v62 = vld [vmem:[%s8917_s9 + $0x1dc] ss:$56 sps:$4 sm:$0xff]   ;;  %v8062_v4 = vld [vmem:[%s8917_s9 + $0x1d8] ss:$56 sps:$4 sm:$0xff]  }
  0x1a   : > { %v8108_v60 = vld [vmem:[%s10345_s1 + $0xa8] sm:$0xff]   ;;  %v8123_v0 = vld [vmem:[%s10345_s1 + $0xb0] sm:$0xff]   ;;  %v8086_v2 = vld [vmem:[%s10345_s1 + $0x238] sm:$0xff]  }
  0x1b   : > { %3854 = vmatpush1.bf16.msra.mxu1 %v8005_v11  ;;  %4721 = vmatpush1.bf16.msra.mxu0 %v8006_v12  ;;  %v8061_v3 = vld [vmem:[%s8917_s9 + $0x1c0] ss:$56 sps:$4 sm:$0xff]   ;;  %v8065_v5 = vld [vmem:[%s8917_s9 + $0x234] ss:$56 sps:$4 sm:$0xff]   ;;  %v8069_v9 = vld [vmem:[%s8917_s9 + $0x230] ss:$56 sps:$4 sm:$0xff]  }
  0x1c   : > { %3855 = vmatprep.subr.bf16.mxu1 %v8801_v1  ;;  %4722 = vmatprep.subr.bf16.mxu0 %v8801_v1  ;;  %v8138_v6 = vld [vmem:[%s10345_s1 + $0xb8] sm:$0xff]   ;;  %v8067_v7 = vld [vmem:[%s8917_s9 + $0x24c] ss:$56 sps:$4 sm:$0xff]   ;;  %v8070_v11 = vld [vmem:[%s8917_s9 + $0x248] ss:$56 sps:$4 sm:$0xff]  }
  0x1d   : > { %v8094_v8 = vld [vmem:[%s10345_s1 + $0x240] sm:$0xff]   ;;  %v8101_v10 = vld [vmem:[%s10345_s1 + $0x248] sm:$0xff]  }
  0x1e   : > { %v8072_v12 = vld [vmem:[%s8917_s9 + $0x2a4] ss:$56 sps:$4 sm:$0xff]   ;;  %v8080_v19 = vld [vmem:[%s8917_s9 + $0x314] ss:$56 sps:$4 sm:$0xff]  }
  0x1f   : > { %3856 = vmatpush1.bf16.msra.mxu1 %v8007_v13  ;;  %4723 = vmatpush1.bf16.msra.mxu0 %v8008_v14  ;;  %v8074_v13 = vld [vmem:[%s8917_s9 + $0x2bc] ss:$56 sps:$4 sm:$0xff]   ;;  %v8153_v14 = vld [vmem:[%s10345_s1 + $0xc0] sm:$0xff]  }
  0x20   : > { %3857 = vmatprep.subr.bf16.mxu1 %v8801_v1  ;;  %4724 = vmatprep.subr.bf16.mxu0 %v8801_v1  ;;  %v8082_v21 = vld [vmem:[%s8917_s9 + $0x32c] ss:$56 sps:$4 sm:$0xff]  }
  0x23   : > { %3858 = vmatpush1.bf16.msra.mxu1 %v8009_v15  ;;  %4725 = vmatpush1.bf16.msra.mxu0 %v8010_v16  ;;  %v8109_v15 = vld [vmem:[%s10345_s1 + $0x250] sm:$0xff]   ;;  %v8076_v16 = vld [vmem:[%s8917_s9 + $0x2a0] ss:$56 sps:$4 sm:$0xff]  }
  0x24   : > { %3859 = vmatprep.subr.bf16.mxu1 %v8801_v1  ;;  %4726 = vmatprep.subr.bf16.mxu0 %v8801_v1 }
  0x27   : > { %3860 = vmatpush1.bf16.msra.mxu1 %v8011_v17  ;;  %4727 = vmatpush1.bf16.msra.mxu0 %v8012_v18  ;;  %v8116_v17 = vld [vmem:[%s10345_s1 + $0x258] sm:$0xff]  }
  0x28   : > { %3861 = vmatprep.subr.bf16.mxu1 %v8801_v1  ;;  %4728 = vmatprep.subr.bf16.mxu0 %v8801_v1  ;;  %v8077_v18 = vld [vmem:[%s8917_s9 + $0x2b8] ss:$56 sps:$4 sm:$0xff]  }
  0x2b   : > { %3862 = vmatpush1.bf16.msra.mxu1 %v8013_v20  ;;  %4729 = vmatpush1.bf16.msra.mxu0 %v8014_v22  ;;  %v8167_v20 = vld [vmem:[%s10345_s1 + $0xc8] sm:$0xff]   ;;  %v8124_v22 = vld [vmem:[%s10345_s1 + $0x260] sm:$0xff]  }
  0x2c   : > { %3863 = vmatprep.subr.bf16.mxu1 %v8801_v1  ;;  %4730 = vmatprep.subr.bf16.mxu0 %v8801_v1 }
  0x2f   : > { %3864 = vmatpush1.bf16.msra.mxu1 %v8015_v23  ;;  %4731 = vmatpush1.bf16.msra.mxu0 %v8016_v24  ;;  %v8084_v23 = vld [vmem:[%s8917_s9 + $0x310] ss:$56 sps:$4 sm:$0xff]  }
  0x30   : > { %3865 = vmatprep.subr.bf16.mxu1 %v8801_v1  ;;  %4732 = vmatprep.subr.bf16.mxu0 %v8801_v1  ;;  %v8131_v24 = vld [vmem:[%s10345_s1 + $0x268] sm:$0xff]  }
  0x33   : > { %3866 = vmatpush1.bf16.msra.mxu1 %v8017_v25  ;;  %4733 = vmatpush1.bf16.msra.mxu0 %v8018_v26  ;;  %v8085_v25 = vld [vmem:[%s8917_s9 + $0x328] ss:$56 sps:$4 sm:$0xff]   ;;  %v8181_v26 = vld [vmem:[%s10345_s1 + $0xd0] sm:$0xff]  }
  0x34   : > { %3867 = vmatprep.subr.bf16.mxu1 %v8801_v1  ;;  %4734 = vmatprep.subr.bf16.mxu0 %v8801_v1 }
  0x37   : > { %3868 = vmatpush1.bf16.msra.mxu1 %v8019_v27  ;;  %4735 = vmatpush1.bf16.msra.mxu0 %v8020_v28  ;;  %v8087_v27 = vld [vmem:[%s8917_s9 + $0x384] ss:$56 sps:$4 sm:$0xff]  }
  0x38   : > { %3869 = vmatprep.subr.bf16.mxu1 %v8801_v1  ;;  %4736 = vmatprep.subr.bf16.mxu0 %v8801_v1  ;;  %v8089_v28 = vld [vmem:[%s8917_s9 + $0x39c] ss:$56 sps:$4 sm:$0xff]  }
  0x3b   : > { %3870 = vmatpush1.bf16.msra.mxu1 %v8021_v29  ;;  %4737 = vmatpush1.bf16.msra.mxu0 %v8022_v30  ;;  %v8139_v29 = vld [vmem:[%s10345_s1 + $0x270] sm:$0xff]   ;;  %v8091_v30 = vld [vmem:[%s8917_s9 + $0x380] ss:$56 sps:$4 sm:$0xff]  }
  0x3c   : > { %3871 = vmatprep.subr.bf16.mxu1 %v8801_v1  ;;  %4738 = vmatprep.subr.bf16.mxu0 %v8801_v1 }
  0x3f   : > { %3872 = vmatpush1.bf16.msra.mxu1 %v8023_v31  ;;  %4739 = vmatpush1.bf16.msra.mxu0 %v8024_v32  ;;  %v8146_v31 = vld [vmem:[%s10345_s1 + $0x278] sm:$0xff]  }
  0x40   : > { %3873 = vmatprep.subr.bf16.mxu1 %v8801_v1  ;;  %4740 = vmatprep.subr.bf16.mxu0 %v8801_v1  ;;  %v8195_v32 = vld [vmem:[%s10345_s1 + $0xd8] sm:$0xff]  }
  0x43   : > { %3874 = vmatpush1.bf16.msra.mxu1 %v8025_v33  ;;  %4741 = vmatpush1.bf16.msra.mxu0 %v8026_v34  ;;  %v8092_v33 = vld [vmem:[%s8917_s9 + $0x398] ss:$56 sps:$4 sm:$0xff]   ;;  %v8095_v34 = vld [vmem:[%s8917_s9 + $0x3f4] ss:$56 sps:$4 sm:$0xff]  }
  0x44   : > { %4132 = vmatprep.subr.bf16.mxu1 %v8801_v1  ;;  %4999 = vmatprep.subr.bf16.mxu0 %v8801_v1 }
  0x46   : > { %3876 = vmatmul.mubr.bf16.vlgmr.msra.gmra.mrb[0].mxu1 %v8027_v35  ;;  %4743 = vmatmul.mubr.bf16.vlgmr.msra.gmra.mrb[0].mxu0 %v8030_v36  ;;  %v8097_v35 = vld [vmem:[%s8917_s9 + $0x40c] ss:$56 sps:$4 sm:$0xff]  }
  0x47   : > { %4133 = vmatpush1.bf16.msra.mxu1 %v8033_v37  ;;  %5000 = vmatpush1.bf16.msra.mxu0 %v8034_v38  ;;  %v8209_v36 = vld [vmem:[%s10345_s1 + $0xe0] sm:$0xff]   ;;  %v8099_v37 = vld [vmem:[%s8917_s9 + $0x3f0] ss:$56 sps:$4 sm:$0xff]  }
  0x48   : > { %3883 = vmatprep.mubr.bf16.mxu1 %v8035_v39  ;;  %4750 = vmatprep.mubr.bf16.mxu0 %v8037_v40  ;;  %v8100_v38 = vld [vmem:[%s8917_s9 + $0x408] ss:$56 sps:$4 sm:$0xff]   ;;  %v8102_v39 = vld [vmem:[%s8917_s9 + $0x464] ss:$56 sps:$4 sm:$0xff]  }
  0x49   : > { %5001 = vmatprep.subr.bf16.mxu0 %v8801_v1  ;;  %4134 = vmatprep.subr.bf16.mxu1 %v8801_v1  ;;  %v8104_v40 = vld [vmem:[%s8917_s9 + $0x47c] ss:$56 sps:$4 sm:$0xff]  }
  0x4b   : > { %4135 = vmatpush1.bf16.msra.mxu1 %v8048_v41  ;;  %5002 = vmatpush1.bf16.msra.mxu0 %v8041_v43  ;;  %v8106_v41 = vld [vmem:[%s8917_s9 + $0x460] ss:$56 sps:$4 sm:$0xff]   ;;  %v8110_v43 = vld [vmem:[%s8917_s9 + $0x4d4] ss:$56 sps:$4 sm:$0xff]  }
  0x4c   : > { %4136 = vmatprep.subr.bf16.mxu1 %v8801_v1  ;;  %5003 = vmatprep.subr.bf16.mxu0 %v8801_v1 }
  0x4e   : > { %3884 = vmatmul.mubr.bf16.gmra.mrb[4].mxu1 %v8039_v42  ;;  %4751 = vmatmul.mubr.bf16.gmra.mrb[4].mxu0 %v8040_v44  ;;  %v8107_v42 = vld [vmem:[%s8917_s9 + $0x478] ss:$56 sps:$4 sm:$0xff]   ;;  %v8112_v44 = vld [vmem:[%s8917_s9 + $0x4ec] ss:$56 sps:$4 sm:$0xff]  }
  0x4f   : > { %3891 = vmatprep.mubr.bf16.mxu1 %v8042_v45  ;;  %4758 = vmatprep.mubr.bf16.mxu0 %v8044_v46  ;;  %v8223_v45 = vld [vmem:[%s10345_s1 + $0xe8] sm:$0xff]  }
  0x50   : > { %5004 = vmatpush1.bf16.msra.mxu0 %v8049_v47  ;;  %4137 = vmatpush1.bf16.msra.mxu1 %v8063_v48  ;;  %v8114_v46 = vld [vmem:[%s8917_s9 + $0x4d0] ss:$56 sps:$4 sm:$0xff]   ;;  %v8117_v48 = vld [vmem:[%s8917_s9 + $0x544] ss:$56 sps:$4 sm:$0xff]  }
  0x51   : > { %5005 = vmatprep.subr.bf16.mxu0 %v8801_v1  ;;  %4138 = vmatprep.subr.bf16.mxu1 %v8801_v1  ;;  %v8115_v47 = vld [vmem:[%s8917_s9 + $0x4e8] ss:$56 sps:$4 sm:$0xff]  }
  0x54   : > { %5006 = vmatpush1.bf16.msra.mxu0 %v8056_v50  ;;  %4139 = vmatpush1.bf16.msra.mxu1 %v8078_v52  ;;  %v8121_v50 = vld [vmem:[%s8917_s9 + $0x540] ss:$56 sps:$4 sm:$0xff]   ;;  %v8125_v52 = vld [vmem:[%s8917_s9 + $0x5b4] ss:$56 sps:$4 sm:$0xff]  }
  0x55   : > { %5007 = vmatprep.subr.bf16.mxu0 %v8801_v1  ;;  %4140 = vmatprep.subr.bf16.mxu1 %v8801_v1 }
  0x56   : > { %3892 = vmatmul.mubr.bf16.gmra.mrb[8].mxu1 %v8046_v49  ;;  %4759 = vmatmul.mubr.bf16.gmra.mrb[8].mxu0 %v8047_v51  ;;  %v8119_v49 = vld [vmem:[%s8917_s9 + $0x55c] ss:$56 sps:$4 sm:$0xff]   ;;  %v8122_v51 = vld [vmem:[%s8917_s9 + $0x558] ss:$56 sps:$4 sm:$0xff]  }
  0x57   : > { %3899 = vmatprep.mubr.bf16.mxu1 %v8050_v53  ;;  %4766 = vmatprep.mubr.bf16.mxu0 %v8052_v54  ;;  %v8127_v53 = vld [vmem:[%s8917_s9 + $0x5cc] ss:$56 sps:$4 sm:$0xff]   ;;  %v8237_v54 = vld [vmem:[%s10345_s1 + $0xf0] sm:$0xff]  }
  0x58   : > { %5008 = vmatpush1.bf16.msra.mxu0 %v8064_v55  ;;  %4141 = vmatpush1.bf16.msra.mxu1 %v8093_v56  ;;  %v8129_v55 = vld [vmem:[%s8917_s9 + $0x5b0] ss:$56 sps:$4 sm:$0xff]  }
  0x59   : > { %5009 = vmatprep.subr.bf16.mxu0 %v8801_v1  ;;  %4142 = vmatprep.subr.bf16.mxu1 %v8801_v1  ;;  %v8130_v56 = vld [vmem:[%s8917_s9 + $0x5c8] ss:$56 sps:$4 sm:$0xff]  }
  0x5c   : > { %5010 = vmatpush1.bf16.msra.mxu0 %v8071_v58  ;;  %4143 = vmatpush1.bf16.msra.mxu1 %v8108_v60  ;;  %v8134_v58 = vld [vmem:[%s8917_s9 + $0x63c] ss:$56 sps:$4 sm:$0xff]   ;;  %v8137_v60 = vld [vmem:[%s8917_s9 + $0x638] ss:$56 sps:$4 sm:$0xff]  }
  0x5d   : > { %5011 = vmatprep.subr.bf16.mxu0 %v8801_v1  ;;  %4144 = vmatprep.subr.bf16.mxu1 %v8801_v1 }
  0x5e   : > { %3900 = vmatmul.mubr.bf16.gmra.mrb[12].mxu1 %v8054_v57  ;;  %4767 = vmatmul.mubr.bf16.gmra.mrb[12].mxu0 %v8055_v59  ;;  %v8132_v57 = vld [vmem:[%s8917_s9 + $0x624] ss:$56 sps:$4 sm:$0xff]   ;;  %v8136_v59 = vld [vmem:[%s8917_s9 + $0x620] ss:$56 sps:$4 sm:$0xff]  }
  0x5f   : > { %3907 = vmatprep.mubr.bf16.mxu1 %v8057_v61  ;;  %4774 = vmatprep.mubr.bf16.mxu0 %v8059_v62  ;;  %v8140_v61 = vld [vmem:[%s8917_s9 + $0x694] ss:$56 sps:$4 sm:$0xff]  }
  0x60   : > { %5012 = vmatpush1.bf16.msra.mxu0 %v8079_v63  ;;  %4145 = vmatpush1.bf16.msra.mxu1 %v8123_v0  ;;  %v8142_v62 = vld [vmem:[%s8917_s9 + $0x6ac] ss:$56 sps:$4 sm:$0xff]   ;;  %v8251_v63 = vld [vmem:[%s10345_s1 + $0xf8] sm:$0xff]   ;;  %v8144_v0 = vld [vmem:[%s8917_s9 + $0x690] ss:$56 sps:$4 sm:$0xff]  }
  0x61   : > { %5013 = vmatprep.subr.bf16.mxu0 %v8801_v1  ;;  %4146 = vmatprep.subr.bf16.mxu1 %v8801_v1 }
  0x64   : > { %5014 = vmatpush1.bf16.msra.mxu0 %v8086_v2  ;;  %4147 = vmatpush1.bf16.msra.mxu1 %v8138_v6  ;;  %v8145_v2 = vld [vmem:[%s8917_s9 + $0x6a8] ss:$56 sps:$4 sm:$0xff]  }
  0x65   : > { %5015 = vmatprep.subr.bf16.mxu0 %v8801_v1  ;;  %4148 = vmatprep.subr.bf16.mxu1 %v8801_v1  ;;  %v8149_v6 = vld [vmem:[%s8917_s9 + $0x20] ss:$56 sps:$4 sm:$0xff]  }
  0x66   : > { %3908 = vmatmul.mubr.bf16.gmra.mrb[16].mxu1 %v8061_v3  ;;  %4775 = vmatmul.mubr.bf16.gmra.mrb[16].mxu0 %v8062_v4  ;;  %v8147_v3 = vld [vmem:[%s8917_s9 + $0x704] ss:$56 sps:$4 sm:$0xff]  }
  0x67   : > { %3915 = vmatprep.mubr.bf16.mxu1 %v8065_v5  ;;  %4782 = vmatprep.mubr.bf16.mxu0 %v8067_v7  ;;  %v8151_v4 = vld [vmem:[%s8917_s9 + $0x24] ss:$56 sps:$4 sm:$0xff]   ;;  %v8152_v5 = vld [vmem:[%s8917_s9 + $0x700] ss:$56 sps:$4 sm:$0xff]   ;;  %v8155_v7 = vld [vmem:[%s8917_s9 + $0x774] ss:$56 sps:$4 sm:$0xff]  }
  0x68   : > { %5016 = vmatpush1.bf16.msra.mxu0 %v8094_v8  ;;  %4149 = vmatpush1.bf16.msra.mxu1 %v8153_v14  ;;  %v8154_v8 = vld [vmem:[%s10345_s1 + $0x280] sm:$0xff]  }
  0x69   : > { %5017 = vmatprep.subr.bf16.mxu0 %v8801_v1  ;;  %4150 = vmatprep.subr.bf16.mxu1 %v8801_v1  ;;  %v8163_v14 = vld [vmem:[%s8917_s9 + $0x104] ss:$56 sps:$4 sm:$0xff]  }
  0x6c   : > { %5018 = vmatpush1.bf16.msra.mxu0 %v8101_v10  ;;  %4151 = vmatpush1.bf16.msra.mxu1 %v8167_v20  ;;  %v8159_v10 = vld [vmem:[%s8917_s9 + $0x770] ss:$56 sps:$4 sm:$0xff]   ;;  %v8171_v20 = vld [vmem:[%s8917_s9 + $0x174] ss:$56 sps:$4 sm:$0xff]  }
  0x6d   : > { %5019 = vmatprep.subr.bf16.mxu0 %v8801_v1  ;;  %4152 = vmatprep.subr.bf16.mxu1 %v8801_v1 }
  0x6e   : > { %3916 = vmatmul.mubr.bf16.gmra.mrb[20].mxu1 %v8069_v9  ;;  %4783 = vmatmul.mubr.bf16.gmra.mrb[20].mxu0 %v8070_v11  ;;  %v8157_v9 = vld [vmem:[%s8917_s9 + $0x94] ss:$56 sps:$4 sm:$0xff]  }
  0x6f   : > { %3923 = vmatprep.mubr.bf16.mxu1 %v8072_v12  ;;  %4790 = vmatprep.mubr.bf16.mxu0 %v8074_v13  ;;  %v8168_v11 = vld [vmem:[%s10345_s1 + $0x288] sm:$0xff]   ;;  %v8161_v13 = vld [vmem:[%s8917_s9 + $0x7e4] ss:$56 sps:$4 sm:$0xff]  }
  0x70   : > { %5020 = vmatpush1.bf16.msra.mxu0 %v8109_v15  ;;  %4153 = vmatpush1.bf16.msra.mxu1 %v8181_v26  ;;  %v8160_v12 = vld [vmem:[%s8917_s9 + $0x90] ss:$56 sps:$4 sm:$0xff]   ;;  %v8177_v26 = vld [vmem:[%s8917_s9 + $0x1e4] ss:$56 sps:$4 sm:$0xff]  }
  0x71   : > { %5021 = vmatprep.subr.bf16.mxu0 %v8801_v1  ;;  %4154 = vmatprep.subr.bf16.mxu1 %v8801_v1  ;;  %v8182_v15 = vld [vmem:[%s10345_s1 + $0x290] sm:$0xff]  }
  0x74   : > { %5022 = vmatpush1.bf16.msra.mxu0 %v8116_v17  ;;  %4155 = vmatpush1.bf16.msra.mxu1 %v8195_v32  ;;  %v8196_v17 = vld [vmem:[%s10345_s1 + $0x298] sm:$0xff]   ;;  %v8185_v32 = vld [vmem:[%s8917_s9 + $0x254] ss:$56 sps:$4 sm:$0xff]  }
  0x75   : > { %5023 = vmatprep.subr.bf16.mxu0 %v8801_v1  ;;  %4156 = vmatprep.subr.bf16.mxu1 %v8801_v1 }
  0x76   : > { %3924 = vmatmul.mubr.bf16.gmra.mrb[24].mxu1 %v8076_v16  ;;  %4791 = vmatmul.mubr.bf16.gmra.mrb[24].mxu0 %v8077_v18  ;;  %v8165_v16 = vld [vmem:[%s8917_s9 + $0x7e0] ss:$56 sps:$4 sm:$0xff]  }
  0x77   : > { %3931 = vmatprep.mubr.bf16.mxu1 %v8080_v19  ;;  %4798 = vmatprep.mubr.bf16.mxu0 %v8082_v21  ;;  %v8166_v18 = vld [vmem:[%s8917_s9 + $0x100] ss:$56 sps:$4 sm:$0xff]   ;;  %v8169_v19 = vld [vmem:[%s8917_s9 + $0x854] ss:$56 sps:$4 sm:$0xff]  }
  0x78   : > { %5024 = vmatpush1.bf16.msra.mxu0 %v8124_v22  ;;  %4157 = vmatpush1.bf16.msra.mxu1 %v8209_v36  ;;  %v8210_v21 = vld [vmem:[%s10345_s1 + $0x2a0] sm:$0xff]   ;;  %v8173_v22 = vld [vmem:[%s8917_s9 + $0x850] ss:$56 sps:$4 sm:$0xff]  }
  0x79   : > { %5025 = vmatprep.subr.bf16.mxu0 %v8801_v1  ;;  %4158 = vmatprep.subr.bf16.mxu1 %v8801_v1  ;;  %v8188_v36 = vld [vmem:[%s8917_s9 + $0x250] ss:$56 sps:$4 sm:$0xff]  }
  0x7c   : > { %5026 = vmatpush1.bf16.msra.mxu0 %v8131_v24  ;;  %4159 = vmatpush1.bf16.msra.mxu1 %v8223_v45  ;;  %v8174_v24 = vld [vmem:[%s8917_s9 + $0x170] ss:$56 sps:$4 sm:$0xff]  }
  0x7d   : > { %5027 = vmatprep.subr.bf16.mxu0 %v8801_v1  ;;  %4160 = vmatprep.subr.bf16.mxu1 %v8801_v1  ;;  %v8201_v45 = vld [vmem:[%s8917_s9 + $0xa10] ss:$56 sps:$4 sm:$0xff]  }
  0x7e   : > { %3932 = vmatmul.mubr.bf16.gmra.mrb[28].mxu1 %v8084_v23  ;;  %4799 = vmatmul.mubr.bf16.gmra.mrb[28].mxu0 %v8085_v25  ;;  %v8224_v23 = vld [vmem:[%s10345_s1 + $0x2a8] sm:$0xff]   ;;  %v8175_v25 = vld [vmem:[%s8917_s9 + $0x8c4] ss:$56 sps:$4 sm:$0xff]  }
  0x7f   : > { %3939 = vmatprep.mubr.bf16.mxu1 %v8087_v27  ;;  %4806 = vmatprep.mubr.bf16.mxu0 %v8089_v28  ;;  %v8238_v27 = vld [vmem:[%s10345_s1 + $0x2b0] sm:$0xff]   ;;  %v8179_v28 = vld [vmem:[%s8917_s9 + $0x8c0] ss:$56 sps:$4 sm:$0xff]  }
  0x80   : > { %5028 = vmatpush1.bf16.msra.mxu0 %v8139_v29  ;;  %4161 = vmatpush1.bf16.msra.mxu1 %v8237_v54  ;;  %v8252_v29 = vld [vmem:[%s10345_s1 + $0x2b8] sm:$0xff]   ;;  %v8215_v54 = vld [vmem:[%s8917_s9 + $0xaf0] ss:$56 sps:$4 sm:$0xff]  }
  0x81   : > { %5029 = vmatprep.subr.bf16.mxu0 %v8801_v1  ;;  %4162 = vmatprep.subr.bf16.mxu1 %v8801_v1 }
  0x84   : > { %5030 = vmatpush1.bf16.msra.mxu0 %v8146_v31  ;;  %4163 = vmatpush1.bf16.msra.mxu1 %v8251_v63  ;;  %v8183_v31 = vld [vmem:[%s8917_s9 + $0x934] ss:$56 sps:$4 sm:$0xff]   ;;  %v8229_v63 = vld [vmem:[%s8917_s9 + $0xbd0] ss:$56 sps:$4 sm:$0xff]  }
  0x85   : > { %5288 = vmatprep.subr.bf16.mxu0 %v8801_v1  ;;  %4421 = vmatprep.subr.bf16.mxu1 %v8801_v1 }
  0x86   : > { %3940 = vmatmul.mubr.bf16.gmra.mrb[32].mxu1 %v8091_v30  ;;  %4807 = vmatmul.mubr.bf16.gmra.mrb[32].mxu0 %v8092_v33  ;;  %v8180_v30 = vld [vmem:[%s8917_s9 + $0x1e0] ss:$56 sps:$4 sm:$0xff]  }
  0x87   : > { %3947 = vmatprep.mubr.bf16.mxu1 %v8095_v34  ;;  %4814 = vmatprep.mubr.bf16.mxu0 %v8097_v35  ;;  %v8266_v33 = vld [vmem:[%s10345_s1 + $0x2c0] sm:$0xff]   ;;  %v8187_v34 = vld [vmem:[%s8917_s9 + $0x930] ss:$56 sps:$4 sm:$0xff]  }
  0x88   : > { %v8280_v35 = vld [vmem:[%s10345_s1 + $0x2c8] sm:$0xff]  }
  0x8e   : > { %3948 = vmatmul.mubr.bf16.gmra.mrb[36].mxu1 %v8099_v37  ;;  %4815 = vmatmul.mubr.bf16.gmra.mrb[36].mxu0 %v8100_v38  ;;  %v8189_v37 = vld [vmem:[%s8917_s9 + $0x9a4] ss:$56 sps:$4 sm:$0xff]  }
  0x8f   : > { %3955 = vmatprep.mubr.bf16.mxu1 %v8102_v39  ;;  %4822 = vmatprep.mubr.bf16.mxu0 %v8104_v40  ;;  %v8191_v38 = vld [vmem:[%s8917_s9 + $0x2c4] ss:$56 sps:$4 sm:$0xff]   ;;  %v8294_v39 = vld [vmem:[%s10345_s1 + $0x2d0] sm:$0xff]   ;;  %v8193_v40 = vld [vmem:[%s8917_s9 + $0x9a0] ss:$56 sps:$4 sm:$0xff]  }
  0x96   : > { %3956 = vmatmul.mubr.bf16.gmra.mrb[40].mxu1 %v8106_v41  ;;  %4823 = vmatmul.mubr.bf16.gmra.mrb[40].mxu0 %v8107_v42  ;;  %v8194_v41 = vld [vmem:[%s8917_s9 + $0x2c0] ss:$56 sps:$4 sm:$0xff]   ;;  %v8197_v42 = vld [vmem:[%s8917_s9 + $0xa14] ss:$56 sps:$4 sm:$0xff]  }
  0x97   : > { %3963 = vmatprep.mubr.bf16.mxu1 %v8110_v43  ;;  %4830 = vmatprep.mubr.bf16.mxu0 %v8112_v44  ;;  %v8199_v43 = vld [vmem:[%s8917_s9 + $0x334] ss:$56 sps:$4 sm:$0xff]   ;;  %v8308_v44 = vld [vmem:[%s10345_s1 + $0x2d8] sm:$0xff]  }
  0x9e   : > { %3964 = vmatmul.mubr.bf16.gmra.mrb[44].mxu1 %v8114_v46  ;;  %4831 = vmatmul.mubr.bf16.gmra.mrb[44].mxu0 %v8115_v47  ;;  %v8202_v46 = vld [vmem:[%s8917_s9 + $0x330] ss:$56 sps:$4 sm:$0xff]   ;;  %v8203_v47 = vld [vmem:[%s8917_s9 + $0xa84] ss:$56 sps:$4 sm:$0xff]  }
  0x9f   : > { %3971 = vmatprep.mubr.bf16.mxu1 %v8117_v48  ;;  %4838 = vmatprep.mubr.bf16.mxu0 %v8119_v49  ;;  %v8205_v48 = vld [vmem:[%s8917_s9 + $0x3a4] ss:$56 sps:$4 sm:$0xff]   ;;  %v8207_v49 = vld [vmem:[%s8917_s9 + $0xa80] ss:$56 sps:$4 sm:$0xff]  }
  0xa6   : > { %3972 = vmatmul.mubr.bf16.gmra.mrb[48].mxu1 %v8121_v50  ;;  %4839 = vmatmul.mubr.bf16.gmra.mrb[48].mxu0 %v8122_v51  ;;  %v8208_v50 = vld [vmem:[%s8917_s9 + $0x3a0] ss:$56 sps:$4 sm:$0xff]   ;;  %v8211_v51 = vld [vmem:[%s8917_s9 + $0xaf4] ss:$56 sps:$4 sm:$0xff]  }
  0xa7   : > { %3979 = vmatprep.mubr.bf16.mxu1 %v8125_v52  ;;  %4846 = vmatprep.mubr.bf16.mxu0 %v8127_v53  ;;  %v8213_v52 = vld [vmem:[%s8917_s9 + $0x414] ss:$56 sps:$4 sm:$0xff]   ;;  %v8322_v53 = vld [vmem:[%s10345_s1 + $0x2e0] sm:$0xff]  }
  0xae   : > { %3980 = vmatmul.mubr.bf16.gmra.mrb[52].mxu1 %v8129_v55  ;;  %4847 = vmatmul.mubr.bf16.gmra.mrb[52].mxu0 %v8130_v56  ;;  %v8216_v55 = vld [vmem:[%s8917_s9 + $0x410] ss:$56 sps:$4 sm:$0xff]   ;;  %v8217_v56 = vld [vmem:[%s8917_s9 + $0xb64] ss:$56 sps:$4 sm:$0xff]  }
  0xaf   : > { %3987 = vmatprep.mubr.bf16.mxu1 %v8132_v57  ;;  %4854 = vmatprep.mubr.bf16.mxu0 %v8134_v58  ;;  %v8219_v57 = vld [vmem:[%s8917_s9 + $0x484] ss:$56 sps:$4 sm:$0xff]   ;;  %v8221_v58 = vld [vmem:[%s8917_s9 + $0xb60] ss:$56 sps:$4 sm:$0xff]  }
  0xb6   : > { %3988 = vmatmul.mubr.bf16.gmra.mrb[56].mxu1 %v8136_v59  ;;  %4855 = vmatmul.mubr.bf16.gmra.mrb[56].mxu0 %v8137_v60  ;;  %v8222_v59 = vld [vmem:[%s8917_s9 + $0x480] ss:$56 sps:$4 sm:$0xff]   ;;  %v8225_v60 = vld [vmem:[%s8917_s9 + $0xbd4] ss:$56 sps:$4 sm:$0xff]  }
  0xb7   : > { %3995 = vmatprep.mubr.bf16.mxu1 %v8140_v61  ;;  %4862 = vmatprep.mubr.bf16.mxu0 %v8142_v62  ;;  %v8227_v61 = vld [vmem:[%s8917_s9 + $0x4f4] ss:$56 sps:$4 sm:$0xff]  }
  0xb8   : > { %v8336_v62 = vld [vmem:[%s10345_s1 + $0x2e8] sm:$0xff]  }
  0xbe   : > { %3996 = vmatmul.mubr.bf16.gmra.mrb[60].mxu1 %v8144_v0  ;;  %4863 = vmatmul.mubr.bf16.gmra.mrb[60].mxu0 %v8145_v2  ;;  %v8230_v0 = vld [vmem:[%s8917_s9 + $0x4f0] ss:$56 sps:$4 sm:$0xff]   ;;  %v8231_v2 = vld [vmem:[%s8917_s9 + $0xc44] ss:$56 sps:$4 sm:$0xff]  }
  0xbf   : > { %4003 = vmatprep.mubr.bf16.mxu1 %v8147_v3  ;;  %5031 = vmatprep.mubr.bf16.mxu0 %v8151_v4  ;;  %v8233_v3 = vld [vmem:[%s8917_s9 + $0x564] ss:$56 sps:$4 sm:$0xff]   ;;  %v8235_v4 = vld [vmem:[%s8917_s9 + $0xc40] ss:$56 sps:$4 sm:$0xff]  }
  0xc6   : > { %4004 = vmatmul.mubr.bf16.gmra.mrb[64].mxu1 %v8152_v5  ;;  %5032 = vmatmul.mubr.bf16.vlgmr.msra.gmra.mrb[0].mxu0 %v8149_v6  ;;  %v8236_v5 = vld [vmem:[%s8917_s9 + $0x560] ss:$56 sps:$4 sm:$0xff]   ;;  %v8239_v6 = vld [vmem:[%s8917_s9 + $0xcb4] ss:$56 sps:$4 sm:$0xff]  }
  0xc7   : > { %4011 = vmatprep.mubr.bf16.mxu1 %v8155_v7  ;;  %5289 = vmatpush1.bf16.msra.mxu0 %v8154_v8  ;;  %v8241_v7 = vld [vmem:[%s8917_s9 + $0x5d4] ss:$56 sps:$4 sm:$0xff]  }
  0xc8   : > { %5039 = vmatprep.mubr.bf16.mxu0 %v8157_v9  ;;  %5290 = vmatprep.subr.bf16.mxu0 %v8801_v1  ;;  %v8350_v8 = vld [vmem:[%s10345_s1 + $0x2f0] sm:$0xff]  }
  0xc9   : > { %v8243_v9 = vld [vmem:[%s8917_s9 + $0xcb0] ss:$56 sps:$4 sm:$0xff]  }
  0xcb   : > { %5291 = vmatpush1.bf16.msra.mxu0 %v8168_v11  ;;  %v8245_v11 = vld [vmem:[%s8917_s9 + $0xd24] ss:$56 sps:$4 sm:$0xff]  }
  0xcc   : > { %5292 = vmatprep.subr.bf16.mxu0 %v8801_v1 }
  0xce   : > { %4012 = vmatmul.mubr.bf16.gmra.mrb[68].mxu1 %v8159_v10  ;;  %5040 = vmatmul.mubr.bf16.gmra.mrb[4].mxu0 %v8160_v12  ;;  %v8244_v10 = vld [vmem:[%s8917_s9 + $0x5d0] ss:$56 sps:$4 sm:$0xff]   ;;  %v8247_v12 = vld [vmem:[%s8917_s9 + $0x644] ss:$56 sps:$4 sm:$0xff]  }
  0xcf   : > { %4019 = vmatprep.mubr.bf16.mxu1 %v8161_v13  ;;  %5047 = vmatprep.mubr.bf16.mxu0 %v8163_v14  ;;  %v8249_v13 = vld [vmem:[%s8917_s9 + $0xd20] ss:$56 sps:$4 sm:$0xff]  }
  0xd0   : > { %5293 = vmatpush1.bf16.msra.mxu0 %v8182_v15  ;;  %v8250_v14 = vld [vmem:[%s8917_s9 + $0x640] ss:$56 sps:$4 sm:$0xff]   ;;  %v8253_v15 = vld [vmem:[%s8917_s9 + $0xd94] ss:$56 sps:$4 sm:$0xff]  }
  0xd1   : > { %5294 = vmatprep.subr.bf16.mxu0 %v8801_v1 }
  0xd4   : > { %5295 = vmatpush1.bf16.msra.mxu0 %v8196_v17  ;;  %v8364_v17 = vld [vmem:[%s10345_s1 + $0x2f8] sm:$0xff]  }
  0xd5   : > { %5296 = vmatprep.subr.bf16.mxu0 %v8801_v1 }
  0xd6   : > { %4020 = vmatmul.mubr.bf16.gmra.mrb[72].mxu1 %v8165_v16  ;;  %5048 = vmatmul.mubr.bf16.gmra.mrb[8].mxu0 %v8166_v18  ;;  %v8255_v16 = vld [vmem:[%s8917_s9 + $0x6b4] ss:$56 sps:$4 sm:$0xff]   ;;  %v8257_v18 = vld [vmem:[%s8917_s9 + $0xd90] ss:$56 sps:$4 sm:$0xff]  }
  0xd7   : > { %4027 = vmatprep.mubr.bf16.mxu1 %v8169_v19  ;;  %5055 = vmatprep.mubr.bf16.mxu0 %v8171_v20  ;;  %v8258_v19 = vld [vmem:[%s8917_s9 + $0x6b0] ss:$56 sps:$4 sm:$0xff]   ;;  %v8261_v20 = vld [vmem:[%s8917_s9 + $0xc] ss:$56 sps:$4 sm:$0xff]  }
  0xd8   : > { %5297 = vmatpush1.bf16.msra.mxu0 %v8210_v21  ;;  %v8262_v21 = vld [vmem:[%s8917_s9 + $0x724] ss:$56 sps:$4 sm:$0xff]  }
  0xd9   : > { %5298 = vmatprep.subr.bf16.mxu0 %v8801_v1 }
  0xdc   : > { %5299 = vmatpush1.bf16.msra.mxu0 %v8224_v23  ;;  %v8264_v23 = vld [vmem:[%s8917_s9 + $0x720] ss:$56 sps:$4 sm:$0xff]  }
  0xdd   : > { %5300 = vmatprep.subr.bf16.mxu0 %v8801_v1 }
  0xde   : > { %4028 = vmatmul.mubr.bf16.gmra.mrb[76].mxu1 %v8173_v22  ;;  %5056 = vmatmul.mubr.bf16.gmra.mrb[12].mxu0 %v8174_v24  ;;  %v8259_v22 = vld [vmem:[%s8917_s9 + $0x8] ss:$56 sps:$4 sm:$0xff]  }
  0xdf   : > { %4035 = vmatprep.mubr.bf16.mxu1 %v8175_v25  ;;  %5063 = vmatprep.mubr.bf16.mxu0 %v8177_v26  ;;  %v8265_v24 = vld [vmem:[%s10345_s1 + $0x100] sm:$0xff]   ;;  %v8267_v25 = vld [vmem:[%s8917_s9 + $0x7c] ss:$56 sps:$4 sm:$0xff]  }
  0xe0   : > { %5301 = vmatpush1.bf16.msra.mxu0 %v8238_v27  ;;  %v8269_v26 = vld [vmem:[%s8917_s9 + $0x794] ss:$56 sps:$4 sm:$0xff]  }
  0xe1   : > { %5302 = vmatprep.subr.bf16.mxu0 %v8801_v1  ;;  %v8279_v27 = vld [vmem:[%s10345_s1 + $0x108] sm:$0xff]  }
  0xe4   : > { %5303 = vmatpush1.bf16.msra.mxu0 %v8252_v29  ;;  %v8272_v29 = vld [vmem:[%s8917_s9 + $0x790] ss:$56 sps:$4 sm:$0xff]  }
  0xe5   : > { %5304 = vmatprep.subr.bf16.mxu0 %v8801_v1 }
  0xe6   : > { %4036 = vmatmul.mubr.bf16.gmra.mrb[80].mxu1 %v8179_v28  ;;  %5064 = vmatmul.mubr.bf16.gmra.mrb[16].mxu0 %v8180_v30  ;;  %v8271_v28 = vld [vmem:[%s8917_s9 + $0x78] ss:$56 sps:$4 sm:$0xff]   ;;  %v8273_v30 = vld [vmem:[%s8917_s9 + $0xec] ss:$56 sps:$4 sm:$0xff]  }
  0xe7   : > { %4043 = vmatprep.mubr.bf16.mxu1 %v8183_v31  ;;  %5071 = vmatprep.mubr.bf16.mxu0 %v8185_v32  ;;  %v8275_v31 = vld [vmem:[%s8917_s9 + $0x804] ss:$56 sps:$4 sm:$0xff]   ;;  %v8293_v32 = vld [vmem:[%s10345_s1 + $0x110] sm:$0xff]  }
  0xe8   : > { %5305 = vmatpush1.bf16.msra.mxu0 %v8266_v33  ;;  %v8307_v33 = vld [vmem:[%s10345_s1 + $0x118] sm:$0xff]  }
  0xe9   : > { %5306 = vmatprep.subr.bf16.mxu0 %v8801_v1 }
  0xec   : > { %5307 = vmatpush1.bf16.msra.mxu0 %v8280_v35  ;;  %v8278_v35 = vld [vmem:[%s8917_s9 + $0x800] ss:$56 sps:$4 sm:$0xff]  }
  0xed   : > { %5308 = vmatprep.subr.bf16.mxu0 %v8801_v1 }
  0xee   : > { %4044 = vmatmul.mubr.bf16.gmra.mrb[84].mxu1 %v8187_v34  ;;  %5072 = vmatmul.mubr.bf16.gmra.mrb[20].mxu0 %v8188_v36  ;;  %v8277_v34 = vld [vmem:[%s8917_s9 + $0xe8] ss:$56 sps:$4 sm:$0xff]   ;;  %v8281_v36 = vld [vmem:[%s8917_s9 + $0x15c] ss:$56 sps:$4 sm:$0xff]  }
  0xef   : > { %4051 = vmatprep.mubr.bf16.mxu1 %v8189_v37  ;;  %5079 = vmatprep.mubr.bf16.mxu0 %v8191_v38  ;;  %v8283_v37 = vld [vmem:[%s8917_s9 + $0x874] ss:$56 sps:$4 sm:$0xff]   ;;  %v8321_v38 = vld [vmem:[%s10345_s1 + $0x120] sm:$0xff]  }
  0xf0   : > { %5309 = vmatpush1.bf16.msra.mxu0 %v8294_v39  ;;  %v8335_v39 = vld [vmem:[%s10345_s1 + $0x128] sm:$0xff]  }
  0xf1   : > { %5310 = vmatprep.subr.bf16.mxu0 %v8801_v1 }
  0xf4   : > { %5311 = vmatpush1.bf16.msra.mxu0 %v8308_v44  ;;  %v8349_v44 = vld [vmem:[%s10345_s1 + $0x130] sm:$0xff]  }
  0xf5   : > { %5312 = vmatprep.subr.bf16.mxu0 %v8801_v1 }
  0xf6   : > { %4052 = vmatmul.mubr.bf16.gmra.mrb[88].mxu1 %v8193_v40  ;;  %5080 = vmatmul.mubr.bf16.gmra.mrb[24].mxu0 %v8194_v41  ;;  %v8285_v40 = vld [vmem:[%s8917_s9 + $0x158] ss:$56 sps:$4 sm:$0xff]  }
  0xf7   : > { %4059 = vmatprep.mubr.bf16.mxu1 %v8197_v42  ;;  %5087 = vmatprep.mubr.bf16.mxu0 %v8199_v43  ;;  %v8286_v41 = vld [vmem:[%s8917_s9 + $0x870] ss:$56 sps:$4 sm:$0xff]   ;;  %v8287_v42 = vld [vmem:[%s8917_s9 + $0x1cc] ss:$56 sps:$4 sm:$0xff]  }
  0xf8   : > { %5313 = vmatpush1.bf16.msra.mxu0 %v8322_v53  ;;  %v8289_v43 = vld [vmem:[%s8917_s9 + $0x8e4] ss:$56 sps:$4 sm:$0xff]   ;;  %v8300_v53 = vld [vmem:[%s8917_s9 + $0x950] ss:$56 sps:$4 sm:$0xff]  }
  0xf9   : > { %5314 = vmatprep.subr.bf16.mxu0 %v8801_v1 }
  0xfc   : > { %5315 = vmatpush1.bf16.msra.mxu0 %v8336_v62  ;;  %v8313_v62 = vld [vmem:[%s8917_s9 + $0x318] ss:$56 sps:$4 sm:$0xff]  }
  0xfd   : > { %5316 = vmatprep.subr.bf16.mxu0 %v8801_v1 }
  0xfe   : > { %4060 = vmatmul.mubr.bf16.gmra.mrb[92].mxu1 %v8201_v45  ;;  %5088 = vmatmul.mubr.bf16.gmra.mrb[28].mxu0 %v8202_v46  ;;  %v8363_v45 = vld [vmem:[%s10345_s1 + $0x138] sm:$0xff]   ;;  %v8291_v46 = vld [vmem:[%s8917_s9 + $0x1c8] ss:$56 sps:$4 sm:$0xff]  }
  0xff   : > { %4067 = vmatprep.mubr.bf16.mxu1 %v8203_v47  ;;  %5095 = vmatprep.mubr.bf16.mxu0 %v8205_v48  ;;  %v8292_v47 = vld [vmem:[%s8917_s9 + $0x8e0] ss:$56 sps:$4 sm:$0xff]   ;;  %v8295_v48 = vld [vmem:[%s8917_s9 + $0x23c] ss:$56 sps:$4 sm:$0xff]  }
 0x100   : > { %5317 = vmatpush1.bf16.msra.mxu0 %v8350_v8  ;;  %v8327_v8 = vld [vmem:[%s8917_s9 + $0x3f8] ss:$56 sps:$4 sm:$0xff]  }
 0x101   : > { %5318 = vmatprep.subr.bf16.mxu0 %v8801_v1 }
 0x104   : > { %5319 = vmatpush1.bf16.msra.mxu0 %v8364_v17  ;;  %v8341_v17 = vld [vmem:[%s8917_s9 + $0x4d8] ss:$56 sps:$4 sm:$0xff]  }
 0x105   : > { %5577 = vmatprep.subr.bf16.mxu0 %v8801_v1 }
 0x106   : > { %4068 = vmatmul.mubr.bf16.gmra.mrb[96].mxu1 %v8207_v49  ;;  %5096 = vmatmul.mubr.bf16.gmra.mrb[32].mxu0 %v8208_v50  ;;  %v8297_v49 = vld [vmem:[%s8917_s9 + $0x954] ss:$56 sps:$4 sm:$0xff]   ;;  %v8377_v50 = vld [vmem:[%s10345_s1 + $0x140] sm:$0xff]  }
 0x107   : > { %4075 = vmatprep.mubr.bf16.mxu1 %v8211_v51  ;;  %5103 = vmatprep.mubr.bf16.mxu0 %v8213_v52  ;;  %v8391_v51 = vld [vmem:[%s10345_s1 + $0x148] sm:$0xff]   ;;  %v8299_v52 = vld [vmem:[%s8917_s9 + $0x238] ss:$56 sps:$4 sm:$0xff]  }
 0x10e   : > { %4076 = vmatmul.mubr.bf16.gmra.mrb[100].mxu1 %v8215_v54  ;;  %5104 = vmatmul.mubr.bf16.gmra.mrb[36].mxu0 %v8216_v55  ;;  %v8301_v54 = vld [vmem:[%s8917_s9 + $0x2ac] ss:$56 sps:$4 sm:$0xff]  }
 0x10f   : > { %4083 = vmatprep.mubr.bf16.mxu1 %v8217_v56  ;;  %5111 = vmatprep.mubr.bf16.mxu0 %v8219_v57  ;;  %v8303_v55 = vld [vmem:[%s8917_s9 + $0x9c4] ss:$56 sps:$4 sm:$0xff]   ;;  %v8405_v56 = vld [vmem:[%s10345_s1 + $0x150] sm:$0xff]   ;;  %v8305_v57 = vld [vmem:[%s8917_s9 + $0x2a8] ss:$56 sps:$4 sm:$0xff]  }
 0x116   : > { %4084 = vmatmul.mubr.bf16.gmra.mrb[104].mxu1 %v8221_v58  ;;  %5112 = vmatmul.mubr.bf16.gmra.mrb[40].mxu0 %v8222_v59  ;;  %v8306_v58 = vld [vmem:[%s8917_s9 + $0x9c0] ss:$56 sps:$4 sm:$0xff]   ;;  %v8309_v59 = vld [vmem:[%s8917_s9 + $0x31c] ss:$56 sps:$4 sm:$0xff]  }
 0x117   : > { %4091 = vmatprep.mubr.bf16.mxu1 %v8225_v60  ;;  %5119 = vmatprep.mubr.bf16.mxu0 %v8227_v61  ;;  %v8311_v60 = vld [vmem:[%s8917_s9 + $0xa34] ss:$56 sps:$4 sm:$0xff]   ;;  %v8419_v61 = vld [vmem:[%s10345_s1 + $0x158] sm:$0xff]  }
 0x11e   : > { %4092 = vmatmul.mubr.bf16.gmra.mrb[108].mxu1 %v8229_v63  ;;  %5120 = vmatmul.mubr.bf16.gmra.mrb[44].mxu0 %v8230_v0  ;;  %v8314_v63 = vld [vmem:[%s8917_s9 + $0xa30] ss:$56 sps:$4 sm:$0xff]   ;;  %v8315_v0 = vld [vmem:[%s8917_s9 + $0x38c] ss:$56 sps:$4 sm:$0xff]  }
 0x11f   : > { %4099 = vmatprep.mubr.bf16.mxu1 %v8231_v2  ;;  %5127 = vmatprep.mubr.bf16.mxu0 %v8233_v3  ;;  %v8317_v2 = vld [vmem:[%s8917_s9 + $0xaa4] ss:$56 sps:$4 sm:$0xff]   ;;  %v8319_v3 = vld [vmem:[%s8917_s9 + $0x388] ss:$56 sps:$4 sm:$0xff]  }
 0x126   : > { %4100 = vmatmul.mubr.bf16.gmra.mrb[112].mxu1 %v8235_v4  ;;  %5128 = vmatmul.mubr.bf16.gmra.mrb[48].mxu0 %v8236_v5  ;;  %v8320_v4 = vld [vmem:[%s8917_s9 + $0xaa0] ss:$56 sps:$4 sm:$0xff]   ;;  %v8323_v5 = vld [vmem:[%s8917_s9 + $0x3fc] ss:$56 sps:$4 sm:$0xff]  }
 0x127   : > { %4107 = vmatprep.mubr.bf16.mxu1 %v8239_v6  ;;  %5135 = vmatprep.mubr.bf16.mxu0 %v8241_v7  ;;  %v8325_v6 = vld [vmem:[%s8917_s9 + $0xb14] ss:$56 sps:$4 sm:$0xff]   ;;  %v8432_v7 = vld [vmem:[%s10345_s1 + $0x160] sm:$0xff]  }
 0x12e   : > { %4108 = vmatmul.mubr.bf16.gmra.mrb[116].mxu1 %v8243_v9  ;;  %5136 = vmatmul.mubr.bf16.gmra.mrb[52].mxu0 %v8244_v10  ;;  %v8328_v9 = vld [vmem:[%s8917_s9 + $0xb10] ss:$56 sps:$4 sm:$0xff]   ;;  %v8329_v10 = vld [vmem:[%s8917_s9 + $0x46c] ss:$56 sps:$4 sm:$0xff]  }
 0x12f   : > { %4115 = vmatprep.mubr.bf16.mxu1 %v8245_v11  ;;  %5143 = vmatprep.mubr.bf16.mxu0 %v8247_v12  ;;  %v8331_v11 = vld [vmem:[%s8917_s9 + $0xb84] ss:$56 sps:$4 sm:$0xff]   ;;  %v8333_v12 = vld [vmem:[%s8917_s9 + $0x468] ss:$56 sps:$4 sm:$0xff]  }
 0x136   : > { %4116 = vmatmul.mubr.bf16.gmra.mrb[120].mxu1 %v8249_v13  ;;  %5144 = vmatmul.mubr.bf16.gmra.mrb[56].mxu0 %v8250_v14  ;;  %v8334_v13 = vld [vmem:[%s8917_s9 + $0xb80] ss:$56 sps:$4 sm:$0xff]   ;;  %v8337_v14 = vld [vmem:[%s8917_s9 + $0x4dc] ss:$56 sps:$4 sm:$0xff]  }
 0x137   : > { %4123 = vmatprep.mubr.bf16.mxu1 %v8253_v15  ;;  %5151 = vmatprep.mubr.bf16.mxu0 %v8255_v16  ;;  %v8339_v15 = vld [vmem:[%s8917_s9 + $0xbf4] ss:$56 sps:$4 sm:$0xff]  }
 0x138   : > { %v8446_v16 = vld [vmem:[%s10345_s1 + $0x168] sm:$0xff]  }
 0x13e   : > { %4124 = vmatmul.mubr.bf16.gmra.mrb[124].mxu1 %v8257_v18  ;;  %5152 = vmatmul.mubr.bf16.gmra.mrb[60].mxu0 %v8258_v19  ;;  %v8342_v18 = vld [vmem:[%s8917_s9 + $0xbf0] ss:$56 sps:$4 sm:$0xff]   ;;  %v8343_v19 = vld [vmem:[%s8917_s9 + $0x54c] ss:$56 sps:$4 sm:$0xff]  }
 0x13f   : > { %4164 = vmatprep.mubr.bf16.mxu1 %v8261_v20  ;;  %5159 = vmatprep.mubr.bf16.mxu0 %v8262_v21  ;;  %v8345_v20 = vld [vmem:[%s8917_s9 + $0xc64] ss:$56 sps:$4 sm:$0xff]   ;;  %v8347_v21 = vld [vmem:[%s8917_s9 + $0x548] ss:$56 sps:$4 sm:$0xff]  }
 0x146   : > { %4165 = vmatmul.mubr.bf16.vlgmr.msra.gmra.mrb[0].mxu1 %v8259_v22  ;;  %5160 = vmatmul.mubr.bf16.gmra.mrb[64].mxu0 %v8264_v23  ;;  %v8348_v22 = vld [vmem:[%s8917_s9 + $0xc60] ss:$56 sps:$4 sm:$0xff]   ;;  %v8351_v23 = vld [vmem:[%s8917_s9 + $0x5bc] ss:$56 sps:$4 sm:$0xff]  }
 0x147   : > { %4422 = vmatpush1.bf16.msra.mxu1 %v8265_v24  ;;  %4172 = vmatprep.mubr.bf16.mxu1 %v8267_v25  ;;  %v8353_v24 = vld [vmem:[%s8917_s9 + $0xcd4] ss:$56 sps:$4 sm:$0xff]  }
 0x148   : > { %5167 = vmatprep.mubr.bf16.mxu0 %v8269_v26  ;;  %4423 = vmatprep.subr.bf16.mxu1 %v8801_v1  ;;  %v8460_v25 = vld [vmem:[%s10345_s1 + $0x170] sm:$0xff]  }
 0x149   : > { %v8355_v26 = vld [vmem:[%s8917_s9 + $0x5b8] ss:$56 sps:$4 sm:$0xff]  }
 0x14b   : > { %4424 = vmatpush1.bf16.msra.mxu1 %v8279_v27  ;;  %v8356_v27 = vld [vmem:[%s8917_s9 + $0xcd0] ss:$56 sps:$4 sm:$0xff]  }
 0x14c   : > { %4425 = vmatprep.subr.bf16.mxu1 %v8801_v1 }
 0x14e   : > { %4173 = vmatmul.mubr.bf16.gmra.mrb[4].mxu1 %v8271_v28  ;;  %5168 = vmatmul.mubr.bf16.gmra.mrb[68].mxu0 %v8272_v29  ;;  %v8357_v28 = vld [vmem:[%s8917_s9 + $0x62c] ss:$56 sps:$4 sm:$0xff]  }
 0x14f   : > { %4180 = vmatprep.mubr.bf16.mxu1 %v8273_v30  ;;  %5175 = vmatprep.mubr.bf16.mxu0 %v8275_v31  ;;  %v8359_v29 = vld [vmem:[%s8917_s9 + $0xd44] ss:$56 sps:$4 sm:$0xff]   ;;  %v8361_v30 = vld [vmem:[%s8917_s9 + $0x628] ss:$56 sps:$4 sm:$0xff]  }
 0x150   : > { %4426 = vmatpush1.bf16.msra.mxu1 %v8293_v32  ;;  %v8362_v31 = vld [vmem:[%s8917_s9 + $0xd40] ss:$56 sps:$4 sm:$0xff]   ;;  %v8365_v32 = vld [vmem:[%s8917_s9 + $0x69c] ss:$56 sps:$4 sm:$0xff]  }
 0x151   : > { %4427 = vmatprep.subr.bf16.mxu1 %v8801_v1 }
 0x154   : > { %4428 = vmatpush1.bf16.msra.mxu1 %v8307_v33  ;;  %v8367_v33 = vld [vmem:[%s8917_s9 + $0xdb4] ss:$56 sps:$4 sm:$0xff]  }
 0x155   : > { %4429 = vmatprep.subr.bf16.mxu1 %v8801_v1 }
 0x156   : > { %4181 = vmatmul.mubr.bf16.gmra.mrb[8].mxu1 %v8277_v34  ;;  %5176 = vmatmul.mubr.bf16.gmra.mrb[72].mxu0 %v8278_v35  ;;  %v8474_v34 = vld [vmem:[%s10345_s1 + $0x178] sm:$0xff]  }
 0x157   : > { %4188 = vmatprep.mubr.bf16.mxu1 %v8281_v36  ;;  %5183 = vmatprep.mubr.bf16.mxu0 %v8283_v37  ;;  %v8369_v35 = vld [vmem:[%s8917_s9 + $0x698] ss:$56 sps:$4 sm:$0xff]   ;;  %v8371_v37 = vld [vmem:[%s8917_s9 + $0x70c] ss:$56 sps:$4 sm:$0xff]  }
 0x158   : > { %4430 = vmatpush1.bf16.msra.mxu1 %v8321_v38  ;;  %v8370_v36 = vld [vmem:[%s8917_s9 + $0xdb0] ss:$56 sps:$4 sm:$0xff]   ;;  %v8375_v38 = vld [vmem:[%s8917_s9 + $0x2c] ss:$56 sps:$4 sm:$0xff]  }
 0x159   : > { %4431 = vmatprep.subr.bf16.mxu1 %v8801_v1 }
 0x15c   : > { %4432 = vmatpush1.bf16.msra.mxu1 %v8335_v39  ;;  %v8376_v39 = vld [vmem:[%s8917_s9 + $0x708] ss:$56 sps:$4 sm:$0xff]  }
 0x15d   : > { %4433 = vmatprep.subr.bf16.mxu1 %v8801_v1 }
 0x15e   : > { %4189 = vmatmul.mubr.bf16.gmra.mrb[12].mxu1 %v8285_v40  ;;  %5184 = vmatmul.mubr.bf16.gmra.mrb[76].mxu0 %v8286_v41  ;;  %v8373_v40 = vld [vmem:[%s8917_s9 + $0x28] ss:$56 sps:$4 sm:$0xff]   ;;  %v8379_v41 = vld [vmem:[%s8917_s9 + $0x77c] ss:$56 sps:$4 sm:$0xff]  }
 0x15f   : > { %4196 = vmatprep.mubr.bf16.mxu1 %v8287_v42  ;;  %5191 = vmatprep.mubr.bf16.mxu0 %v8289_v43  ;;  %v8378_v42 = vld [vmem:[%s10345_s1 + $0x300] sm:$0xff]   ;;  %v8381_v43 = vld [vmem:[%s8917_s9 + $0x9c] ss:$56 sps:$4 sm:$0xff]  }
 0x160   : > { %4434 = vmatpush1.bf16.msra.mxu1 %v8349_v44  ;;  %v8396_v44 = vld [vmem:[%s10345_s1 + $0x308] sm:$0xff]  }
 0x161   : > { %4435 = vmatprep.subr.bf16.mxu1 %v8801_v1 }
 0x164   : > { %4436 = vmatpush1.bf16.msra.mxu1 %v8363_v45  ;;  %v8383_v45 = vld [vmem:[%s8917_s9 + $0x778] ss:$56 sps:$4 sm:$0xff]  }
 0x165   : > { %4437 = vmatprep.subr.bf16.mxu1 %v8801_v1 }
 0x166   : > { %4197 = vmatmul.mubr.bf16.gmra.mrb[16].mxu1 %v8291_v46  ;;  %5192 = vmatmul.mubr.bf16.gmra.mrb[80].mxu0 %v8292_v47  ;;  %v8384_v46 = vld [vmem:[%s8917_s9 + $0x98] ss:$56 sps:$4 sm:$0xff]   ;;  %v8385_v47 = vld [vmem:[%s8917_s9 + $0x7ec] ss:$56 sps:$4 sm:$0xff]  }
 0x167   : > { %4204 = vmatprep.mubr.bf16.mxu1 %v8295_v48  ;;  %5199 = vmatprep.mubr.bf16.mxu0 %v8297_v49  ;;  %v8387_v48 = vld [vmem:[%s8917_s9 + $0x10c] ss:$56 sps:$4 sm:$0xff]   ;;  %v8412_v49 = vld [vmem:[%s10345_s1 + $0x310] sm:$0xff]  }
 0x168   : > { %4438 = vmatpush1.bf16.msra.mxu1 %v8377_v50  ;;  %v8433_v50 = vld [vmem:[%s10345_s1 + $0x318] sm:$0xff]  }
 0x169   : > { %4439 = vmatprep.subr.bf16.mxu1 %v8801_v1 }
 0x16c   : > { %4440 = vmatpush1.bf16.msra.mxu1 %v8391_v51  ;;  %v8389_v51 = vld [vmem:[%s8917_s9 + $0x7e8] ss:$56 sps:$4 sm:$0xff]  }
 0x16d   : > { %4441 = vmatprep.subr.bf16.mxu1 %v8801_v1 }
 0x16e   : > { %4205 = vmatmul.mubr.bf16.gmra.mrb[20].mxu1 %v8299_v52  ;;  %5200 = vmatmul.mubr.bf16.gmra.mrb[84].mxu0 %v8300_v53  ;;  %v8390_v52 = vld [vmem:[%s8917_s9 + $0x108] ss:$56 sps:$4 sm:$0xff]   ;;  %v8392_v53 = vld [vmem:[%s8917_s9 + $0x85c] ss:$56 sps:$4 sm:$0xff]  }
 0x16f   : > { %4212 = vmatprep.mubr.bf16.mxu1 %v8301_v54  ;;  %5207 = vmatprep.mubr.bf16.mxu0 %v8303_v55  ;;  %v8394_v54 = vld [vmem:[%s8917_s9 + $0x17c] ss:$56 sps:$4 sm:$0xff]   ;;  %v8451_v55 = vld [vmem:[%s10345_s1 + $0x320] sm:$0xff]  }
 0x170   : > { %4442 = vmatpush1.bf16.msra.mxu1 %v8405_v56  ;;  %v8467_v56 = vld [vmem:[%s10345_s1 + $0x328] sm:$0xff]  }
 0x171   : > { %4443 = vmatprep.subr.bf16.mxu1 %v8801_v1 }
 0x174   : > { %4444 = vmatpush1.bf16.msra.mxu1 %v8419_v61  ;;  %v8487_v61 = vld [vmem:[%s10345_s1 + $0x330] sm:$0xff]  }
 0x175   : > { %4445 = vmatprep.subr.bf16.mxu1 %v8801_v1 }
 0x176   : > { %4213 = vmatmul.mubr.bf16.gmra.mrb[24].mxu1 %v8305_v57  ;;  %5208 = vmatmul.mubr.bf16.gmra.mrb[88].mxu0 %v8306_v58  ;;  %v8397_v57 = vld [vmem:[%s8917_s9 + $0x858] ss:$56 sps:$4 sm:$0xff]  }
 0x177   : > { %4220 = vmatprep.mubr.bf16.mxu1 %v8309_v59  ;;  %5215 = vmatprep.mubr.bf16.mxu0 %v8311_v60  ;;  %v8398_v58 = vld [vmem:[%s8917_s9 + $0x178] ss:$56 sps:$4 sm:$0xff]   ;;  %v8399_v59 = vld [vmem:[%s8917_s9 + $0x8cc] ss:$56 sps:$4 sm:$0xff]  }
 0x178   : > { %4446 = vmatpush1.bf16.msra.mxu1 %v8432_v7  ;;  %v8401_v60 = vld [vmem:[%s8917_s9 + $0x1ec] ss:$56 sps:$4 sm:$0xff]  }
 0x179   : > { %4447 = vmatprep.subr.bf16.mxu1 %v8801_v1  ;;  %v8415_v7 = vld [vmem:[%s8917_s9 + $0x2cc] ss:$56 sps:$4 sm:$0xff]  }
 0x17c   : > { %4448 = vmatpush1.bf16.msra.mxu1 %v8446_v16  ;;  %v8428_v16 = vld [vmem:[%s8917_s9 + $0x3ac] ss:$56 sps:$4 sm:$0xff]  }
 0x17d   : > { %4449 = vmatprep.subr.bf16.mxu1 %v8801_v1 }
 0x17e   : > { %4221 = vmatmul.mubr.bf16.gmra.mrb[28].mxu1 %v8313_v62  ;;  %5216 = vmatmul.mubr.bf16.gmra.mrb[92].mxu0 %v8314_v63  ;;  %v8504_v62 = vld [vmem:[%s10345_s1 + $0x338] sm:$0xff]   ;;  %v8403_v63 = vld [vmem:[%s8917_s9 + $0x8c8] ss:$56 sps:$4 sm:$0xff]  }
 0x17f   : > { %4228 = vmatprep.mubr.bf16.mxu1 %v8315_v0  ;;  %5223 = vmatprep.mubr.bf16.mxu0 %v8317_v2  ;;  %v8404_v0 = vld [vmem:[%s8917_s9 + $0x1e8] ss:$56 sps:$4 sm:$0xff]   ;;  %v8406_v2 = vld [vmem:[%s8917_s9 + $0x93c] ss:$56 sps:$4 sm:$0xff]  }
 0x180   : > { %4450 = vmatpush1.bf16.msra.mxu1 %v8460_v25  ;;  %v8442_v25 = vld [vmem:[%s8917_s9 + $0x48c] ss:$56 sps:$4 sm:$0xff]  }
 0x181   : > { %4451 = vmatprep.subr.bf16.mxu1 %v8801_v1 }
 0x184   : > { %4452 = vmatpush1.bf16.msra.mxu1 %v8474_v34  ;;  %v8456_v34 = vld [vmem:[%s8917_s9 + $0x56c] ss:$56 sps:$4 sm:$0xff]  }
 0x185   : > { %7249 = vmatprep.subr.bf16.mxu1 %v8801_v1 }
 0x186   : > { %4229 = vmatmul.mubr.bf16.gmra.mrb[32].mxu1 %v8319_v3  ;;  %5224 = vmatmul.mubr.bf16.gmra.mrb[96].mxu0 %v8320_v4  ;;  %v8408_v3 = vld [vmem:[%s8917_s9 + $0x25c] ss:$56 sps:$4 sm:$0xff]   ;;  %v8410_v4 = vld [vmem:[%s8917_s9 + $0x938] ss:$56 sps:$4 sm:$0xff]  }
 0x187   : > { %4236 = vmatprep.mubr.bf16.mxu1 %v8323_v5  ;;  %5231 = vmatprep.mubr.bf16.mxu0 %v8325_v6  ;;  %v8411_v5 = vld [vmem:[%s8917_s9 + $0x258] ss:$56 sps:$4 sm:$0xff]   ;;  %v8413_v6 = vld [vmem:[%s8917_s9 + $0x9ac] ss:$56 sps:$4 sm:$0xff]  }
 0x18e   : > { %4237 = vmatmul.mubr.bf16.gmra.mrb[36].mxu1 %v8327_v8  ;;  %5232 = vmatmul.mubr.bf16.gmra.mrb[100].mxu0 %v8328_v9  ;;  %v8519_v8 = vld [vmem:[%s10345_s1 + $0x340] sm:$0xff]  }
 0x18f   : > { %4244 = vmatprep.mubr.bf16.mxu1 %v8329_v10  ;;  %5239 = vmatprep.mubr.bf16.mxu0 %v8331_v11  ;;  %v8417_v9 = vld [vmem:[%s8917_s9 + $0x9a8] ss:$56 sps:$4 sm:$0xff]   ;;  %v8420_v11 = vld [vmem:[%s8917_s9 + $0xa1c] ss:$56 sps:$4 sm:$0xff]  }
 0x190   : > { %v8418_v10 = vld [vmem:[%s8917_s9 + $0x2c8] ss:$56 sps:$4 sm:$0xff]  }
 0x196   : > { %4245 = vmatmul.mubr.bf16.gmra.mrb[40].mxu1 %v8333_v12  ;;  %5240 = vmatmul.mubr.bf16.gmra.mrb[104].mxu0 %v8334_v13  ;;  %v8422_v12 = vld [vmem:[%s8917_s9 + $0x33c] ss:$56 sps:$4 sm:$0xff]   ;;  %v8424_v13 = vld [vmem:[%s8917_s9 + $0xa18] ss:$56 sps:$4 sm:$0xff]  }
 0x197   : > { %4252 = vmatprep.mubr.bf16.mxu1 %v8337_v14  ;;  %5247 = vmatprep.mubr.bf16.mxu0 %v8339_v15  ;;  %v8425_v14 = vld [vmem:[%s8917_s9 + $0x338] ss:$56 sps:$4 sm:$0xff]   ;;  %v8426_v15 = vld [vmem:[%s8917_s9 + $0xa8c] ss:$56 sps:$4 sm:$0xff]  }
 0x19e   : > { %4253 = vmatmul.mubr.bf16.gmra.mrb[44].mxu1 %v8341_v17  ;;  %5248 = vmatmul.mubr.bf16.gmra.mrb[108].mxu0 %v8342_v18  ;;  %v8430_v17 = vld [vmem:[%s8917_s9 + $0xa88] ss:$56 sps:$4 sm:$0xff]  }
 0x19f   : > { %4260 = vmatprep.mubr.bf16.mxu1 %v8343_v19  ;;  %5255 = vmatprep.mubr.bf16.mxu0 %v8345_v20  ;;  %v8431_v18 = vld [vmem:[%s8917_s9 + $0x3a8] ss:$56 sps:$4 sm:$0xff]   ;;  %v8434_v19 = vld [vmem:[%s8917_s9 + $0xafc] ss:$56 sps:$4 sm:$0xff]  }
 0x1a0   : > { %v8436_v20 = vld [vmem:[%s8917_s9 + $0x41c] ss:$56 sps:$4 sm:$0xff]  }
 0x1a6   : > { %4261 = vmatmul.mubr.bf16.gmra.mrb[48].mxu1 %v8347_v21  ;;  %5256 = vmatmul.mubr.bf16.gmra.mrb[112].mxu0 %v8348_v22  ;;  %v8538_v21 = vld [vmem:[%s10345_s1 + $0x348] sm:$0xff]   ;;  %v8438_v22 = vld [vmem:[%s8917_s9 + $0xaf8] ss:$56 sps:$4 sm:$0xff]  }
 0x1a7   : > { %4268 = vmatprep.mubr.bf16.mxu1 %v8351_v23  ;;  %5263 = vmatprep.mubr.bf16.mxu0 %v8353_v24  ;;  %v8439_v23 = vld [vmem:[%s8917_s9 + $0x418] ss:$56 sps:$4 sm:$0xff]   ;;  %v8440_v24 = vld [vmem:[%s8917_s9 + $0xb6c] ss:$56 sps:$4 sm:$0xff]  }
 0x1ae   : > { %4269 = vmatmul.mubr.bf16.gmra.mrb[52].mxu1 %v8355_v26  ;;  %5264 = vmatmul.mubr.bf16.gmra.mrb[116].mxu0 %v8356_v27  ;;  %v8444_v26 = vld [vmem:[%s8917_s9 + $0xb68] ss:$56 sps:$4 sm:$0xff]  }
 0x1af   : > { %4276 = vmatprep.mubr.bf16.mxu1 %v8357_v28  ;;  %5271 = vmatprep.mubr.bf16.mxu0 %v8359_v29  ;;  %v8445_v27 = vld [vmem:[%s8917_s9 + $0x488] ss:$56 sps:$4 sm:$0xff]   ;;  %v8447_v28 = vld [vmem:[%s8917_s9 + $0xbdc] ss:$56 sps:$4 sm:$0xff]  }
 0x1b0   : > { %v8449_v29 = vld [vmem:[%s8917_s9 + $0x4fc] ss:$56 sps:$4 sm:$0xff]  }
 0x1b6   : > { %4277 = vmatmul.mubr.bf16.gmra.mrb[56].mxu1 %v8361_v30  ;;  %5272 = vmatmul.mubr.bf16.gmra.mrb[120].mxu0 %v8362_v31  ;;  %v8555_v30 = vld [vmem:[%s10345_s1 + $0x350] sm:$0xff]  }
 0x1b7   : > { %4284 = vmatprep.mubr.bf16.mxu1 %v8365_v32  ;;  %5279 = vmatprep.mubr.bf16.mxu0 %v8367_v33  ;;  %v8452_v31 = vld [vmem:[%s8917_s9 + $0xbd8] ss:$56 sps:$4 sm:$0xff]   ;;  %v8454_v33 = vld [vmem:[%s8917_s9 + $0xc4c] ss:$56 sps:$4 sm:$0xff]  }
 0x1b8   : > { %v8453_v32 = vld [vmem:[%s8917_s9 + $0x4f8] ss:$56 sps:$4 sm:$0xff]  }
 0x1be   : > { %4285 = vmatmul.mubr.bf16.gmra.mrb[60].mxu1 %v8369_v35  ;;  %5280 = vmatmul.mubr.bf16.gmra.mrb[124].mxu0 %v8370_v36  ;;  %v8458_v35 = vld [vmem:[%s8917_s9 + $0xc48] ss:$56 sps:$4 sm:$0xff]  }
 0x1bf   : > { %4292 = vmatprep.mubr.bf16.mxu1 %v8371_v37  ;;  %5320 = vmatprep.mubr.bf16.mxu0 %v8375_v38  ;;  %v8459_v36 = vld [vmem:[%s8917_s9 + $0x568] ss:$56 sps:$4 sm:$0xff]   ;;  %v8461_v37 = vld [vmem:[%s8917_s9 + $0xcbc] ss:$56 sps:$4 sm:$0xff]  }
 0x1c0   : > { %v8463_v38 = vld [vmem:[%s8917_s9 + $0x5dc] ss:$56 sps:$4 sm:$0xff]  }
 0x1c6   : > { %4293 = vmatmul.mubr.bf16.gmra.mrb[64].mxu1 %v8376_v39  ;;  %5321 = vmatmul.mubr.bf16.vlgmr.msra.gmra.mrb[0].mxu0 %v8373_v40  ;;  %v8465_v39 = vld [vmem:[%s8917_s9 + $0xcb8] ss:$56 sps:$4 sm:$0xff]  }
 0x1c7   : > { %4300 = vmatprep.mubr.bf16.mxu1 %v8379_v41  ;;  %5578 = vmatpush1.bf16.msra.mxu0 %v8378_v42  ;;  %v8466_v40 = vld [vmem:[%s8917_s9 + $0x5d8] ss:$56 sps:$4 sm:$0xff]   ;;  %v8468_v41 = vld [vmem:[%s8917_s9 + $0xd2c] ss:$56 sps:$4 sm:$0xff]  }
 0x1c8   : > { %5328 = vmatprep.mubr.bf16.mxu0 %v8381_v43  ;;  %5579 = vmatprep.subr.bf16.mxu0 %v8801_v1  ;;  %v8470_v42 = vld [vmem:[%s8917_s9 + $0x64c] ss:$56 sps:$4 sm:$0xff]   ;;  %v8570_v43 = vld [vmem:[%s10345_s1 + $0x358] sm:$0xff]  }
 0x1cb   : > { %5580 = vmatpush1.bf16.msra.mxu0 %v8396_v44  ;;  %v8472_v44 = vld [vmem:[%s8917_s9 + $0xd28] ss:$56 sps:$4 sm:$0xff]  }
 0x1cc   : > { %5581 = vmatprep.subr.bf16.mxu0 %v8801_v1 }
 0x1ce   : > { %4301 = vmatmul.mubr.bf16.gmra.mrb[68].mxu1 %v8383_v45  ;;  %5329 = vmatmul.mubr.bf16.gmra.mrb[4].mxu0 %v8384_v46  ;;  %v8473_v45 = vld [vmem:[%s8917_s9 + $0x648] ss:$56 sps:$4 sm:$0xff]   ;;  %v8475_v46 = vld [vmem:[%s8917_s9 + $0xd9c] ss:$56 sps:$4 sm:$0xff]  }
 0x1cf   : > { %4308 = vmatprep.mubr.bf16.mxu1 %v8385_v47  ;;  %5336 = vmatprep.mubr.bf16.mxu0 %v8387_v48  ;;  %v8477_v47 = vld [vmem:[%s8917_s9 + $0x6bc] ss:$56 sps:$4 sm:$0xff]   ;;  %v8479_v48 = vld [vmem:[%s8917_s9 + $0xd98] ss:$56 sps:$4 sm:$0xff]  }
 0x1d0   : > { %5582 = vmatpush1.bf16.msra.mxu0 %v8412_v49  ;;  %v8480_v49 = vld [vmem:[%s8917_s9 + $0x6b8] ss:$56 sps:$4 sm:$0xff]  }
 0x1d1   : > { %5583 = vmatprep.subr.bf16.mxu0 %v8801_v1 }
 0x1d4   : > { %5584 = vmatpush1.bf16.msra.mxu0 %v8433_v50  ;;  %v8483_v50 = vld [vmem:[%s8917_s9 + $0x14] ss:$56 sps:$4 sm:$0xff]  }
 0x1d5   : > { %5585 = vmatprep.subr.bf16.mxu0 %v8801_v1 }
 0x1d6   : > { %4309 = vmatmul.mubr.bf16.gmra.mrb[72].mxu1 %v8389_v51  ;;  %5337 = vmatmul.mubr.bf16.gmra.mrb[8].mxu0 %v8390_v52  ;;  %v8484_v51 = vld [vmem:[%s8917_s9 + $0x72c] ss:$56 sps:$4 sm:$0xff]   ;;  %v8481_v52 = vld [vmem:[%s8917_s9 + $0x10] ss:$56 sps:$4 sm:$0xff]  }
 0x1d7   : > { %4316 = vmatprep.mubr.bf16.mxu1 %v8392_v53  ;;  %5344 = vmatprep.mubr.bf16.mxu0 %v8394_v54  ;;  %v8486_v53 = vld [vmem:[%s8917_s9 + $0x728] ss:$56 sps:$4 sm:$0xff]   ;;  %v8488_v54 = vld [vmem:[%s8917_s9 + $0x84] ss:$56 sps:$4 sm:$0xff]  }
 0x1d8   : > { %5586 = vmatpush1.bf16.msra.mxu0 %v8451_v55  ;;  %v8490_v55 = vld [vmem:[%s8917_s9 + $0x79c] ss:$56 sps:$4 sm:$0xff]  }
 0x1d9   : > { %5587 = vmatprep.subr.bf16.mxu0 %v8801_v1 }
 0x1dc   : > { %5588 = vmatpush1.bf16.msra.mxu0 %v8467_v56  ;;  %v8775_v56 = vld [vmem:[%s10345_s1 + $0x180] sm:$0xff]  }
 0x1dd   : > { %5589 = vmatprep.subr.bf16.mxu0 %v8801_v1 }
 0x1de   : > { %4317 = vmatmul.mubr.bf16.gmra.mrb[76].mxu1 %v8397_v57  ;;  %5345 = vmatmul.mubr.bf16.gmra.mrb[12].mxu0 %v8398_v58  ;;  %v8492_v57 = vld [vmem:[%s8917_s9 + $0x80] ss:$56 sps:$4 sm:$0xff]  }
 0x1df   : > { %4324 = vmatprep.mubr.bf16.mxu1 %v8399_v59  ;;  %5352 = vmatprep.mubr.bf16.mxu0 %v8401_v60  ;;  %v8493_v58 = vld [vmem:[%s8917_s9 + $0x798] ss:$56 sps:$4 sm:$0xff]   ;;  %v8494_v59 = vld [vmem:[%s8917_s9 + $0xf4] ss:$56 sps:$4 sm:$0xff]  }
 0x1e0   : > { %5590 = vmatpush1.bf16.msra.mxu0 %v8487_v61  ;;  %v8776_v60 = vld [vmem:[%s10345_s1 + $0x188] sm:$0xff]  }
 0x1e1   : > { %5591 = vmatprep.subr.bf16.mxu0 %v8801_v1  ;;  %v8496_v61 = vld [vmem:[%s8917_s9 + $0x80c] ss:$56 sps:$4 sm:$0xff]  }
 0x1e4   : > { %5592 = vmatpush1.bf16.msra.mxu0 %v8504_v62  ;;  %v8777_v62 = vld [vmem:[%s10345_s1 + $0x190] sm:$0xff]  }
 0x1e5   : > { %5593 = vmatprep.subr.bf16.mxu0 %v8801_v1 }
 0x1e6   : > { %4325 = vmatmul.mubr.bf16.gmra.mrb[80].mxu1 %v8403_v63  ;;  %5353 = vmatmul.mubr.bf16.gmra.mrb[16].mxu0 %v8404_v0  ;;  %v8498_v63 = vld [vmem:[%s8917_s9 + $0xf0] ss:$56 sps:$4 sm:$0xff]  }
 0x1e7   : > { %4332 = vmatprep.mubr.bf16.mxu1 %v8406_v2  ;;  %5360 = vmatprep.mubr.bf16.mxu0 %v8408_v3  ;;  %v8499_v0 = vld [vmem:[%s8917_s9 + $0x808] ss:$56 sps:$4 sm:$0xff]   ;;  %v8500_v2 = vld [vmem:[%s8917_s9 + $0x164] ss:$56 sps:$4 sm:$0xff]  }
 0x1e8   : > { %5594 = vmatpush1.bf16.msra.mxu0 %v8519_v8  ;;  %v8502_v3 = vld [vmem:[%s8917_s9 + $0x87c] ss:$56 sps:$4 sm:$0xff]  }
 0x1e9   : > { %5595 = vmatprep.subr.bf16.mxu0 %v8801_v1  ;;  %v8507_v8 = vld [vmem:[%s8917_s9 + $0x1d4] ss:$56 sps:$4 sm:$0xff]  }
 0x1ec   : > { %5596 = vmatpush1.bf16.msra.mxu0 %v8538_v21  ;;  %v8522_v21 = vld [vmem:[%s8917_s9 + $0x9cc] ss:$56 sps:$4 sm:$0xff]  }
 0x1ed   : > { %5597 = vmatprep.subr.bf16.mxu0 %v8801_v1 }
 0x1ee   : > { %4333 = vmatmul.mubr.bf16.gmra.mrb[84].mxu1 %v8410_v4  ;;  %5361 = vmatmul.mubr.bf16.gmra.mrb[20].mxu0 %v8411_v5  ;;  %v8778_v4 = vld [vmem:[%s10345_s1 + $0x198] sm:$0xff]   ;;  %v8779_v5 = vld [vmem:[%s10345_s1 + $0x1a0] sm:$0xff]  }
 0x1ef   : > { %4340 = vmatprep.mubr.bf16.mxu1 %v8413_v6  ;;  %5368 = vmatprep.mubr.bf16.mxu0 %v8415_v7  ;;  %v8505_v6 = vld [vmem:[%s8917_s9 + $0x160] ss:$56 sps:$4 sm:$0xff]  }
 0x1f0   : > { %5598 = vmatpush1.bf16.msra.mxu0 %v8555_v30  ;;  %v8506_v7 = vld [vmem:[%s8917_s9 + $0x878] ss:$56 sps:$4 sm:$0xff]  }
 0x1f1   : > { %5599 = vmatprep.subr.bf16.mxu0 %v8801_v1  ;;  %v8530_v30 = vld [vmem:[%s8917_s9 + $0x320] ss:$56 sps:$4 sm:$0xff]  }
 0x1f4   : > { %5600 = vmatpush1.bf16.msra.mxu0 %v8570_v43  ;;  %v8545_v43 = vld [vmem:[%s8917_s9 + $0x474] ss:$56 sps:$4 sm:$0xff]  }
 0x1f6   : > { %4341 = vmatmul.mubr.bf16.gmra.mrb[88].mxu1 %v8417_v9  ;;  %5369 = vmatmul.mubr.bf16.gmra.mrb[24].mxu0 %v8418_v10  ;;  %v8509_v9 = vld [vmem:[%s8917_s9 + $0x8ec] ss:$56 sps:$4 sm:$0xff]  }
 0x1f7   : > { %4348 = vmatprep.mubr.bf16.mxu1 %v8420_v11  ;;  %5376 = vmatprep.mubr.bf16.mxu0 %v8422_v12  ;;  %v8780_v10 = vld [vmem:[%s10345_s1 + $0x1a8] sm:$0xff]   ;;  %v8781_v11 = vld [vmem:[%s10345_s1 + $0x1b0] sm:$0xff]  }
 0x1f8   : > { %v8511_v12 = vld [vmem:[%s8917_s9 + $0x1d0] ss:$56 sps:$4 sm:$0xff]  }
 0x1fe   : > { %4349 = vmatmul.mubr.bf16.gmra.mrb[92].mxu1 %v8424_v13  ;;  %5377 = vmatmul.mubr.bf16.gmra.mrb[28].mxu0 %v8425_v14  ;;  %v8512_v13 = vld [vmem:[%s8917_s9 + $0x8e8] ss:$56 sps:$4 sm:$0xff]   ;;  %v8513_v14 = vld [vmem:[%s8917_s9 + $0x244] ss:$56 sps:$4 sm:$0xff]  }
 0x1ff   : > { %4356 = vmatprep.mubr.bf16.mxu1 %v8426_v15  ;;  %5384 = vmatprep.mubr.bf16.mxu0 %v8428_v16  ;;  %v8515_v15 = vld [vmem:[%s8917_s9 + $0x95c] ss:$56 sps:$4 sm:$0xff]  }
 0x200   : > { %v8782_v16 = vld [vmem:[%s10345_s1 + $0x1b8] sm:$0xff]  }
 0x206   : > { %4357 = vmatmul.mubr.bf16.gmra.mrb[96].mxu1 %v8430_v17  ;;  %5385 = vmatmul.mubr.bf16.gmra.mrb[32].mxu0 %v8431_v18  ;;  %v8783_v17 = vld [vmem:[%s10345_s1 + $0x1c0] sm:$0xff]  }
 0x207   : > { %4364 = vmatprep.mubr.bf16.mxu1 %v8434_v19  ;;  %5392 = vmatprep.mubr.bf16.mxu0 %v8436_v20  ;;  %v8517_v18 = vld [vmem:[%s8917_s9 + $0x240] ss:$56 sps:$4 sm:$0xff]   ;;  %v8520_v20 = vld [vmem:[%s8917_s9 + $0x2b4] ss:$56 sps:$4 sm:$0xff]  }
 0x208   : > { %v8518_v19 = vld [vmem:[%s8917_s9 + $0x958] ss:$56 sps:$4 sm:$0xff]  }
 0x20e   : > { %4365 = vmatmul.mubr.bf16.gmra.mrb[100].mxu1 %v8438_v22  ;;  %5393 = vmatmul.mubr.bf16.gmra.mrb[36].mxu0 %v8439_v23  ;;  %v8784_v22 = vld [vmem:[%s10345_s1 + $0x1c8] sm:$0xff]   ;;  %v8785_v23 = vld [vmem:[%s10345_s1 + $0x1d0] sm:$0xff]  }
 0x20f   : > { %4372 = vmatprep.mubr.bf16.mxu1 %v8440_v24  ;;  %5400 = vmatprep.mubr.bf16.mxu0 %v8442_v25  ;;  %v8524_v24 = vld [vmem:[%s8917_s9 + $0x2b0] ss:$56 sps:$4 sm:$0xff]  }
 0x210   : > { %v8525_v25 = vld [vmem:[%s8917_s9 + $0x9c8] ss:$56 sps:$4 sm:$0xff]  }
 0x216   : > { %4373 = vmatmul.mubr.bf16.gmra.mrb[104].mxu1 %v8444_v26  ;;  %5401 = vmatmul.mubr.bf16.gmra.mrb[40].mxu0 %v8445_v27  ;;  %v8526_v26 = vld [vmem:[%s8917_s9 + $0x324] ss:$56 sps:$4 sm:$0xff]  }
 0x217   : > { %4380 = vmatprep.mubr.bf16.mxu1 %v8447_v28  ;;  %5408 = vmatprep.mubr.bf16.mxu0 %v8449_v29  ;;  %v8528_v27 = vld [vmem:[%s8917_s9 + $0xa3c] ss:$56 sps:$4 sm:$0xff]   ;;  %v8787_v29 = vld [vmem:[%s10345_s1 + $0x1e0] sm:$0xff]  }
 0x218   : > { %v8786_v28 = vld [vmem:[%s10345_s1 + $0x1d8] sm:$0xff]  }
 0x21e   : > { %4381 = vmatmul.mubr.bf16.gmra.mrb[108].mxu1 %v8452_v31  ;;  %5409 = vmatmul.mubr.bf16.gmra.mrb[44].mxu0 %v8453_v32  ;;  %v8531_v31 = vld [vmem:[%s8917_s9 + $0xa38] ss:$56 sps:$4 sm:$0xff]   ;;  %v8532_v32 = vld [vmem:[%s8917_s9 + $0x394] ss:$56 sps:$4 sm:$0xff]  }
 0x21f   : > { %4388 = vmatprep.mubr.bf16.mxu1 %v8454_v33  ;;  %5416 = vmatprep.mubr.bf16.mxu0 %v8456_v34  ;;  %v8534_v33 = vld [vmem:[%s8917_s9 + $0xaac] ss:$56 sps:$4 sm:$0xff]  }
 0x220   : > { %v8788_v34 = vld [vmem:[%s10345_s1 + $0x1e8] sm:$0xff]  }
 0x226   : > { %4389 = vmatmul.mubr.bf16.gmra.mrb[112].mxu1 %v8458_v35  ;;  %5417 = vmatmul.mubr.bf16.gmra.mrb[48].mxu0 %v8459_v36  ;;  %v8789_v35 = vld [vmem:[%s10345_s1 + $0x1f0] sm:$0xff]  }
 0x227   : > { %4396 = vmatprep.mubr.bf16.mxu1 %v8461_v37  ;;  %5424 = vmatprep.mubr.bf16.mxu0 %v8463_v38  ;;  %v8536_v36 = vld [vmem:[%s8917_s9 + $0x390] ss:$56 sps:$4 sm:$0xff]   ;;  %v8539_v38 = vld [vmem:[%s8917_s9 + $0x404] ss:$56 sps:$4 sm:$0xff]  }
 0x228   : > { %v8537_v37 = vld [vmem:[%s8917_s9 + $0xaa8] ss:$56 sps:$4 sm:$0xff]  }
 0x22e   : > { %4397 = vmatmul.mubr.bf16.gmra.mrb[116].mxu1 %v8465_v39  ;;  %5425 = vmatmul.mubr.bf16.gmra.mrb[52].mxu0 %v8466_v40  ;;  %v8541_v39 = vld [vmem:[%s8917_s9 + $0xb1c] ss:$56 sps:$4 sm:$0xff]  }
 0x22f   : > { %4404 = vmatprep.mubr.bf16.mxu1 %v8468_v41  ;;  %5432 = vmatprep.mubr.bf16.mxu0 %v8470_v42  ;;  %v8790_v40 = vld [vmem:[%s10345_s1 + $0x1f8] sm:$0xff]  }
 0x230   : > { %v8543_v41 = vld [vmem:[%s8917_s9 + $0x400] ss:$56 sps:$4 sm:$0xff]  }
 0x231   : > { %v8544_v42 = vld [vmem:[%s8917_s9 + $0xb18] ss:$56 sps:$4 sm:$0xff]  }
 0x236   : > { %4405 = vmatmul.mubr.bf16.gmra.mrb[120].mxu1 %v8472_v44  ;;  %5433 = vmatmul.mubr.bf16.gmra.mrb[56].mxu0 %v8473_v45  ;;  %v8547_v44 = vld [vmem:[%s8917_s9 + $0xb8c] ss:$56 sps:$4 sm:$0xff]   ;;  %v8549_v45 = vld [vmem:[%s8917_s9 + $0x470] ss:$56 sps:$4 sm:$0xff]  }
 0x237   : > { %4412 = vmatprep.mubr.bf16.mxu1 %v8475_v46  ;;  %5440 = vmatprep.mubr.bf16.mxu0 %v8477_v47  ;;  %v8550_v46 = vld [vmem:[%s8917_s9 + $0xb88] ss:$56 sps:$4 sm:$0xff]   ;;  %v8551_v47 = vld [vmem:[%s8917_s9 + $0x4e4] ss:$56 sps:$4 sm:$0xff]  }
 0x23e   : > { %4413 = vmatmul.mubr.bf16.gmra.mrb[124].mxu1 %v8479_v48  ;;  %5441 = vmatmul.mubr.bf16.gmra.mrb[60].mxu0 %v8480_v49  ;;  %v8553_v48 = vld [vmem:[%s8917_s9 + $0xbfc] ss:$56 sps:$4 sm:$0xff]   ;;  %v8556_v49 = vld [vmem:[%s8917_s9 + $0x4e0] ss:$56 sps:$4 sm:$0xff]  }
 0x23f   : > { %4453 = vmatprep.mubr.bf16.mxu1 %v8483_v50  ;;  %5448 = vmatprep.mubr.bf16.mxu0 %v8484_v51  ;;  %v8557_v50 = vld [vmem:[%s8917_s9 + $0xbf8] ss:$56 sps:$4 sm:$0xff]   ;;  %v8558_v51 = vld [vmem:[%s8917_s9 + $0x554] ss:$56 sps:$4 sm:$0xff]  }
 0x246   : > { %4454 = vmatmul.mubr.bf16.vlgmr.msra.gmra.mrb[0].mxu1 %v8481_v52  ;;  %5449 = vmatmul.mubr.bf16.gmra.mrb[64].mxu0 %v8486_v53  ;;  %v8560_v52 = vld [vmem:[%s8917_s9 + $0xc6c] ss:$56 sps:$4 sm:$0xff]   ;;  %v8562_v53 = vld [vmem:[%s8917_s9 + $0x550] ss:$56 sps:$4 sm:$0xff]  }
 0x247   : > { %7265 = vmatpush1.bf16.msra.mxu1 %v8775_v56  ;;  %4461 = vmatprep.mubr.bf16.mxu1 %v8488_v54  ;;  %v8563_v54 = vld [vmem:[%s8917_s9 + $0xc68] ss:$56 sps:$4 sm:$0xff]   ;;  %v8566_v56 = vld [vmem:[%s8917_s9 + $0xcdc] ss:$56 sps:$4 sm:$0xff]  }
 0x248   : > { %5456 = vmatprep.mubr.bf16.mxu0 %v8490_v55  ;;  %7250 = vmatprep.subr.bf16.mxu1 %v8801_v1  ;;  %v8564_v55 = vld [vmem:[%s8917_s9 + $0x5c4] ss:$56 sps:$4 sm:$0xff]  }
 0x24b   : > { %7266 = vmatpush1.bf16.msra.mxu1 %v8776_v60  ;;  %v8573_v60 = vld [vmem:[%s8917_s9 + $0xd4c] ss:$56 sps:$4 sm:$0xff]  }
 0x24c   : > { %7251 = vmatprep.subr.bf16.mxu1 %v8801_v1 }
 0x24e   : > { %4462 = vmatmul.mubr.bf16.gmra.mrb[4].mxu1 %v8492_v57  ;;  %5457 = vmatmul.mubr.bf16.gmra.mrb[68].mxu0 %v8493_v58  ;;  %v8568_v57 = vld [vmem:[%s8917_s9 + $0x5c0] ss:$56 sps:$4 sm:$0xff]  }
 0x24f   : > { %4469 = vmatprep.mubr.bf16.mxu1 %v8494_v59  ;;  %5464 = vmatprep.mubr.bf16.mxu0 %v8496_v61  ;;  %v8569_v58 = vld [vmem:[%s8917_s9 + $0xcd8] ss:$56 sps:$4 sm:$0xff]   ;;  %v8571_v59 = vld [vmem:[%s8917_s9 + $0x634] ss:$56 sps:$4 sm:$0xff]  }
 0x250   : > { %7267 = vmatpush1.bf16.msra.mxu1 %v8777_v62  ;;  %v8575_v61 = vld [vmem:[%s8917_s9 + $0x630] ss:$56 sps:$4 sm:$0xff]  }
 0x251   : > { %7252 = vmatprep.subr.bf16.mxu1 %v8801_v1  ;;  %v8576_v62 = vld [vmem:[%s8917_s9 + $0xd48] ss:$56 sps:$4 sm:$0xff]  }
 0x254   : > { %7268 = vmatpush1.bf16.msra.mxu1 %v8778_v4  ;;  %v8583_v4 = vld [vmem:[%s8917_s9 + $0x714] ss:$56 sps:$4 sm:$0xff]  }
 0x255   : > { %7253 = vmatprep.subr.bf16.mxu1 %v8801_v1 }
 0x256   : > { %4470 = vmatmul.mubr.bf16.gmra.mrb[8].mxu1 %v8498_v63  ;;  %5465 = vmatmul.mubr.bf16.gmra.mrb[72].mxu0 %v8499_v0  ;;  %v8577_v63 = vld [vmem:[%s8917_s9 + $0x6a4] ss:$56 sps:$4 sm:$0xff]  }
 0x257   : > { %4477 = vmatprep.mubr.bf16.mxu1 %v8500_v2  ;;  %5472 = vmatprep.mubr.bf16.mxu0 %v8502_v3  ;;  %v8579_v0 = vld [vmem:[%s8917_s9 + $0xdbc] ss:$56 sps:$4 sm:$0xff]   ;;  %v8581_v2 = vld [vmem:[%s8917_s9 + $0x6a0] ss:$56 sps:$4 sm:$0xff]  }
 0x258   : > { %7269 = vmatpush1.bf16.msra.mxu1 %v8779_v5  ;;  %v8582_v3 = vld [vmem:[%s8917_s9 + $0xdb8] ss:$56 sps:$4 sm:$0xff]   ;;  %v8587_v5 = vld [vmem:[%s8917_s9 + $0x34] ss:$56 sps:$4 sm:$0xff]  }
 0x259   : > { %7254 = vmatprep.subr.bf16.mxu1 %v8801_v1 }
 0x25c   : > { %7270 = vmatpush1.bf16.msra.mxu1 %v8780_v10  ;;  %v8593_v10 = vld [vmem:[%s8917_s9 + $0x780] ss:$56 sps:$4 sm:$0xff]  }
 0x25d   : > { %7255 = vmatprep.subr.bf16.mxu1 %v8801_v1 }
 0x25e   : > { %4478 = vmatmul.mubr.bf16.gmra.mrb[12].mxu1 %v8505_v6  ;;  %5473 = vmatmul.mubr.bf16.gmra.mrb[76].mxu0 %v8506_v7  ;;  %v8588_v6 = vld [vmem:[%s8917_s9 + $0x710] ss:$56 sps:$4 sm:$0xff]  }
 0x25f   : > { %4485 = vmatprep.mubr.bf16.mxu1 %v8507_v8  ;;  %5480 = vmatprep.mubr.bf16.mxu0 %v8509_v9  ;;  %v8585_v7 = vld [vmem:[%s8917_s9 + $0x30] ss:$56 sps:$4 sm:$0xff]   ;;  %v8589_v8 = vld [vmem:[%s8917_s9 + $0x784] ss:$56 sps:$4 sm:$0xff]  }
 0x260   : > { %7271 = vmatpush1.bf16.msra.mxu1 %v8781_v11  ;;  %v8591_v9 = vld [vmem:[%s8917_s9 + $0xa4] ss:$56 sps:$4 sm:$0xff]   ;;  %v8594_v11 = vld [vmem:[%s8917_s9 + $0xa0] ss:$56 sps:$4 sm:$0xff]  }
 0x261   : > { %7256 = vmatprep.subr.bf16.mxu1 %v8801_v1 }
 0x264   : > { %7272 = vmatpush1.bf16.msra.mxu1 %v8782_v16  ;;  %v8601_v16 = vld [vmem:[%s8917_s9 + $0x864] ss:$56 sps:$4 sm:$0xff]  }
 0x265   : > { %7257 = vmatprep.subr.bf16.mxu1 %v8801_v1 }
 0x266   : > { %4486 = vmatmul.mubr.bf16.gmra.mrb[16].mxu1 %v8511_v12  ;;  %5481 = vmatmul.mubr.bf16.gmra.mrb[80].mxu0 %v8512_v13  ;;  %v8595_v12 = vld [vmem:[%s8917_s9 + $0x7f4] ss:$56 sps:$4 sm:$0xff]  }
 0x267   : > { %4493 = vmatprep.mubr.bf16.mxu1 %v8513_v14  ;;  %5488 = vmatprep.mubr.bf16.mxu0 %v8515_v15  ;;  %v8597_v13 = vld [vmem:[%s8917_s9 + $0x114] ss:$56 sps:$4 sm:$0xff]   ;;  %v8599_v14 = vld [vmem:[%s8917_s9 + $0x7f0] ss:$56 sps:$4 sm:$0xff]  }
 0x268   : > { %7273 = vmatpush1.bf16.msra.mxu1 %v8783_v17  ;;  %v8600_v15 = vld [vmem:[%s8917_s9 + $0x110] ss:$56 sps:$4 sm:$0xff]   ;;  %v8603_v17 = vld [vmem:[%s8917_s9 + $0x184] ss:$56 sps:$4 sm:$0xff]  }
 0x269   : > { %7258 = vmatprep.subr.bf16.mxu1 %v8801_v1 }
 0x26c   : > { %7274 = vmatpush1.bf16.msra.mxu1 %v8784_v22  ;;  %v8611_v22 = vld [vmem:[%s8917_s9 + $0x8d0] ss:$56 sps:$4 sm:$0xff]  }
 0x26d   : > { %7259 = vmatprep.subr.bf16.mxu1 %v8801_v1 }
 0x26e   : > { %4494 = vmatmul.mubr.bf16.gmra.mrb[20].mxu1 %v8517_v18  ;;  %5489 = vmatmul.mubr.bf16.gmra.mrb[84].mxu0 %v8518_v19  ;;  %v8605_v18 = vld [vmem:[%s8917_s9 + $0x860] ss:$56 sps:$4 sm:$0xff]  }
 0x26f   : > { %4501 = vmatprep.mubr.bf16.mxu1 %v8520_v20  ;;  %5496 = vmatprep.mubr.bf16.mxu0 %v8522_v21  ;;  %v8606_v19 = vld [vmem:[%s8917_s9 + $0x180] ss:$56 sps:$4 sm:$0xff]   ;;  %v8607_v20 = vld [vmem:[%s8917_s9 + $0x8d4] ss:$56 sps:$4 sm:$0xff]  }
 0x270   : > { %7275 = vmatpush1.bf16.msra.mxu1 %v8785_v23  ;;  %v8609_v21 = vld [vmem:[%s8917_s9 + $0x1f4] ss:$56 sps:$4 sm:$0xff]   ;;  %v8612_v23 = vld [vmem:[%s8917_s9 + $0x1f0] ss:$56 sps:$4 sm:$0xff]  }
 0x271   : > { %7260 = vmatprep.subr.bf16.mxu1 %v8801_v1 }
 0x274   : > { %7276 = vmatpush1.bf16.msra.mxu1 %v8786_v28  ;;  %v8619_v28 = vld [vmem:[%s8917_s9 + $0x9b4] ss:$56 sps:$4 sm:$0xff]  }
 0x275   : > { %7261 = vmatprep.subr.bf16.mxu1 %v8801_v1 }
 0x276   : > { %4502 = vmatmul.mubr.bf16.gmra.mrb[24].mxu1 %v8524_v24  ;;  %5497 = vmatmul.mubr.bf16.gmra.mrb[88].mxu0 %v8525_v25  ;;  %v8613_v24 = vld [vmem:[%s8917_s9 + $0x944] ss:$56 sps:$4 sm:$0xff]  }
 0x277   : > { %4509 = vmatprep.mubr.bf16.mxu1 %v8526_v26  ;;  %5504 = vmatprep.mubr.bf16.mxu0 %v8528_v27  ;;  %v8615_v25 = vld [vmem:[%s8917_s9 + $0x264] ss:$56 sps:$4 sm:$0xff]   ;;  %v8617_v26 = vld [vmem:[%s8917_s9 + $0x940] ss:$56 sps:$4 sm:$0xff]  }
 0x278   : > { %7277 = vmatpush1.bf16.msra.mxu1 %v8787_v29  ;;  %v8618_v27 = vld [vmem:[%s8917_s9 + $0x260] ss:$56 sps:$4 sm:$0xff]   ;;  %v8621_v29 = vld [vmem:[%s8917_s9 + $0x2d4] ss:$56 sps:$4 sm:$0xff]  }
 0x279   : > { %7262 = vmatprep.subr.bf16.mxu1 %v8801_v1 }
 0x27c   : > { %7278 = vmatpush1.bf16.msra.mxu1 %v8788_v34  ;;  %v8629_v34 = vld [vmem:[%s8917_s9 + $0xa20] ss:$56 sps:$4 sm:$0xff]  }
 0x27d   : > { %7263 = vmatprep.subr.bf16.mxu1 %v8801_v1 }
 0x27e   : > { %4510 = vmatmul.mubr.bf16.gmra.mrb[28].mxu1 %v8530_v30  ;;  %5505 = vmatmul.mubr.bf16.gmra.mrb[92].mxu0 %v8531_v31  ;;  %v8623_v30 = vld [vmem:[%s8917_s9 + $0x9b0] ss:$56 sps:$4 sm:$0xff]  }
 0x27f   : > { %4517 = vmatprep.mubr.bf16.mxu1 %v8532_v32  ;;  %5512 = vmatprep.mubr.bf16.mxu0 %v8534_v33  ;;  %v8624_v31 = vld [vmem:[%s8917_s9 + $0x2d0] ss:$56 sps:$4 sm:$0xff]   ;;  %v8625_v32 = vld [vmem:[%s8917_s9 + $0xa24] ss:$56 sps:$4 sm:$0xff]  }
 0x280   : > { %7279 = vmatpush1.bf16.msra.mxu1 %v8789_v35  ;;  %v8627_v33 = vld [vmem:[%s8917_s9 + $0x344] ss:$56 sps:$4 sm:$0xff]   ;;  %v8630_v35 = vld [vmem:[%s8917_s9 + $0x340] ss:$56 sps:$4 sm:$0xff]  }
 0x281   : > { %7264 = vmatprep.subr.bf16.mxu1 %v8801_v1 }
 0x284   : > { %7280 = vmatpush1.bf16.msra.mxu1 %v8790_v40  ;;  %v8637_v40 = vld [vmem:[%s8917_s9 + $0xb04] ss:$56 sps:$4 sm:$0xff]  }
 0x286   : > { %4518 = vmatmul.mubr.bf16.gmra.mrb[32].mxu1 %v8536_v36  ;;  %5513 = vmatmul.mubr.bf16.gmra.mrb[96].mxu0 %v8537_v37  ;;  %v8631_v36 = vld [vmem:[%s8917_s9 + $0xa94] ss:$56 sps:$4 sm:$0xff]  }
 0x287   : > { %4525 = vmatprep.mubr.bf16.mxu1 %v8539_v38  ;;  %5520 = vmatprep.mubr.bf16.mxu0 %v8541_v39  ;;  %v8633_v37 = vld [vmem:[%s8917_s9 + $0x3b4] ss:$56 sps:$4 sm:$0xff]   ;;  %v8635_v38 = vld [vmem:[%s8917_s9 + $0xa90] ss:$56 sps:$4 sm:$0xff]  }
 0x288   : > { %v8636_v39 = vld [vmem:[%s8917_s9 + $0x3b0] ss:$56 sps:$4 sm:$0xff]  }
 0x28e   : > { %4526 = vmatmul.mubr.bf16.gmra.mrb[36].mxu1 %v8543_v41  ;;  %5521 = vmatmul.mubr.bf16.gmra.mrb[100].mxu0 %v8544_v42  ;;  %v8639_v41 = vld [vmem:[%s8917_s9 + $0x424] ss:$56 sps:$4 sm:$0xff]   ;;  %v8641_v42 = vld [vmem:[%s8917_s9 + $0xb00] ss:$56 sps:$4 sm:$0xff]  }
 0x28f   : > { %4533 = vmatprep.mubr.bf16.mxu1 %v8545_v43  ;;  %5528 = vmatprep.mubr.bf16.mxu0 %v8547_v44  ;;  %v8642_v43 = vld [vmem:[%s8917_s9 + $0x420] ss:$56 sps:$4 sm:$0xff]   ;;  %v8643_v44 = vld [vmem:[%s8917_s9 + $0xb74] ss:$56 sps:$4 sm:$0xff]  }
 0x296   : > { %4534 = vmatmul.mubr.bf16.gmra.mrb[40].mxu1 %v8549_v45  ;;  %5529 = vmatmul.mubr.bf16.gmra.mrb[104].mxu0 %v8550_v46  ;;  %v8645_v45 = vld [vmem:[%s8917_s9 + $0x494] ss:$56 sps:$4 sm:$0xff]   ;;  %v8647_v46 = vld [vmem:[%s8917_s9 + $0xb70] ss:$56 sps:$4 sm:$0xff]  }
 0x297   : > { %4541 = vmatprep.mubr.bf16.mxu1 %v8551_v47  ;;  %5536 = vmatprep.mubr.bf16.mxu0 %v8553_v48  ;;  %v8648_v47 = vld [vmem:[%s8917_s9 + $0x490] ss:$56 sps:$4 sm:$0xff]   ;;  %v8649_v48 = vld [vmem:[%s8917_s9 + $0xbe4] ss:$56 sps:$4 sm:$0xff]  }
 0x29e   : > { %4542 = vmatmul.mubr.bf16.gmra.mrb[44].mxu1 %v8556_v49  ;;  %5537 = vmatmul.mubr.bf16.gmra.mrb[108].mxu0 %v8557_v50  ;;  %v8651_v49 = vld [vmem:[%s8917_s9 + $0x504] ss:$56 sps:$4 sm:$0xff]  }
 0x29f   : > { %4549 = vmatprep.mubr.bf16.mxu1 %v8558_v51  ;;  %5544 = vmatprep.mubr.bf16.mxu0 %v8560_v52  ;;  %v8653_v52 = vld [vmem:[%s8917_s9 + $0xbe0] ss:$56 sps:$4 sm:$0xff]  }
 0x2a6   : > { %4550 = vmatmul.mubr.bf16.gmra.mrb[48].mxu1 %v8562_v53  ;;  %5545 = vmatmul.mubr.bf16.gmra.mrb[112].mxu0 %v8563_v54  ;;  %v8654_v54 = vld [vmem:[%s8917_s9 + $0x500] ss:$56 sps:$4 sm:$0xff]  }
 0x2a7   : > { %4557 = vmatprep.mubr.bf16.mxu1 %v8564_v55  ;;  %5552 = vmatprep.mubr.bf16.mxu0 %v8566_v56  ;;  %v8655_v55 = vld [vmem:[%s8917_s9 + $0xc54] ss:$56 sps:$4 sm:$0xff]  }
 0x2ae   : > { %4558 = vmatmul.mubr.bf16.gmra.mrb[52].mxu1 %v8568_v57  ;;  %5553 = vmatmul.mubr.bf16.gmra.mrb[116].mxu0 %v8569_v58  ;;  %v8657_v57 = vld [vmem:[%s8917_s9 + $0x574] ss:$56 sps:$4 sm:$0xff]  }
 0x2af   : > { %4565 = vmatprep.mubr.bf16.mxu1 %v8571_v59  ;;  %5560 = vmatprep.mubr.bf16.mxu0 %v8573_v60  ;;  %v8659_v60 = vld [vmem:[%s8917_s9 + $0xc50] ss:$56 sps:$4 sm:$0xff]  }
 0x2b6   : > { %4566 = vmatmul.mubr.bf16.gmra.mrb[56].mxu1 %v8575_v61  ;;  %5561 = vmatmul.mubr.bf16.gmra.mrb[120].mxu0 %v8576_v62  ;;  %v8660_v62 = vld [vmem:[%s8917_s9 + $0x570] ss:$56 sps:$4 sm:$0xff]  }
 0x2b7   : > { %4573 = vmatprep.mubr.bf16.mxu1 %v8577_v63  ;;  %5568 = vmatprep.mubr.bf16.mxu0 %v8579_v0  ;;  %v8661_v63 = vld [vmem:[%s8917_s9 + $0xcc4] ss:$56 sps:$4 sm:$0xff]  }
 0x2be   : > { %4574 = vmatmul.mubr.bf16.gmra.mrb[60].mxu1 %v8581_v2  ;;  %5569 = vmatmul.mubr.bf16.gmra.mrb[124].mxu0 %v8582_v3  ;;  %v8663_v2 = vld [vmem:[%s8917_s9 + $0x5e4] ss:$56 sps:$4 sm:$0xff]  }
 0x2bf   : > { %4581 = vmatprep.mubr.bf16.mxu1 %v8583_v4  ;;  %7084 = vmatprep.mubr.msk.bf16.mxu0 %vm3746_vm0, %v8587_v5  ;;  %v8665_v5 = vld [vmem:[%s8917_s9 + $0xcc0] ss:$56 sps:$4 sm:$0xff]  }
 0x2c6   : > { %4582 = vmatmul.mubr.bf16.gmra.mrb[64].mxu1 %v8588_v6  ;;  %5610 = vmatmul.mubr.bf16.vlgmr.msra.gmra.mrb[0].mxu0 %v8585_v7  ;;  %v8666_v7 = vld [vmem:[%s8917_s9 + $0x5e0] ss:$56 sps:$4 sm:$0xff]  }
 0x2c7   : > { %4589 = vmatprep.mubr.bf16.mxu1 %v8589_v8  ;;  %7085 = vmatprep.mubr.msk.bf16.mxu0 %vm3746_vm0, %v8591_v9  ;;  %v8667_v8 = vld [vmem:[%s8917_s9 + $0xd34] ss:$56 sps:$4 sm:$0xff]  }
 0x2ce   : > { %4590 = vmatmul.mubr.bf16.gmra.mrb[68].mxu1 %v8593_v10  ;;  %5618 = vmatmul.mubr.bf16.gmra.mrb[4].mxu0 %v8594_v11  ;;  %v8669_v10 = vld [vmem:[%s8917_s9 + $0x654] ss:$56 sps:$4 sm:$0xff]  }
 0x2cf   : > { %4597 = vmatprep.mubr.bf16.mxu1 %v8595_v12  ;;  %7086 = vmatprep.mubr.msk.bf16.mxu0 %vm3746_vm0, %v8597_v13  ;;  %v8671_v13 = vld [vmem:[%s8917_s9 + $0xd30] ss:$56 sps:$4 sm:$0xff]  }
 0x2d6   : > { %4598 = vmatmul.mubr.bf16.gmra.mrb[72].mxu1 %v8599_v14  ;;  %5626 = vmatmul.mubr.bf16.gmra.mrb[8].mxu0 %v8600_v15  ;;  %v8672_v15 = vld [vmem:[%s8917_s9 + $0x650] ss:$56 sps:$4 sm:$0xff]  }
 0x2d7   : > { %4605 = vmatprep.mubr.bf16.mxu1 %v8601_v16  ;;  %7087 = vmatprep.mubr.msk.bf16.mxu0 %vm3746_vm0, %v8603_v17  ;;  %v8673_v16 = vld [vmem:[%s8917_s9 + $0xda4] ss:$56 sps:$4 sm:$0xff]  }
 0x2de   : > { %4606 = vmatmul.mubr.bf16.gmra.mrb[76].mxu1 %v8605_v18  ;;  %5634 = vmatmul.mubr.bf16.gmra.mrb[12].mxu0 %v8606_v19  ;;  %v8675_v18 = vld [vmem:[%s8917_s9 + $0x6c4] ss:$56 sps:$4 sm:$0xff]  }
 0x2df   : > { %4613 = vmatprep.mubr.bf16.mxu1 %v8607_v20  ;;  %7088 = vmatprep.mubr.msk.bf16.mxu0 %vm3746_vm0, %v8609_v21  ;;  %v8677_v21 = vld [vmem:[%s8917_s9 + $0xda0] ss:$56 sps:$4 sm:$0xff]  }
 0x2e6   : > { %4614 = vmatmul.mubr.bf16.gmra.mrb[80].mxu1 %v8611_v22  ;;  %5642 = vmatmul.mubr.bf16.gmra.mrb[16].mxu0 %v8612_v23  ;;  %v8678_v23 = vld [vmem:[%s8917_s9 + $0x6c0] ss:$56 sps:$4 sm:$0xff]  }
 0x2e7   : > { %4621 = vmatprep.mubr.bf16.mxu1 %v8613_v24  ;;  %7089 = vmatprep.mubr.msk.bf16.mxu0 %vm3746_vm0, %v8615_v25  ;;  %v8681_v24 = vld [vmem:[%s8917_s9 + $0x71c] ss:$56 sps:$4 sm:$0xff]  }
 0x2ee   : > { %4622 = vmatmul.mubr.bf16.gmra.mrb[84].mxu1 %v8617_v26  ;;  %5650 = vmatmul.mubr.bf16.gmra.mrb[20].mxu0 %v8618_v27  ;;  %v8682_v26 = vld [vmem:[%s8917_s9 + $0x734] ss:$56 sps:$4 sm:$0xff]  }
 0x2ef   : > { %4629 = vmatprep.mubr.bf16.mxu1 %v8619_v28  ;;  %7090 = vmatprep.mubr.msk.bf16.mxu0 %vm3746_vm0, %v8621_v29  ;;  %v8679_v29 = vld [vmem:[%s8917_s9 + $0x718] ss:$56 sps:$4 sm:$0xff]  }
 0x2f6   : > { %4630 = vmatmul.mubr.bf16.gmra.mrb[88].mxu1 %v8623_v30  ;;  %5658 = vmatmul.mubr.bf16.gmra.mrb[24].mxu0 %v8624_v31  ;;  %v8684_v31 = vld [vmem:[%s8917_s9 + $0x730] ss:$56 sps:$4 sm:$0xff]  }
 0x2f7   : > { %4637 = vmatprep.mubr.bf16.mxu1 %v8625_v32  ;;  %7091 = vmatprep.mubr.msk.bf16.mxu0 %vm3746_vm0, %v8627_v33  ;;  %v8685_v32 = vld [vmem:[%s8917_s9 + $0x78c] ss:$56 sps:$4 sm:$0xff]  }
 0x2fe   : > { %4638 = vmatmul.mubr.bf16.gmra.mrb[92].mxu1 %v8629_v34  ;;  %5666 = vmatmul.mubr.bf16.gmra.mrb[28].mxu0 %v8630_v35  ;;  %v8687_v34 = vld [vmem:[%s8917_s9 + $0x7a4] ss:$56 sps:$4 sm:$0xff]  }
 0x2ff   : > { %4645 = vmatprep.mubr.bf16.mxu1 %v8631_v36  ;;  %7092 = vmatprep.mubr.msk.bf16.mxu0 %vm3746_vm0, %v8633_v37  ;;  %v8689_v37 = vld [vmem:[%s8917_s9 + $0x788] ss:$56 sps:$4 sm:$0xff]  }
 0x306   : > { %4646 = vmatmul.mubr.bf16.gmra.mrb[96].mxu1 %v8635_v38  ;;  %5674 = vmatmul.mubr.bf16.gmra.mrb[32].mxu0 %v8636_v39  ;;  %v8690_v39 = vld [vmem:[%s8917_s9 + $0x7a0] ss:$56 sps:$4 sm:$0xff]  }
 0x307   : > { %4653 = vmatprep.mubr.bf16.mxu1 %v8637_v40  ;;  %7093 = vmatprep.mubr.msk.bf16.mxu0 %vm3746_vm0, %v8639_v41  ;;  %v8691_v40 = vld [vmem:[%s8917_s9 + $0x7fc] ss:$56 sps:$4 sm:$0xff]  }
 0x30e   : > { %4654 = vmatmul.mubr.bf16.gmra.mrb[100].mxu1 %v8641_v42  ;;  %5682 = vmatmul.mubr.bf16.gmra.mrb[36].mxu0 %v8642_v43  ;;  %v8693_v42 = vld [vmem:[%s8917_s9 + $0x814] ss:$56 sps:$4 sm:$0xff]  }
 0x30f   : > { %4661 = vmatprep.mubr.bf16.mxu1 %v8643_v44  ;;  %7094 = vmatprep.mubr.msk.bf16.mxu0 %vm3746_vm0, %v8645_v45  ;;  %v8695_v45 = vld [vmem:[%s8917_s9 + $0x7f8] ss:$56 sps:$4 sm:$0xff]  }
 0x316   : > { %4662 = vmatmul.mubr.bf16.gmra.mrb[104].mxu1 %v8647_v46  ;;  %5690 = vmatmul.mubr.bf16.gmra.mrb[40].mxu0 %v8648_v47  ;;  %v8696_v47 = vld [vmem:[%s8917_s9 + $0x810] ss:$56 sps:$4 sm:$0xff]  }
 0x317   : > { %4669 = vmatprep.mubr.bf16.mxu1 %v8649_v48  ;;  %7095 = vmatprep.mubr.msk.bf16.mxu0 %vm3746_vm0, %v8651_v49  ;;  %v8697_v48 = vld [vmem:[%s8917_s9 + $0x86c] ss:$56 sps:$4 sm:$0xff]  }
 0x319   : > { %v9726_v50 = vpop.f32.mrb[0].mxu1 }
 0x31a   : > { %v4457_v51 = vpop.f32.mrb[1].mxu1 }
 0x31b   : > { %v9729_v53 = vpop.f32.mrb[2].mxu1  ;;  %v8699_v51 = vld [vmem:[%s8917_s9 + $0x884] ss:$56 sps:$4 sm:$0xff]  }
 0x31c   : > { %v4460_v56 = vpop.f32.mrb[3].mxu1 }
 0x31e   : > { %4670 = vmatmul.mubr.bf16.gmra.mrb[108].mxu1 %v8653_v52  ;;  %5698 = vmatmul.mubr.bf16.gmra.mrb[44].mxu0 %v8654_v54 }
 0x31f   : > { %4677 = vmatprep.mubr.bf16.mxu1 %v8655_v55  ;;  %7096 = vmatprep.mubr.msk.bf16.mxu0 %vm3746_vm0, %v8657_v57  ;;  %v8701_v55 = vld [vmem:[%s8917_s9 + $0x868] ss:$56 sps:$4 sm:$0xff]  }
 0x320   : > { %v8702_v57 = vld [vmem:[%s8917_s9 + $0x880] ss:$56 sps:$4 sm:$0xff]  }
 0x321   : > { %v9735_v58 = vpop.f32.mrb[4].mxu1 }
 0x322   : > { %v4465_v59 = vpop.f32.mrb[5].mxu1 }
 0x323   : > { %v9738_v61 = vpop.f32.mrb[6].mxu1  ;;  %v8703_v59 = vld [vmem:[%s8917_s9 + $0x8dc] ss:$56 sps:$4 sm:$0xff]  }
 0x324   : > { %v4468_v0 = vpop.f32.mrb[7].mxu1 }
 0x326   : > { %4678 = vmatmul.mubr.bf16.gmra.mrb[112].mxu1 %v8659_v60  ;;  %5706 = vmatmul.mubr.bf16.gmra.mrb[48].mxu0 %v8660_v62  ;;  %v8705_v62 = vld [vmem:[%s8917_s9 + $0x8f4] ss:$56 sps:$4 sm:$0xff]  }
 0x327   : > { %4685 = vmatprep.mubr.bf16.mxu1 %v8661_v63  ;;  %7097 = vmatprep.mubr.msk.bf16.mxu0 %vm3746_vm0, %v8663_v2  ;;  %v8707_v2 = vld [vmem:[%s8917_s9 + $0x8d8] ss:$56 sps:$4 sm:$0xff]  }
 0x329   : > { %v9744_v3 = vpop.f32.mrb[8].mxu1 }
 0x32a   : > { %v4473_v4 = vpop.f32.mrb[9].mxu1 }
 0x32b   : > { %v9747_v6 = vpop.f32.mrb[10].mxu1 }
 0x32c   : > { %v4476_v9 = vpop.f32.mrb[11].mxu1 }
 0x32d   : > { %v8711_v9 = vld [vmem:[%s8917_s9 + $0x964] ss:$56 sps:$4 sm:$0xff]  }
 0x32e   : > { %4686 = vmatmul.mubr.bf16.gmra.mrb[116].mxu1 %v8665_v5  ;;  %5714 = vmatmul.mubr.bf16.gmra.mrb[52].mxu0 %v8666_v7  ;;  %v8708_v5 = vld [vmem:[%s8917_s9 + $0x8f0] ss:$56 sps:$4 sm:$0xff]   ;;  %v8709_v7 = vld [vmem:[%s8917_s9 + $0x94c] ss:$56 sps:$4 sm:$0xff]  }
 0x32f   : > { %4693 = vmatprep.mubr.bf16.mxu1 %v8667_v8  ;;  %7098 = vmatprep.mubr.msk.bf16.mxu0 %vm3746_vm0, %v8669_v10 }
 0x331   : > { %v9753_v11 = vpop.f32.mrb[12].mxu1 }
 0x332   : > { %v4481_v12 = vpop.f32.mrb[13].mxu1 }
 0x333   : > { %v9756_v14 = vpop.f32.mrb[14].mxu1 }
 0x334   : > { %v4484_v17 = vpop.f32.mrb[15].mxu1 }
 0x335   : > { %v8715_v17 = vld [vmem:[%s8917_s9 + $0x9bc] ss:$56 sps:$4 sm:$0xff]  }
 0x336   : > { %4694 = vmatmul.mubr.bf16.gmra.mrb[120].mxu1 %v8671_v13  ;;  %5722 = vmatmul.mubr.bf16.gmra.mrb[56].mxu0 %v8672_v15  ;;  %v8713_v13 = vld [vmem:[%s8917_s9 + $0x948] ss:$56 sps:$4 sm:$0xff]  }
 0x337   : > { %4701 = vmatprep.mubr.bf16.mxu1 %v8673_v16  ;;  %7099 = vmatprep.mubr.msk.bf16.mxu0 %vm3746_vm0, %v8675_v18  ;;  %v8714_v16 = vld [vmem:[%s8917_s9 + $0x960] ss:$56 sps:$4 sm:$0xff]  }
 0x339   : > { %v9762_v19 = vpop.f32.mrb[16].mxu1 }
 0x33a   : > { %v4489_v20 = vpop.f32.mrb[17].mxu1 }
 0x33b   : > { %v9765_v22 = vpop.f32.mrb[18].mxu1  ;;  %v8717_v20 = vld [vmem:[%s8917_s9 + $0x9d4] ss:$56 sps:$4 sm:$0xff]  }
 0x33c   : > { %v4492_v25 = vpop.f32.mrb[19].mxu1 }
 0x33e   : > { %4702 = vmatmul.mubr.bf16.gmra.mrb[124].mxu1 %v8677_v21  ;;  %5730 = vmatmul.mubr.bf16.gmra.mrb[60].mxu0 %v8678_v23 }
 0x33f   : > { %4870 = vmatprep.mubr.bf16.mxu1 %v8681_v24  ;;  %7100 = vmatprep.mubr.msk.bf16.mxu0 %vm3746_vm0, %v8682_v26  ;;  %v8719_v24 = vld [vmem:[%s8917_s9 + $0x9b8] ss:$56 sps:$4 sm:$0xff]  }
 0x340   : > { %v8720_v26 = vld [vmem:[%s8917_s9 + $0x9d0] ss:$56 sps:$4 sm:$0xff]  }
 0x341   : > { %v9771_v27 = vpop.f32.mrb[20].mxu1 }
 0x342   : > { %v4497_v28 = vpop.f32.mrb[21].mxu1 }
 0x343   : > { %v9774_v30 = vpop.f32.mrb[22].mxu1  ;;  %v8721_v28 = vld [vmem:[%s8917_s9 + $0xa2c] ss:$56 sps:$4 sm:$0xff]  }
 0x344   : > { %v4500_v33 = vpop.f32.mrb[23].mxu1 }
 0x346   : > { %4871 = vmatmul.mubr.bf16.vlgmr.msra.gmra.mrb[64].mxu1 %v8679_v29  ;;  %5738 = vmatmul.mubr.bf16.gmra.mrb[64].mxu0 %v8684_v31  ;;  %v8723_v31 = vld [vmem:[%s8917_s9 + $0xa44] ss:$56 sps:$4 sm:$0xff]  }
 0x347   : > { %4878 = vmatprep.mubr.bf16.mxu1 %v8685_v32  ;;  %7101 = vmatprep.mubr.msk.bf16.mxu0 %vm3746_vm0, %v8687_v34  ;;  %v8725_v34 = vld [vmem:[%s8917_s9 + $0xa28] ss:$56 sps:$4 sm:$0xff]  }
 0x349   : > { %v9780_v35 = vpop.f32.mrb[24].mxu1 }
 0x34a   : > { %v4505_v36 = vpop.f32.mrb[25].mxu1 }
 0x34b   : > { %v9783_v38 = vpop.f32.mrb[26].mxu1 }
 0x34c   : > { %v4508_v41 = vpop.f32.mrb[27].mxu1 }
 0x34d   : > { %v8729_v41 = vld [vmem:[%s8917_s9 + $0xab4] ss:$56 sps:$4 sm:$0xff]  }
 0x34e   : > { %4879 = vmatmul.mubr.bf16.gmra.mrb[68].mxu1 %v8689_v37  ;;  %5746 = vmatmul.mubr.bf16.gmra.mrb[68].mxu0 %v8690_v39  ;;  %v8726_v37 = vld [vmem:[%s8917_s9 + $0xa40] ss:$56 sps:$4 sm:$0xff]   ;;  %v8727_v39 = vld [vmem:[%s8917_s9 + $0xa9c] ss:$56 sps:$4 sm:$0xff]  }
 0x34f   : > { %4886 = vmatprep.mubr.bf16.mxu1 %v8691_v40  ;;  %7102 = vmatprep.mubr.msk.bf16.mxu0 %vm3746_vm0, %v8693_v42 }
 0x351   : > { %v9789_v43 = vpop.f32.mrb[28].mxu1 }
 0x352   : > { %v4513_v44 = vpop.f32.mrb[29].mxu1 }
 0x353   : > { %v9792_v46 = vpop.f32.mrb[30].mxu1 }
 0x354   : > { %v4516_v49 = vpop.f32.mrb[31].mxu1 }
 0x355   : > { %v8733_v49 = vld [vmem:[%s8917_s9 + $0xb0c] ss:$56 sps:$4 sm:$0xff]  }
 0x356   : > { %4887 = vmatmul.mubr.bf16.gmra.mrb[72].mxu1 %v8695_v45  ;;  %5754 = vmatmul.mubr.bf16.gmra.mrb[72].mxu0 %v8696_v47  ;;  %v8731_v45 = vld [vmem:[%s8917_s9 + $0xa98] ss:$56 sps:$4 sm:$0xff]  }
 0x357   : > { %4894 = vmatprep.mubr.bf16.mxu1 %v8697_v48  ;;  %7103 = vmatprep.mubr.msk.bf16.mxu0 %vm3746_vm0, %v8699_v51  ;;  %v8732_v48 = vld [vmem:[%s8917_s9 + $0xab0] ss:$56 sps:$4 sm:$0xff]  }
 0x359   : > { %v9798_v52 = vpop.f32.mrb[32].mxu1 }
 0x35a   : > { %v4521_v54 = vpop.f32.mrb[33].mxu1 }
 0x35b   : > { %v9801_v56 = vpop.f32.mrb[34].mxu1  ;;  %v8735_v54 = vld [vmem:[%s8917_s9 + $0xb24] ss:$56 sps:$4 sm:$0xff]  }
 0x35c   : > { %v4524_v60 = vpop.f32.mrb[35].mxu1 }
 0x35e   : > { %4895 = vmatmul.mubr.bf16.gmra.mrb[76].mxu1 %v8701_v55  ;;  %5762 = vmatmul.mubr.bf16.gmra.mrb[76].mxu0 %v8702_v57 }
 0x35f   : > { %4902 = vmatprep.mubr.bf16.mxu1 %v8703_v59  ;;  %7104 = vmatprep.mubr.msk.bf16.mxu0 %vm3746_vm0, %v8705_v62  ;;  %v8737_v59 = vld [vmem:[%s8917_s9 + $0xb08] ss:$56 sps:$4 sm:$0xff]  }
 0x360   : > { %v8738_v62 = vld [vmem:[%s8917_s9 + $0xb20] ss:$56 sps:$4 sm:$0xff]  }
 0x361   : > { %v9807_v63 = vpop.f32.mrb[36].mxu1 }
 0x362   : > { %v4529_v0 = vpop.f32.mrb[37].mxu1 }
 0x363   : > { %v9810_v4 = vpop.f32.mrb[38].mxu1  ;;  %v8739_v0 = vld [vmem:[%s8917_s9 + $0xb7c] ss:$56 sps:$4 sm:$0xff]  }
 0x364   : > { %v4532_v8 = vpop.f32.mrb[39].mxu1 }
 0x366   : > { %4903 = vmatmul.mubr.bf16.gmra.mrb[80].mxu1 %v8707_v2  ;;  %5770 = vmatmul.mubr.bf16.gmra.mrb[80].mxu0 %v8708_v5  ;;  %v8741_v5 = vld [vmem:[%s8917_s9 + $0xb94] ss:$56 sps:$4 sm:$0xff]  }
 0x367   : > { %4910 = vmatprep.mubr.bf16.mxu1 %v8709_v7  ;;  %7105 = vmatprep.mubr.msk.bf16.mxu0 %vm3746_vm0, %v8711_v9  ;;  %v6075_v7 = vlaneseq }
 0x369   : > { %v9816_v10 = vpop.f32.mrb[40].mxu1 }
 0x36a   : > { %v4537_v12 = vpop.f32.mrb[41].mxu1 }
 0x36b   : > { %v9819_v15 = vpop.f32.mrb[42].mxu1  ;;  %v8743_v12 = vld [vmem:[%s8917_s9 + $0xb78] ss:$56 sps:$4 sm:$0xff]  }
 0x36c   : > { %v4540_v18 = vpop.f32.mrb[43].mxu1 }
 0x36d   : > { %v8745_v18 = vld [vmem:[%s8917_s9 + $0xbec] ss:$56 sps:$4 sm:$0xff]  }
 0x36e   : > { %4911 = vmatmul.mubr.bf16.gmra.mrb[84].mxu1 %v8713_v13  ;;  %5778 = vmatmul.mubr.bf16.gmra.mrb[84].mxu0 %v8714_v16  ;;  %v8744_v13 = vld [vmem:[%s8917_s9 + $0xb90] ss:$56 sps:$4 sm:$0xff]  }
 0x36f   : > { %4918 = vmatprep.mubr.bf16.mxu1 %v8715_v17  ;;  %7106 = vmatprep.mubr.msk.bf16.mxu0 %vm3746_vm0, %v8717_v20  ;;  %v6008_v17 = vld [vmem:[%s10348_s4] sm:$0x1] }
 0x370   : > { %vm6009_vm1 = vcmp.gt.f32.partialorder %v6008_v17, 0.0 }
 0x371   : > { %v9825_v21 = vpop.f32.mrb[44].mxu1 }
 0x372   : > { %v4545_v23 = vpop.f32.mrb[45].mxu1 }
 0x373   : > { %v9828_v25 = vpop.f32.mrb[46].mxu1  ;;  %v6076_v23 = vshrl.u32 %v6075_v7, 7 }
 0x374   : > { %v4548_v29 = vpop.f32.mrb[47].mxu1 }
 0x376   : > { %4919 = vmatmul.mubr.bf16.gmra.mrb[88].mxu1 %v8719_v24  ;;  %5786 = vmatmul.mubr.bf16.gmra.mrb[88].mxu0 %v8720_v26  ;;  %v8747_v24 = vld [vmem:[%s8917_s9 + $0xc04] ss:$56 sps:$4 sm:$0xff]   ;;  %v6077_v26 = vsub.s32 0, %v6076_v23 }
 0x377   : > { %4926 = vmatprep.mubr.bf16.mxu1 %v8721_v28  ;;  %7107 = vmatprep.mubr.msk.bf16.mxu0 %vm3746_vm0, %v8723_v31  ;;  %v6074_v28 = vsel %vm6009_vm1, 1, %v8801_v1  ;;  %v9877_v31 = vld [vmem:[%s10346_s2] ss:$0 sm:$0xff] }
 0x379   : > { %v9834_v32 = vpop.f32.mrb[48].mxu1 }
 0x37a   : > { %v4553_v33 = vpop.f32.mrb[49].mxu1 }
 0x37b   : > { %v9837_v36 = vpop.f32.mrb[50].mxu1  ;;  %v8749_v33 = vld [vmem:[%s8917_s9 + $0xbe8] ss:$56 sps:$4 sm:$0xff]  }
 0x37c   : > { %v4556_v40 = vpop.f32.mrb[51].mxu1 }
 0x37d   : > { %v8751_v40 = vld [vmem:[%s8917_s9 + $0xc5c] ss:$56 sps:$4 sm:$0xff]  }
 0x37e   : > { %4927 = vmatmul.mubr.bf16.gmra.mrb[92].mxu1 %v8725_v34  ;;  %5794 = vmatmul.mubr.bf16.gmra.mrb[92].mxu0 %v8726_v37 }
 0x37f   : > { %4934 = vmatprep.mubr.bf16.mxu1 %v8727_v39  ;;  %7108 = vmatprep.mubr.msk.bf16.mxu0 %vm3746_vm0, %v8729_v41  ;;  %v8750_v39 = vld [vmem:[%s8917_s9 + $0xc00] ss:$56 sps:$4 sm:$0xff]  }
 0x380   : > { %v9886_v41 = vld [vmem:[%s10347_s3] ss:$0 sm:$0xff] }
 0x381   : > { %v9843_v42 = vpop.f32.mrb[52].mxu1 }
 0x382   : > { %v4561_v44 = vpop.f32.mrb[53].mxu1 }
 0x383   : > { %v9846_v47 = vpop.f32.mrb[54].mxu1  ;;  %v9888_v44 = vrot.slane %v6074_v28, %v6077_v26 }
 0x384   : > { %v4564_v51 = vpop.f32.mrb[55].mxu1 }
 0x385   : > { %vm6079_vm2 = vcmp.eq.s32.totalorder %v9888_v44, 1 }
 0x386   : > { %4935 = vmatmul.mubr.bf16.gmra.mrb[96].mxu1 %v8731_v45  ;;  %5802 = vmatmul.mubr.bf16.gmra.mrb[96].mxu0 %v8732_v48  ;;  %v8753_v45 = vld [vmem:[%s8917_s9 + $0xc74] ss:$56 sps:$4 sm:$0xff]  }
 0x387   : > { %4942 = vmatprep.mubr.bf16.mxu1 %v8733_v49  ;;  %7109 = vmatprep.mubr.msk.bf16.mxu0 %vm3746_vm0, %v8735_v54 }
 0x389   : > { %v9852_v55 = vpop.f32.mrb[56].mxu1 }
 0x38a   : > { %v4569_v57 = vpop.f32.mrb[57].mxu1 }
 0x38b   : > { %v9855_v60 = vpop.f32.mrb[58].mxu1 }
 0x38c   : > { %v4572_v2 = vpop.f32.mrb[59].mxu1 }
 0x38e   : > { %4943 = vmatmul.mubr.bf16.gmra.mrb[100].mxu1 %v8737_v59  ;;  %5810 = vmatmul.mubr.bf16.gmra.mrb[100].mxu0 %v8738_v62  ;;  %v8755_v62 = vld [vmem:[%s8917_s9 + $0xc58] ss:$56 sps:$4 sm:$0xff]  }
 0x38f   : > { %4950 = vmatprep.mubr.bf16.mxu1 %v8739_v0  ;;  %7110 = vmatprep.mubr.msk.bf16.mxu0 %vm3746_vm0, %v8741_v5 }
 0x391   : > { %v9861_v8 = vpop.f32.mrb[60].mxu1 }
 0x392   : > { %v4577_v9 = vpop.f32.mrb[61].mxu1 }
 0x393   : > { %v9865_v16 = vpop.f32.mrb[62].mxu1  ;;  %v8756_v9 = vld [vmem:[%s8917_s9 + $0xc70] ss:$56 sps:$4 sm:$0xff]  }
 0x394   : > { %v4580_v20 = vpop.f32.mrb[63].mxu1 }
 0x396   : > { %4951 = vmatmul.mubr.bf16.gmra.mrb[104].mxu1 %v8743_v12  ;;  %5818 = vmatmul.mubr.bf16.gmra.mrb[104].mxu0 %v8744_v13  ;;  %v8757_v12 = vld [vmem:[%s8917_s9 + $0xccc] ss:$56 sps:$4 sm:$0xff]  }
 0x397   : > { %4958 = vmatprep.mubr.bf16.mxu1 %v8745_v18  ;;  %7111 = vmatprep.mubr.msk.bf16.mxu0 %vm3746_vm0, %v8747_v24  ;;  %v8759_v18 = vld [vmem:[%s8917_s9 + $0xce4] ss:$56 sps:$4 sm:$0xff]  }
 0x399   : > { %v5611_v29 = vpop.f32.mrb[0].mxu0 }
 0x39a   : > { %v7281_v34 = vadd.f32 %v5611_v29, %v9726_v50  ;;  %v5613_v37 = vpop.f32.mrb[1].mxu0 }
 0x39b   : > { %v5614_v1 = vpop.f32.mrb[2].mxu0  ;;  %v8761_v37 = vld [vmem:[%s8917_s9 + $0xcc8] ss:$56 sps:$4 sm:$0xff]  }
 0x39c   : > { %v5873_v48 = vmul.f32 %v7281_v34, %v9877_v31  ;;  %v7282_v49 = vadd.f32 %v5614_v1, %v9729_v53  ;;  %v5616_v51 = vpop.f32.mrb[3].mxu0 }
 0x39e   : > { %4959 = vmatmul.mubr.bf16.gmra.mrb[108].mxu1 %v8749_v33  ;;  %v5944_v50 = vadd.f32 %v9886_v41, %v5873_v48  ;;  %v5874_v54 = vmul.f32 %v7282_v49, %v9877_v31  ;;  %5826 = vmatmul.mubr.bf16.gmra.mrb[108].mxu0 %v8750_v39  ;;  %v8762_v48 = vld [vmem:[%s8917_s9 + $0xce0] ss:$56 sps:$4 sm:$0xff]   ;;  %v8763_v49 = vld [vmem:[%s8917_s9 + $0xd3c] ss:$56 sps:$4 sm:$0xff]  }
 0x39f   : > { %4966 = vmatprep.mubr.bf16.mxu1 %v8751_v40  ;;  %7112 = vmatprep.mubr.msk.bf16.mxu0 %vm3746_vm0, %v8753_v45 }
 0x3a0   : > { %v6010_v57 = vmax.f32 %v5944_v50, 0.0  ;;  %v5945_v59 = vadd.f32 %v9886_v41, %v5874_v54  ;;  %v8765_v54 = vld [vmem:[%s8917_s9 + $0xd54] ss:$56 sps:$4 sm:$0xff]  }
 0x3a1   : > { %v5619_v53 = vpop.f32.mrb[4].mxu0 }
 0x3a2   : > { %v6080_v0 = vsel %vm6079_vm2, %v6010_v57, %v5944_v50  ;;  %v6011_v2 = vmax.f32 %v5945_v59, 0.0  ;;  %v7283_v5 = vadd.f32 %v5619_v53, %v9735_v58  ;;  %v5621_v7 = vpop.f32.mrb[5].mxu0 }
 0x3a3   : > { %v7185_v13 = vpack.c.bf16 %v6080_v0, %v6080_v0  ;;  %v5622_v17 = vpop.f32.mrb[6].mxu0 }
 0x3a4   : > { %v6081_v20 = vsel %vm6079_vm2, %v6011_v2, %v5945_v59  ;;  %v5875_v23 = vmul.f32 %v7283_v5, %v9877_v31  ;;  %v7284_v24 = vadd.f32 %v5622_v17, %v9738_v61  ;;  %v5624_v26 = vpop.f32.mrb[7].mxu0 }
 0x3a5   : > { %6401 = vst.msk [vmem:[%s9903_s13] sm:$0xf] %vm6400_vm3, %v7185_v13  ;;  %v7186_v28 = vpack.c.bf16 %v6081_v20, %v6081_v20  ;;  %v8768_v20 = vld [vmem:[%s8917_s9 + $0xd50] ss:$56 sps:$4 sm:$0xff]  }
 0x3a6   : > { %4967 = vmatmul.mubr.bf16.gmra.mrb[112].mxu1 %v8755_v62  ;;  %v5946_v58 = vadd.f32 %v9886_v41, %v5875_v23  ;;  %v5876_v29 = vmul.f32 %v7284_v24, %v9877_v31  ;;  %5834 = vmatmul.mubr.bf16.gmra.mrb[112].mxu0 %v8756_v9  ;;  %v8767_v9 = vld [vmem:[%s8917_s9 + $0xd38] ss:$56 sps:$4 sm:$0xff]   ;;  %v8769_v23 = vld [vmem:[%s8917_s9 + $0xdac] ss:$56 sps:$4 sm:$0xff]  }
 0x3a7   : > { %4974 = vmatprep.mubr.bf16.mxu1 %v8757_v12  ;;  %6402 = vst.msk [vmem:[%s9903_s13 + $0x4] sm:$0xf] %vm6400_vm3, %v7186_v28  ;;  %7113 = vmatprep.mubr.msk.bf16.mxu0 %vm3746_vm0, %v8759_v18  ;;  %v8771_v28 = vld [vmem:[%s8917_s9 + $0xdc4] ss:$56 sps:$4 sm:$0xff]  }
 0x3a8   : > { %v6012_v33 = vmax.f32 %v5946_v58, 0.0  ;;  %v5947_v61 = vadd.f32 %v9886_v41, %v5876_v29 }
 0x3a9   : > { %v5627_v34 = vpop.f32.mrb[8].mxu0 }
 0x3aa   : > { %v6082_v39 = vsel %vm6079_vm2, %v6012_v33, %v5946_v58  ;;  %v6013_v40 = vmax.f32 %v5947_v61, 0.0  ;;  %v7285_v1 = vadd.f32 %v5627_v34, %v9744_v3  ;;  %v5629_v45 = vpop.f32.mrb[9].mxu0 }
 0x3ab   : > { %v7187_v51 = vpack.c.bf16 %v6082_v39, %v6082_v39  ;;  %v5630_v50 = vpop.f32.mrb[10].mxu0 }
 0x3ac   : > { %v6083_v57 = vsel %vm6079_vm2, %v6013_v40, %v5947_v61  ;;  %v5877_v59 = vmul.f32 %v7285_v1, %v9877_v31  ;;  %v7286_v53 = vadd.f32 %v5630_v50, %v9747_v6  ;;  %v5632_v62 = vpop.f32.mrb[11].mxu0  ;;  %v8773_v1 = vld [vmem:[%s8917_s9 + $0xda8] ss:$56 sps:$4 sm:$0xff]  }
 0x3ad   : > { %6403 = vst.msk [vmem:[%s9903_s13 + $0x8] sm:$0xf] %vm6400_vm3, %v7187_v51  ;;  %v7188_v0 = vpack.c.bf16 %v6083_v57, %v6083_v57  ;;  %v8774_v50 = vld [vmem:[%s8917_s9 + $0xdc0] ss:$56 sps:$4 sm:$0xff]  }
 0x3ae   : > { %4975 = vmatmul.mubr.bf16.gmra.mrb[116].mxu1 %v8761_v37  ;;  %v5948_v3 = vadd.f32 %v9886_v41, %v5877_v59  ;;  %v5878_v2 = vmul.f32 %v7286_v53, %v9877_v31  ;;  %5842 = vmatmul.mubr.bf16.gmra.mrb[116].mxu0 %v8762_v48 }
 0x3af   : > { %4982 = vmatprep.mubr.bf16.mxu1 %v8763_v49  ;;  %6404 = vst.msk [vmem:[%s9903_s13 + $0xc] sm:$0xf] %vm6400_vm3, %v7188_v0  ;;  %7114 = vmatprep.mubr.msk.bf16.mxu0 %vm3746_vm0, %v8765_v54 }
 0x3b0   : > { %v6014_v5 = vmax.f32 %v5948_v3, 0.0  ;;  %v5949_v6 = vadd.f32 %v9886_v41, %v5878_v2 }
 0x3b1   : > { %v5635_v7 = vpop.f32.mrb[12].mxu0 }
 0x3b2   : > { %v6084_v12 = vsel %vm6079_vm2, %v6014_v5, %v5948_v3  ;;  %v6015_v13 = vmax.f32 %v5949_v6, 0.0  ;;  %v7287_v17 = vadd.f32 %v5635_v7, %v9753_v11  ;;  %v5637_v18 = vpop.f32.mrb[13].mxu0 }
 0x3b3   : > { %v7189_v24 = vpack.c.bf16 %v6084_v12, %v6084_v12  ;;  %v5638_v26 = vpop.f32.mrb[14].mxu0 }
 0x3b4   : > { %v6085_v58 = vsel %vm6079_vm2, %v6015_v13, %v5949_v6  ;;  %v5879_v29 = vmul.f32 %v7287_v17, %v9877_v31  ;;  %v7288_v33 = vadd.f32 %v5638_v26, %v9756_v14  ;;  %v5640_v61 = vpop.f32.mrb[15].mxu0 }
 0x3b5   : > { %6405 = vst.msk [vmem:[%s9903_s13 + $0x10] sm:$0xf] %vm6400_vm3, %v7189_v24  ;;  %v7190_v34 = vpack.c.bf16 %v6085_v58, %v6085_v58 }
 0x3b6   : > { %4983 = vmatmul.mubr.bf16.gmra.mrb[120].mxu1 %v8767_v9  ;;  %v5950_v11 = vadd.f32 %v9886_v41, %v5879_v29  ;;  %v5880_v37 = vmul.f32 %v7288_v33, %v9877_v31  ;;  %5850 = vmatmul.mubr.bf16.gmra.mrb[120].mxu0 %v8768_v20 }
 0x3b7   : > { %4990 = vmatprep.mubr.bf16.mxu1 %v8769_v23  ;;  %6406 = vst.msk [vmem:[%s9903_s13 + $0x14] sm:$0xf] %vm6400_vm3, %v7190_v34  ;;  %7115 = vmatprep.mubr.msk.bf16.mxu0 %vm3746_vm0, %v8771_v28 }
 0x3b8   : > { %v6016_v39 = vmax.f32 %v5950_v11, 0.0  ;;  %v5951_v14 = vadd.f32 %v9886_v41, %v5880_v37 }
 0x3b9   : > { %v5643_v40 = vpop.f32.mrb[16].mxu0 }
 0x3ba   : > { %v6086_v45 = vsel %vm6079_vm2, %v6016_v39, %v5950_v11  ;;  %v6017_v48 = vmax.f32 %v5951_v14, 0.0  ;;  %v7289_v49 = vadd.f32 %v5643_v40, %v9762_v19  ;;  %v5645_v51 = vpop.f32.mrb[17].mxu0 }
 0x3bb   : > { %v7191_v54 = vpack.c.bf16 %v6086_v45, %v6086_v45  ;;  %v5646_v57 = vpop.f32.mrb[18].mxu0 }
 0x3bc   : > { %v6087_v59 = vsel %vm6079_vm2, %v6017_v48, %v5951_v14  ;;  %v5881_v53 = vmul.f32 %v7289_v49, %v9877_v31  ;;  %v7290_v62 = vadd.f32 %v5646_v57, %v9765_v22  ;;  %v5648_v0 = vpop.f32.mrb[19].mxu0 }
 0x3bd   : > { %6407 = vst.msk [vmem:[%s9903_s13 + $0x18] sm:$0xf] %vm6400_vm3, %v7191_v54  ;;  %v7192_v3 = vpack.c.bf16 %v6087_v59, %v6087_v59 }
 0x3be   : > { %4991 = vmatmul.mubr.bf16.gmra.mrb[124].mxu1 %v8773_v1  ;;  %v5952_v2 = vadd.f32 %v9886_v41, %v5881_v53  ;;  %v5882_v19 = vmul.f32 %v7290_v62, %v9877_v31  ;;  %5858 = vmatmul.mubr.bf16.gmra.mrb[124].mxu0 %v8774_v50 }
 0x3bf   : > { %6408 = vst.msk [vmem:[%s9903_s13 + $0x1c] sm:$0xf] %vm6400_vm3, %v7192_v3 }
 0x3c0   : > { %v6018_v5 = vmax.f32 %v5952_v2, 0.0  ;;  %v5953_v6 = vadd.f32 %v9886_v41, %v5882_v19 }
 0x3c1   : > { %v5651_v7 = vpop.f32.mrb[20].mxu0 }
 0x3c2   : > { %v6088_v22 = vsel %vm6079_vm2, %v6018_v5, %v5952_v2  ;;  %v6019_v9 = vmax.f32 %v5953_v6, 0.0  ;;  %v7291_v12 = vadd.f32 %v5651_v7, %v9771_v27  ;;  %v5653_v13 = vpop.f32.mrb[21].mxu0 }
 0x3c3   : > { %v7193_v17 = vpack.c.bf16 %v6088_v22, %v6088_v22  ;;  %v5654_v18 = vpop.f32.mrb[22].mxu0 }
 0x3c4   : > { %v6089_v20 = vsel %vm6079_vm2, %v6019_v9, %v5953_v6  ;;  %v5883_v23 = vmul.f32 %v7291_v12, %v9877_v31  ;;  %v7292_v24 = vadd.f32 %v5654_v18, %v9774_v30  ;;  %v5656_v26 = vpop.f32.mrb[23].mxu0 }
 0x3c5   : > { %6409 = vst.msk [vmem:[%s9903_s13 + $0x20] sm:$0xf] %vm6400_vm3, %v7193_v17  ;;  %v7194_v28 = vpack.c.bf16 %v6089_v20, %v6089_v20 }
 0x3c6   : > { %v5954_v58 = vadd.f32 %v9886_v41, %v5883_v23  ;;  %v5884_v29 = vmul.f32 %v7292_v24, %v9877_v31 }
 0x3c7   : > { %6410 = vst.msk [vmem:[%s9903_s13 + $0x24] sm:$0xf] %vm6400_vm3, %v7194_v28 }
 0x3c8   : > { %v6020_v27 = vmax.f32 %v5954_v58, 0.0  ;;  %v5955_v33 = vadd.f32 %v9886_v41, %v5884_v29 }
 0x3c9   : > { %v5659_v61 = vpop.f32.mrb[24].mxu0 }
 0x3ca   : > { %v6090_v34 = vsel %vm6079_vm2, %v6020_v27, %v5954_v58  ;;  %v6021_v30 = vmax.f32 %v5955_v33, 0.0  ;;  %v7293_v11 = vadd.f32 %v5659_v61, %v9780_v35  ;;  %v5661_v37 = vpop.f32.mrb[25].mxu0 }
 0x3cb   : > { %v7195_v39 = vpack.c.bf16 %v6090_v34, %v6090_v34  ;;  %v5662_v14 = vpop.f32.mrb[26].mxu0 }
 0x3cc   : > { %v6091_v40 = vsel %vm6079_vm2, %v6021_v30, %v5955_v33  ;;  %v5885_v1 = vmul.f32 %v7293_v11, %v9877_v31  ;;  %v7294_v45 = vadd.f32 %v5662_v14, %v9783_v38  ;;  %v5664_v48 = vpop.f32.mrb[27].mxu0 }
 0x3cd   : > { %6411 = vst.msk [vmem:[%s9903_s13 + $0x28] sm:$0xf] %vm6400_vm3, %v7195_v39  ;;  %v7196_v49 = vpack.c.bf16 %v6091_v40, %v6091_v40 }
 0x3ce   : > { %v5956_v51 = vadd.f32 %v9886_v41, %v5885_v1  ;;  %v5886_v50 = vmul.f32 %v7294_v45, %v9877_v31 }
 0x3cf   : > { %6412 = vst.msk [vmem:[%s9903_s13 + $0x2c] sm:$0xf] %vm6400_vm3, %v7196_v49 }
 0x3d0   : > { %v6022_v35 = vmax.f32 %v5956_v51, 0.0  ;;  %v5957_v54 = vadd.f32 %v9886_v41, %v5886_v50 }
 0x3d1   : > { %v5667_v57 = vpop.f32.mrb[28].mxu0 }
 0x3d2   : > { %v6092_v59 = vsel %vm6079_vm2, %v6022_v35, %v5956_v51  ;;  %v6023_v38 = vmax.f32 %v5957_v54, 0.0  ;;  %v7295_v53 = vadd.f32 %v5667_v57, %v9789_v43  ;;  %v5669_v62 = vpop.f32.mrb[29].mxu0 }
 0x3d3   : > { %v7197_v0 = vpack.c.bf16 %v6092_v59, %v6092_v59  ;;  %v5670_v3 = vpop.f32.mrb[30].mxu0 }
 0x3d4   : > { %v6093_v2 = vsel %vm6079_vm2, %v6023_v38, %v5957_v54  ;;  %v5887_v19 = vmul.f32 %v7295_v53, %v9877_v31  ;;  %v7296_v5 = vadd.f32 %v5670_v3, %v9792_v46  ;;  %v5672_v6 = vpop.f32.mrb[31].mxu0 }
 0x3d5   : > { %6413 = vst.msk [vmem:[%s9903_s13 + $0x30] sm:$0xf] %vm6400_vm3, %v7197_v0  ;;  %v7198_v7 = vpack.c.bf16 %v6093_v2, %v6093_v2 }
 0x3d6   : > { %v5958_v22 = vadd.f32 %v9886_v41, %v5887_v19  ;;  %v5888_v9 = vmul.f32 %v7296_v5, %v9877_v31 }
 0x3d7   : > { %6414 = vst.msk [vmem:[%s9903_s13 + $0x34] sm:$0xf] %vm6400_vm3, %v7198_v7 }
 0x3d8   : > { %v6024_v43 = vmax.f32 %v5958_v22, 0.0  ;;  %v5959_v12 = vadd.f32 %v9886_v41, %v5888_v9 }
 0x3d9   : > { %v5675_v13 = vpop.f32.mrb[32].mxu0 }
 0x3da   : > { %v6094_v17 = vsel %vm6079_vm2, %v6024_v43, %v5958_v22  ;;  %v6025_v46 = vmax.f32 %v5959_v12, 0.0  ;;  %v7297_v18 = vadd.f32 %v5675_v13, %v9798_v52  ;;  %v5677_v20 = vpop.f32.mrb[33].mxu0 }
 0x3db   : > { %v7199_v23 = vpack.c.bf16 %v6094_v17, %v6094_v17  ;;  %v5678_v24 = vpop.f32.mrb[34].mxu0 }
 0x3dc   : > { %v6095_v26 = vsel %vm6079_vm2, %v6025_v46, %v5959_v12  ;;  %v5889_v28 = vmul.f32 %v7297_v18, %v9877_v31  ;;  %v7298_v58 = vadd.f32 %v5678_v24, %v9801_v56  ;;  %v5680_v29 = vpop.f32.mrb[35].mxu0 }
 0x3dd   : > { %6415 = vst.msk [vmem:[%s9903_s13 + $0x38] sm:$0xf] %vm6400_vm3, %v7199_v23  ;;  %v7200_v27 = vpack.c.bf16 %v6095_v26, %v6095_v26 }
 0x3de   : > { %v5960_v33 = vadd.f32 %v9886_v41, %v5889_v28  ;;  %v5890_v61 = vmul.f32 %v7298_v58, %v9877_v31 }
 0x3df   : > { %6416 = vst.msk [vmem:[%s9903_s13 + $0x3c] sm:$0xf] %vm6400_vm3, %v7200_v27 }
 0x3e0   : > { %v6026_v52 = vmax.f32 %v5960_v33, 0.0  ;;  %v5961_v34 = vadd.f32 %v9886_v41, %v5890_v61 }
 0x3e1   : > { %v5683_v30 = vpop.f32.mrb[36].mxu0 }
 0x3e2   : > { %v6096_v11 = vsel %vm6079_vm2, %v6026_v52, %v5960_v33  ;;  %v6027_v56 = vmax.f32 %v5961_v34, 0.0  ;;  %v7299_v37 = vadd.f32 %v5683_v30, %v9807_v63  ;;  %v5685_v39 = vpop.f32.mrb[37].mxu0 }
 0x3e3   : > { %v7201_v14 = vpack.c.bf16 %v6096_v11, %v6096_v11  ;;  %v5686_v40 = vpop.f32.mrb[38].mxu0 }
 0x3e4   : > { %v6097_v1 = vsel %vm6079_vm2, %v6027_v56, %v5961_v34  ;;  %v5891_v45 = vmul.f32 %v7299_v37, %v9877_v31  ;;  %v7300_v48 = vadd.f32 %v5686_v40, %v9810_v4  ;;  %v5688_v49 = vpop.f32.mrb[39].mxu0 }
 0x3e5   : > { %6417 = vst.msk [vmem:[%s9903_s13 + $0x40] sm:$0xf] %vm6400_vm3, %v7201_v14  ;;  %v7202_v51 = vpack.c.bf16 %v6097_v1, %v6097_v1 }
 0x3e6   : > { %v5962_v50 = vadd.f32 %v9886_v41, %v5891_v45  ;;  %v5892_v35 = vmul.f32 %v7300_v48, %v9877_v31 }
 0x3e7   : > { %6418 = vst.msk [vmem:[%s9903_s13 + $0x44] sm:$0xf] %vm6400_vm3, %v7202_v51 }
 0x3e8   : > { %v6028_v63 = vmax.f32 %v5962_v50, 0.0  ;;  %v5963_v54 = vadd.f32 %v9886_v41, %v5892_v35 }
 0x3e9   : > { %v5691_v57 = vpop.f32.mrb[40].mxu0 }
 0x3ea   : > { %v6098_v59 = vsel %vm6079_vm2, %v6028_v63, %v5962_v50  ;;  %v6029_v4 = vmax.f32 %v5963_v54, 0.0  ;;  %v7301_v38 = vadd.f32 %v5691_v57, %v9816_v10  ;;  %v5693_v53 = vpop.f32.mrb[41].mxu0 }
 0x3eb   : > { %v7203_v62 = vpack.c.bf16 %v6098_v59, %v6098_v59  ;;  %v5694_v0 = vpop.f32.mrb[42].mxu0 }
 0x3ec   : > { %v6099_v3 = vsel %vm6079_vm2, %v6029_v4, %v5963_v54  ;;  %v5893_v2 = vmul.f32 %v7301_v38, %v9877_v31  ;;  %v7302_v19 = vadd.f32 %v5694_v0, %v9819_v15  ;;  %v5696_v5 = vpop.f32.mrb[43].mxu0 }
 0x3ed   : > { %6419 = vst.msk [vmem:[%s9903_s13 + $0x48] sm:$0xf] %vm6400_vm3, %v7203_v62  ;;  %v7204_v6 = vpack.c.bf16 %v6099_v3, %v6099_v3 }
 0x3ee   : > { %v5964_v7 = vadd.f32 %v9886_v41, %v5893_v2  ;;  %v5894_v22 = vmul.f32 %v7302_v19, %v9877_v31 }
 0x3ef   : > { %6420 = vst.msk [vmem:[%s9903_s13 + $0x4c] sm:$0xf] %vm6400_vm3, %v7204_v6 }
 0x3f0   : > { %v6030_v10 = vmax.f32 %v5964_v7, 0.0  ;;  %v5965_v9 = vadd.f32 %v9886_v41, %v5894_v22 }
 0x3f1   : > { %v5699_v43 = vpop.f32.mrb[44].mxu0 }
 0x3f2   : > { %v6100_v12 = vsel %vm6079_vm2, %v6030_v10, %v5964_v7  ;;  %v6031_v15 = vmax.f32 %v5965_v9, 0.0  ;;  %v7303_v13 = vadd.f32 %v5699_v43, %v9825_v21  ;;  %v5701_v17 = vpop.f32.mrb[45].mxu0 }
 0x3f3   : > { %v7205_v46 = vpack.c.bf16 %v6100_v12, %v6100_v12  ;;  %v5702_v18 = vpop.f32.mrb[46].mxu0 }
 0x3f4   : > { %v6101_v20 = vsel %vm6079_vm2, %v6031_v15, %v5965_v9  ;;  %v5895_v23 = vmul.f32 %v7303_v13, %v9877_v31  ;;  %v7304_v24 = vadd.f32 %v5702_v18, %v9828_v25  ;;  %v5704_v26 = vpop.f32.mrb[47].mxu0 }
 0x3f5   : > { %6421 = vst.msk [vmem:[%s9903_s13 + $0x50] sm:$0xf] %vm6400_vm3, %v7205_v46  ;;  %v7206_v28 = vpack.c.bf16 %v6101_v20, %v6101_v20 }
 0x3f6   : > { %v5966_v58 = vadd.f32 %v9886_v41, %v5895_v23  ;;  %v5896_v29 = vmul.f32 %v7304_v24, %v9877_v31 }
 0x3f7   : > { %6422 = vst.msk [vmem:[%s9903_s13 + $0x54] sm:$0xf] %vm6400_vm3, %v7206_v28 }
 0x3f8   : > { %v6032_v21 = vmax.f32 %v5966_v58, 0.0  ;;  %v5967_v27 = vadd.f32 %v9886_v41, %v5896_v29 }
 0x3f9   : > { %v5707_v33 = vpop.f32.mrb[48].mxu0 }
 0x3fa   : > { %v6102_v61 = vsel %vm6079_vm2, %v6032_v21, %v5966_v58  ;;  %v6033_v25 = vmax.f32 %v5967_v27, 0.0  ;;  %v7305_v52 = vadd.f32 %v5707_v33, %v9834_v32  ;;  %v5709_v34 = vpop.f32.mrb[49].mxu0 }
 0x3fb   : > { %v7207_v30 = vpack.c.bf16 %v6102_v61, %v6102_v61  ;;  %v5710_v11 = vpop.f32.mrb[50].mxu0 }
 0x3fc   : > { %v6103_v56 = vsel %vm6079_vm2, %v6033_v25, %v5967_v27  ;;  %v5897_v37 = vmul.f32 %v7305_v52, %v9877_v31  ;;  %v7306_v39 = vadd.f32 %v5710_v11, %v9837_v36  ;;  %v5712_v14 = vpop.f32.mrb[51].mxu0 }
 0x3fd   : > { %6423 = vst.msk [vmem:[%s9903_s13 + $0x58] sm:$0xf] %vm6400_vm3, %v7207_v30  ;;  %v7208_v40 = vpack.c.bf16 %v6103_v56, %v6103_v56 }
 0x3fe   : > { %v5968_v1 = vadd.f32 %v9886_v41, %v5897_v37  ;;  %v5898_v45 = vmul.f32 %v7306_v39, %v9877_v31 }
 0x3ff   : > { %6424 = vst.msk [vmem:[%s9903_s13 + $0x5c] sm:$0xf] %vm6400_vm3, %v7208_v40 }
 0x400   : > { %v6034_v32 = vmax.f32 %v5968_v1, 0.0  ;;  %v5969_v48 = vadd.f32 %v9886_v41, %v5898_v45 }
 0x401   : > { %v5715_v49 = vpop.f32.mrb[52].mxu0 }
 0x402   : > { %v6104_v51 = vsel %vm6079_vm2, %v6034_v32, %v5968_v1  ;;  %v6035_v36 = vmax.f32 %v5969_v48, 0.0  ;;  %v7307_v50 = vadd.f32 %v5715_v49, %v9843_v42  ;;  %v5717_v35 = vpop.f32.mrb[53].mxu0 }
 0x403   : > { %v7209_v63 = vpack.c.bf16 %v6104_v51, %v6104_v51  ;;  %v5718_v54 = vpop.f32.mrb[54].mxu0 }
 0x404   : > { %v6105_v57 = vsel %vm6079_vm2, %v6035_v36, %v5969_v48  ;;  %v5899_v59 = vmul.f32 %v7307_v50, %v9877_v31  ;;  %v7308_v4 = vadd.f32 %v5718_v54, %v9846_v47  ;;  %v5720_v38 = vpop.f32.mrb[55].mxu0 }
 0x405   : > { %6425 = vst.msk [vmem:[%s9903_s13 + $0x60] sm:$0xf] %vm6400_vm3, %v7209_v63  ;;  %v7210_v53 = vpack.c.bf16 %v6105_v57, %v6105_v57 }
 0x406   : > { %v5970_v62 = vadd.f32 %v9886_v41, %v5899_v59  ;;  %v5900_v0 = vmul.f32 %v7308_v4, %v9877_v31 }
 0x407   : > { %6426 = vst.msk [vmem:[%s9903_s13 + $0x64] sm:$0xf] %vm6400_vm3, %v7210_v53 }
 0x408   : > { %v6036_v42 = vmax.f32 %v5970_v62, 0.0  ;;  %v5971_v3 = vadd.f32 %v9886_v41, %v5900_v0 }
 0x409   : > { %v5723_v2 = vpop.f32.mrb[56].mxu0 }
 0x40a   : > { %v6106_v19 = vsel %vm6079_vm2, %v6036_v42, %v5970_v62  ;;  %v6037_v47 = vmax.f32 %v5971_v3, 0.0  ;;  %v7309_v5 = vadd.f32 %v5723_v2, %v9852_v55  ;;  %v5725_v6 = vpop.f32.mrb[57].mxu0 }
 0x40b   : > { %v7211_v7 = vpack.c.bf16 %v6106_v19, %v6106_v19  ;;  %v5726_v22 = vpop.f32.mrb[58].mxu0 }
 0x40c   : > { %v6107_v10 = vsel %vm6079_vm2, %v6037_v47, %v5971_v3  ;;  %v5901_v9 = vmul.f32 %v7309_v5, %v9877_v31  ;;  %v7310_v43 = vadd.f32 %v5726_v22, %v9855_v60  ;;  %v5728_v12 = vpop.f32.mrb[59].mxu0 }
 0x40d   : > { %6427 = vst.msk [vmem:[%s9903_s13 + $0x68] sm:$0xf] %vm6400_vm3, %v7211_v7  ;;  %v7212_v15 = vpack.c.bf16 %v6107_v10, %v6107_v10 }
 0x40e   : > { %v5972_v13 = vadd.f32 %v9886_v41, %v5901_v9  ;;  %v5902_v17 = vmul.f32 %v7310_v43, %v9877_v31 }
 0x40f   : > { %6428 = vst.msk [vmem:[%s9903_s13 + $0x6c] sm:$0xf] %vm6400_vm3, %v7212_v15 }
 0x410   : > { %v6038_v55 = vmax.f32 %v5972_v13, 0.0  ;;  %v5973_v46 = vadd.f32 %v9886_v41, %v5902_v17 }
 0x411   : > { %v5731_v18 = vpop.f32.mrb[60].mxu0 }
 0x412   : > { %v6108_v20 = vsel %vm6079_vm2, %v6038_v55, %v5972_v13  ;;  %v6039_v60 = vmax.f32 %v5973_v46, 0.0  ;;  %v7311_v23 = vadd.f32 %v5731_v18, %v9861_v8  ;;  %v5733_v24 = vpop.f32.mrb[61].mxu0 }
 0x413   : > { %v7213_v26 = vpack.c.bf16 %v6108_v20, %v6108_v20  ;;  %v5734_v28 = vpop.f32.mrb[62].mxu0 }
 0x414   : > { %v6109_v58 = vsel %vm6079_vm2, %v6039_v60, %v5973_v46  ;;  %v5903_v29 = vmul.f32 %v7311_v23, %v9877_v31  ;;  %v7312_v21 = vadd.f32 %v5734_v28, %v9865_v16  ;;  %v5736_v27 = vpop.f32.mrb[63].mxu0 }
 0x415   : > { %6429 = vst.msk [vmem:[%s9903_s13 + $0x70] sm:$0xf] %vm6400_vm3, %v7213_v26  ;;  %v7214_v33 = vpack.c.bf16 %v6109_v58, %v6109_v58 }
 0x416   : > { %v5974_v61 = vadd.f32 %v9886_v41, %v5903_v29  ;;  %v5904_v25 = vmul.f32 %v7312_v21, %v9877_v31 }
 0x417   : > { %6430 = vst.msk [vmem:[%s9903_s13 + $0x74] sm:$0xf] %vm6400_vm3, %v7214_v33 }
 0x418   : > { %v6040_v8 = vmax.f32 %v5974_v61, 0.0  ;;  %v5975_v52 = vadd.f32 %v9886_v41, %v5904_v25 }
 0x419   : > { %v4872_v34 = vpop.f32.mrb[64].mxu1  ;;  %v5739_v30 = vpop.f32.mrb[64].mxu0 }
 0x41a   : > { %v4874_v11 = vpop.f32.mrb[65].mxu1  ;;  %v6110_v16 = vsel %vm6079_vm2, %v6040_v8, %v5974_v61  ;;  %v6041_v56 = vmax.f32 %v5975_v52, 0.0  ;;  %v7313_v37 = vadd.f32 %v5739_v30, %v4872_v34  ;;  %v5741_v39 = vpop.f32.mrb[65].mxu0 }
 0x41b   : > { %v4875_v14 = vpop.f32.mrb[66].mxu1  ;;  %v7215_v40 = vpack.c.bf16 %v6110_v16, %v6110_v16  ;;  %v5742_v1 = vpop.f32.mrb[66].mxu0 }
 0x41c   : > { %v4877_v45 = vpop.f32.mrb[67].mxu1  ;;  %v6111_v32 = vsel %vm6079_vm2, %v6041_v56, %v5975_v52  ;;  %v5905_v48 = vmul.f32 %v7313_v37, %v9877_v31  ;;  %v7314_v49 = vadd.f32 %v5742_v1, %v4875_v14  ;;  %v5744_v51 = vpop.f32.mrb[67].mxu0 }
 0x41d   : > { %6431 = vst.msk [vmem:[%s9903_s13 + $0x78] sm:$0xf] %vm6400_vm3, %v7215_v40  ;;  %v7216_v36 = vpack.c.bf16 %v6111_v32, %v6111_v32 }
 0x41e   : > { %v5976_v50 = vadd.f32 %v9886_v41, %v5905_v48  ;;  %v5906_v35 = vmul.f32 %v7314_v49, %v9877_v31 }
 0x41f   : > { %6432 = vst.msk [vmem:[%s9903_s13 + $0x7c] sm:$0xf] %vm6400_vm3, %v7216_v36 }
 0x420   : > { %v6042_v63 = vmax.f32 %v5976_v50, 0.0  ;;  %v5977_v54 = vadd.f32 %v9886_v41, %v5906_v35 }
 0x421   : > { %v4880_v57 = vpop.f32.mrb[68].mxu1  ;;  %v5747_v59 = vpop.f32.mrb[68].mxu0 }
 0x422   : > { %v4882_v4 = vpop.f32.mrb[69].mxu1  ;;  %v6112_v38 = vsel %vm6079_vm2, %v6042_v63, %v5976_v50  ;;  %v6043_v53 = vmax.f32 %v5977_v54, 0.0  ;;  %v7315_v62 = vadd.f32 %v5747_v59, %v4880_v57  ;;  %v5749_v0 = vpop.f32.mrb[69].mxu0 }
 0x423   : > { %v4883_v42 = vpop.f32.mrb[70].mxu1  ;;  %v7217_v3 = vpack.c.bf16 %v6112_v38, %v6112_v38  ;;  %v5750_v2 = vpop.f32.mrb[70].mxu0 }
 0x424   : > { %v4885_v19 = vpop.f32.mrb[71].mxu1  ;;  %v6113_v47 = vsel %vm6079_vm2, %v6043_v53, %v5977_v54  ;;  %v5907_v5 = vmul.f32 %v7315_v62, %v9877_v31  ;;  %v7316_v6 = vadd.f32 %v5750_v2, %v4883_v42  ;;  %v5752_v7 = vpop.f32.mrb[71].mxu0 }
 0x425   : > { %6433 = vst.msk [vmem:[%s9903_s13 + $0x80] sm:$0xf] %vm6400_vm3, %v7217_v3  ;;  %v7218_v22 = vpack.c.bf16 %v6113_v47, %v6113_v47 }
 0x426   : > { %v5978_v10 = vadd.f32 %v9886_v41, %v5907_v5  ;;  %v5908_v9 = vmul.f32 %v7316_v6, %v9877_v31 }
 0x427   : > { %6434 = vst.msk [vmem:[%s9903_s13 + $0x84] sm:$0xf] %vm6400_vm3, %v7218_v22 }
 0x428   : > { %v6044_v43 = vmax.f32 %v5978_v10, 0.0  ;;  %v5979_v12 = vadd.f32 %v9886_v41, %v5908_v9 }
 0x429   : > { %v4888_v15 = vpop.f32.mrb[72].mxu1  ;;  %v5755_v13 = vpop.f32.mrb[72].mxu0 }
 0x42a   : > { %v4890_v17 = vpop.f32.mrb[73].mxu1  ;;  %v6114_v55 = vsel %vm6079_vm2, %v6044_v43, %v5978_v10  ;;  %v6045_v46 = vmax.f32 %v5979_v12, 0.0  ;;  %v7317_v18 = vadd.f32 %v5755_v13, %v4888_v15  ;;  %v5757_v20 = vpop.f32.mrb[73].mxu0 }
 0x42b   : > { %v4891_v60 = vpop.f32.mrb[74].mxu1  ;;  %v7219_v23 = vpack.c.bf16 %v6114_v55, %v6114_v55  ;;  %v5758_v24 = vpop.f32.mrb[74].mxu0 }
 0x42c   : > { %v4893_v26 = vpop.f32.mrb[75].mxu1  ;;  %v6115_v28 = vsel %vm6079_vm2, %v6045_v46, %v5979_v12  ;;  %v5909_v58 = vmul.f32 %v7317_v18, %v9877_v31  ;;  %v7318_v29 = vadd.f32 %v5758_v24, %v4891_v60  ;;  %v5760_v21 = vpop.f32.mrb[75].mxu0 }
 0x42d   : > { %6435 = vst.msk [vmem:[%s9903_s13 + $0x88] sm:$0xf] %vm6400_vm3, %v7219_v23  ;;  %v7220_v27 = vpack.c.bf16 %v6115_v28, %v6115_v28 }
 0x42e   : > { %v5980_v33 = vadd.f32 %v9886_v41, %v5909_v58  ;;  %v5910_v61 = vmul.f32 %v7318_v29, %v9877_v31 }
 0x42f   : > { %6436 = vst.msk [vmem:[%s9903_s13 + $0x8c] sm:$0xf] %vm6400_vm3, %v7220_v27 }
 0x430   : > { %v6046_v25 = vmax.f32 %v5980_v33, 0.0  ;;  %v5981_v8 = vadd.f32 %v9886_v41, %v5910_v61 }
 0x431   : > { %v4896_v52 = vpop.f32.mrb[76].mxu1  ;;  %v5763_v34 = vpop.f32.mrb[76].mxu0 }
 0x432   : > { %v4898_v30 = vpop.f32.mrb[77].mxu1  ;;  %v6116_v11 = vsel %vm6079_vm2, %v6046_v25, %v5980_v33  ;;  %v6047_v16 = vmax.f32 %v5981_v8, 0.0  ;;  %v7319_v56 = vadd.f32 %v5763_v34, %v4896_v52  ;;  %v5765_v37 = vpop.f32.mrb[77].mxu0 }
 0x433   : > { %v4899_v39 = vpop.f32.mrb[78].mxu1  ;;  %v7221_v14 = vpack.c.bf16 %v6116_v11, %v6116_v11  ;;  %v5766_v40 = vpop.f32.mrb[78].mxu0 }
 0x434   : > { %v4901_v1 = vpop.f32.mrb[79].mxu1  ;;  %v6117_v45 = vsel %vm6079_vm2, %v6047_v16, %v5981_v8  ;;  %v5911_v32 = vmul.f32 %v7319_v56, %v9877_v31  ;;  %v7320_v48 = vadd.f32 %v5766_v40, %v4899_v39  ;;  %v5768_v49 = vpop.f32.mrb[79].mxu0 }
 0x435   : > { %6437 = vst.msk [vmem:[%s9903_s13 + $0x90] sm:$0xf] %vm6400_vm3, %v7221_v14  ;;  %v7222_v51 = vpack.c.bf16 %v6117_v45, %v6117_v45 }
 0x436   : > { %v5982_v36 = vadd.f32 %v9886_v41, %v5911_v32  ;;  %v5912_v50 = vmul.f32 %v7320_v48, %v9877_v31 }
 0x437   : > { %6438 = vst.msk [vmem:[%s9903_s13 + $0x94] sm:$0xf] %vm6400_vm3, %v7222_v51 }
 0x438   : > { %v6048_v35 = vmax.f32 %v5982_v36, 0.0  ;;  %v5983_v63 = vadd.f32 %v9886_v41, %v5912_v50 }
 0x439   : > { %v4904_v54 = vpop.f32.mrb[80].mxu1  ;;  %v5771_v57 = vpop.f32.mrb[80].mxu0 }
 0x43a   : > { %v4906_v59 = vpop.f32.mrb[81].mxu1  ;;  %v6118_v4 = vsel %vm6079_vm2, %v6048_v35, %v5982_v36  ;;  %v6049_v38 = vmax.f32 %v5983_v63, 0.0  ;;  %v7321_v53 = vadd.f32 %v5771_v57, %v4904_v54  ;;  %v5773_v62 = vpop.f32.mrb[81].mxu0 }
 0x43b   : > { %v4907_v0 = vpop.f32.mrb[82].mxu1  ;;  %v7223_v42 = vpack.c.bf16 %v6118_v4, %v6118_v4  ;;  %v5774_v3 = vpop.f32.mrb[82].mxu0 }
 0x43c   : > { %v4909_v2 = vpop.f32.mrb[83].mxu1  ;;  %v6119_v19 = vsel %vm6079_vm2, %v6049_v38, %v5983_v63  ;;  %v5913_v47 = vmul.f32 %v7321_v53, %v9877_v31  ;;  %v7322_v5 = vadd.f32 %v5774_v3, %v4907_v0  ;;  %v5776_v6 = vpop.f32.mrb[83].mxu0 }
 0x43d   : > { %6439 = vst.msk [vmem:[%s9903_s13 + $0x98] sm:$0xf] %vm6400_vm3, %v7223_v42  ;;  %v7224_v7 = vpack.c.bf16 %v6119_v19, %v6119_v19 }
 0x43e   : > { %v5984_v22 = vadd.f32 %v9886_v41, %v5913_v47  ;;  %v5914_v10 = vmul.f32 %v7322_v5, %v9877_v31 }
 0x43f   : > { %6440 = vst.msk [vmem:[%s9903_s13 + $0x9c] sm:$0xf] %vm6400_vm3, %v7224_v7 }
 0x440   : > { %v6050_v9 = vmax.f32 %v5984_v22, 0.0  ;;  %v5985_v43 = vadd.f32 %v9886_v41, %v5914_v10 }
 0x441   : > { %v4912_v12 = vpop.f32.mrb[84].mxu1  ;;  %v5779_v15 = vpop.f32.mrb[84].mxu0 }
 0x442   : > { %v4914_v13 = vpop.f32.mrb[85].mxu1  ;;  %v6120_v17 = vsel %vm6079_vm2, %v6050_v9, %v5984_v22  ;;  %v6051_v55 = vmax.f32 %v5985_v43, 0.0  ;;  %v7323_v46 = vadd.f32 %v5779_v15, %v4912_v12  ;;  %v5781_v18 = vpop.f32.mrb[85].mxu0 }
 0x443   : > { %v4915_v20 = vpop.f32.mrb[86].mxu1  ;;  %v7225_v60 = vpack.c.bf16 %v6120_v17, %v6120_v17  ;;  %v5782_v23 = vpop.f32.mrb[86].mxu0 }
 0x444   : > { %v4917_v24 = vpop.f32.mrb[87].mxu1  ;;  %v6121_v26 = vsel %vm6079_vm2, %v6051_v55, %v5985_v43  ;;  %v5915_v28 = vmul.f32 %v7323_v46, %v9877_v31  ;;  %v7324_v58 = vadd.f32 %v5782_v23, %v4915_v20  ;;  %v5784_v29 = vpop.f32.mrb[87].mxu0 }
 0x445   : > { %6441 = vst.msk [vmem:[%s9903_s13 + $0xa0] sm:$0xf] %vm6400_vm3, %v7225_v60  ;;  %v7226_v21 = vpack.c.bf16 %v6121_v26, %v6121_v26 }
 0x446   : > { %v5986_v27 = vadd.f32 %v9886_v41, %v5915_v28  ;;  %v5916_v33 = vmul.f32 %v7324_v58, %v9877_v31 }
 0x447   : > { %6442 = vst.msk [vmem:[%s9903_s13 + $0xa4] sm:$0xf] %vm6400_vm3, %v7226_v21 }
 0x448   : > { %v6052_v61 = vmax.f32 %v5986_v27, 0.0  ;;  %v5987_v25 = vadd.f32 %v9886_v41, %v5916_v33 }
 0x449   : > { %v4920_v8 = vpop.f32.mrb[88].mxu1  ;;  %v5787_v52 = vpop.f32.mrb[88].mxu0 }
 0x44a   : > { %v4922_v34 = vpop.f32.mrb[89].mxu1  ;;  %v6122_v30 = vsel %vm6079_vm2, %v6052_v61, %v5986_v27  ;;  %v6053_v11 = vmax.f32 %v5987_v25, 0.0  ;;  %v7325_v16 = vadd.f32 %v5787_v52, %v4920_v8  ;;  %v5789_v56 = vpop.f32.mrb[89].mxu0  ;;  %v10238_v27 = vld [vmem:[%s10346_s2] ss:$0 sm:$0xff] }
 0x44b   : > { %v4923_v37 = vpop.f32.mrb[90].mxu1  ;;  %v7227_v39 = vpack.c.bf16 %v6122_v30, %v6122_v30  ;;  %v5790_v14 = vpop.f32.mrb[90].mxu0 }
 0x44c   : > { %v4925_v40 = vpop.f32.mrb[91].mxu1  ;;  %v6123_v1 = vsel %vm6079_vm2, %v6053_v11, %v5987_v25  ;;  %v5917_v45 = vmul.f32 %v7325_v16, %v9877_v31  ;;  %v7326_v32 = vadd.f32 %v5790_v14, %v4923_v37  ;;  %v5792_v48 = vpop.f32.mrb[91].mxu0 }
 0x44d   : > { %6443 = vst.msk [vmem:[%s9903_s13 + $0xa8] sm:$0xf] %vm6400_vm3, %v7227_v39  ;;  %v7228_v49 = vpack.c.bf16 %v6123_v1, %v6123_v1 }
 0x44e   : > { %v5988_v51 = vadd.f32 %v9886_v41, %v5917_v45  ;;  %v5918_v36 = vmul.f32 %v7326_v32, %v9877_v31 }
 0x44f   : > { %6444 = vst.msk [vmem:[%s9903_s13 + $0xac] sm:$0xf] %vm6400_vm3, %v7228_v49 }
 0x450   : > { %v6054_v50 = vmax.f32 %v5988_v51, 0.0  ;;  %v5989_v35 = vadd.f32 %v9886_v41, %v5918_v36 }
 0x451   : > { %v4928_v63 = vpop.f32.mrb[92].mxu1  ;;  %v5795_v54 = vpop.f32.mrb[92].mxu0 }
 0x452   : > { %v4930_v57 = vpop.f32.mrb[93].mxu1  ;;  %v6124_v59 = vsel %vm6079_vm2, %v6054_v50, %v5988_v51  ;;  %v6055_v4 = vmax.f32 %v5989_v35, 0.0  ;;  %v7327_v38 = vadd.f32 %v5795_v54, %v4928_v63  ;;  %v5797_v53 = vpop.f32.mrb[93].mxu0 }
 0x453   : > { %v4931_v62 = vpop.f32.mrb[94].mxu1  ;;  %v7229_v0 = vpack.c.bf16 %v6124_v59, %v6124_v59  ;;  %v5798_v42 = vpop.f32.mrb[94].mxu0 }
 0x454   : > { %v4933_v3 = vpop.f32.mrb[95].mxu1  ;;  %v6125_v2 = vsel %vm6079_vm2, %v6055_v4, %v5989_v35  ;;  %v5919_v19 = vmul.f32 %v7327_v38, %v9877_v31  ;;  %v7328_v47 = vadd.f32 %v5798_v42, %v4931_v62  ;;  %v5800_v5 = vpop.f32.mrb[95].mxu0 }
 0x455   : > { %6445 = vst.msk [vmem:[%s9903_s13 + $0xb0] sm:$0xf] %vm6400_vm3, %v7229_v0  ;;  %v7230_v6 = vpack.c.bf16 %v6125_v2, %v6125_v2 }
 0x456   : > { %v5990_v7 = vadd.f32 %v9886_v41, %v5919_v19  ;;  %v5920_v22 = vmul.f32 %v7328_v47, %v9877_v31 }
 0x457   : > { %6446 = vst.msk [vmem:[%s9903_s13 + $0xb4] sm:$0xf] %vm6400_vm3, %v7230_v6 }
 0x458   : > { %v6056_v10 = vmax.f32 %v5990_v7, 0.0  ;;  %v5991_v9 = vadd.f32 %v9886_v41, %v5920_v22 }
 0x459   : > { %v4936_v43 = vpop.f32.mrb[96].mxu1  ;;  %v5803_v12 = vpop.f32.mrb[96].mxu0 }
 0x45a   : > { %v4938_v15 = vpop.f32.mrb[97].mxu1  ;;  %v6126_v13 = vsel %vm6079_vm2, %v6056_v10, %v5990_v7  ;;  %v6057_v17 = vmax.f32 %v5991_v9, 0.0  ;;  %v7329_v55 = vadd.f32 %v5803_v12, %v4936_v43  ;;  %v5805_v46 = vpop.f32.mrb[97].mxu0 }
 0x45b   : > { %v4939_v18 = vpop.f32.mrb[98].mxu1  ;;  %v7231_v20 = vpack.c.bf16 %v6126_v13, %v6126_v13  ;;  %v5806_v60 = vpop.f32.mrb[98].mxu0 }
 0x45c   : > { %v4941_v23 = vpop.f32.mrb[99].mxu1  ;;  %v6127_v24 = vsel %vm6079_vm2, %v6057_v17, %v5991_v9  ;;  %v5921_v26 = vmul.f32 %v7329_v55, %v9877_v31  ;;  %v7330_v28 = vadd.f32 %v5806_v60, %v4939_v18  ;;  %v5808_v58 = vpop.f32.mrb[99].mxu0  ;;  %v10246_v31 = vld [vmem:[%s10347_s3] ss:$0 sm:$0xff] }
 0x45d   : > { %6447 = vst.msk [vmem:[%s9903_s13 + $0xb8] sm:$0xf] %vm6400_vm3, %v7231_v20  ;;  %v7232_v29 = vpack.c.bf16 %v6127_v24, %v6127_v24 }
 0x45e   : > { %v5992_v21 = vadd.f32 %v9886_v41, %v5921_v26  ;;  %v5922_v33 = vmul.f32 %v10238_v27, %v7330_v28 }
 0x45f   : > { %6448 = vst.msk [vmem:[%s9903_s13 + $0xbc] sm:$0xf] %vm6400_vm3, %v7232_v29 }
 0x460   : > { %v6058_v61 = vmax.f32 %v5992_v21, 0.0  ;;  %v5993_v25 = vadd.f32 %v10246_v31, %v5922_v33 }
 0x461   : > { %v4944_v8 = vpop.f32.mrb[100].mxu1  ;;  %v5811_v41 = vpop.f32.mrb[100].mxu0 }
 0x462   : > { %v4946_v52 = vpop.f32.mrb[101].mxu1  ;;  %v6128_v34 = vsel %vm6079_vm2, %v6058_v61, %v5992_v21  ;;  %v6059_v30 = vmax.f32 %v5993_v25, 0.0  ;;  %v7331_v11 = vadd.f32 %v5811_v41, %v4944_v8  ;;  %v5813_v16 = vpop.f32.mrb[101].mxu0 }
 0x463   : > { %v4947_v56 = vpop.f32.mrb[102].mxu1  ;;  %v7233_v37 = vpack.c.bf16 %v6128_v34, %v6128_v34  ;;  %v5814_v39 = vpop.f32.mrb[102].mxu0 }
 0x464   : > { %v4949_v14 = vpop.f32.mrb[103].mxu1  ;;  %v6129_v40 = vsel %vm6079_vm2, %v6059_v30, %v5993_v25  ;;  %v5923_v1 = vmul.f32 %v10238_v27, %v7331_v11  ;;  %v7332_v45 = vadd.f32 %v5814_v39, %v4947_v56  ;;  %v5816_v32 = vpop.f32.mrb[103].mxu0 }
 0x465   : > { %6449 = vst.msk [vmem:[%s9903_s13 + $0xc0] sm:$0xf] %vm6400_vm3, %v7233_v37  ;;  %v7234_v48 = vpack.c.bf16 %v6129_v40, %v6129_v40 }
 0x466   : > { %v5994_v49 = vadd.f32 %v10246_v31, %v5923_v1  ;;  %v5924_v51 = vmul.f32 %v10238_v27, %v7332_v45 }
 0x467   : > { %6450 = vst.msk [vmem:[%s9903_s13 + $0xc4] sm:$0xf] %vm6400_vm3, %v7234_v48 }
 0x468   : > { %v6060_v36 = vmax.f32 %v5994_v49, 0.0  ;;  %v5995_v50 = vadd.f32 %v10246_v31, %v5924_v51 }
 0x469   : > { %v4952_v35 = vpop.f32.mrb[104].mxu1  ;;  %v5819_v63 = vpop.f32.mrb[104].mxu0 }
 0x46a   : > { %v4954_v54 = vpop.f32.mrb[105].mxu1  ;;  %v6130_v57 = vsel %vm6079_vm2, %v6060_v36, %v5994_v49  ;;  %v6061_v59 = vmax.f32 %v5995_v50, 0.0  ;;  %v7333_v4 = vadd.f32 %v5819_v63, %v4952_v35  ;;  %v5821_v38 = vpop.f32.mrb[105].mxu0 }
 0x46b   : > { %v4955_v53 = vpop.f32.mrb[106].mxu1  ;;  %v7235_v62 = vpack.c.bf16 %v6130_v57, %v6130_v57  ;;  %v5822_v0 = vpop.f32.mrb[106].mxu0 }
 0x46c   : > { %v4957_v42 = vpop.f32.mrb[107].mxu1  ;;  %v6131_v3 = vsel %vm6079_vm2, %v6061_v59, %v5995_v50  ;;  %v5925_v2 = vmul.f32 %v10238_v27, %v7333_v4  ;;  %v7334_v19 = vadd.f32 %v5822_v0, %v4955_v53  ;;  %v5824_v47 = vpop.f32.mrb[107].mxu0 }
 0x46d   : > { %6451 = vst.msk [vmem:[%s9903_s13 + $0xc8] sm:$0xf] %vm6400_vm3, %v7235_v62  ;;  %v7236_v5 = vpack.c.bf16 %v6131_v3, %v6131_v3 }
 0x46e   : > { %v5996_v6 = vadd.f32 %v10246_v31, %v5925_v2  ;;  %v5926_v7 = vmul.f32 %v10238_v27, %v7334_v19 }
 0x46f   : > { %6452 = vst.msk [vmem:[%s9903_s13 + $0xcc] sm:$0xf] %vm6400_vm3, %v7236_v5 }
 0x470   : > { %v6062_v22 = vmax.f32 %v5996_v6, 0.0  ;;  %v5997_v10 = vadd.f32 %v10246_v31, %v5926_v7 }
 0x471   : > { %v4960_v9 = vpop.f32.mrb[108].mxu1  ;;  %v5827_v43 = vpop.f32.mrb[108].mxu0 }
 0x472   : > { %v4962_v12 = vpop.f32.mrb[109].mxu1  ;;  %v6132_v15 = vsel %vm6079_vm2, %v6062_v22, %v5996_v6  ;;  %v6063_v13 = vmax.f32 %v5997_v10, 0.0  ;;  %v7335_v17 = vadd.f32 %v5827_v43, %v4960_v9  ;;  %v5829_v55 = vpop.f32.mrb[109].mxu0 }
 0x473   : > { %v4963_v46 = vpop.f32.mrb[110].mxu1  ;;  %v7237_v18 = vpack.c.bf16 %v6132_v15, %v6132_v15  ;;  %v5830_v20 = vpop.f32.mrb[110].mxu0 }
 0x474   : > { %v4965_v60 = vpop.f32.mrb[111].mxu1  ;;  %v6133_v23 = vsel %vm6079_vm2, %v6063_v13, %v5997_v10  ;;  %v5927_v24 = vmul.f32 %v10238_v27, %v7335_v17  ;;  %v7336_v26 = vadd.f32 %v5830_v20, %v4963_v46  ;;  %v5832_v28 = vpop.f32.mrb[111].mxu0 }
 0x475   : > { %6453 = vst.msk [vmem:[%s9903_s13 + $0xd0] sm:$0xf] %vm6400_vm3, %v7237_v18  ;;  %v7238_v58 = vpack.c.bf16 %v6133_v23, %v6133_v23 }
 0x476   : > { %v5998_v29 = vadd.f32 %v10246_v31, %v5927_v24  ;;  %v5928_v21 = vmul.f32 %v10238_v27, %v7336_v26 }
 0x477   : > { %6454 = vst.msk [vmem:[%s9903_s13 + $0xd4] sm:$0xf] %vm6400_vm3, %v7238_v58 }
 0x478   : > { %v6064_v33 = vmax.f32 %v5998_v29, 0.0  ;;  %v5999_v61 = vadd.f32 %v10246_v31, %v5928_v21 }
 0x479   : > { %v4968_v25 = vpop.f32.mrb[112].mxu1  ;;  %v5835_v8 = vpop.f32.mrb[112].mxu0 }
 0x47a   : > { %v4970_v41 = vpop.f32.mrb[113].mxu1  ;;  %v6134_v52 = vsel %vm6079_vm2, %v6064_v33, %v5998_v29  ;;  %v6065_v34 = vmax.f32 %v5999_v61, 0.0  ;;  %v7337_v30 = vadd.f32 %v5835_v8, %v4968_v25  ;;  %v5837_v11 = vpop.f32.mrb[113].mxu0 }
 0x47b   : > { %v4971_v16 = vpop.f32.mrb[114].mxu1  ;;  %v7239_v56 = vpack.c.bf16 %v6134_v52, %v6134_v52  ;;  %v5838_v37 = vpop.f32.mrb[114].mxu0 }
 0x47c   : > { %v4973_v39 = vpop.f32.mrb[115].mxu1  ;;  %v6135_v14 = vsel %vm6079_vm2, %v6065_v34, %v5999_v61  ;;  %v5929_v40 = vmul.f32 %v10238_v27, %v7337_v30  ;;  %v7338_v1 = vadd.f32 %v5838_v37, %v4971_v16  ;;  %v5840_v45 = vpop.f32.mrb[115].mxu0 }
 0x47d   : > { %6455 = vst.msk [vmem:[%s9903_s13 + $0xd8] sm:$0xf] %vm6400_vm3, %v7239_v56  ;;  %v7240_v32 = vpack.c.bf16 %v6135_v14, %v6135_v14 }
 0x47e   : > { %v6000_v48 = vadd.f32 %v10246_v31, %v5929_v40  ;;  %v5930_v49 = vmul.f32 %v10238_v27, %v7338_v1 }
 0x47f   : > { %6456 = vst.msk [vmem:[%s9903_s13 + $0xdc] sm:$0xf] %vm6400_vm3, %v7240_v32 }
 0x480   : > { %v6066_v51 = vmax.f32 %v6000_v48, 0.0  ;;  %v6001_v36 = vadd.f32 %v10246_v31, %v5930_v49 }
 0x481   : > { %v4976_v50 = vpop.f32.mrb[116].mxu1  ;;  %v5843_v35 = vpop.f32.mrb[116].mxu0 }
 0x482   : > { %v4978_v63 = vpop.f32.mrb[117].mxu1  ;;  %v6136_v54 = vsel %vm6079_vm2, %v6066_v51, %v6000_v48  ;;  %v6067_v57 = vmax.f32 %v6001_v36, 0.0  ;;  %v7339_v59 = vadd.f32 %v5843_v35, %v4976_v50  ;;  %v5845_v4 = vpop.f32.mrb[117].mxu0 }
 0x483   : > { %v4979_v38 = vpop.f32.mrb[118].mxu1  ;;  %v7241_v53 = vpack.c.bf16 %v6136_v54, %v6136_v54  ;;  %v5846_v62 = vpop.f32.mrb[118].mxu0 }
 0x484   : > { %v4981_v0 = vpop.f32.mrb[119].mxu1  ;;  %v6137_v42 = vsel %vm6079_vm2, %v6067_v57, %v6001_v36  ;;  %v5931_v3 = vmul.f32 %v10238_v27, %v7339_v59  ;;  %v7340_v2 = vadd.f32 %v5846_v62, %v4979_v38  ;;  %v5848_v19 = vpop.f32.mrb[119].mxu0 }
 0x485   : > { %6457 = vst.msk [vmem:[%s9903_s13 + $0xe0] sm:$0xf] %vm6400_vm3, %v7241_v53  ;;  %v7242_v47 = vpack.c.bf16 %v6137_v42, %v6137_v42 }
 0x486   : > { %v6002_v5 = vadd.f32 %v10246_v31, %v5931_v3  ;;  %v5932_v6 = vmul.f32 %v10238_v27, %v7340_v2 }
 0x487   : > { %6458 = vst.msk [vmem:[%s9903_s13 + $0xe4] sm:$0xf] %vm6400_vm3, %v7242_v47 }
 0x488   : > { %v6068_v7 = vmax.f32 %v6002_v5, 0.0  ;;  %v6003_v22 = vadd.f32 %v10246_v31, %v5932_v6 }
 0x489   : > { %v4984_v10 = vpop.f32.mrb[120].mxu1  ;;  %v5851_v9 = vpop.f32.mrb[120].mxu0 }
 0x48a   : > { %v4986_v43 = vpop.f32.mrb[121].mxu1  ;;  %v6138_v12 = vsel %vm6079_vm2, %v6068_v7, %v6002_v5  ;;  %v6069_v15 = vmax.f32 %v6003_v22, 0.0  ;;  %v7341_v13 = vadd.f32 %v5851_v9, %v4984_v10  ;;  %v5853_v17 = vpop.f32.mrb[121].mxu0 }
 0x48b   : > { %v4987_v55 = vpop.f32.mrb[122].mxu1  ;;  %v7243_v46 = vpack.c.bf16 %v6138_v12, %v6138_v12  ;;  %v5854_v18 = vpop.f32.mrb[122].mxu0 }
 0x48c   : > { %v4989_v20 = vpop.f32.mrb[123].mxu1  ;;  %v6139_v60 = vsel %vm6079_vm2, %v6069_v15, %v6003_v22  ;;  %v5933_v23 = vmul.f32 %v10238_v27, %v7341_v13  ;;  %v7342_v24 = vadd.f32 %v5854_v18, %v4987_v55  ;;  %v5856_v26 = vpop.f32.mrb[123].mxu0 }
 0x48d   : > { %6459 = vst.msk [vmem:[%s9903_s13 + $0xe8] sm:$0xf] %vm6400_vm3, %v7243_v46  ;;  %v7244_v28 = vpack.c.bf16 %v6139_v60, %v6139_v60 }
 0x48e   : > { %v6004_v58 = vadd.f32 %v10246_v31, %v5933_v23  ;;  %v5934_v29 = vmul.f32 %v10238_v27, %v7342_v24 }
 0x48f   : > { %6460 = vst.msk [vmem:[%s9903_s13 + $0xec] sm:$0xf] %vm6400_vm3, %v7244_v28 }
 0x490   : > { %v6070_v21 = vmax.f32 %v6004_v58, 0.0  ;;  %v6005_v33 = vadd.f32 %v10246_v31, %v5934_v29 }
 0x491   : > { %v4992_v61 = vpop.f32.mrb[124].mxu1  ;;  %v5859_v25 = vpop.f32.mrb[124].mxu0 }
 0x492   : > { %v4994_v8 = vpop.f32.mrb[125].mxu1  ;;  %v6140_v41 = vsel %vm6079_vm2, %v6070_v21, %v6004_v58  ;;  %v6071_v52 = vmax.f32 %v6005_v33, 0.0  ;;  %v7343_v34 = vadd.f32 %v5859_v25, %v4992_v61  ;;  %v5861_v30 = vpop.f32.mrb[125].mxu0 }
 0x493   : > { %v4995_v11 = vpop.f32.mrb[126].mxu1  ;;  %v7245_v16 = vpack.c.bf16 %v6140_v41, %v6140_v41  ;;  %v5862_v56 = vpop.f32.mrb[126].mxu0 }
 0x494   : > { %v4997_v37 = vpop.f32.mrb[127].mxu1  ;;  %v6141_v39 = vsel %vm6079_vm2, %v6071_v52, %v6005_v33  ;;  %v5935_v14 = vmul.f32 %v10238_v27, %v7343_v34  ;;  %v7344_v40 = vadd.f32 %v5862_v56, %v4995_v11  ;;  %v5864_v1 = vpop.f32.mrb[127].mxu0 }
 0x495   : > { %6461 = vst.msk [vmem:[%s9903_s13 + $0xf0] sm:$0xf] %vm6400_vm3, %v7245_v16  ;;  %v7246_v45 = vpack.c.bf16 %v6141_v39, %v6141_v39 }
 0x496   : > { %v6006_v32 = vadd.f32 %v10246_v31, %v5935_v14  ;;  %v5936_v48 = vmul.f32 %v10238_v27, %v7344_v40 }
 0x497   : > { %6462 = vst.msk [vmem:[%s9903_s13 + $0xf4] sm:$0xf] %vm6400_vm3, %v7246_v45 }
 0x498   : > { %v6072_v49 = vmax.f32 %v6006_v32, 0.0  ;;  %v6007_v51 = vadd.f32 %v10246_v31, %v5936_v48 }
 0x49a   : > { %v6142_v36 = vsel %vm6079_vm2, %v6072_v49, %v6006_v32  ;;  %v6073_v50 = vmax.f32 %v6007_v51, 0.0 }
 0x49b   : > { %v7247_v35 = vpack.c.bf16 %v6142_v36, %v6142_v36 }
 0x49c   : > { %v6143_v63 = vsel %vm6079_vm2, %v6073_v50, %v6007_v51 }
 0x49d   : > { %6463 = vst.msk [vmem:[%s9903_s13 + $0xf8] sm:$0xf] %vm6400_vm3, %v7247_v35  ;;  %v7248_v54 = vpack.c.bf16 %v6143_v63, %v6143_v63 }
 0x49f   : > { %6464 = vst.msk [vmem:[%s9903_s13 + $0xfc] sm:$0xf] %vm6400_vm3, %v7248_v54 }
 0x4a0 PF: > { %s15_s18 = sadd.s32 1, %s8799_s18  }
 0x4a1   : > { %p12_p4 = scmp.ge.s32.totalorder %s15_s18, 4  }
 0x4a3   :  { %14 = sbr.rel (!%p12_p4) target bundleno = 1 (0x1), region = 70 }

</bundles_post_ra>
